<compile_context>
chip_gen: v7x
topology: tpu7x:2x2x1
jax: 0.10.0
libtpu: 0.0.40
codegen_flags: <defaults>
</compile_context>

<pallas_src>
import math

import jax
import jax.numpy as jnp
from jax.experimental import pallas as pl
from jax.experimental.pallas import tpu as pltpu

IMG = 28 * 28          # 784
IMG_PAD = 896          # 7 * 128, lane-aligned feature width
TILE_B = 128           # batch tile (MXU-friendly on v5e/v6e/v7x)
BN_EPS = 1e-5

# (in_dim, out_dim, activation, has_batchnorm) — exact nn.Sequential order
# (Linear -> ReLU -> BatchNorm1d [-> Dropout]); Dropout = identity in eval.
LAYER_DEFS = [
    (IMG, 512, "relu", True),
    (512, 256, "relu", True),
    (256, 128, "relu", True),
    (128, 64, "relu", True),
    (64, 32, "relu", True),
    (32, 2, None, False),
    (2, 32, "relu", True),
    (32, 64, "relu", True),
    (64, 128, "relu", True),
    (128, 256, "relu", True),
    (256, 512, "relu", True),
    (512, IMG, "sigmoid", False),
]
NUM_LAYERS = len(LAYER_DEFS)


def _round_up(n, m):
    return ((n + m - 1) // m) * m


# ---------------------------------------------------------------------------
# Parameter construction (PyTorch-style init) + inference-time folding/packing
# ---------------------------------------------------------------------------
def init_raw_params(key):
    """Linear ~ U(-1/sqrt(fan_in), 1/sqrt(fan_in)); BatchNorm1d gamma=1,
    beta=0, running_mean=0, running_var=1 (eval / running-stats semantics)."""
    raw = []
    for (din, dout, _act, has_bn) in LAYER_DEFS:
        key, kw, kb = jax.random.split(key, 3)
        bound = 1.0 / math.sqrt(din)
        layer = {
            "w": jax.random.uniform(kw, (din, dout), jnp.float32, -bound, bound),
            "b": jax.random.uniform(kb, (dout,), jnp.float32, -bound, bound),
        }
        if has_bn:
            layer["gamma"] = jnp.ones((dout,), jnp.float32)
            layer["beta"] = jnp.zeros((dout,), jnp.float32)
            layer["mean"] = jnp.zeros((dout,), jnp.float32)
            layer["var"] = jnp.ones((dout,), jnp.float32)
        raw.append(layer)
    return raw


def fold_and_pack_params(raw):
    """Fold each post-ReLU BatchNorm (inference scale/shift) into the NEXT
    Linear (exact in eval mode since the ops in between are identity), pad the
    784 feature dim to 896 at the model edges, cast weights to bf16 and pack
    all biases into one lane-aligned f32 array."""
    weights, biases = [], []
    pend_scale = pend_shift = None
    for i, ((din, dout, _act, has_bn), layer) in enumerate(zip(LAYER_DEFS, raw)):
        w0, b = layer["w"], layer["b"]
        if pend_scale is not None:
            w = pend_scale[:, None] * w0            # row-scale by previous BN scale
            b = b + pend_shift @ w0                 # shift pushed through the Linear
        else:
            w = w0
        if has_bn:
            scale = layer["gamma"] / jnp.sqrt(layer["var"] + BN_EPS)
            shift = layer["beta"] - layer["mean"] * scale
            pend_scale, pend_shift = scale, shift
        else:
            pend_scale = pend_shift = None

        if i == 0:                                  # zero-pad input features 784 -> 896
            w = jnp.pad(w, ((0, IMG_PAD - din), (0, 0)))
        if i == NUM_LAYERS - 1:                     # zero-pad output features 784 -> 896
            w = jnp.pad(w, ((0, 0), (0, IMG_PAD - dout)))
            b = jnp.pad(b, (0, IMG_PAD - dout))

        weights.append(w.astype(jnp.bfloat16))
        biases.append(b.astype(jnp.float32))

    offsets, cur = [], 0
    for b in biases:
        offsets.append(cur)
        cur += _round_up(b.shape[0], 128)
    packed = jnp.zeros((1, cur), jnp.float32)
    for off, b in zip(offsets, biases):
        packed = packed.at[0, off:off + b.shape[0]].set(b)
    return weights, packed, tuple(offsets)


# ---------------------------------------------------------------------------
# Pallas kernel
# ---------------------------------------------------------------------------
def _make_kernel(layer_meta):
    """layer_meta: tuple of (activation, bias_offset, out_width) per layer."""

    def kernel(*refs):
        x_ref = refs[0]
        w_refs = refs[1:1 + NUM_LAYERS]
        bias_ref = refs[1 + NUM_LAYERS]
        out_ref = refs[2 + NUM_LAYERS]

        h = x_ref[...]                                       # (TILE_B, 896) f32
        for li, (act, off, width) in enumerate(layer_meta):
            w = w_refs[li][...]                              # bf16 weights (VMEM-resident)
            b = bias_ref[:, off:off + width]                 # (1, width) f32
            acc = jnp.dot(h.astype(jnp.bfloat16), w,
                          preferred_element_type=jnp.float32) + b
            if act == "relu":
                h = jnp.maximum(acc, 0.0)
            elif act == "sigmoid":
                h = jax.nn.sigmoid(acc)
            else:
                h = acc
        out_ref[...] = h                                     # lane-dense (TILE_B, 896)

    return kernel


def autoencoder_forward(x, weights, bias_packed, bias_offsets):
    B = x.shape[0]
    x_flat = x.reshape(B, IMG).astype(jnp.float32)

    n_tiles = pl.cdiv(B, TILE_B)
    b_pad = n_tiles * TILE_B
    x_pad = jnp.zeros((b_pad, IMG_PAD), jnp.float32).at[:B, :IMG].set(x_flat)

    layer_meta = tuple(
        (act, off, int(w.shape[1]))
        for (_din, _dout, act, _bn), off, w in zip(LAYER_DEFS, bias_offsets, weights)
    )
    kernel = _make_kernel(layer_meta)

    in_specs = [pl.BlockSpec((TILE_B, IMG_PAD), lambda i: (i, 0))]        # activations: tiled over batch
    in_specs += [pl.BlockSpec(tuple(w.shape), lambda i: (0, 0)) for w in weights]   # weights: resident
    in_specs += [pl.BlockSpec(tuple(bias_packed.shape), lambda i: (0, 0))]          # packed biases: resident

    out = pl.pallas_call(
        kernel,
        out_shape=jax.ShapeDtypeStruct((b_pad, IMG_PAD), jnp.float32),
        grid=(n_tiles,),
        in_specs=in_specs,
        out_specs=pl.BlockSpec((TILE_B, IMG_PAD), lambda i: (i, 0)),
        compiler_params=pltpu.CompilerParams(
            dimension_semantics=("parallel",),
        ),
    )(x_pad, *weights, bias_packed)

    return out[:B, :IMG].reshape(B, 1, 28, 28)


# ---------------------------------------------------------------------------
# Pure-JAX references for correctness checking
# ---------------------------------------------------------------------------
def reference_original(x, raw):
    """Original (unfolded, f32) eval-mode forward — mirrors the PyTorch module."""
    B = x.shape[0]
    h = x.reshape(B, IMG).astype(jnp.float32)
    for (_din, _dout, act, has_bn), layer in zip(LAYER_DEFS, raw):
        h = h @ layer["w"] + layer["b"]
        if act == "relu":
            h = jnp.maximum(h, 0.0)
        elif act == "sigmoid":
            h = jax.nn.sigmoid(h)
        if has_bn:
            scale = layer["gamma"] / jnp.sqrt(layer["var"] + BN_EPS)
            shift = layer["beta"] - layer["mean"] * scale
            h = h * scale + shift
    return h.reshape(B, 1, 28, 28)


def reference_folded(x, weights, bias_packed, offsets):
    """Mirrors the kernel math exactly (folded BN, bf16 weights, f32 accum)."""
    B = x.shape[0]
    h = jnp.zeros((B, IMG_PAD), jnp.float32).at[:, :IMG].set(
        x.reshape(B, IMG).astype(jnp.float32))
    for (_din, _dout, act, _bn), w, off in zip(LAYER_DEFS, weights, offsets):
        width = w.shape[1]
        b = bias_packed[0, off:off + width]
        h = jnp.dot(h.astype(jnp.bfloat16), w,
                    preferred_element_type=jnp.float32) + b
        if act == "relu":
            h = jnp.maximum(h, 0.0)
        elif act == "sigmoid":
            h = jax.nn.sigmoid(h)
    return h[:, :IMG].reshape(B, 1, 28, 28)


if __name__ == "__main__":
    key = jax.random.PRNGKey(0)
    key_x, key_p = jax.random.split(key)

    # small MNIST-like batch: [B, 1, 28, 28]
    x = jax.random.uniform(key_x, (2, 1, 28, 28), jnp.float32)

    raw = init_raw_params(key_p)
    weights, bias_packed, bias_offsets = fold_and_pack_params(raw)

    out = autoencoder_forward(x, weights, bias_packed, bias_offsets)
    out = jax.block_until_ready(out)
    assert out.shape == (2, 1, 28, 28)

    # Exact-math check against a pure-JAX mirror of the kernel (same folded bf16 params).
    ref_f = reference_folded(x, weights, bias_packed, bias_offsets)
    assert jnp.allclose(out, ref_f, atol=2e-3, rtol=2e-3), float(jnp.max(jnp.abs(out - ref_f)))

    # Semantics check against the original f32, unfolded eval-mode model
    # (looser tolerance: bf16 weights slightly change numerics).
    ref_o = reference_original(x, raw)
    assert jnp.allclose(out, ref_o, atol=3e-2, rtol=3e-2), float(jnp.max(jnp.abs(out - ref_o)))

    print("KERNEL_OK")
</pallas_src>

<mosaic_0001>
module attributes {stable_mosaic.version = 11 : i64} {
  func.func @kernel(%arg0: i32, %arg1: memref<128x896xf32, #tpu.memory_space<vmem>>, %arg2: memref<896x512xbf16, #tpu.memory_space<vmem>>, %arg3: memref<512x256xbf16, #tpu.memory_space<vmem>>, %arg4: memref<256x128xbf16, #tpu.memory_space<vmem>>, %arg5: memref<128x64xbf16, #tpu.memory_space<vmem>>, %arg6: memref<64x32xbf16, #tpu.memory_space<vmem>>, %arg7: memref<32x2xbf16, #tpu.memory_space<vmem>>, %arg8: memref<2x32xbf16, #tpu.memory_space<vmem>>, %arg9: memref<32x64xbf16, #tpu.memory_space<vmem>>, %arg10: memref<64x128xbf16, #tpu.memory_space<vmem>>, %arg11: memref<128x256xbf16, #tpu.memory_space<vmem>>, %arg12: memref<256x512xbf16, #tpu.memory_space<vmem>>, %arg13: memref<512x896xbf16, #tpu.memory_space<vmem>>, %arg14: memref<1x3328xf32, #tpu.memory_space<vmem>>, %arg15: memref<128x896xf32, #tpu.memory_space<vmem>>) attributes {dimension_semantics = [#tpu.dimension_semantics<parallel>], iteration_bounds = array<i64: 1>, scalar_prefetch = 0 : i64, scratch_operands = 0 : i64, tpu.core_type = #tpu.core_type<tc>, window_params = [{transform_indices = @transform_0, window_bounds = array<i64: 128, 896>}, {pipeline_mode = #tpu.pipeline_mode<synchronous>, transform_indices = @transform_1, window_bounds = array<i64: 896, 512>}, {pipeline_mode = #tpu.pipeline_mode<synchronous>, transform_indices = @transform_2, window_bounds = array<i64: 512, 256>}, {pipeline_mode = #tpu.pipeline_mode<synchronous>, transform_indices = @transform_3, window_bounds = array<i64: 256, 128>}, {pipeline_mode = #tpu.pipeline_mode<synchronous>, transform_indices = @transform_4, window_bounds = array<i64: 128, 64>}, {pipeline_mode = #tpu.pipeline_mode<synchronous>, transform_indices = @transform_5, window_bounds = array<i64: 64, 32>}, {pipeline_mode = #tpu.pipeline_mode<synchronous>, transform_indices = @transform_6, window_bounds = array<i64: 32, 2>}, {pipeline_mode = #tpu.pipeline_mode<synchronous>, transform_indices = @transform_7, window_bounds = array<i64: 2, 32>}, {pipeline_mode = #tpu.pipeline_mode<synchronous>, transform_indices = @transform_8, window_bounds = array<i64: 32, 64>}, {pipeline_mode = #tpu.pipeline_mode<synchronous>, transform_indices = @transform_9, window_bounds = array<i64: 64, 128>}, {pipeline_mode = #tpu.pipeline_mode<synchronous>, transform_indices = @transform_10, window_bounds = array<i64: 128, 256>}, {pipeline_mode = #tpu.pipeline_mode<synchronous>, transform_indices = @transform_11, window_bounds = array<i64: 256, 512>}, {pipeline_mode = #tpu.pipeline_mode<synchronous>, transform_indices = @transform_12, window_bounds = array<i64: 512, 896>}, {pipeline_mode = #tpu.pipeline_mode<synchronous>, transform_indices = @transform_13, window_bounds = array<i64: 1, 3328>}, {transform_indices = @transform_14, window_bounds = array<i64: 128, 896>}]} {
    %c0 = arith.constant 0 : index
    %c0_0 = arith.constant 0 : index
    %0 = vector.load %arg1[%c0, %c0_0] : memref<128x896xf32, #tpu.memory_space<vmem>>, vector<128x896xf32>
    %c0_1 = arith.constant 0 : index
    %c0_2 = arith.constant 0 : index
    %1 = vector.load %arg2[%c0_1, %c0_2] : memref<896x512xbf16, #tpu.memory_space<vmem>>, vector<896x512xbf16>
    %c0_3 = arith.constant 0 : index
    %c0_4 = arith.constant 0 : index
    %2 = vector.load %arg14[%c0_3, %c0_4] : memref<1x3328xf32, #tpu.memory_space<vmem>>, vector<1x512xf32>
    %3 = arith.truncf %0 : vector<128x896xf32> to vector<128x896xbf16>
    %cst = arith.constant dense<0.000000e+00> : vector<128x512xf32>
    %4 = tpu.matmul %3, %1, %cst {dimension_numbers = #tpu.dot_dimension_numbers<[1], [0], [0], [1], [0, 0, 1, 1], [], []>} : vector<128x896xbf16>, vector<896x512xbf16>, vector<128x512xf32> -> vector<128x512xf32>
    %5 = vector.broadcast %2 : vector<1x512xf32> to vector<128x512xf32>
    %6 = arith.addf %4, %5 : vector<128x512xf32>
    %cst_5 = arith.constant 0.000000e+00 : f32
    %7 = vector.broadcast %cst_5 : f32 to vector<128x512xf32>
    %8 = arith.maximumf %6, %7 : vector<128x512xf32>
    %c0_6 = arith.constant 0 : index
    %c0_7 = arith.constant 0 : index
    %9 = vector.load %arg3[%c0_6, %c0_7] : memref<512x256xbf16, #tpu.memory_space<vmem>>, vector<512x256xbf16>
    %c0_8 = arith.constant 0 : index
    %c512 = arith.constant 512 : index
    %10 = vector.load %arg14[%c0_8, %c512] : memref<1x3328xf32, #tpu.memory_space<vmem>>, vector<1x256xf32>
    %11 = arith.truncf %8 : vector<128x512xf32> to vector<128x512xbf16>
    %cst_9 = arith.constant dense<0.000000e+00> : vector<128x256xf32>
    %12 = tpu.matmul %11, %9, %cst_9 {dimension_numbers = #tpu.dot_dimension_numbers<[1], [0], [0], [1], [0, 0, 1, 1], [], []>} : vector<128x512xbf16>, vector<512x256xbf16>, vector<128x256xf32> -> vector<128x256xf32>
    %13 = vector.broadcast %10 : vector<1x256xf32> to vector<128x256xf32>
    %14 = arith.addf %12, %13 : vector<128x256xf32>
    %cst_10 = arith.constant 0.000000e+00 : f32
    %15 = vector.broadcast %cst_10 : f32 to vector<128x256xf32>
    %16 = arith.maximumf %14, %15 : vector<128x256xf32>
    %c0_11 = arith.constant 0 : index
    %c0_12 = arith.constant 0 : index
    %17 = vector.load %arg4[%c0_11, %c0_12] : memref<256x128xbf16, #tpu.memory_space<vmem>>, vector<256x128xbf16>
    %c0_13 = arith.constant 0 : index
    %c768 = arith.constant 768 : index
    %18 = vector.load %arg14[%c0_13, %c768] : memref<1x3328xf32, #tpu.memory_space<vmem>>, vector<1x128xf32>
    %19 = arith.truncf %16 : vector<128x256xf32> to vector<128x256xbf16>
    %cst_14 = arith.constant dense<0.000000e+00> : vector<128x128xf32>
    %20 = tpu.matmul %19, %17, %cst_14 {dimension_numbers = #tpu.dot_dimension_numbers<[1], [0], [0], [1], [0, 0, 1, 1], [], []>} : vector<128x256xbf16>, vector<256x128xbf16>, vector<128x128xf32> -> vector<128x128xf32>
    %21 = vector.broadcast %18 : vector<1x128xf32> to vector<128x128xf32>
    %22 = arith.addf %20, %21 : vector<128x128xf32>
    %cst_15 = arith.constant 0.000000e+00 : f32
    %23 = vector.broadcast %cst_15 : f32 to vector<128x128xf32>
    %24 = arith.maximumf %22, %23 : vector<128x128xf32>
    %c0_16 = arith.constant 0 : index
    %c0_17 = arith.constant 0 : index
    %25 = vector.load %arg5[%c0_16, %c0_17] : memref<128x64xbf16, #tpu.memory_space<vmem>>, vector<128x64xbf16>
    %c0_18 = arith.constant 0 : index
    %c896 = arith.constant 896 : index
    %26 = vector.load %arg14[%c0_18, %c896] : memref<1x3328xf32, #tpu.memory_space<vmem>>, vector<1x64xf32>
    %27 = arith.truncf %24 : vector<128x128xf32> to vector<128x128xbf16>
    %cst_19 = arith.constant dense<0.000000e+00> : vector<128x64xf32>
    %28 = tpu.matmul %27, %25, %cst_19 {dimension_numbers = #tpu.dot_dimension_numbers<[1], [0], [0], [1], [0, 0, 1, 1], [], []>} : vector<128x128xbf16>, vector<128x64xbf16>, vector<128x64xf32> -> vector<128x64xf32>
    %29 = vector.broadcast %26 : vector<1x64xf32> to vector<128x64xf32>
    %30 = arith.addf %28, %29 : vector<128x64xf32>
    %cst_20 = arith.constant 0.000000e+00 : f32
    %31 = vector.broadcast %cst_20 : f32 to vector<128x64xf32>
    %32 = arith.maximumf %30, %31 : vector<128x64xf32>
    %c0_21 = arith.constant 0 : index
    %c0_22 = arith.constant 0 : index
    %33 = vector.load %arg6[%c0_21, %c0_22] : memref<64x32xbf16, #tpu.memory_space<vmem>>, vector<64x32xbf16>
    %c0_23 = arith.constant 0 : index
    %c1024 = arith.constant 1024 : index
    %34 = vector.load %arg14[%c0_23, %c1024] : memref<1x3328xf32, #tpu.memory_space<vmem>>, vector<1x32xf32>
    %35 = arith.truncf %32 : vector<128x64xf32> to vector<128x64xbf16>
    %cst_24 = arith.constant dense<0.000000e+00> : vector<128x32xf32>
    %36 = tpu.matmul %35, %33, %cst_24 {dimension_numbers = #tpu.dot_dimension_numbers<[1], [0], [0], [1], [0, 0, 1, 1], [], []>} : vector<128x64xbf16>, vector<64x32xbf16>, vector<128x32xf32> -> vector<128x32xf32>
    %37 = vector.broadcast %34 : vector<1x32xf32> to vector<128x32xf32>
    %38 = arith.addf %36, %37 : vector<128x32xf32>
    %cst_25 = arith.constant 0.000000e+00 : f32
    %39 = vector.broadcast %cst_25 : f32 to vector<128x32xf32>
    %40 = arith.maximumf %38, %39 : vector<128x32xf32>
    %c0_26 = arith.constant 0 : index
    %c0_27 = arith.constant 0 : index
    %41 = vector.load %arg7[%c0_26, %c0_27] : memref<32x2xbf16, #tpu.memory_space<vmem>>, vector<32x2xbf16>
    %c0_28 = arith.constant 0 : index
    %c1152 = arith.constant 1152 : index
    %42 = vector.load %arg14[%c0_28, %c1152] : memref<1x3328xf32, #tpu.memory_space<vmem>>, vector<1x2xf32>
    %43 = arith.truncf %40 : vector<128x32xf32> to vector<128x32xbf16>
    %cst_29 = arith.constant dense<0.000000e+00> : vector<128x2xf32>
    %44 = tpu.matmul %43, %41, %cst_29 {dimension_numbers = #tpu.dot_dimension_numbers<[1], [0], [0], [1], [0, 0, 1, 1], [], []>} : vector<128x32xbf16>, vector<32x2xbf16>, vector<128x2xf32> -> vector<128x2xf32>
    %45 = vector.broadcast %42 : vector<1x2xf32> to vector<128x2xf32>
    %46 = arith.addf %44, %45 : vector<128x2xf32>
    %c0_30 = arith.constant 0 : index
    %c0_31 = arith.constant 0 : index
    %47 = vector.load %arg8[%c0_30, %c0_31] : memref<2x32xbf16, #tpu.memory_space<vmem>>, vector<2x32xbf16>
    %c0_32 = arith.constant 0 : index
    %c1280 = arith.constant 1280 : index
    %48 = vector.load %arg14[%c0_32, %c1280] : memref<1x3328xf32, #tpu.memory_space<vmem>>, vector<1x32xf32>
    %49 = arith.truncf %46 : vector<128x2xf32> to vector<128x2xbf16>
    %cst_33 = arith.constant dense<0.000000e+00> : vector<128x32xf32>
    %50 = tpu.matmul %49, %47, %cst_33 {dimension_numbers = #tpu.dot_dimension_numbers<[1], [0], [0], [1], [0, 0, 1, 1], [], []>} : vector<128x2xbf16>, vector<2x32xbf16>, vector<128x32xf32> -> vector<128x32xf32>
    %51 = vector.broadcast %48 : vector<1x32xf32> to vector<128x32xf32>
    %52 = arith.addf %50, %51 : vector<128x32xf32>
    %cst_34 = arith.constant 0.000000e+00 : f32
    %53 = vector.broadcast %cst_34 : f32 to vector<128x32xf32>
    %54 = arith.maximumf %52, %53 : vector<128x32xf32>
    %c0_35 = arith.constant 0 : index
    %c0_36 = arith.constant 0 : index
    %55 = vector.load %arg9[%c0_35, %c0_36] : memref<32x64xbf16, #tpu.memory_space<vmem>>, vector<32x64xbf16>
    %c0_37 = arith.constant 0 : index
    %c1408 = arith.constant 1408 : index
    %56 = vector.load %arg14[%c0_37, %c1408] : memref<1x3328xf32, #tpu.memory_space<vmem>>, vector<1x64xf32>
    %57 = arith.truncf %54 : vector<128x32xf32> to vector<128x32xbf16>
    %cst_38 = arith.constant dense<0.000000e+00> : vector<128x64xf32>
    %58 = tpu.matmul %57, %55, %cst_38 {dimension_numbers = #tpu.dot_dimension_numbers<[1], [0], [0], [1], [0, 0, 1, 1], [], []>} : vector<128x32xbf16>, vector<32x64xbf16>, vector<128x64xf32> -> vector<128x64xf32>
    %59 = vector.broadcast %56 : vector<1x64xf32> to vector<128x64xf32>
    %60 = arith.addf %58, %59 : vector<128x64xf32>
    %cst_39 = arith.constant 0.000000e+00 : f32
    %61 = vector.broadcast %cst_39 : f32 to vector<128x64xf32>
    %62 = arith.maximumf %60, %61 : vector<128x64xf32>
    %c0_40 = arith.constant 0 : index
    %c0_41 = arith.constant 0 : index
    %63 = vector.load %arg10[%c0_40, %c0_41] : memref<64x128xbf16, #tpu.memory_space<vmem>>, vector<64x128xbf16>
    %c0_42 = arith.constant 0 : index
    %c1536 = arith.constant 1536 : index
    %64 = vector.load %arg14[%c0_42, %c1536] : memref<1x3328xf32, #tpu.memory_space<vmem>>, vector<1x128xf32>
    %65 = arith.truncf %62 : vector<128x64xf32> to vector<128x64xbf16>
    %cst_43 = arith.constant dense<0.000000e+00> : vector<128x128xf32>
    %66 = tpu.matmul %65, %63, %cst_43 {dimension_numbers = #tpu.dot_dimension_numbers<[1], [0], [0], [1], [0, 0, 1, 1], [], []>} : vector<128x64xbf16>, vector<64x128xbf16>, vector<128x128xf32> -> vector<128x128xf32>
    %67 = vector.broadcast %64 : vector<1x128xf32> to vector<128x128xf32>
    %68 = arith.addf %66, %67 : vector<128x128xf32>
    %cst_44 = arith.constant 0.000000e+00 : f32
    %69 = vector.broadcast %cst_44 : f32 to vector<128x128xf32>
    %70 = arith.maximumf %68, %69 : vector<128x128xf32>
    %c0_45 = arith.constant 0 : index
    %c0_46 = arith.constant 0 : index
    %71 = vector.load %arg11[%c0_45, %c0_46] : memref<128x256xbf16, #tpu.memory_space<vmem>>, vector<128x256xbf16>
    %c0_47 = arith.constant 0 : index
    %c1664 = arith.constant 1664 : index
    %72 = vector.load %arg14[%c0_47, %c1664] : memref<1x3328xf32, #tpu.memory_space<vmem>>, vector<1x256xf32>
    %73 = arith.truncf %70 : vector<128x128xf32> to vector<128x128xbf16>
    %cst_48 = arith.constant dense<0.000000e+00> : vector<128x256xf32>
    %74 = tpu.matmul %73, %71, %cst_48 {dimension_numbers = #tpu.dot_dimension_numbers<[1], [0], [0], [1], [0, 0, 1, 1], [], []>} : vector<128x128xbf16>, vector<128x256xbf16>, vector<128x256xf32> -> vector<128x256xf32>
    %75 = vector.broadcast %72 : vector<1x256xf32> to vector<128x256xf32>
    %76 = arith.addf %74, %75 : vector<128x256xf32>
    %cst_49 = arith.constant 0.000000e+00 : f32
    %77 = vector.broadcast %cst_49 : f32 to vector<128x256xf32>
    %78 = arith.maximumf %76, %77 : vector<128x256xf32>
    %c0_50 = arith.constant 0 : index
    %c0_51 = arith.constant 0 : index
    %79 = vector.load %arg12[%c0_50, %c0_51] : memref<256x512xbf16, #tpu.memory_space<vmem>>, vector<256x512xbf16>
    %c0_52 = arith.constant 0 : index
    %c1920 = arith.constant 1920 : index
    %80 = vector.load %arg14[%c0_52, %c1920] : memref<1x3328xf32, #tpu.memory_space<vmem>>, vector<1x512xf32>
    %81 = arith.truncf %78 : vector<128x256xf32> to vector<128x256xbf16>
    %cst_53 = arith.constant dense<0.000000e+00> : vector<128x512xf32>
    %82 = tpu.matmul %81, %79, %cst_53 {dimension_numbers = #tpu.dot_dimension_numbers<[1], [0], [0], [1], [0, 0, 1, 1], [], []>} : vector<128x256xbf16>, vector<256x512xbf16>, vector<128x512xf32> -> vector<128x512xf32>
    %83 = vector.broadcast %80 : vector<1x512xf32> to vector<128x512xf32>
    %84 = arith.addf %82, %83 : vector<128x512xf32>
    %cst_54 = arith.constant 0.000000e+00 : f32
    %85 = vector.broadcast %cst_54 : f32 to vector<128x512xf32>
    %86 = arith.maximumf %84, %85 : vector<128x512xf32>
    %c0_55 = arith.constant 0 : index
    %c0_56 = arith.constant 0 : index
    %87 = vector.load %arg13[%c0_55, %c0_56] : memref<512x896xbf16, #tpu.memory_space<vmem>>, vector<512x896xbf16>
    %c0_57 = arith.constant 0 : index
    %c2432 = arith.constant 2432 : index
    %88 = vector.load %arg14[%c0_57, %c2432] : memref<1x3328xf32, #tpu.memory_space<vmem>>, vector<1x896xf32>
    %89 = arith.truncf %86 : vector<128x512xf32> to vector<128x512xbf16>
    %cst_58 = arith.constant dense<0.000000e+00> : vector<128x896xf32>
    %90 = tpu.matmul %89, %87, %cst_58 {dimension_numbers = #tpu.dot_dimension_numbers<[1], [0], [0], [1], [0, 0, 1, 1], [], []>} : vector<128x512xbf16>, vector<512x896xbf16>, vector<128x896xf32> -> vector<128x896xf32>
    %91 = vector.broadcast %88 : vector<1x896xf32> to vector<128x896xf32>
    %92 = arith.addf %90, %91 : vector<128x896xf32>
    %93 = arith.negf %92 : vector<128x896xf32>
    %94 = math.exp %93 : vector<128x896xf32>
    %cst_59 = arith.constant 1.000000e+00 : f32
    %95 = vector.broadcast %cst_59 : f32 to vector<128x896xf32>
    %96 = arith.addf %95, %94 : vector<128x896xf32>
    %97 = arith.divf %95, %96 : vector<128x896xf32>
    %c0_60 = arith.constant 0 : index
    %c0_61 = arith.constant 0 : index
    %98 = vector.load %arg15[%c0_60, %c0_61] : memref<128x896xf32, #tpu.memory_space<vmem>>, vector<128x896xf32>
    tpu.vector_store %arg15[%c0_60, %c0_61], %97 {strides = array<i32>} : memref<128x896xf32, #tpu.memory_space<vmem>>, vector<128x896xf32>,
    return
  }
  func.func @transform_0(%arg0: i32) -> (i32, i32) {
    %c0_i32 = arith.constant 0 : i32
    %c0_i32_0 = arith.constant 0 : i32
    return %arg0, %c0_i32 : i32, i32
  }
  func.func @transform_1(%arg0: i32) -> (i32, i32) {
    %c0_i32 = arith.constant 0 : i32
    %c0_i32_0 = arith.constant 0 : i32
    %c0_i32_1 = arith.constant 0 : i32
    return %c0_i32, %c0_i32_0 : i32, i32
  }
  func.func @transform_2(%arg0: i32) -> (i32, i32) {
    %c0_i32 = arith.constant 0 : i32
    %c0_i32_0 = arith.constant 0 : i32
    %c0_i32_1 = arith.constant 0 : i32
    return %c0_i32, %c0_i32_0 : i32, i32
  }
  func.func @transform_3(%arg0: i32) -> (i32, i32) {
    %c0_i32 = arith.constant 0 : i32
    %c0_i32_0 = arith.constant 0 : i32
    %c0_i32_1 = arith.constant 0 : i32
    return %c0_i32, %c0_i32_0 : i32, i32
  }
  func.func @transform_4(%arg0: i32) -> (i32, i32) {
    %c0_i32 = arith.constant 0 : i32
    %c0_i32_0 = arith.constant 0 : i32
    %c0_i32_1 = arith.constant 0 : i32
    return %c0_i32, %c0_i32_0 : i32, i32
  }
  func.func @transform_5(%arg0: i32) -> (i32, i32) {
    %c0_i32 = arith.constant 0 : i32
    %c0_i32_0 = arith.constant 0 : i32
    %c0_i32_1 = arith.constant 0 : i32
    return %c0_i32, %c0_i32_0 : i32, i32
  }
  func.func @transform_6(%arg0: i32) -> (i32, i32) {
    %c0_i32 = arith.constant 0 : i32
    %c0_i32_0 = arith.constant 0 : i32
    %c0_i32_1 = arith.constant 0 : i32
    return %c0_i32, %c0_i32_0 : i32, i32
  }
  func.func @transform_7(%arg0: i32) -> (i32, i32) {
    %c0_i32 = arith.constant 0 : i32
    %c0_i32_0 = arith.constant 0 : i32
    %c0_i32_1 = arith.constant 0 : i32
    return %c0_i32, %c0_i32_0 : i32, i32
  }
  func.func @transform_8(%arg0: i32) -> (i32, i32) {
    %c0_i32 = arith.constant 0 : i32
    %c0_i32_0 = arith.constant 0 : i32
    %c0_i32_1 = arith.constant 0 : i32
    return %c0_i32, %c0_i32_0 : i32, i32
  }
  func.func @transform_9(%arg0: i32) -> (i32, i32) {
    %c0_i32 = arith.constant 0 : i32
    %c0_i32_0 = arith.constant 0 : i32
    %c0_i32_1 = arith.constant 0 : i32
    return %c0_i32, %c0_i32_0 : i32, i32
  }
  func.func @transform_10(%arg0: i32) -> (i32, i32) {
    %c0_i32 = arith.constant 0 : i32
    %c0_i32_0 = arith.constant 0 : i32
    %c0_i32_1 = arith.constant 0 : i32
    return %c0_i32, %c0_i32_0 : i32, i32
  }
  func.func @transform_11(%arg0: i32) -> (i32, i32) {
    %c0_i32 = arith.constant 0 : i32
    %c0_i32_0 = arith.constant 0 : i32
    %c0_i32_1 = arith.constant 0 : i32
    return %c0_i32, %c0_i32_0 : i32, i32
  }
  func.func @transform_12(%arg0: i32) -> (i32, i32) {
    %c0_i32 = arith.constant 0 : i32
    %c0_i32_0 = arith.constant 0 : i32
    %c0_i32_1 = arith.constant 0 : i32
    return %c0_i32, %c0_i32_0 : i32, i32
  }
  func.func @transform_13(%arg0: i32) -> (i32, i32) {
    %c0_i32 = arith.constant 0 : i32
    %c0_i32_0 = arith.constant 0 : i32
    %c0_i32_1 = arith.constant 0 : i32
    return %c0_i32, %c0_i32_0 : i32, i32
  }
  func.func @transform_14(%arg0: i32) -> (i32, i32) {
    %c0_i32 = arith.constant 0 : i32
    %c0_i32_0 = arith.constant 0 : i32
    return %arg0, %c0_i32 : i32, i32
  }
}

</mosaic_0001>

<bundles_post_ra>
// kernel: tpu_custom_call.1
= control target key start
LH: loop header
LB: loop body
LE: loop exit
PB: predicated region body
PF: predicated region fallthrough
CT: control target
= control target key end

     0   :  { %19 = vsyncpa [#allocation3], 0  ;;  %s13320_s0 = inlined_call_operand.hbm [shape: f32[128,896], index: 0, kind: input, shape index: {}]   ;;  %s13321_s1 = inlined_call_operand.hbm [shape: bf16[896,512], index: 1, kind: input, shape index: {}]   ;;  %s13322_s2 = inlined_call_operand.hbm [shape: bf16[512,256], index: 2, kind: input, shape index: {}]   ;;  %s13323_s3 = inlined_call_operand.vmem [shape: bf16[256,128], index: 3, kind: input, shape index: {}]   ;;  %s13324_s4 = inlined_call_operand.vmem [shape: bf16[128,64], index: 4, kind: input, shape index: {}]   ;;  %s13325_s5 = inlined_call_operand.vmem [shape: bf16[64,32], index: 5, kind: input, shape index: {}]   ;;  %s13326_s6 = inlined_call_operand.vmem [shape: bf16[32,2], index: 6, kind: input, shape index: {}]   ;;  %s13327_s7 = inlined_call_operand.vmem [shape: bf16[2,32], index: 7, kind: input, shape index: {}]   ;;  %s13328_s8 = inlined_call_operand.hbm [shape: bf16[32,64], index: 8, kind: input, shape index: {}]   ;;  %s13329_s9 = inlined_call_operand.vmem [shape: bf16[64,128], index: 9, kind: input, shape index: {}]   ;;  %s13330_s10 = inlined_call_operand.hbm [shape: bf16[128,256], index: 10, kind: input, shape index: {}]   ;;  %s13331_s11 = inlined_call_operand.hbm [shape: bf16[256,512], index: 11, kind: input, shape index: {}]   ;;  %s13332_s12 = inlined_call_operand.hbm [shape: bf16[512,896], index: 12, kind: input, shape index: {}]   ;;  %s13333_s13 = inlined_call_operand.vmem [shape: f32[1,3328], index: 13, kind: input, shape index: {}]   ;;  %s13334_s14 = inlined_call_operand.hbm [shape: f32[128,896], index: 14, kind: output, shape index: {}]  }
   0x1   :  { %20 = vsyncpa [#allocation6], 0 }
   0x2   :  { %21 = vsyncpa [#allocation9], 0 }
   0x3   :  { %22 = vsyncpa [#allocation12], 0 }
   0x4   :  { %23 = vsyncpa [#allocation4], 0  ;;  %s12027_s29 = smov [#allocation5]   ;;  %s11841_s17 = scalar_lea.hbm %s13321_s1, 28672 }
   0x5   :  { %s41_s30 = sshll.u32 %s12027_s29, 4  ;;  %p11842_p0 = scmp.ne.s32.totalorder %s13321_s1, %s11841_s17  ;;  %s42_s30 = int_to_ptr.vmem [resolvable:$true] %s41_s30 }
   0x6   :  { %p11845_p1 = scmp.lt.u32.totalorder %s11841_s17, %s13321_s1 }
   0x8   :  { %p11847_p2 = pnand %p11845_p1, %p11842_p0 }
   0xa   :  { %11850 = shalt.err (!%p11847_p2)
}
   0xb   :  { %s11851_s22 = scalar_lea.vmem %s42_s30, 28672  ;;  %p11856_p4 = scmp.lt.s32.totalorder %s42_s30, %s42_s30 }
   0xc   :  { %p11852_p3 = scmp.ne.s32.totalorder %s42_s30, %s11851_s22  ;;  %p11857_p5 = scmp.lt.s32.totalorder %s11851_s22, %s11851_s22 }
   0xe   :  { %p11858_p6 = por %p11857_p5, %p11856_p4 }
  0x10   :  { %p11859_p7 = pnand %p11858_p6, %p11852_p3 }
  0x12   :  { %11862 = shalt.err (!%p11859_p7)
}
  0x13   :  { %s13335_s23 = smov 256   ;;  %s12029_s24 = smov 16  }
  0x14   :  { %47 = dma.hbm_to_vmem [thread:$0]  %s13321_s1, 28672, %s42_s30, [#allocation6], %s13335_s23, %s13335_s23, %s12029_s24  }
  0x15   :  { %s12030_s27 = smov [#allocation8]   ;;  %s11863_s16 = scalar_lea.hbm %s13328_s8, 256 }
  0x16   :  { %s75_s28 = sshll.u32 %s12030_s27, 4  ;;  %p11864_p8 = scmp.ne.s32.totalorder %s13328_s8, %s11863_s16  ;;  %s76_s28 = int_to_ptr.vmem [resolvable:$true] %s75_s28 }
  0x17   :  { %p11867_p9 = scmp.lt.u32.totalorder %s11863_s16, %s13328_s8 }
  0x19   :  { %p11869_p10 = pnand %p11867_p9, %p11864_p8 }
  0x1b   :  { %11872 = shalt.err (!%p11869_p10)
}
  0x1c   :  { %s11873_s21 = scalar_lea.vmem %s76_s28, 256  ;;  %p11878_p12 = scmp.lt.s32.totalorder %s76_s28, %s76_s28 }
  0x1d   :  { %p11874_p11 = scmp.ne.s32.totalorder %s76_s28, %s11873_s21  ;;  %p11879_p13 = scmp.lt.s32.totalorder %s11873_s21, %s11873_s21 }
  0x1f   :  { %p11880_p0 = por %p11879_p13, %p11878_p12 }
  0x21   :  { %p11881_p1 = pnand %p11880_p0, %p11874_p11 }
  0x23   :  { %11884 = shalt.err (!%p11881_p1)
}
  0x24   :  { %s12031_s1 = smov 64   ;;  %s12032_s30 = smov 4  }
  0x25   :  { %81 = dma.hbm_to_vmem [thread:$0]  %s13328_s8, 256, %s76_s28, [#allocation9], %s12031_s1, %s12031_s1, %s12032_s30  }
  0x26   :  { %s12033_s26 = smov [#allocation11]   ;;  %s12034_s29 = smov [#allocation2]  }
  0x27   :  { %s101_s27 = sshll.u32 %s12033_s26, 4  ;;  %s29_s15 = sshll.u32 %s12034_s29, 4  ;;  %s102_s27 = int_to_ptr.vmem [resolvable:$true] %s101_s27  ;;  %s12148_s15 = int_to_ptr.vmem [resolvable:$true] %s29_s15 }
  0x28   :  { %s11885_s18 = scalar_lea.hbm %s13331_s11, 8192 }
  0x29   :  { %p11886_p2 = scmp.ne.s32.totalorder %s13331_s11, %s11885_s18  ;;  %p11889_p3 = scmp.lt.u32.totalorder %s11885_s18, %s13331_s11 }
  0x2b   :  { %p11891_p4 = pnand %p11889_p3, %p11886_p2 }
  0x2d   :  { %11894 = shalt.err (!%p11891_p4)
}
  0x2e   :  { %s11895_s8 = scalar_lea.vmem %s102_s27, 8192  ;;  %p11900_p6 = scmp.lt.s32.totalorder %s102_s27, %s102_s27 }
  0x2f   :  { %p11896_p5 = scmp.ne.s32.totalorder %s102_s27, %s11895_s8  ;;  %p11901_p7 = scmp.lt.s32.totalorder %s11895_s8, %s11895_s8 }
  0x31   :  { %p11902_p8 = por %p11901_p7, %p11900_p6 }
  0x33   :  { %p11903_p9 = pnand %p11902_p8, %p11896_p5 }
  0x35   :  { %11906 = shalt.err (!%p11903_p9)
}
  0x36   :  { %s13336_s28 = smov 256   ;;  %s11907_s23 = scalar_lea.hbm %s13320_s0, 14336 }
  0x37   :  { %107 = dma.hbm_to_vmem [thread:$0]  %s13331_s11, 8192, %s102_s27, [#allocation12], %s13336_s28, %s13336_s28, %s12029_s24  }
  0x38   :  { %p11908_p10 = scmp.ne.s32.totalorder %s13320_s0, %s11907_s23  ;;  %p11911_p11 = scmp.lt.u32.totalorder %s11907_s23, %s13320_s0 }
  0x3a   :  { %p11913_p12 = pnand %p11911_p11, %p11908_p10 }
  0x3c   :  { %11916 = shalt.err (!%p11913_p12)
}
  0x3d   :  { %s11917_s18 = scalar_lea.vmem %s12148_s15, 14336  ;;  %p11922_p0 = scmp.lt.s32.totalorder %s12148_s15, %s12148_s15 }
  0x3e   :  { %p11918_p13 = scmp.ne.s32.totalorder %s12148_s15, %s11917_s18  ;;  %p11923_p1 = scmp.lt.s32.totalorder %s11917_s18, %s11917_s18 }
  0x40   :  { %p11924_p2 = por %p11923_p1, %p11922_p0 }
  0x42   :  { %p11925_p3 = pnand %p11924_p2, %p11918_p13 }
  0x44   :  { %11928 = shalt.err (!%p11925_p3)
}
  0x45   :  { %s12035_s11 = smov 896   ;;  %s12036_s24 = smov 56  }
  0x46   :  { %35 = dma.hbm_to_vmem [thread:$0]  %s13320_s0, 14336, %s12148_s15, [#allocation3], %s12035_s11, %s12035_s11, %s12036_s24  }
  0x47   :  { %s12037_s20 = smov [#allocation7]   ;;  %s11929_s1 = scalar_lea.hbm %s13322_s2, 8192 }
  0x48   :  { %s53_s21 = sshll.u32 %s12037_s20, 4  ;;  %p11930_p4 = scmp.ne.s32.totalorder %s13322_s2, %s11929_s1  ;;  %s54_s21 = int_to_ptr.vmem [resolvable:$true] %s53_s21 }
  0x49   :  { %p11933_p5 = scmp.lt.u32.totalorder %s11929_s1, %s13322_s2 }
  0x4b   :  { %p11935_p6 = pnand %p11933_p5, %p11930_p4 }
  0x4d   :  { %11938 = shalt.err (!%p11935_p6)
}
  0x4e   :  { %s11939_s26 = scalar_lea.vmem %s54_s21, 8192  ;;  %p11944_p8 = scmp.lt.s32.totalorder %s54_s21, %s54_s21 }
  0x4f   :  { %p11940_p7 = scmp.ne.s32.totalorder %s54_s21, %s11939_s26  ;;  %p11945_p9 = scmp.lt.s32.totalorder %s11939_s26, %s11939_s26 }
  0x51   :  { %p11946_p10 = por %p11945_p9, %p11944_p8 }
  0x53   :  { %p11947_p11 = pnand %p11946_p10, %p11940_p7 }
  0x55   :  { %11950 = shalt.err (!%p11947_p11)
}
  0x56   :  { %s12038_s0 = smov 128   ;;  %s12039_s15 = smov 8  }
  0x57   :  { %59 = dma.hbm_to_vmem [thread:$0]  %s13322_s2, 8192, %s54_s21, [#allocation6], %s12038_s0, %s12038_s0, %s12039_s15  }
  0x58   :  { %s12040_s17 = smov [#allocation10]   ;;  %s12041_s27 = smov [#allocation13]  }
  0x59   :  { %s89_s18 = sshll.u32 %s12040_s17, 4  ;;  %s113_s19 = sshll.u32 %s12041_s27, 4  ;;  %s90_s18 = int_to_ptr.vmem [resolvable:$true] %s89_s18  ;;  %s114_s19 = int_to_ptr.vmem [resolvable:$true] %s113_s19 }
  0x5a   :  { %s11951_s28 = scalar_lea.hbm %s13330_s10, 2048 }
  0x5b   :  { %p11952_p12 = scmp.ne.s32.totalorder %s13330_s10, %s11951_s28  ;;  %p11955_p13 = scmp.lt.u32.totalorder %s11951_s28, %s13330_s10 }
  0x5d   :  { %p11957_p0 = pnand %p11955_p13, %p11952_p12 }
  0x5f   :  { %11960 = shalt.err (!%p11957_p0)
}
  0x60   :  { %s11961_s2 = scalar_lea.vmem %s90_s18, 2048  ;;  %p11966_p2 = scmp.lt.s32.totalorder %s90_s18, %s90_s18 }
  0x61   :  { %p11962_p1 = scmp.ne.s32.totalorder %s90_s18, %s11961_s2  ;;  %p11967_p3 = scmp.lt.s32.totalorder %s11961_s2, %s11961_s2 }
  0x63   :  { %p11968_p4 = por %p11967_p3, %p11966_p2 }
  0x65   :  { %p11969_p5 = pnand %p11968_p4, %p11962_p1 }
  0x67   :  { %11972 = shalt.err (!%p11969_p5)
}
  0x68   :  { %95 = dma.hbm_to_vmem [thread:$0]  %s13330_s10, 2048, %s90_s18, [#allocation9], %s12038_s0, %s12038_s0, %s12039_s15  }
  0x69   :  { %s11973_s16 = scalar_lea.hbm %s13332_s12, 28672 }
  0x6a   :  { %p11974_p6 = scmp.ne.s32.totalorder %s13332_s12, %s11973_s16  ;;  %p11977_p7 = scmp.lt.u32.totalorder %s11973_s16, %s13332_s12 }
  0x6c   :  { %p11979_p8 = pnand %p11977_p7, %p11974_p6 }
  0x6e   :  { %11982 = shalt.err (!%p11979_p8)
}
  0x6f   :  { %s11983_s28 = scalar_lea.vmem %s114_s19, 28672  ;;  %p11988_p10 = scmp.lt.s32.totalorder %s114_s19, %s114_s19 }
  0x70   :  { %p11984_p9 = scmp.ne.s32.totalorder %s114_s19, %s11983_s28  ;;  %p11989_p11 = scmp.lt.s32.totalorder %s11983_s28, %s11983_s28 }
  0x72   :  { %p11990_p12 = por %p11989_p11, %p11988_p10 }
  0x74   :  { %p11991_p13 = pnand %p11990_p12, %p11984_p9 }
  0x76   :  { %11994 = shalt.err (!%p11991_p13)
}
  0x77   :  { %s12042_s10 = smov 448   ;;  %s12043_s0 = smov 28  }
  0x78   :  { %119 = dma.hbm_to_vmem [thread:$0]  %s13332_s12, 28672, %s114_s19, [#allocation12], %s12042_s10, %s12042_s10, %s12043_s0  }
  0x79   :  { %12017 = dma.done.wait [#allocation3], 14336  }
  0x7a   :  { %12018 = vsyncadd [#allocation3], 4294952960 }
  0x7b   :  { %12019 = dma.done.wait [#allocation6], 36864  }
  0x7c   :  { %12020 = vsyncadd [#allocation6], 4294930432 }
  0x7d   :  { %12021 = dma.done.wait [#allocation9], 2304  }
  0x7e   :  { %12022 = vsyncadd [#allocation9], 4294964992 }
  0x7f   :  { %12023 = dma.done.wait [#allocation12], 36864  }
  0x80   :  { %12024 = vsyncadd [#allocation12], 4294930432  ;;  %v10484_v0 = vld [vmem:[#allocation5 + $0x4] ss:$16 sps:$4 sm:$0xff]   ;;  %v10486_v1 = vld [vmem:[#allocation5 + $0xc] ss:$16 sps:$4 sm:$0xff]  }
  0x81   :  { %1678 = vmatprep.subr.bf16.mxu0 %v10484_v0  ;;  %v10488_v2 = vld [vmem:[#allocation5] ss:$16 sps:$4 sm:$0xff]   ;;  %v10489_v3 = vld [vmem:[#allocation5 + $0x8] ss:$16 sps:$4 sm:$0xff]   ;;  %2130 = vmatprep.subr.bf16.mxu1 %v10486_v1  ;;  %v10490_v4 = vld [vmem:[#allocation5 + $0x24] ss:$16 sps:$4 sm:$0xff]  }
  0x82   :  { %1679 = vmatpush1.bf16.msra.mxu0 %v10488_v2  ;;  %2131 = vmatpush1.bf16.msra.mxu1 %v10489_v3  ;;  %v10492_v5 = vld [vmem:[#allocation5 + $0x2c] ss:$16 sps:$4 sm:$0xff]   ;;  %v10494_v6 = vld [vmem:[#allocation5 + $0x20] ss:$16 sps:$4 sm:$0xff]   ;;  %v10495_v7 = vld [vmem:[#allocation5 + $0x28] ss:$16 sps:$4 sm:$0xff]  }
  0x83   :  { %1680 = vmatprep.subr.bf16.mxu0 %v10490_v4  ;;  %2132 = vmatprep.subr.bf16.mxu1 %v10492_v5  ;;  %v10496_v8 = vld [vmem:[#allocation5 + $0x44] ss:$16 sps:$4 sm:$0xff]   ;;  %v10498_v9 = vld [vmem:[#allocation5 + $0x4c] ss:$16 sps:$4 sm:$0xff]   ;;  %v10500_v10 = vld [vmem:[#allocation5 + $0x40] ss:$16 sps:$4 sm:$0xff]  }
  0x84   :  { %v10501_v11 = vld [vmem:[#allocation5 + $0x48] ss:$16 sps:$4 sm:$0xff]   ;;  %v10502_v12 = vld [vmem:[#allocation5 + $0x64] ss:$16 sps:$4 sm:$0xff]   ;;  %v10504_v13 = vld [vmem:[#allocation5 + $0x6c] ss:$16 sps:$4 sm:$0xff]  }
  0x85   :  { %v10506_v14 = vld [vmem:[#allocation5 + $0x60] ss:$16 sps:$4 sm:$0xff]   ;;  %v10507_v15 = vld [vmem:[#allocation5 + $0x68] ss:$16 sps:$4 sm:$0xff]   ;;  %v10508_v16 = vld [vmem:[#allocation5 + $0x84] ss:$16 sps:$4 sm:$0xff]  }
  0x86   :  { %1681 = vmatpush1.bf16.msra.mxu0 %v10494_v6  ;;  %2133 = vmatpush1.bf16.msra.mxu1 %v10495_v7  ;;  %v10510_v17 = vld [vmem:[#allocation5 + $0x8c] ss:$16 sps:$4 sm:$0xff]   ;;  %v10512_v18 = vld [vmem:[#allocation5 + $0x80] ss:$16 sps:$4 sm:$0xff]   ;;  %v10513_v19 = vld [vmem:[#allocation5 + $0x88] ss:$16 sps:$4 sm:$0xff]  }
  0x87   :  { %1682 = vmatprep.subr.bf16.mxu0 %v10496_v8  ;;  %2134 = vmatprep.subr.bf16.mxu1 %v10498_v9  ;;  %v10514_v20 = vld [vmem:[#allocation5 + $0xa4] ss:$16 sps:$4 sm:$0xff]   ;;  %v10516_v21 = vld [vmem:[#allocation5 + $0xac] ss:$16 sps:$4 sm:$0xff]   ;;  %v10518_v22 = vld [vmem:[#allocation5 + $0xa0] ss:$16 sps:$4 sm:$0xff]  }
  0x88   :  { %v10519_v23 = vld [vmem:[#allocation5 + $0xa8] ss:$16 sps:$4 sm:$0xff]   ;;  %v10520_v24 = vld [vmem:[#allocation5 + $0xc4] ss:$16 sps:$4 sm:$0xff]   ;;  %v10522_v25 = vld [vmem:[#allocation5 + $0xcc] ss:$16 sps:$4 sm:$0xff]  }
  0x89   :  { %v10524_v26 = vld [vmem:[#allocation5 + $0xc0] ss:$16 sps:$4 sm:$0xff]   ;;  %v10525_v27 = vld [vmem:[#allocation5 + $0xc8] ss:$16 sps:$4 sm:$0xff]   ;;  %v10526_v28 = vld [vmem:[#allocation5 + $0xe4] ss:$16 sps:$4 sm:$0xff]  }
  0x8a   :  { %1683 = vmatpush1.bf16.msra.mxu0 %v10500_v10  ;;  %2135 = vmatpush1.bf16.msra.mxu1 %v10501_v11  ;;  %v10528_v29 = vld [vmem:[#allocation5 + $0xec] ss:$16 sps:$4 sm:$0xff]   ;;  %v10530_v30 = vld [vmem:[#allocation5 + $0xe0] ss:$16 sps:$4 sm:$0xff]   ;;  %v10531_v31 = vld [vmem:[#allocation5 + $0xe8] ss:$16 sps:$4 sm:$0xff]  }
  0x8b   :  { %1684 = vmatprep.subr.bf16.mxu0 %v10502_v12  ;;  %2136 = vmatprep.subr.bf16.mxu1 %v10504_v13  ;;  %v10532_v32 = vld [vmem:[#allocation5 + $0x104] ss:$16 sps:$4 sm:$0xff]   ;;  %v10534_v33 = vld [vmem:[#allocation5 + $0x10c] ss:$16 sps:$4 sm:$0xff]   ;;  %v10536_v34 = vld [vmem:[#allocation5 + $0x100] ss:$16 sps:$4 sm:$0xff]  }
  0x8c   :  { %v10537_v35 = vld [vmem:[#allocation5 + $0x108] ss:$16 sps:$4 sm:$0xff]   ;;  %v10538_v36 = vld [vmem:[#allocation5 + $0x124] ss:$16 sps:$4 sm:$0xff]   ;;  %v10540_v37 = vld [vmem:[#allocation5 + $0x12c] ss:$16 sps:$4 sm:$0xff]  }
  0x8d   :  { %v10542_v38 = vld [vmem:[#allocation5 + $0x120] ss:$16 sps:$4 sm:$0xff]   ;;  %v10543_v39 = vld [vmem:[#allocation5 + $0x128] ss:$16 sps:$4 sm:$0xff]   ;;  %v10544_v40 = vld [vmem:[#allocation5 + $0x144] ss:$16 sps:$4 sm:$0xff]  }
  0x8e   :  { %1685 = vmatpush1.bf16.msra.mxu0 %v10506_v14  ;;  %2137 = vmatpush1.bf16.msra.mxu1 %v10507_v15  ;;  %v10546_v41 = vld [vmem:[#allocation5 + $0x14c] ss:$16 sps:$4 sm:$0xff]   ;;  %v10548_v42 = vld [vmem:[#allocation5 + $0x140] ss:$16 sps:$4 sm:$0xff]   ;;  %v10549_v43 = vld [vmem:[#allocation5 + $0x148] ss:$16 sps:$4 sm:$0xff]  }
  0x8f   :  { %1686 = vmatprep.subr.bf16.mxu0 %v10508_v16  ;;  %2138 = vmatprep.subr.bf16.mxu1 %v10510_v17  ;;  %v10550_v44 = vld [vmem:[#allocation5 + $0x164] ss:$16 sps:$4 sm:$0xff]   ;;  %v10552_v45 = vld [vmem:[#allocation5 + $0x16c] ss:$16 sps:$4 sm:$0xff]   ;;  %v10554_v47 = vld [vmem:[#allocation5 + $0x160] ss:$16 sps:$4 sm:$0xff]  }
  0x90   :  { %v145_v46 = vld [vmem:[#allocation2 + $0x8] sm:$0xff]  ;;  %v152_v49 = vld [vmem:[#allocation2 + $0x40] sm:$0xff]  ;;  %v151_v4 = vld [vmem:[#allocation2 + $0x38] sm:$0xff]  ;;  %vm3835_vm0 = vcmask 523264   ;;  %vm4167_vm1 = vcmask 1040384   ;;  %vm4004_vm2 = vcmask 261120  }
  0x91   :  { %v10555_v48 = vld [vmem:[#allocation5 + $0x168] ss:$16 sps:$4 sm:$0xff]   ;;  %v10556_v50 = vld [vmem:[#allocation5 + $0x184] ss:$16 sps:$4 sm:$0xff]   ;;  %v482_v51 = vpack.c.bf16 %v152_v49, %v145_v46  ;;  %v10558_v52 = vld [vmem:[#allocation5 + $0x18c] ss:$16 sps:$4 sm:$0xff]  }
  0x92   :  { %1687 = vmatpush1.bf16.msra.mxu0 %v10512_v18  ;;  %2139 = vmatpush1.bf16.msra.mxu1 %v10513_v19  ;;  %v10560_v53 = vld [vmem:[#allocation5 + $0x180] ss:$16 sps:$4 sm:$0xff]   ;;  %v10561_v54 = vld [vmem:[#allocation5 + $0x188] ss:$16 sps:$4 sm:$0xff]   ;;  %v10562_v55 = vld [vmem:[#allocation5 + $0x1a4] ss:$16 sps:$4 sm:$0xff]  }
  0x93   :  { %1688 = vmatprep.subr.bf16.mxu0 %v10514_v20  ;;  %2140 = vmatprep.subr.bf16.mxu1 %v10516_v21  ;;  %v10564_v56 = vld [vmem:[#allocation5 + $0x1ac] ss:$16 sps:$4 sm:$0xff]   ;;  %v10566_v57 = vld [vmem:[#allocation5 + $0x1a0] ss:$16 sps:$4 sm:$0xff]   ;;  %v10567_v58 = vld [vmem:[#allocation5 + $0x1a8] ss:$16 sps:$4 sm:$0xff]  }
  0x94   :  { %1710 = vmatprep.mubr.bf16.mxu0 %v482_v51  ;;  %2162 = vmatprep.mubr.bf16.mxu1 %v482_v51  ;;  %v10568_v59 = vld [vmem:[#allocation5 + $0x1c4] ss:$16 sps:$4 sm:$0xff]   ;;  %v10570_v60 = vld [vmem:[#allocation5 + $0x1cc] ss:$16 sps:$4 sm:$0xff]   ;;  %v10572_v61 = vld [vmem:[#allocation5 + $0x1c0] ss:$16 sps:$4 sm:$0xff]  }
  0x95   :  { %v10573_v62 = vld [vmem:[#allocation5 + $0x1c8] ss:$16 sps:$4 sm:$0xff]   ;;  %v10574_v63 = vld [vmem:[#allocation5 + $0x1e4] ss:$16 sps:$4 sm:$0xff]   ;;  %v10576_v0 = vld [vmem:[#allocation5 + $0x1ec] ss:$16 sps:$4 sm:$0xff]  }
  0x96   :  { %1689 = vmatpush1.bf16.msra.mxu0 %v10518_v22  ;;  %2141 = vmatpush1.bf16.msra.mxu1 %v10519_v23  ;;  %v10578_v1 = vld [vmem:[#allocation5 + $0x1e0] ss:$16 sps:$4 sm:$0xff]   ;;  %v10579_v2 = vld [vmem:[#allocation5 + $0x1e8] ss:$16 sps:$4 sm:$0xff]   ;;  %v10582_v5 = vld [vmem:[#allocation5 + $0x204] ss:$16 sps:$4 sm:$0xff]  }
  0x97   :  { %1690 = vmatprep.subr.bf16.mxu0 %v10520_v24  ;;  %2142 = vmatprep.subr.bf16.mxu1 %v10522_v25  ;;  %v144_v3 = vld [vmem:[#allocation2] sm:$0xff]  ;;  %v10585_v6 = vld [vmem:[#allocation5 + $0x20c] ss:$16 sps:$4 sm:$0xff]   ;;  %v10583_v9 = vld [vmem:[#allocation5 + $0x208] ss:$16 sps:$4 sm:$0xff]   ;;  %vm4142_vm3 = vcmask 15360  }
  0x98   :  { %v10580_v7 = vld [vmem:[#allocation5 + $0x200] ss:$16 sps:$4 sm:$0xff]   ;;  %v481_v8 = vpack.c.bf16 %v151_v4, %v144_v3  ;;  %v159_v10 = vld [vmem:[#allocation2 + $0x78] sm:$0xff]  ;;  %v10588_v12 = vld [vmem:[#allocation5 + $0x224] ss:$16 sps:$4 sm:$0xff]  }
  0x99   :  { %v166_v11 = vld [vmem:[#allocation2 + $0xb0] sm:$0xff]  ;;  %v10591_v13 = vld [vmem:[#allocation5 + $0x22c] ss:$16 sps:$4 sm:$0xff]   ;;  %v10589_v16 = vld [vmem:[#allocation5 + $0x228] ss:$16 sps:$4 sm:$0xff]  }
  0x9a   :  { %1691 = vmatpush1.bf16.msra.mxu0 %v10524_v26  ;;  %2143 = vmatpush1.bf16.msra.mxu1 %v10525_v27  ;;  %v10586_v14 = vld [vmem:[#allocation5 + $0x220] ss:$16 sps:$4 sm:$0xff]   ;;  %v489_v15 = vpack.c.bf16 %v166_v11, %v159_v10  ;;  %v165_v18 = vld [vmem:[#allocation2 + $0xa8] sm:$0xff]  ;;  %v10594_v19 = vld [vmem:[#allocation5 + $0x244] ss:$16 sps:$4 sm:$0xff]  }
  0x9b   :  { %1692 = vmatprep.subr.bf16.mxu0 %v10526_v28  ;;  %2144 = vmatprep.subr.bf16.mxu1 %v10528_v29  ;;  %v158_v17 = vld [vmem:[#allocation2 + $0x70] sm:$0xff]  ;;  %v10597_v20 = vld [vmem:[#allocation5 + $0x24c] ss:$16 sps:$4 sm:$0xff]   ;;  %v10595_v22 = vld [vmem:[#allocation5 + $0x248] ss:$16 sps:$4 sm:$0xff]  }
  0x9c   :  { %v10592_v21 = vld [vmem:[#allocation5 + $0x240] ss:$16 sps:$4 sm:$0xff]   ;;  %v488_v23 = vpack.c.bf16 %v165_v18, %v158_v17  ;;  %v173_v24 = vld [vmem:[#allocation2 + $0xe8] sm:$0xff]  ;;  %v10600_v26 = vld [vmem:[#allocation5 + $0x264] ss:$16 sps:$4 sm:$0xff]  }
  0x9d   :  { %v180_v25 = vld [vmem:[#allocation2 + $0x120] sm:$0xff]  ;;  %v10603_v27 = vld [vmem:[#allocation5 + $0x26c] ss:$16 sps:$4 sm:$0xff]   ;;  %v10631_v3 = vld [vmem:[#allocation5 + $0x308] ss:$16 sps:$4 sm:$0xff]  }
  0x9e   :  { %1693 = vmatpush1.bf16.msra.mxu0 %v10530_v30  ;;  %2145 = vmatpush1.bf16.msra.mxu1 %v10531_v31  ;;  %v496_v28 = vpack.c.bf16 %v180_v25, %v173_v24  ;;  %v10598_v29 = vld [vmem:[#allocation5 + $0x260] ss:$16 sps:$4 sm:$0xff]   ;;  %v10601_v30 = vld [vmem:[#allocation5 + $0x268] ss:$16 sps:$4 sm:$0xff]   ;;  %v10636_v4 = vld [vmem:[#allocation5 + $0x324] ss:$16 sps:$4 sm:$0xff]  }
  0x9f   :  { %1694 = vmatprep.subr.bf16.mxu0 %v10532_v32  ;;  %2146 = vmatprep.subr.bf16.mxu1 %v10534_v33  ;;  %v172_v31 = vld [vmem:[#allocation2 + $0xe0] sm:$0xff]  ;;  %v179_v32 = vld [vmem:[#allocation2 + $0x118] sm:$0xff]  ;;  %v193_v46 = vld [vmem:[#allocation2 + $0x188] sm:$0xff] }
  0xa0   :  { %v10606_v33 = vld [vmem:[#allocation5 + $0x284] ss:$16 sps:$4 sm:$0xff]   ;;  %v10616_v49 = vld [vmem:[#allocation5 + $0x2c0] ss:$16 sps:$4 sm:$0xff]   ;;  %v201_v51 = vld [vmem:[#allocation2 + $0x1c8] sm:$0xff] }
  0xa1   :  { %v221_v10 = vld [vmem:[#allocation2 + $0x268] sm:$0xff]  ;;  %v10642_v11 = vld [vmem:[#allocation5 + $0x344] ss:$16 sps:$4 sm:$0xff]   ;;  %v235_v24 = vld [vmem:[#allocation2 + $0x2d8] sm:$0xff] }
  0xa2   :  { %1695 = vmatpush1.bf16.msra.mxu0 %v10536_v34  ;;  %2147 = vmatpush1.bf16.msra.mxu1 %v10537_v35  ;;  %v10609_v34 = vld [vmem:[#allocation5 + $0x28c] ss:$16 sps:$4 sm:$0xff]   ;;  %v10604_v35 = vld [vmem:[#allocation5 + $0x280] ss:$16 sps:$4 sm:$0xff]   ;;  %v10648_v18 = vld [vmem:[#allocation5 + $0x364] ss:$16 sps:$4 sm:$0xff]  }
  0xa3   :  { %1696 = vmatprep.subr.bf16.mxu0 %v10538_v36  ;;  %2148 = vmatprep.subr.bf16.mxu1 %v10540_v37  ;;  %v10607_v36 = vld [vmem:[#allocation5 + $0x288] ss:$16 sps:$4 sm:$0xff]   ;;  %v495_v37 = vpack.c.bf16 %v179_v32, %v172_v31  ;;  %v236_v17 = vld [vmem:[#allocation2 + $0x2e0] sm:$0xff]  ;;  %v250_v31 = vld [vmem:[#allocation2 + $0x350] sm:$0xff] }
  0xa4   :  { %v10654_v25 = vld [vmem:[#allocation5 + $0x384] ss:$16 sps:$4 sm:$0xff]  }
  0xa5   :  { %v10660_v32 = vld [vmem:[#allocation5 + $0x3a4] ss:$16 sps:$4 sm:$0xff]  }
  0xa6   :  { %1697 = vmatpush1.bf16.msra.mxu0 %v10542_v38  ;;  %2149 = vmatpush1.bf16.msra.mxu1 %v10543_v39  ;;  %v187_v38 = vld [vmem:[#allocation2 + $0x158] sm:$0xff]  ;;  %v194_v39 = vld [vmem:[#allocation2 + $0x190] sm:$0xff] }
  0xa7   :  { %1698 = vmatprep.subr.bf16.mxu0 %v10544_v40  ;;  %2150 = vmatprep.subr.bf16.mxu1 %v10546_v41  ;;  %v10612_v40 = vld [vmem:[#allocation5 + $0x2a4] ss:$16 sps:$4 sm:$0xff]   ;;  %v10615_v41 = vld [vmem:[#allocation5 + $0x2ac] ss:$16 sps:$4 sm:$0xff]  }
  0xaa   :  { %1699 = vmatpush1.bf16.msra.mxu0 %v10548_v42  ;;  %2151 = vmatpush1.bf16.msra.mxu1 %v10549_v43  ;;  %v10610_v42 = vld [vmem:[#allocation5 + $0x2a0] ss:$16 sps:$4 sm:$0xff]   ;;  %v503_v43 = vpack.c.bf16 %v194_v39, %v187_v38  ;;  %v249_v38 = vld [vmem:[#allocation2 + $0x348] sm:$0xff]  ;;  %v10666_v39 = vld [vmem:[#allocation5 + $0x3c4] ss:$16 sps:$4 sm:$0xff]  }
  0xab   :  { %1700 = vmatprep.subr.bf16.mxu0 %v10550_v44  ;;  %2152 = vmatprep.subr.bf16.mxu1 %v10552_v45  ;;  %v10613_v44 = vld [vmem:[#allocation5 + $0x2a8] ss:$16 sps:$4 sm:$0xff]   ;;  %v186_v45 = vld [vmem:[#allocation2 + $0x150] sm:$0xff] }
  0xae   :  { %1701 = vmatpush1.bf16.msra.mxu0 %v10554_v47  ;;  %2153 = vmatpush1.bf16.msra.mxu1 %v10555_v48  ;;  %v10618_v47 = vld [vmem:[#allocation5 + $0x2c4] ss:$16 sps:$4 sm:$0xff]   ;;  %v10621_v48 = vld [vmem:[#allocation5 + $0x2cc] ss:$16 sps:$4 sm:$0xff]  }
  0xaf   :  { %1702 = vmatprep.subr.bf16.mxu0 %v10556_v50  ;;  %2154 = vmatprep.subr.bf16.mxu1 %v10558_v52  ;;  %v502_v50 = vpack.c.bf16 %v193_v46, %v186_v45  ;;  %v208_v52 = vld [vmem:[#allocation2 + $0x200] sm:$0xff]  ;;  %v154_v45 = vld [vmem:[#allocation2 + $0x50] sm:$0xff] }
  0xb0   :  { %v10672_v46 = vld [vmem:[#allocation5 + $0x3e4] ss:$16 sps:$4 sm:$0xff]  }
  0xb2   :  { %1703 = vmatpush1.bf16.msra.mxu0 %v10560_v53  ;;  %2155 = vmatpush1.bf16.msra.mxu1 %v10561_v54  ;;  %v10619_v53 = vld [vmem:[#allocation5 + $0x2c8] ss:$16 sps:$4 sm:$0xff]   ;;  %v10624_v54 = vld [vmem:[#allocation5 + $0x2e4] ss:$16 sps:$4 sm:$0xff]  }
  0xb3   :  { %1704 = vmatprep.subr.bf16.mxu0 %v10562_v55  ;;  %2156 = vmatprep.subr.bf16.mxu1 %v10564_v56  ;;  %v10627_v55 = vld [vmem:[#allocation5 + $0x2ec] ss:$16 sps:$4 sm:$0xff]   ;;  %v10622_v56 = vld [vmem:[#allocation5 + $0x2e0] ss:$16 sps:$4 sm:$0xff]  }
  0xb6   :  { %1705 = vmatpush1.bf16.msra.mxu0 %v10566_v57  ;;  %2157 = vmatpush1.bf16.msra.mxu1 %v10567_v58  ;;  %v10625_v57 = vld [vmem:[#allocation5 + $0x2e8] ss:$16 sps:$4 sm:$0xff]   ;;  %v510_v58 = vpack.c.bf16 %v208_v52, %v201_v51  ;;  %v146_v51 = vld [vmem:[#allocation2 + $0x10] sm:$0xff] }
  0xb7   :  { %1706 = vmatprep.subr.bf16.mxu0 %v10568_v59  ;;  %2158 = vmatprep.subr.bf16.mxu1 %v10570_v60  ;;  %v200_v59 = vld [vmem:[#allocation2 + $0x1c0] sm:$0xff]  ;;  %v207_v60 = vld [vmem:[#allocation2 + $0x1f8] sm:$0xff]  ;;  %v153_v52 = vld [vmem:[#allocation2 + $0x48] sm:$0xff] }
  0xba   :  { %1707 = vmatpush1.bf16.msra.mxu0 %v10572_v61  ;;  %2159 = vmatpush1.bf16.msra.mxu1 %v10573_v62  ;;  %v10630_v61 = vld [vmem:[#allocation5 + $0x304] ss:$16 sps:$4 sm:$0xff]   ;;  %v10633_v62 = vld [vmem:[#allocation5 + $0x30c] ss:$16 sps:$4 sm:$0xff]  }
  0xbb   :  { %1708 = vmatprep.subr.bf16.mxu0 %v10574_v63  ;;  %2160 = vmatprep.subr.bf16.mxu1 %v10576_v0  ;;  %v509_v63 = vpack.c.bf16 %v207_v60, %v200_v59  ;;  %v215_v0 = vld [vmem:[#allocation2 + $0x238] sm:$0xff]  ;;  %v10684_v60 = vld [vmem:[#allocation5 + $0x424] ss:$16 sps:$4 sm:$0xff]  }
  0xbc   :  { %v10679_v59 = vld [vmem:[#allocation5 + $0x408] ss:$16 sps:$4 sm:$0xff]  }
  0xbe   :  { %1709 = vmatpush1.bf16.msra.mxu0 %v10578_v1  ;;  %2161 = vmatpush1.bf16.msra.mxu1 %v10579_v2  ;;  %v222_v1 = vld [vmem:[#allocation2 + $0x270] sm:$0xff] }
  0xbf   :  { %1791 = vmatprep.subr.bf16.mxu0 %v10582_v5  ;;  %2243 = vmatprep.subr.bf16.mxu1 %v10585_v6  ;;  %v10628_v2 = vld [vmem:[#allocation5 + $0x300] ss:$16 sps:$4 sm:$0xff]   ;;  %v10639_v5 = vld [vmem:[#allocation5 + $0x32c] ss:$16 sps:$4 sm:$0xff]  }
  0xc0   :  { %v10634_v6 = vld [vmem:[#allocation5 + $0x320] ss:$16 sps:$4 sm:$0xff]  }
  0xc1   :  { %1711 = vmatmul.mubr.bf16.vlgmr.msra.gmra.mrb[0].mxu0 %v481_v8  ;;  %2163 = vmatmul.mubr.bf16.vlgmr.msra.gmra.mrb[0].mxu1 %v481_v8  ;;  %v517_v8 = vpack.c.bf16 %v222_v1, %v215_v0  ;;  %v160_v1 = vld [vmem:[#allocation2 + $0x80] sm:$0xff] }
  0xc2   :  { %1792 = vmatpush1.bf16.msra.mxu0 %v10580_v7  ;;  %2244 = vmatpush1.bf16.msra.mxu1 %v10583_v9  ;;  %v10637_v7 = vld [vmem:[#allocation5 + $0x328] ss:$16 sps:$4 sm:$0xff]   ;;  %v214_v9 = vld [vmem:[#allocation2 + $0x230] sm:$0xff] }
  0xc3   :  { %1793 = vmatprep.subr.bf16.mxu0 %v10588_v12  ;;  %2245 = vmatprep.subr.bf16.mxu1 %v10591_v13  ;;  %v10645_v12 = vld [vmem:[#allocation5 + $0x34c] ss:$16 sps:$4 sm:$0xff]   ;;  %v10640_v13 = vld [vmem:[#allocation5 + $0x340] ss:$16 sps:$4 sm:$0xff]  }
  0xc4   :  { %1720 = vmatprep.mubr.bf16.mxu0 %v489_v15  ;;  %2172 = vmatprep.mubr.bf16.mxu1 %v489_v15  ;;  %v10643_v15 = vld [vmem:[#allocation5 + $0x348] ss:$16 sps:$4 sm:$0xff]  }
  0xc6   :  { %1794 = vmatpush1.bf16.msra.mxu0 %v10586_v14  ;;  %2246 = vmatpush1.bf16.msra.mxu1 %v10589_v16  ;;  %v516_v14 = vpack.c.bf16 %v221_v10, %v214_v9  ;;  %v229_v16 = vld [vmem:[#allocation2 + $0x2a8] sm:$0xff]  ;;  %v10696_v10 = vld [vmem:[#allocation5 + $0x464] ss:$16 sps:$4 sm:$0xff]  }
  0xc7   :  { %1795 = vmatprep.subr.bf16.mxu0 %v10594_v19  ;;  %2247 = vmatprep.subr.bf16.mxu1 %v10597_v20  ;;  %v10651_v19 = vld [vmem:[#allocation5 + $0x36c] ss:$16 sps:$4 sm:$0xff]   ;;  %v10646_v20 = vld [vmem:[#allocation5 + $0x360] ss:$16 sps:$4 sm:$0xff]   ;;  %v10691_v9 = vld [vmem:[#allocation5 + $0x448] ss:$16 sps:$4 sm:$0xff]  }
  0xc9   :  { %1721 = vmatmul.mubr.bf16.gmra.mrb[4].mxu0 %v488_v23  ;;  %2173 = vmatmul.mubr.bf16.gmra.mrb[4].mxu1 %v488_v23  ;;  %v228_v23 = vld [vmem:[#allocation2 + $0x2a0] sm:$0xff] }
  0xca   :  { %1796 = vmatpush1.bf16.msra.mxu0 %v10592_v21  ;;  %2248 = vmatpush1.bf16.msra.mxu1 %v10595_v22  ;;  %v524_v21 = vpack.c.bf16 %v236_v17, %v229_v16  ;;  %v10649_v22 = vld [vmem:[#allocation5 + $0x368] ss:$16 sps:$4 sm:$0xff]   ;;  %v10702_v17 = vld [vmem:[#allocation5 + $0x484] ss:$16 sps:$4 sm:$0xff]  }
  0xcb   :  { %1797 = vmatprep.subr.bf16.mxu0 %v10600_v26  ;;  %2249 = vmatprep.subr.bf16.mxu1 %v10603_v27  ;;  %v10657_v26 = vld [vmem:[#allocation5 + $0x38c] ss:$16 sps:$4 sm:$0xff]   ;;  %v10652_v27 = vld [vmem:[#allocation5 + $0x380] ss:$16 sps:$4 sm:$0xff]  }
  0xcc   :  { %1730 = vmatprep.mubr.bf16.mxu0 %v496_v28  ;;  %2182 = vmatprep.mubr.bf16.mxu1 %v496_v28  ;;  %v10655_v28 = vld [vmem:[#allocation5 + $0x388] ss:$16 sps:$4 sm:$0xff]  }
  0xcd   :  { %v181_v16 = vld [vmem:[#allocation2 + $0x128] sm:$0xff] }
  0xce   :  { %1798 = vmatpush1.bf16.msra.mxu0 %v10598_v29  ;;  %2250 = vmatpush1.bf16.msra.mxu1 %v10601_v30  ;;  %v523_v29 = vpack.c.bf16 %v235_v24, %v228_v23  ;;  %v243_v30 = vld [vmem:[#allocation2 + $0x318] sm:$0xff]  ;;  %v196_v23 = vld [vmem:[#allocation2 + $0x1a0] sm:$0xff] }
  0xcf   :  { %1799 = vmatprep.subr.bf16.mxu0 %v10606_v33  ;;  %2251 = vmatprep.subr.bf16.mxu1 %v10609_v34  ;;  %v10663_v33 = vld [vmem:[#allocation5 + $0x3ac] ss:$16 sps:$4 sm:$0xff]   ;;  %v531_v34 = vpack.c.bf16 %v250_v31, %v243_v30  ;;  %v10708_v24 = vld [vmem:[#allocation5 + $0x4a4] ss:$16 sps:$4 sm:$0xff]  }
  0xd0   :  { %v195_v30 = vld [vmem:[#allocation2 + $0x198] sm:$0xff]  ;;  %v10714_v31 = vld [vmem:[#allocation5 + $0x4c4] ss:$16 sps:$4 sm:$0xff]  }
  0xd1   :  { %1731 = vmatmul.mubr.bf16.gmra.mrb[8].mxu0 %v495_v37  ;;  %2183 = vmatmul.mubr.bf16.gmra.mrb[8].mxu1 %v495_v37  ;;  %v242_v37 = vld [vmem:[#allocation2 + $0x310] sm:$0xff] }
  0xd2   :  { %1800 = vmatpush1.bf16.msra.mxu0 %v10604_v35  ;;  %2252 = vmatpush1.bf16.msra.mxu1 %v10607_v36  ;;  %v10658_v35 = vld [vmem:[#allocation5 + $0x3a0] ss:$16 sps:$4 sm:$0xff]   ;;  %v10661_v36 = vld [vmem:[#allocation5 + $0x3a8] ss:$16 sps:$4 sm:$0xff]  }
  0xd3   :  { %1801 = vmatprep.subr.bf16.mxu0 %v10612_v40  ;;  %2253 = vmatprep.subr.bf16.mxu1 %v10615_v41  ;;  %v10669_v40 = vld [vmem:[#allocation5 + $0x3cc] ss:$16 sps:$4 sm:$0xff]   ;;  %v10664_v41 = vld [vmem:[#allocation5 + $0x3c0] ss:$16 sps:$4 sm:$0xff]  }
  0xd4   :  { %1740 = vmatprep.mubr.bf16.mxu0 %v503_v43  ;;  %2192 = vmatprep.mubr.bf16.mxu1 %v503_v43  ;;  %v530_v43 = vpack.c.bf16 %v249_v38, %v242_v37  ;;  %v10715_v37 = vld [vmem:[#allocation5 + $0x4c8] ss:$16 sps:$4 sm:$0xff]   ;;  %v10720_v38 = vld [vmem:[#allocation5 + $0x4e4] ss:$16 sps:$4 sm:$0xff]  }
  0xd6   :  { %1802 = vmatpush1.bf16.msra.mxu0 %v10610_v42  ;;  %2254 = vmatpush1.bf16.msra.mxu1 %v10613_v44  ;;  %v10667_v42 = vld [vmem:[#allocation5 + $0x3c8] ss:$16 sps:$4 sm:$0xff]  }
  0xd7   :  { %1803 = vmatprep.subr.bf16.mxu0 %v10618_v47  ;;  %2255 = vmatprep.subr.bf16.mxu1 %v10621_v48  ;;  %v147_v44 = vld [vmem:[#allocation2 + $0x18] sm:$0xff]  ;;  %v10670_v48 = vld [vmem:[#allocation5 + $0x3e0] ss:$16 sps:$4 sm:$0xff]  }
  0xd8   :  { %v10675_v47 = vld [vmem:[#allocation5 + $0x3ec] ss:$16 sps:$4 sm:$0xff]  }
  0xd9   :  { %1741 = vmatmul.mubr.bf16.gmra.mrb[12].mxu0 %v502_v50  ;;  %2193 = vmatmul.mubr.bf16.gmra.mrb[12].mxu1 %v502_v50  ;;  %v10673_v50 = vld [vmem:[#allocation5 + $0x3e8] ss:$16 sps:$4 sm:$0xff]  }
  0xda   :  { %1804 = vmatpush1.bf16.msra.mxu0 %v10616_v49  ;;  %2256 = vmatpush1.bf16.msra.mxu1 %v10619_v53  ;;  %v484_v49 = vpack.c.bf16 %v154_v45, %v147_v44  ;;  %v10678_v53 = vld [vmem:[#allocation5 + $0x404] ss:$16 sps:$4 sm:$0xff]   ;;  %v209_v44 = vld [vmem:[#allocation2 + $0x208] sm:$0xff] }
  0xdb   :  { %1805 = vmatprep.subr.bf16.mxu0 %v10624_v54  ;;  %2257 = vmatprep.subr.bf16.mxu1 %v10627_v55  ;;  %v10681_v54 = vld [vmem:[#allocation5 + $0x40c] ss:$16 sps:$4 sm:$0xff]   ;;  %v10676_v55 = vld [vmem:[#allocation5 + $0x400] ss:$16 sps:$4 sm:$0xff]   ;;  %v10726_v45 = vld [vmem:[#allocation5 + $0x504] ss:$16 sps:$4 sm:$0xff]  }
  0xdc   :  { %1750 = vmatprep.mubr.bf16.mxu0 %v510_v58  ;;  %2202 = vmatprep.mubr.bf16.mxu1 %v510_v58  ;;  %v168_v58 = vld [vmem:[#allocation2 + $0xc0] sm:$0xff] }
  0xde   :  { %1806 = vmatpush1.bf16.msra.mxu0 %v10622_v56  ;;  %2258 = vmatpush1.bf16.msra.mxu1 %v10625_v57  ;;  %v483_v56 = vpack.c.bf16 %v153_v52, %v146_v51  ;;  %v161_v57 = vld [vmem:[#allocation2 + $0x88] sm:$0xff]  ;;  %v10732_v52 = vld [vmem:[#allocation5 + $0x524] ss:$16 sps:$4 sm:$0xff]  }
  0xdf   :  { %1807 = vmatprep.subr.bf16.mxu0 %v10630_v61  ;;  %2259 = vmatprep.subr.bf16.mxu1 %v10633_v62  ;;  %v10687_v61 = vld [vmem:[#allocation5 + $0x42c] ss:$16 sps:$4 sm:$0xff]   ;;  %v10682_v62 = vld [vmem:[#allocation5 + $0x420] ss:$16 sps:$4 sm:$0xff]   ;;  %v491_v0 = vpack.c.bf16 %v168_v58, %v161_v57  ;;  %v10727_v51 = vld [vmem:[#allocation5 + $0x508] ss:$16 sps:$4 sm:$0xff]  }
  0xe0   :  { %v216_v57 = vld [vmem:[#allocation2 + $0x240] sm:$0xff]  ;;  %v223_v58 = vld [vmem:[#allocation2 + $0x278] sm:$0xff] }
  0xe1   :  { %1751 = vmatmul.mubr.bf16.gmra.mrb[16].mxu0 %v509_v63  ;;  %2203 = vmatmul.mubr.bf16.gmra.mrb[16].mxu1 %v509_v63  ;;  %v10685_v63 = vld [vmem:[#allocation5 + $0x428] ss:$16 sps:$4 sm:$0xff]  }
  0xe2   :  { %1808 = vmatpush1.bf16.msra.mxu0 %v10628_v2  ;;  %2260 = vmatpush1.bf16.msra.mxu1 %v10631_v3  ;;  %v167_v2 = vld [vmem:[#allocation2 + $0xb8] sm:$0xff]  ;;  %v10690_v3 = vld [vmem:[#allocation5 + $0x444] ss:$16 sps:$4 sm:$0xff]  }
  0xe3   :  { %1809 = vmatprep.subr.bf16.mxu0 %v10636_v4  ;;  %2261 = vmatprep.subr.bf16.mxu1 %v10639_v5  ;;  %v10693_v4 = vld [vmem:[#allocation5 + $0x44c] ss:$16 sps:$4 sm:$0xff]   ;;  %v490_v5 = vpack.c.bf16 %v167_v2, %v160_v1  ;;  %v238_v1 = vld [vmem:[#allocation2 + $0x2f0] sm:$0xff] }
  0xe4   :  { %1760 = vmatprep.mubr.bf16.mxu0 %v517_v8  ;;  %2212 = vmatprep.mubr.bf16.mxu1 %v517_v8  ;;  %v10688_v8 = vld [vmem:[#allocation5 + $0x440] ss:$16 sps:$4 sm:$0xff]   ;;  %v10744_v2 = vld [vmem:[#allocation5 + $0x564] ss:$16 sps:$4 sm:$0xff]  }
  0xe6   :  { %1810 = vmatpush1.bf16.msra.mxu0 %v10634_v6  ;;  %2262 = vmatpush1.bf16.msra.mxu1 %v10637_v7  ;;  %v175_v6 = vld [vmem:[#allocation2 + $0xf8] sm:$0xff]  ;;  %v182_v7 = vld [vmem:[#allocation2 + $0x130] sm:$0xff] }
  0xe7   :  { %1811 = vmatprep.subr.bf16.mxu0 %v10642_v11  ;;  %2263 = vmatprep.subr.bf16.mxu1 %v10645_v12  ;;  %v10699_v11 = vld [vmem:[#allocation5 + $0x46c] ss:$16 sps:$4 sm:$0xff]   ;;  %v10694_v12 = vld [vmem:[#allocation5 + $0x460] ss:$16 sps:$4 sm:$0xff]  }
  0xe9   :  { %1761 = vmatmul.mubr.bf16.gmra.mrb[20].mxu0 %v516_v14  ;;  %2213 = vmatmul.mubr.bf16.gmra.mrb[20].mxu1 %v516_v14  ;;  %v498_v14 = vpack.c.bf16 %v182_v7, %v175_v6  ;;  %v10745_v6 = vld [vmem:[#allocation5 + $0x568] ss:$16 sps:$4 sm:$0xff]   ;;  %v230_v7 = vld [vmem:[#allocation2 + $0x2b0] sm:$0xff] }
  0xea   :  { %1812 = vmatpush1.bf16.msra.mxu0 %v10640_v13  ;;  %2264 = vmatpush1.bf16.msra.mxu1 %v10643_v15  ;;  %v10697_v13 = vld [vmem:[#allocation5 + $0x468] ss:$16 sps:$4 sm:$0xff]   ;;  %v174_v15 = vld [vmem:[#allocation2 + $0xf0] sm:$0xff] }
  0xeb   :  { %1813 = vmatprep.subr.bf16.mxu0 %v10648_v18  ;;  %2265 = vmatprep.subr.bf16.mxu1 %v10651_v19  ;;  %v10705_v18 = vld [vmem:[#allocation5 + $0x48c] ss:$16 sps:$4 sm:$0xff]   ;;  %v10700_v19 = vld [vmem:[#allocation5 + $0x480] ss:$16 sps:$4 sm:$0xff]  }
  0xec   :  { %1770 = vmatprep.mubr.bf16.mxu0 %v524_v21  ;;  %2222 = vmatprep.mubr.bf16.mxu1 %v524_v21  ;;  %v10703_v21 = vld [vmem:[#allocation5 + $0x488] ss:$16 sps:$4 sm:$0xff]  }
  0xee   :  { %1814 = vmatpush1.bf16.msra.mxu0 %v10646_v20  ;;  %2266 = vmatpush1.bf16.msra.mxu1 %v10649_v22  ;;  %v497_v20 = vpack.c.bf16 %v181_v16, %v174_v15  ;;  %v189_v22 = vld [vmem:[#allocation2 + $0x168] sm:$0xff]  ;;  %v10756_v16 = vld [vmem:[#allocation5 + $0x5a4] ss:$16 sps:$4 sm:$0xff]  }
  0xef   :  { %1815 = vmatprep.subr.bf16.mxu0 %v10654_v25  ;;  %2267 = vmatprep.subr.bf16.mxu1 %v10657_v26  ;;  %v10711_v25 = vld [vmem:[#allocation5 + $0x4ac] ss:$16 sps:$4 sm:$0xff]   ;;  %v10706_v26 = vld [vmem:[#allocation5 + $0x4a0] ss:$16 sps:$4 sm:$0xff]   ;;  %v10751_v15 = vld [vmem:[#allocation5 + $0x588] ss:$16 sps:$4 sm:$0xff]  }
  0xf1   :  { %1771 = vmatmul.mubr.bf16.gmra.mrb[24].mxu0 %v523_v29  ;;  %2223 = vmatmul.mubr.bf16.gmra.mrb[24].mxu1 %v523_v29  ;;  %v188_v29 = vld [vmem:[#allocation2 + $0x160] sm:$0xff] }
  0xf2   :  { %1816 = vmatpush1.bf16.msra.mxu0 %v10652_v27  ;;  %2268 = vmatpush1.bf16.msra.mxu1 %v10655_v28  ;;  %v505_v27 = vpack.c.bf16 %v196_v23, %v189_v22  ;;  %v10709_v28 = vld [vmem:[#allocation5 + $0x4a8] ss:$16 sps:$4 sm:$0xff]   ;;  %v10762_v23 = vld [vmem:[#allocation5 + $0x5c4] ss:$16 sps:$4 sm:$0xff]  }
  0xf3   :  { %1817 = vmatprep.subr.bf16.mxu0 %v10660_v32  ;;  %2269 = vmatprep.subr.bf16.mxu1 %v10663_v33  ;;  %v10717_v32 = vld [vmem:[#allocation5 + $0x4cc] ss:$16 sps:$4 sm:$0xff]   ;;  %v504_v33 = vpack.c.bf16 %v195_v30, %v188_v29  ;;  %v10763_v29 = vld [vmem:[#allocation5 + $0x5c8] ss:$16 sps:$4 sm:$0xff]   ;;  %v10768_v30 = vld [vmem:[#allocation5 + $0x5e4] ss:$16 sps:$4 sm:$0xff]  }
  0xf4   :  { %1780 = vmatprep.mubr.bf16.mxu0 %v531_v34  ;;  %2232 = vmatprep.mubr.bf16.mxu1 %v531_v34  ;;  %v203_v34 = vld [vmem:[#allocation2 + $0x1d8] sm:$0xff] }
  0xf5   :  { %v251_v22 = vld [vmem:[#allocation2 + $0x358] sm:$0xff] }
  0xf6   :  { %1818 = vmatpush1.bf16.msra.mxu0 %v10658_v35  ;;  %2270 = vmatpush1.bf16.msra.mxu1 %v10661_v36  ;;  %v210_v35 = vld [vmem:[#allocation2 + $0x210] sm:$0xff] }
  0xf7   :  { %1819 = vmatprep.subr.bf16.mxu0 %v10666_v39  ;;  %2271 = vmatprep.subr.bf16.mxu1 %v10669_v40  ;;  %v10712_v36 = vld [vmem:[#allocation5 + $0x4c0] ss:$16 sps:$4 sm:$0xff]   ;;  %v10723_v39 = vld [vmem:[#allocation5 + $0x4ec] ss:$16 sps:$4 sm:$0xff]   ;;  %v512_v40 = vpack.c.bf16 %v210_v35, %v203_v34 }
  0xf8   :  { %v148_v35 = vld [vmem:[#allocation2 + $0x20] sm:$0xff] }
  0xf9   :  { %1781 = vmatmul.mubr.bf16.gmra.mrb[28].mxu0 %v530_v43  ;;  %2233 = vmatmul.mubr.bf16.gmra.mrb[28].mxu1 %v530_v43  ;;  %v202_v43 = vld [vmem:[#allocation2 + $0x1d0] sm:$0xff] }
  0xfa   :  { %1820 = vmatpush1.bf16.msra.mxu0 %v10664_v41  ;;  %2272 = vmatpush1.bf16.msra.mxu1 %v10667_v42  ;;  %v10718_v41 = vld [vmem:[#allocation5 + $0x4e0] ss:$16 sps:$4 sm:$0xff]   ;;  %v10721_v42 = vld [vmem:[#allocation5 + $0x4e8] ss:$16 sps:$4 sm:$0xff]  }
  0xfb   :  { %1821 = vmatprep.subr.bf16.mxu0 %v10672_v46  ;;  %2273 = vmatprep.subr.bf16.mxu1 %v10675_v47  ;;  %v10729_v46 = vld [vmem:[#allocation5 + $0x50c] ss:$16 sps:$4 sm:$0xff]   ;;  %v511_v47 = vpack.c.bf16 %v209_v44, %v202_v43  ;;  %v10777_v44 = vld [vmem:[#allocation5 + $0x624] ss:$16 sps:$4 sm:$0xff]  }
  0xfc   :  { %1823 = vmatprep.mubr.bf16.mxu0 %v484_v49  ;;  %2275 = vmatprep.mubr.bf16.mxu1 %v484_v49  ;;  %v224_v49 = vld [vmem:[#allocation2 + $0x280] sm:$0xff] }
  0xfe   :  { %1822 = vmatpush1.bf16.msra.mxu0 %v10670_v48  ;;  %2274 = vmatpush1.bf16.msra.mxu1 %v10673_v50  ;;  %v217_v48 = vld [vmem:[#allocation2 + $0x248] sm:$0xff]  ;;  %v10724_v50 = vld [vmem:[#allocation5 + $0x500] ss:$16 sps:$4 sm:$0xff]  }
  0xff   :  { %1904 = vmatprep.subr.bf16.mxu0 %v10678_v53  ;;  %2356 = vmatprep.subr.bf16.mxu1 %v10681_v54  ;;  %v10735_v53 = vld [vmem:[#allocation5 + $0x52c] ss:$16 sps:$4 sm:$0xff]   ;;  %v10730_v54 = vld [vmem:[#allocation5 + $0x520] ss:$16 sps:$4 sm:$0xff]  }
 0x101   :  { %1824 = vmatmul.mubr.bf16.vlgmr.msra.gmra.mrb[0].mxu0 %v483_v56  ;;  %2276 = vmatmul.mubr.bf16.vlgmr.msra.gmra.mrb[0].mxu1 %v483_v56  ;;  %v10733_v56 = vld [vmem:[#allocation5 + $0x528] ss:$16 sps:$4 sm:$0xff]  }
 0x102   :  { %1905 = vmatpush1.bf16.msra.mxu0 %v10676_v55  ;;  %2357 = vmatpush1.bf16.msra.mxu1 %v10679_v59  ;;  %v519_v55 = vpack.c.bf16 %v224_v49, %v217_v48  ;;  %v10738_v59 = vld [vmem:[#allocation5 + $0x544] ss:$16 sps:$4 sm:$0xff]   ;;  %v10787_v48 = vld [vmem:[#allocation5 + $0x608] ss:$16 sps:$4 sm:$0xff]  }
 0x103   :  { %1906 = vmatprep.subr.bf16.mxu0 %v10684_v60  ;;  %2358 = vmatprep.subr.bf16.mxu1 %v10687_v61  ;;  %v10741_v60 = vld [vmem:[#allocation5 + $0x54c] ss:$16 sps:$4 sm:$0xff]   ;;  %v10736_v61 = vld [vmem:[#allocation5 + $0x540] ss:$16 sps:$4 sm:$0xff]  }
 0x104   :  { %1833 = vmatprep.mubr.bf16.mxu0 %v491_v0  ;;  %2285 = vmatprep.mubr.bf16.mxu1 %v491_v0  ;;  %v231_v0 = vld [vmem:[#allocation2 + $0x2b8] sm:$0xff]  ;;  %v177_v49 = vld [vmem:[#allocation2 + $0x108] sm:$0xff] }
 0x106   :  { %1907 = vmatpush1.bf16.msra.mxu0 %v10682_v62  ;;  %2359 = vmatpush1.bf16.msra.mxu1 %v10685_v63  ;;  %v10739_v62 = vld [vmem:[#allocation5 + $0x548] ss:$16 sps:$4 sm:$0xff]   ;;  %v518_v63 = vpack.c.bf16 %v223_v58, %v216_v57  ;;  %v10798_v57 = vld [vmem:[#allocation5 + $0x64c] ss:$16 sps:$4 sm:$0xff]   ;;  %v176_v58 = vld [vmem:[#allocation2 + $0x100] sm:$0xff] }
 0x107   :  { %1908 = vmatprep.subr.bf16.mxu0 %v10690_v3  ;;  %2360 = vmatprep.subr.bf16.mxu1 %v10693_v4  ;;  %v10747_v3 = vld [vmem:[#allocation5 + $0x56c] ss:$16 sps:$4 sm:$0xff]   ;;  %v10742_v4 = vld [vmem:[#allocation5 + $0x560] ss:$16 sps:$4 sm:$0xff]  }
 0x109   :  { %1834 = vmatmul.mubr.bf16.gmra.mrb[4].mxu0 %v490_v5  ;;  %2286 = vmatmul.mubr.bf16.gmra.mrb[4].mxu1 %v490_v5  ;;  %v526_v5 = vpack.c.bf16 %v238_v1, %v231_v0  ;;  %v10801_v0 = vld [vmem:[#allocation5 + $0x66c] ss:$16 sps:$4 sm:$0xff]   ;;  %v10781_v1 = vld [vmem:[#allocation5 + $0x660] ss:$16 sps:$4 sm:$0xff]  }
 0x10a   :  { %1909 = vmatpush1.bf16.msra.mxu0 %v10688_v8  ;;  %2361 = vmatpush1.bf16.msra.mxu1 %v10691_v9  ;;  %v237_v8 = vld [vmem:[#allocation2 + $0x2e8] sm:$0xff]  ;;  %v10750_v9 = vld [vmem:[#allocation5 + $0x584] ss:$16 sps:$4 sm:$0xff]  }
 0x10b   :  { %1910 = vmatprep.subr.bf16.mxu0 %v10696_v10  ;;  %2362 = vmatprep.subr.bf16.mxu1 %v10699_v11  ;;  %v10753_v10 = vld [vmem:[#allocation5 + $0x58c] ss:$16 sps:$4 sm:$0xff]   ;;  %v525_v11 = vpack.c.bf16 %v237_v8, %v230_v7  ;;  %v10795_v8 = vld [vmem:[#allocation5 + $0x6a4] ss:$16 sps:$4 sm:$0xff]  }
 0x10c   :  { %1843 = vmatprep.mubr.bf16.mxu0 %v498_v14  ;;  %2295 = vmatprep.mubr.bf16.mxu1 %v498_v14  ;;  %v10748_v14 = vld [vmem:[#allocation5 + $0x580] ss:$16 sps:$4 sm:$0xff]  }
 0x10e   :  { %1911 = vmatpush1.bf16.msra.mxu0 %v10694_v12  ;;  %2363 = vmatpush1.bf16.msra.mxu1 %v10697_v13  ;;  %v245_v12 = vld [vmem:[#allocation2 + $0x328] sm:$0xff]  ;;  %v252_v13 = vld [vmem:[#allocation2 + $0x360] sm:$0xff] }
 0x10f   :  { %1912 = vmatprep.subr.bf16.mxu0 %v10702_v17  ;;  %2364 = vmatprep.subr.bf16.mxu1 %v10705_v18  ;;  %v10759_v17 = vld [vmem:[#allocation5 + $0x5ac] ss:$16 sps:$4 sm:$0xff]   ;;  %v10754_v18 = vld [vmem:[#allocation5 + $0x5a0] ss:$16 sps:$4 sm:$0xff]  }
 0x111   :  { %1844 = vmatmul.mubr.bf16.gmra.mrb[8].mxu0 %v497_v20  ;;  %2296 = vmatmul.mubr.bf16.gmra.mrb[8].mxu1 %v497_v20  ;;  %v10757_v20 = vld [vmem:[#allocation5 + $0x5a8] ss:$16 sps:$4 sm:$0xff]  }
 0x112   :  { %1913 = vmatpush1.bf16.msra.mxu0 %v10700_v19  ;;  %2365 = vmatpush1.bf16.msra.mxu1 %v10703_v21  ;;  %v533_v19 = vpack.c.bf16 %v252_v13, %v245_v12  ;;  %v244_v21 = vld [vmem:[#allocation2 + $0x320] sm:$0xff]  ;;  %v197_v12 = vld [vmem:[#allocation2 + $0x1a8] sm:$0xff] }
 0x113   :  { %1914 = vmatprep.subr.bf16.mxu0 %v10708_v24  ;;  %2366 = vmatprep.subr.bf16.mxu1 %v10711_v25  ;;  %v10765_v24 = vld [vmem:[#allocation5 + $0x5cc] ss:$16 sps:$4 sm:$0xff]   ;;  %v532_v25 = vpack.c.bf16 %v251_v22, %v244_v21  ;;  %v10813_v22 = vld [vmem:[#allocation5 + $0x6e4] ss:$16 sps:$4 sm:$0xff]  }
 0x114   :  { %1853 = vmatprep.mubr.bf16.mxu0 %v505_v27  ;;  %2305 = vmatprep.mubr.bf16.mxu1 %v505_v27  ;;  %v156_v27 = vld [vmem:[#allocation2 + $0x60] sm:$0xff]  ;;  %v205_v13 = vld [vmem:[#allocation2 + $0x1e8] sm:$0xff] }
 0x116   :  { %1915 = vmatpush1.bf16.msra.mxu0 %v10706_v26  ;;  %2367 = vmatpush1.bf16.msra.mxu1 %v10709_v28  ;;  %v149_v26 = vld [vmem:[#allocation2 + $0x28] sm:$0xff]  ;;  %v10760_v28 = vld [vmem:[#allocation5 + $0x5c0] ss:$16 sps:$4 sm:$0xff]  }
 0x117   :  { %1916 = vmatprep.subr.bf16.mxu0 %v10714_v31  ;;  %2368 = vmatprep.subr.bf16.mxu1 %v10717_v32  ;;  %v10771_v31 = vld [vmem:[#allocation5 + $0x5ec] ss:$16 sps:$4 sm:$0xff]   ;;  %v10766_v32 = vld [vmem:[#allocation5 + $0x5e0] ss:$16 sps:$4 sm:$0xff]   ;;  %v486_v34 = vpack.c.bf16 %v156_v27, %v149_v26 }
 0x118   :  { %v211_v26 = vld [vmem:[#allocation2 + $0x218] sm:$0xff] }
 0x119   :  { %1854 = vmatmul.mubr.bf16.gmra.mrb[12].mxu0 %v504_v33  ;;  %2306 = vmatmul.mubr.bf16.gmra.mrb[12].mxu1 %v504_v33  ;;  %v10769_v33 = vld [vmem:[#allocation5 + $0x5e8] ss:$16 sps:$4 sm:$0xff]  }
 0x11a   :  { %1917 = vmatpush1.bf16.msra.mxu0 %v10712_v36  ;;  %2369 = vmatpush1.bf16.msra.mxu1 %v10715_v37  ;;  %v155_v36 = vld [vmem:[#allocation2 + $0x58] sm:$0xff]  ;;  %v10774_v37 = vld [vmem:[#allocation5 + $0x604] ss:$16 sps:$4 sm:$0xff]  }
 0x11b   :  { %1918 = vmatprep.subr.bf16.mxu0 %v10720_v38  ;;  %2370 = vmatprep.subr.bf16.mxu1 %v10723_v39  ;;  %v163_v38 = vld [vmem:[#allocation2 + $0x98] sm:$0xff]  ;;  %v170_v39 = vld [vmem:[#allocation2 + $0xd0] sm:$0xff] }
 0x11c   :  { %1863 = vmatprep.mubr.bf16.mxu0 %v512_v40  ;;  %2315 = vmatprep.mubr.bf16.mxu1 %v512_v40  ;;  %v10789_v40 = vld [vmem:[#allocation5 + $0x60c] ss:$16 sps:$4 sm:$0xff]   ;;  %v493_v43 = vpack.c.bf16 %v170_v39, %v163_v38 }
 0x11d   :  { %v219_v27 = vld [vmem:[#allocation2 + $0x258] sm:$0xff] }
 0x11e   :  { %1919 = vmatpush1.bf16.msra.mxu0 %v10718_v41  ;;  %2371 = vmatpush1.bf16.msra.mxu1 %v10721_v42  ;;  %v485_v41 = vpack.c.bf16 %v155_v36, %v148_v35  ;;  %v10772_v42 = vld [vmem:[#allocation5 + $0x600] ss:$16 sps:$4 sm:$0xff]   ;;  %v225_v35 = vld [vmem:[#allocation2 + $0x288] sm:$0xff] }
 0x11f   :  { %1920 = vmatprep.subr.bf16.mxu0 %v10726_v45  ;;  %2372 = vmatprep.subr.bf16.mxu1 %v10729_v46  ;;  %v162_v45 = vld [vmem:[#allocation2 + $0x90] sm:$0xff]  ;;  %v169_v46 = vld [vmem:[#allocation2 + $0xc8] sm:$0xff] }
 0x120   :  { %v233_v36 = vld [vmem:[#allocation2 + $0x2c8] sm:$0xff] }
 0x121   :  { %1864 = vmatmul.mubr.bf16.gmra.mrb[16].mxu0 %v511_v47  ;;  %2316 = vmatmul.mubr.bf16.gmra.mrb[16].mxu1 %v511_v47  ;;  %v10775_v47 = vld [vmem:[#allocation5 + $0x620] ss:$16 sps:$4 sm:$0xff]  }
 0x122   :  { %1921 = vmatpush1.bf16.msra.mxu0 %v10724_v50  ;;  %2373 = vmatpush1.bf16.msra.mxu1 %v10727_v51  ;;  %v10792_v50 = vld [vmem:[#allocation5 + $0x62c] ss:$16 sps:$4 sm:$0xff]   ;;  %v184_v51 = vld [vmem:[#allocation2 + $0x140] sm:$0xff] }
 0x123   :  { %1922 = vmatprep.subr.bf16.mxu0 %v10732_v52  ;;  %2374 = vmatprep.subr.bf16.mxu1 %v10735_v53  ;;  %v10780_v52 = vld [vmem:[#allocation5 + $0x644] ss:$16 sps:$4 sm:$0xff]   ;;  %v10790_v53 = vld [vmem:[#allocation5 + $0x628] ss:$16 sps:$4 sm:$0xff]  }
 0x124   :  { %1873 = vmatprep.mubr.bf16.mxu0 %v519_v55  ;;  %2325 = vmatprep.mubr.bf16.mxu1 %v519_v55  ;;  %v500_v55 = vpack.c.bf16 %v184_v51, %v177_v49  ;;  %v150_v49 = vld [vmem:[#allocation2 + $0x30] sm:$0xff]  ;;  %v12044_v51 = vmov 0  }
 0x126   :  { %1923 = vmatpush1.bf16.msra.mxu0 %v10730_v54  ;;  %2375 = vmatpush1.bf16.msra.mxu1 %v10733_v56  ;;  %v492_v54 = vpack.c.bf16 %v169_v46, %v162_v45  ;;  %v10778_v56 = vld [vmem:[#allocation5 + $0x640] ss:$16 sps:$4 sm:$0xff]  }
 0x127   :  { %1924 = vmatprep.subr.bf16.mxu0 %v10738_v59  ;;  %2376 = vmatprep.subr.bf16.mxu1 %v10741_v60  ;;  %v183_v59 = vld [vmem:[#allocation2 + $0x138] sm:$0xff]  ;;  %v10783_v60 = vld [vmem:[#allocation5 + $0x664] ss:$16 sps:$4 sm:$0xff]  }
 0x128   :  { %v246_v46 = vld [vmem:[#allocation2 + $0x330] sm:$0xff] }
 0x129   :  { %1874 = vmatmul.mubr.bf16.gmra.mrb[20].mxu0 %v518_v63  ;;  %2326 = vmatmul.mubr.bf16.gmra.mrb[20].mxu1 %v518_v63  ;;  %v198_v63 = vld [vmem:[#allocation2 + $0x1b0] sm:$0xff] }
 0x12a   :  { %1925 = vmatpush1.bf16.msra.mxu0 %v10736_v61  ;;  %2377 = vmatpush1.bf16.msra.mxu1 %v10739_v62  ;;  %v10796_v61 = vld [vmem:[#allocation5 + $0x648] ss:$16 sps:$4 sm:$0xff]  }
 0x12b   :  { %1926 = vmatprep.subr.bf16.mxu0 %v10744_v2  ;;  %2378 = vmatprep.subr.bf16.mxu1 %v10747_v3  ;;  %v191_v62 = vld [vmem:[#allocation2 + $0x178] sm:$0xff]  ;;  %v10786_v2 = vld [vmem:[#allocation5 + $0x684] ss:$16 sps:$4 sm:$0xff]  }
 0x12c   :  { %1883 = vmatprep.mubr.bf16.mxu0 %v526_v5  ;;  %2335 = vmatprep.mubr.bf16.mxu1 %v526_v5  ;;  %v10799_v3 = vld [vmem:[#allocation5 + $0x668] ss:$16 sps:$4 sm:$0xff]   ;;  %v10784_v5 = vld [vmem:[#allocation5 + $0x680] ss:$16 sps:$4 sm:$0xff]   ;;  %v507_v7 = vpack.c.bf16 %v198_v63, %v191_v62 }
 0x12d   :  { %v178_v62 = vld [vmem:[#allocation2 + $0x110] sm:$0xff]  ;;  %v185_v63 = vld [vmem:[#allocation2 + $0x148] sm:$0xff] }
 0x12e   :  { %1927 = vmatpush1.bf16.msra.mxu0 %v10742_v4  ;;  %2379 = vmatpush1.bf16.msra.mxu1 %v10745_v6  ;;  %v499_v4 = vpack.c.bf16 %v183_v59, %v176_v58  ;;  %v10807_v6 = vld [vmem:[#allocation5 + $0x68c] ss:$16 sps:$4 sm:$0xff]  }
 0x12f   :  { %1928 = vmatprep.subr.bf16.mxu0 %v10750_v9  ;;  %2380 = vmatprep.subr.bf16.mxu1 %v10753_v10  ;;  %v10805_v9 = vld [vmem:[#allocation5 + $0x688] ss:$16 sps:$4 sm:$0xff]   ;;  %v10810_v10 = vld [vmem:[#allocation5 + $0x6ac] ss:$16 sps:$4 sm:$0xff]  }
 0x130   :  { %v10828_v58 = vld [vmem:[#allocation7 + $0x24] ss:$8 sps:$4 sm:$0xff]  }
 0x131   :  { %1884 = vmatmul.mubr.bf16.gmra.mrb[24].mxu0 %v525_v11  ;;  %2336 = vmatmul.mubr.bf16.gmra.mrb[24].mxu1 %v525_v11  ;;  %v190_v11 = vld [vmem:[#allocation2 + $0x170] sm:$0xff] }
 0x132   :  { %1929 = vmatpush1.bf16.msra.mxu0 %v10748_v14  ;;  %2381 = vmatpush1.bf16.msra.mxu1 %v10751_v15  ;;  %v212_v14 = vld [vmem:[#allocation2 + $0x220] sm:$0xff] }
 0x133   :  { %1930 = vmatprep.subr.bf16.mxu0 %v10756_v16  ;;  %2382 = vmatprep.subr.bf16.mxu1 %v10759_v17  ;;  %v10793_v15 = vld [vmem:[#allocation5 + $0x6a0] ss:$16 sps:$4 sm:$0xff]   ;;  %v10804_v16 = vld [vmem:[#allocation5 + $0x6c4] ss:$16 sps:$4 sm:$0xff]   ;;  %v10808_v17 = vld [vmem:[#allocation5 + $0x6a8] ss:$16 sps:$4 sm:$0xff]   ;;  %v514_v21 = vpack.c.bf16 %v212_v14, %v205_v13 }
 0x134   :  { %1893 = vmatprep.mubr.bf16.mxu0 %v533_v19  ;;  %2345 = vmatprep.mubr.bf16.mxu1 %v533_v19  ;;  %v10802_v19 = vld [vmem:[#allocation5 + $0x6c0] ss:$16 sps:$4 sm:$0xff]   ;;  %v213_v13 = vld [vmem:[#allocation2 + $0x228] sm:$0xff] }
 0x135   :  { %v10841_v14 = vld [vmem:[#allocation7 + $0x70] ss:$8 sps:$4 sm:$0xff]  }
 0x136   :  { %1931 = vmatpush1.bf16.msra.mxu0 %v10754_v18  ;;  %2383 = vmatpush1.bf16.msra.mxu1 %v10757_v20  ;;  %v506_v18 = vpack.c.bf16 %v197_v12, %v190_v11  ;;  %v10816_v20 = vld [vmem:[#allocation5 + $0x6cc] ss:$16 sps:$4 sm:$0xff]   ;;  %v206_v12 = vld [vmem:[#allocation2 + $0x1f0] sm:$0xff] }
 0x137   :  { %1932 = vmatprep.subr.bf16.mxu0 %v10762_v23  ;;  %2384 = vmatprep.subr.bf16.mxu1 %v10765_v24  ;;  %v10814_v23 = vld [vmem:[#allocation5 + $0x6c8] ss:$16 sps:$4 sm:$0xff]   ;;  %v10819_v24 = vld [vmem:[#allocation5 + $0x6ec] ss:$16 sps:$4 sm:$0xff]  }
 0x138   :  { %v10843_v11 = vld [vmem:[#allocation7 + $0x74] ss:$8 sps:$4 sm:$0xff]  }
 0x139   :  { %1894 = vmatmul.mubr.bf16.gmra.mrb[28].mxu0 %v532_v25  ;;  %2346 = vmatmul.mubr.bf16.gmra.mrb[28].mxu1 %v532_v25  ;;  %v204_v25 = vld [vmem:[#allocation2 + $0x1e0] sm:$0xff] }
 0x13a   :  { %1933 = vmatpush1.bf16.msra.mxu0 %v10760_v28  ;;  %2385 = vmatpush1.bf16.msra.mxu1 %v10763_v29  ;;  %v226_v28 = vld [vmem:[#allocation2 + $0x290] sm:$0xff] }
 0x13b   :  { %1934 = vmatprep.subr.bf16.mxu0 %v10768_v30  ;;  %2386 = vmatprep.subr.bf16.mxu1 %v10771_v31  ;;  %v10811_v29 = vld [vmem:[#allocation5 + $0x6e0] ss:$16 sps:$4 sm:$0xff]   ;;  %v10817_v30 = vld [vmem:[#allocation5 + $0x6e8] ss:$16 sps:$4 sm:$0xff]   ;;  %v10822_v31 = vld [vmem:[#allocation7 + $0x4] ss:$8 sps:$4 sm:$0xff]  }
 0x13c   :  { %1936 = vmatprep.mubr.bf16.mxu0 %v486_v34  ;;  %2388 = vmatprep.mubr.bf16.mxu1 %v486_v34  ;;  %v218_v34 = vld [vmem:[#allocation2 + $0x250] sm:$0xff] }
 0x13d   :  { %v520_v38 = vpack.c.bf16 %v225_v35, %v218_v34  ;;  %v255_v34 = vld [vmem:[#allocation2 + $0x378] sm:$0xff] }
 0x13e   :  { %1935 = vmatpush1.bf16.msra.mxu0 %v10766_v32  ;;  %2387 = vmatpush1.bf16.msra.mxu1 %v10769_v33  ;;  %v513_v32 = vpack.c.bf16 %v211_v26, %v204_v25  ;;  %v521_v33 = vpack.c.bf16 %v226_v28, %v219_v27  ;;  %v10855_v25 = vld [vmem:[#allocation7 + $0xb4] ss:$8 sps:$4 sm:$0xff]   ;;  %v241_v27 = vld [vmem:[#allocation2 + $0x308] sm:$0xff]  ;;  %v10853_v28 = vld [vmem:[#allocation7 + $0xb0] ss:$8 sps:$4 sm:$0xff]  }
 0x13f   :  { %2017 = vmatprep.subr.bf16.mxu0 %v10774_v37  ;;  %2469 = vmatprep.subr.bf16.mxu1 %v10789_v40  ;;  %v240_v37 = vld [vmem:[#allocation2 + $0x300] sm:$0xff]  ;;  %v234_v26 = vld [vmem:[#allocation2 + $0x2d0] sm:$0xff] }
 0x140   :  { %v528_v39 = vpack.c.bf16 %v240_v37, %v233_v36  ;;  %v232_v40 = vld [vmem:[#allocation2 + $0x2c0] sm:$0xff]  ;;  %v10859_v35 = vld [vmem:[#allocation7 + $0xd0] ss:$8 sps:$4 sm:$0xff]  }
 0x141   :  { %1937 = vmatmul.mubr.bf16.vlgmr.msra.gmra.mrb[0].mxu0 %v485_v41  ;;  %2389 = vmatmul.mubr.bf16.vlgmr.msra.gmra.mrb[0].mxu1 %v485_v41  ;;  %v239_v41 = vld [vmem:[#allocation2 + $0x2f8] sm:$0xff]  ;;  %v10864_v37 = vld [vmem:[#allocation7 + $0xe4] ss:$8 sps:$4 sm:$0xff]  }
 0x142   :  { %2018 = vmatpush1.bf16.msra.mxu0 %v10772_v42  ;;  %1946 = vmatprep.mubr.bf16.mxu0 %v493_v43  ;;  %v247_v42 = vld [vmem:[#allocation2 + $0x338] sm:$0xff] }
 0x143   :  { %2398 = vmatprep.mubr.bf16.mxu1 %v493_v43  ;;  %2019 = vmatprep.subr.bf16.mxu0 %v10777_v44  ;;  %v254_v43 = vld [vmem:[#allocation2 + $0x370] sm:$0xff]  ;;  %v527_v44 = vpack.c.bf16 %v239_v41, %v232_v40  ;;  %v10870_v41 = vld [vmem:[#allocation7 + $0x104] ss:$8 sps:$4 sm:$0xff]  }
 0x144   :  { %2470 = vmatpush1.bf16.msra.mxu1 %v10787_v48  ;;  %v535_v45 = vpack.c.bf16 %v254_v43, %v247_v42  ;;  %v10865_v40 = vld [vmem:[#allocation7 + $0xf0] ss:$8 sps:$4 sm:$0xff]   ;;  %v538_v42 = vlaneseq }
 0x145   :  { %2471 = vmatprep.subr.bf16.mxu1 %v10792_v50  ;;  %v157_v50 = vld [vmem:[#allocation2 + $0x68] sm:$0xff] }
 0x146   :  { %2020 = vmatpush1.bf16.msra.mxu0 %v10775_v47  ;;  %v253_v47 = vld [vmem:[#allocation2 + $0x368] sm:$0xff]  ;;  %v12237_v43 = vshrl.u32 %v538_v42, 7 }
 0x147   :  { %2021 = vmatprep.subr.bf16.mxu0 %v10780_v52  ;;  %v534_v48 = vpack.c.bf16 %v253_v47, %v246_v46  ;;  %v487_v52 = vpack.c.bf16 %v157_v50, %v150_v49  ;;  %v480_v46 = vld [vmem:[%s13333_s13] sm:$0xf] }
 0x148   :  { %2472 = vmatpush1.bf16.msra.mxu1 %v10790_v53  ;;  %v10820_v53 = vld [vmem:[#allocation7] ss:$8 sps:$4 sm:$0xff]   ;;  %v12249_v47 = vsub.s32 1, %v12237_v43 }
 0x149   :  { %1947 = vmatmul.mubr.bf16.gmra.mrb[4].mxu0 %v492_v54  ;;  %2399 = vmatmul.mubr.bf16.gmra.mrb[4].mxu1 %v492_v54  ;;  %v10825_v54 = vld [vmem:[#allocation7 + $0x14] ss:$8 sps:$4 sm:$0xff]  }
 0x14a   :  { %1956 = vmatprep.mubr.bf16.mxu0 %v500_v55  ;;  %2408 = vmatprep.mubr.bf16.mxu1 %v500_v55  ;;  %v164_v55 = vld [vmem:[#allocation2 + $0xa0] sm:$0xff] }
 0x14b   :  { %2022 = vmatpush1.bf16.msra.mxu0 %v10778_v56  ;;  %2473 = vmatprep.subr.bf16.mxu1 %v10798_v57  ;;  %v171_v56 = vld [vmem:[#allocation2 + $0xd8] sm:$0xff] }
 0x14c   :  { %2023 = vmatprep.subr.bf16.mxu0 %v10783_v60  ;;  %2474 = vmatpush1.bf16.msra.mxu1 %v10796_v61  ;;  %v10823_v57 = vld [vmem:[#allocation7 + $0x10] ss:$8 sps:$4 sm:$0xff]   ;;  %v494_v59 = vpack.c.bf16 %v171_v56, %v164_v55  ;;  %v10826_v60 = vld [vmem:[#allocation7 + $0x20] ss:$8 sps:$4 sm:$0xff]   ;;  %v10831_v61 = vld [vmem:[#allocation7 + $0x34] ss:$8 sps:$4 sm:$0xff]  }
 0x14d   :  { %2475 = vmatprep.subr.bf16.mxu1 %v10801_v0  ;;  %v10829_v0 = vld [vmem:[#allocation7 + $0x30] ss:$8 sps:$4 sm:$0xff]  }
 0x14f   :  { %2024 = vmatpush1.bf16.msra.mxu0 %v10781_v1  ;;  %v10834_v1 = vld [vmem:[#allocation7 + $0x44] ss:$8 sps:$4 sm:$0xff]  }
 0x150   :  { %2025 = vmatprep.subr.bf16.mxu0 %v10786_v2  ;;  %2476 = vmatpush1.bf16.msra.mxu1 %v10799_v3  ;;  %v501_v2 = vpack.c.bf16 %v185_v63, %v178_v62  ;;  %v10832_v3 = vld [vmem:[#allocation7 + $0x40] ss:$8 sps:$4 sm:$0xff]  }
 0x151   :  { %1957 = vmatmul.mubr.bf16.gmra.mrb[8].mxu0 %v499_v4  ;;  %2409 = vmatmul.mubr.bf16.gmra.mrb[8].mxu1 %v499_v4  ;;  %v10837_v4 = vld [vmem:[#allocation7 + $0x54] ss:$8 sps:$4 sm:$0xff]  }
 0x152   :  { %1966 = vmatprep.mubr.bf16.mxu0 %v507_v7  ;;  %2418 = vmatprep.mubr.bf16.mxu1 %v507_v7  ;;  %v10835_v7 = vld [vmem:[#allocation7 + $0x50] ss:$8 sps:$4 sm:$0xff]  }
 0x153   :  { %2026 = vmatpush1.bf16.msra.mxu0 %v10784_v5  ;;  %2477 = vmatprep.subr.bf16.mxu1 %v10807_v6  ;;  %v192_v5 = vld [vmem:[#allocation2 + $0x180] sm:$0xff]  ;;  %v199_v6 = vld [vmem:[#allocation2 + $0x1b8] sm:$0xff] }
 0x154   :  { %2027 = vmatprep.subr.bf16.mxu0 %v10795_v8  ;;  %2478 = vmatpush1.bf16.msra.mxu1 %v10805_v9  ;;  %v10840_v8 = vld [vmem:[#allocation7 + $0x64] ss:$8 sps:$4 sm:$0xff]   ;;  %v508_v9 = vpack.c.bf16 %v199_v6, %v192_v5 }
 0x155   :  { %2479 = vmatprep.subr.bf16.mxu1 %v10810_v10  ;;  %v10838_v10 = vld [vmem:[#allocation7 + $0x60] ss:$8 sps:$4 sm:$0xff]  }
 0x156   :  { %v10917_v5 = vld [vmem:[%s13323_s3] sm:$0xff]  }
 0x157   :  { %2028 = vmatpush1.bf16.msra.mxu0 %v10793_v15  ;;  %v10846_v15 = vld [vmem:[#allocation7 + $0x84] ss:$8 sps:$4 sm:$0xff]  }
 0x158   :  { %2029 = vmatprep.subr.bf16.mxu0 %v10804_v16  ;;  %2480 = vmatpush1.bf16.msra.mxu1 %v10808_v17  ;;  %v515_v16 = vpack.c.bf16 %v213_v13, %v206_v12  ;;  %v10844_v17 = vld [vmem:[#allocation7 + $0x80] ss:$8 sps:$4 sm:$0xff]  }
 0x159   :  { %1967 = vmatmul.mubr.bf16.gmra.mrb[12].mxu0 %v506_v18  ;;  %2419 = vmatmul.mubr.bf16.gmra.mrb[12].mxu1 %v506_v18  ;;  %v10849_v18 = vld [vmem:[#allocation7 + $0x94] ss:$8 sps:$4 sm:$0xff]  }
 0x15a   :  { %1976 = vmatprep.mubr.bf16.mxu0 %v514_v21  ;;  %2428 = vmatprep.mubr.bf16.mxu1 %v514_v21  ;;  %v10847_v21 = vld [vmem:[#allocation7 + $0x90] ss:$8 sps:$4 sm:$0xff]  }
 0x15b   :  { %2030 = vmatpush1.bf16.msra.mxu0 %v10802_v19  ;;  %2481 = vmatprep.subr.bf16.mxu1 %v10816_v20  ;;  %v220_v19 = vld [vmem:[#allocation2 + $0x260] sm:$0xff]  ;;  %v227_v20 = vld [vmem:[#allocation2 + $0x298] sm:$0xff] }
 0x15c   :  { %2031 = vmatprep.subr.bf16.mxu0 %v10813_v22  ;;  %2482 = vmatpush1.bf16.msra.mxu1 %v10814_v23  ;;  %v10852_v22 = vld [vmem:[#allocation7 + $0xa4] ss:$8 sps:$4 sm:$0xff]   ;;  %v522_v23 = vpack.c.bf16 %v227_v20, %v220_v19  ;;  %v10920_v20 = vld [vmem:[%s13323_s3 + $0x50] sm:$0xff]  }
 0x15d   :  { %2483 = vmatprep.subr.bf16.mxu1 %v10819_v24  ;;  %v10850_v24 = vld [vmem:[#allocation7 + $0xa0] ss:$8 sps:$4 sm:$0xff]  }
 0x15f   :  { %2032 = vmatpush1.bf16.msra.mxu0 %v10811_v29  ;;  %v10858_v29 = vld [vmem:[#allocation7 + $0xc4] ss:$8 sps:$4 sm:$0xff]  }
 0x160   :  { %2484 = vmatpush1.bf16.msra.mxu1 %v10817_v30  ;;  %3074 = vmatprep.subr.bf16.mxu0 %v10822_v31  ;;  %v529_v30 = vpack.c.bf16 %v241_v27, %v234_v26  ;;  %v10856_v31 = vld [vmem:[#allocation7 + $0xc0] ss:$8 sps:$4 sm:$0xff]  }
 0x161   :  { %1977 = vmatmul.mubr.bf16.gmra.mrb[16].mxu0 %v513_v32  ;;  %2429 = vmatmul.mubr.bf16.gmra.mrb[16].mxu1 %v513_v32  ;;  %v10861_v32 = vld [vmem:[#allocation7 + $0xd4] ss:$8 sps:$4 sm:$0xff]  }
 0x162   :  { %1986 = vmatprep.mubr.bf16.mxu0 %v521_v33  ;;  %2438 = vmatprep.mubr.bf16.mxu1 %v521_v33  ;;  %v248_v33 = vld [vmem:[#allocation2 + $0x340] sm:$0xff] }
 0x163   :  { %v536_v36 = vpack.c.bf16 %v255_v34, %v248_v33 }
 0x169   :  { %1987 = vmatmul.mubr.bf16.gmra.mrb[20].mxu0 %v520_v38  ;;  %2439 = vmatmul.mubr.bf16.gmra.mrb[20].mxu1 %v520_v38  ;;  %v10862_v38 = vld [vmem:[#allocation7 + $0xe0] ss:$8 sps:$4 sm:$0xff]  }
 0x16a   :  { %1996 = vmatprep.mubr.bf16.mxu0 %v528_v39  ;;  %2448 = vmatprep.mubr.bf16.mxu1 %v528_v39  ;;  %v10867_v39 = vld [vmem:[#allocation7 + $0xf4] ss:$8 sps:$4 sm:$0xff]  }
 0x171   :  { %1997 = vmatmul.mubr.bf16.gmra.mrb[24].mxu0 %v527_v44  ;;  %2449 = vmatmul.mubr.bf16.gmra.mrb[24].mxu1 %v527_v44  ;;  %v12240_v44 = vsub.s32 0, %v12237_v43 }
 0x172   :  { %2006 = vmatprep.mubr.bf16.mxu0 %v535_v45  ;;  %2458 = vmatprep.mubr.bf16.mxu1 %v535_v45  ;;  %v12243_v45 = vsub.s32 2, %v12237_v43 }
 0x173   :  { %v12255_v49 = vrot.slane %v480_v46, %v12240_v44 }
 0x174   :  { %v12258_v50 = vrot.slane %v480_v46, %v12243_v45 }
 0x179   :  { %2007 = vmatmul.mubr.bf16.gmra.mrb[28].mxu0 %v534_v48  ;;  %2459 = vmatmul.mubr.bf16.gmra.mrb[28].mxu1 %v534_v48  ;;  %v12252_v48 = vsub.s32 3, %v12237_v43 }
 0x17a   :  { %2049 = vmatprep.mubr.bf16.mxu0 %v12044_v51  ;;  %2501 = vmatprep.mubr.bf16.mxu1 %v12044_v51 }
 0x181   :  { %2050 = vmatmul.mubr.bf16.vlgmr.msra.gmra.mrb[0].mxu0 %v487_v52  ;;  %2502 = vmatmul.mubr.bf16.vlgmr.msra.gmra.mrb[0].mxu1 %v487_v52  ;;  %v12261_v52 = vrot.slane %v480_v46, %v12249_v47 }
 0x182   :  { %2059 = vmatprep.mubr.bf16.mxu0 %v12044_v51  ;;  %2511 = vmatprep.mubr.bf16.mxu1 %v12044_v51 }
 0x183   :  { %3075 = vmatpush1.bf16.msra.mxu0 %v10820_v53  ;;  %v12264_v53 = vrot.slane %v480_v46, %v12252_v48  ;;  %v10871_v46 = vld [vmem:[#allocation7 + $0x110] ss:$8 sps:$4 sm:$0xff]  }
 0x184   :  { %3076 = vmatprep.subr.bf16.mxu0 %v10825_v54 }
 0x187   :  { %3077 = vmatpush1.bf16.msra.mxu0 %v10823_v57 }
 0x188   :  { %3078 = vmatprep.subr.bf16.mxu0 %v10828_v58 }
 0x189   :  { %2060 = vmatmul.mubr.bf16.gmra.mrb[4].mxu0 %v494_v59  ;;  %2512 = vmatmul.mubr.bf16.gmra.mrb[4].mxu1 %v494_v59 }
 0x18a   :  { %2069 = vmatprep.mubr.bf16.mxu0 %v12044_v51  ;;  %2521 = vmatprep.mubr.bf16.mxu1 %v12044_v51 }
 0x18b   :  { %3079 = vmatpush1.bf16.msra.mxu0 %v10826_v60 }
 0x18c   :  { %3080 = vmatprep.subr.bf16.mxu0 %v10831_v61 }
 0x18f   :  { %3081 = vmatpush1.bf16.msra.mxu0 %v10829_v0 }
 0x190   :  { %3082 = vmatprep.subr.bf16.mxu0 %v10834_v1 }
 0x191   :  { %2070 = vmatmul.mubr.bf16.gmra.mrb[8].mxu0 %v501_v2  ;;  %2522 = vmatmul.mubr.bf16.gmra.mrb[8].mxu1 %v501_v2 }
 0x192   :  { %2079 = vmatprep.mubr.bf16.mxu0 %v12044_v51  ;;  %2531 = vmatprep.mubr.bf16.mxu1 %v12044_v51 }
 0x193   :  { %3083 = vmatpush1.bf16.msra.mxu0 %v10832_v3 }
 0x194   :  { %3084 = vmatprep.subr.bf16.mxu0 %v10837_v4  ;;  %v10916_v4 = vld [vmem:[%s13323_s3 + $0x40] sm:$0xff]  }
 0x195   :  { %9549 = vmatprep.subr.bf16.mxu1 %v10916_v4 }
 0x196   :  { %9550 = vmatpush3.bf16.msra.mxu1 %v10917_v5 }
 0x197   :  { %3085 = vmatpush1.bf16.msra.mxu0 %v10835_v7 }
 0x198   :  { %3086 = vmatprep.subr.bf16.mxu0 %v10840_v8  ;;  %v10918_v8 = vld [vmem:[%s13323_s3 + $0x48] sm:$0xff]  }
 0x199   :  { %2080 = vmatmul.mubr.bf16.gmra.mrb[12].mxu0 %v508_v9  ;;  %2532 = vmatmul.mubr.bf16.gmra.mrb[12].mxu1 %v508_v9 }
 0x19a   :  { %2089 = vmatprep.mubr.bf16.mxu0 %v12044_v51  ;;  %2541 = vmatprep.mubr.bf16.mxu1 %v12044_v51 }
 0x19b   :  { %3087 = vmatpush1.bf16.msra.mxu0 %v10838_v10  ;;  %9551 = vmatprep.subr.bf16.mxu1 %v10918_v8 }
 0x19c   :  { %3088 = vmatprep.subr.bf16.mxu0 %v10843_v11 }
 0x19f   :  { %3089 = vmatpush1.bf16.msra.mxu0 %v10841_v14 }
 0x1a0   :  { %3090 = vmatprep.subr.bf16.mxu0 %v10846_v15 }
 0x1a1   :  { %2090 = vmatmul.mubr.bf16.gmra.mrb[16].mxu0 %v515_v16  ;;  %2542 = vmatmul.mubr.bf16.gmra.mrb[16].mxu1 %v515_v16 }
 0x1a2   :  { %2099 = vmatprep.mubr.bf16.mxu0 %v12044_v51  ;;  %2551 = vmatprep.mubr.bf16.mxu1 %v12044_v51 }
 0x1a3   :  { %3091 = vmatpush1.bf16.msra.mxu0 %v10844_v17  ;;  %v10919_v17 = vld [vmem:[%s13323_s3 + $0x8] sm:$0xff]  }
 0x1a4   :  { %3092 = vmatprep.subr.bf16.mxu0 %v10849_v18  ;;  %9552 = vmatpush3.bf16.msra.mxu1 %v10919_v17  ;;  %v10925_v17 = vld [vmem:[%s13323_s3 + $0x20] sm:$0xff]  }
 0x1a5   :  { %9553 = vmatprep.subr.bf16.mxu1 %v10920_v20 }
 0x1a7   :  { %3093 = vmatpush1.bf16.msra.mxu0 %v10847_v21 }
 0x1a8   :  { %3094 = vmatprep.subr.bf16.mxu0 %v10852_v22 }
 0x1a9   :  { %2100 = vmatmul.mubr.bf16.gmra.mrb[20].mxu0 %v522_v23  ;;  %2552 = vmatmul.mubr.bf16.gmra.mrb[20].mxu1 %v522_v23 }
 0x1aa   :  { %2109 = vmatprep.mubr.bf16.mxu0 %v12044_v51  ;;  %2561 = vmatprep.mubr.bf16.mxu1 %v12044_v51 }
 0x1ab   :  { %3095 = vmatpush1.bf16.msra.mxu0 %v10850_v24 }
 0x1ac   :  { %3096 = vmatprep.subr.bf16.mxu0 %v10855_v25  ;;  %v10868_v25 = vld [vmem:[#allocation7 + $0x100] ss:$8 sps:$4 sm:$0xff]  }
 0x1af   :  { %3097 = vmatpush1.bf16.msra.mxu0 %v10853_v28 }
 0x1b0   :  { %3098 = vmatprep.subr.bf16.mxu0 %v10858_v29 }
 0x1b1   :  { %2110 = vmatmul.mubr.bf16.gmra.mrb[24].mxu0 %v529_v30  ;;  %2562 = vmatmul.mubr.bf16.gmra.mrb[24].mxu1 %v529_v30  ;;  %v10873_v30 = vld [vmem:[#allocation7 + $0x114] ss:$8 sps:$4 sm:$0xff]  }
 0x1b2   :  { %2119 = vmatprep.mubr.bf16.mxu0 %v12044_v51  ;;  %2571 = vmatprep.mubr.bf16.mxu1 %v12044_v51 }
 0x1b3   :  { %3099 = vmatpush1.bf16.msra.mxu0 %v10856_v31 }
 0x1b4   :  { %3100 = vmatprep.subr.bf16.mxu0 %v10861_v32 }
 0x1b7   :  { %3101 = vmatpush1.bf16.msra.mxu0 %v10859_v35  ;;  %v10921_v35 = vld [vmem:[%s13323_s3 + $0x10] sm:$0xff]  }
 0x1b8   :  { %3102 = vmatprep.subr.bf16.mxu0 %v10864_v37  ;;  %9554 = vmatpush3.bf16.msra.mxu1 %v10921_v35 }
 0x1b9   :  { %2120 = vmatmul.mubr.bf16.gmra.mrb[28].mxu0 %v536_v36  ;;  %2572 = vmatmul.mubr.bf16.gmra.mrb[28].mxu1 %v536_v36 }
 0x1bb   :  { %3103 = vmatpush1.bf16.msra.mxu0 %v10862_v38 }
 0x1bc   :  { %3104 = vmatprep.subr.bf16.mxu0 %v10867_v39 }
 0x1bf   :  { %3105 = vmatpush1.bf16.msra.mxu0 %v10865_v40  ;;  %v10922_v40 = vld [vmem:[%s13323_s3 + $0x58] sm:$0xff]  }
 0x1c0   :  { %3187 = vmatprep.subr.bf16.mxu0 %v10870_v41  ;;  %9555 = vmatprep.subr.bf16.mxu1 %v10922_v40  ;;  %v10928_v40 = vld [vmem:[%s13323_s3 + $0x70] sm:$0xff]  }
 0x254   :  { %v2051_v54 = vpop.f32.mrb[0].mxu0  ;;  %v2503_v55 = vpop.f32.mrb[0].mxu1 }
 0x255   :  { %v9952_v56 = vadd.f32 %v2051_v54, %v12255_v49  ;;  %v9984_v57 = vadd.f32 %v2503_v55, %v12258_v50  ;;  %v2053_v58 = vpop.f32.mrb[1].mxu0  ;;  %v2505_v59 = vpop.f32.mrb[1].mxu1 }
 0x256   :  { %v9953_v60 = vadd.f32 %v2053_v58, %v12261_v52  ;;  %v9985_v61 = vadd.f32 %v2505_v59, %v12264_v53  ;;  %v2055_v62 = vpop.f32.mrb[2].mxu0  ;;  %v2507_v63 = vpop.f32.mrb[2].mxu1  ;;  %v10876_v58 = vld [vmem:[#allocation7 + $0x124] ss:$8 sps:$4 sm:$0xff]  }
 0x257   :  { %v9954_v0 = vadd.f32 %v2055_v62, %v12255_v49  ;;  %v9986_v1 = vadd.f32 %v2507_v63, %v12258_v50  ;;  %v2057_v2 = vpop.f32.mrb[3].mxu0  ;;  %v2509_v3 = vpop.f32.mrb[3].mxu1  ;;  %v2582_v9 = vmax.f32 %v9952_v56, 0.0  ;;  %v2584_v10 = vmax.f32 %v9984_v57, 0.0  ;;  %v10923_v63 = vld [vmem:[%s13323_s3 + $0x18] sm:$0xff]  }
 0x258   :  { %v9955_v6 = vadd.f32 %v2057_v2, %v12261_v52  ;;  %v9987_v7 = vadd.f32 %v2509_v3, %v12264_v53  ;;  %v2583_v13 = vmax.f32 %v9953_v60, 0.0  ;;  %v2585_v14 = vmax.f32 %v9985_v61, 0.0  ;;  %v10924_v2 = vld [vmem:[%s13323_s3 + $0x60] sm:$0xff]   ;;  %9556 = vmatpush3.bf16.msra.mxu1 %v10923_v63 }
 0x259   :  { %v2586_v11 = vmax.f32 %v9954_v0, 0.0  ;;  %v2588_v12 = vmax.f32 %v9986_v1, 0.0  ;;  %9557 = vmatprep.subr.bf16.mxu1 %v10924_v2  ;;  %v10929_v2 = vld [vmem:[%s13323_s3 + $0x30] sm:$0xff]  }
 0x25a   :  { %v2587_v15 = vmax.f32 %v9955_v6, 0.0  ;;  %v2589_v16 = vmax.f32 %v9987_v7, 0.0  ;;  %v10874_v7 = vld [vmem:[#allocation7 + $0x120] ss:$8 sps:$4 sm:$0xff]  }
 0x25b   :  { %v2711_v18 = vpack.c.bf16 %v2586_v11, %v2582_v9  ;;  %v12286_v19 = vpack.c.bf16 %v2588_v12, %v2584_v10  ;;  %v10879_v12 = vld [vmem:[#allocation7 + $0x134] ss:$8 sps:$4 sm:$0xff]  }
 0x25c   :  { %v2712_v21 = vpack.c.bf16 %v2587_v15, %v2583_v13  ;;  %v12291_v22 = vpack.c.bf16 %v2589_v16, %v2585_v14  ;;  %v2061_v23 = vpop.f32.mrb[4].mxu0  ;;  %v2513_v24 = vpop.f32.mrb[4].mxu1  ;;  %9558 = vmatpush3.bf16.msra.mxu1 %v10925_v17 }
 0x25d   :  { %v9956_v26 = vadd.f32 %v2061_v23, %v12255_v49  ;;  %v9988_v27 = vadd.f32 %v2513_v24, %v12258_v50  ;;  %v2063_v28 = vpop.f32.mrb[5].mxu0  ;;  %v2515_v29 = vpop.f32.mrb[5].mxu1  ;;  %v10926_v24 = vld [vmem:[%s13323_s3 + $0x68] sm:$0xff]  }
 0x25e   :  { %v9957_v31 = vadd.f32 %v2063_v28, %v12261_v52  ;;  %v9989_v32 = vadd.f32 %v2515_v29, %v12264_v53  ;;  %v2065_v33 = vpop.f32.mrb[6].mxu0  ;;  %v2517_v34 = vpop.f32.mrb[6].mxu1  ;;  %3106 = vmatprep.mubr.bf16.mxu0 %v2712_v21  ;;  %9559 = vmatprep.subr.bf16.mxu1 %v10926_v24 }
 0x25f   :  { %v9958_v36 = vadd.f32 %v2065_v33, %v12255_v49  ;;  %v9990_v37 = vadd.f32 %v2517_v34, %v12258_v50  ;;  %v2067_v38 = vpop.f32.mrb[7].mxu0  ;;  %v2519_v39 = vpop.f32.mrb[7].mxu1  ;;  %3107 = vmatmul.mubr.bf16.vlgmr.msra.gmra.mrb[32].mxu0 %v2711_v18  ;;  %v2590_v54 = vmax.f32 %v9956_v26, 0.0  ;;  %v2592_v55 = vmax.f32 %v9988_v27, 0.0  ;;  %v10877_v27 = vld [vmem:[#allocation7 + $0x130] ss:$8 sps:$4 sm:$0xff]  }
 0x260   :  { %v9959_v41 = vadd.f32 %v2067_v38, %v12261_v52  ;;  %v9991_v42 = vadd.f32 %v2519_v39, %v12264_v53  ;;  %3188 = vmatpush1.bf16.msra.mxu0 %v10868_v25  ;;  %v2591_v59 = vmax.f32 %v9957_v31, 0.0  ;;  %v2593_v60 = vmax.f32 %v9989_v32, 0.0  ;;  %v10882_v32 = vld [vmem:[#allocation7 + $0x144] ss:$8 sps:$4 sm:$0xff]  }
 0x261   :  { %v2594_v56 = vmax.f32 %v9958_v36, 0.0  ;;  %v2596_v57 = vmax.f32 %v9990_v37, 0.0  ;;  %3189 = vmatprep.subr.bf16.mxu0 %v10873_v30  ;;  %v10927_v37 = vld [vmem:[%s13323_s3 + $0x28] sm:$0xff]  }
 0x262   :  { %v2595_v61 = vmax.f32 %v9959_v41, 0.0  ;;  %v2597_v62 = vmax.f32 %v9991_v42, 0.0  ;;  %9560 = vmatpush3.bf16.msra.mxu1 %v10927_v37 }
 0x263   :  { %v2715_v0 = vpack.c.bf16 %v2594_v56, %v2590_v54  ;;  %v12310_v1 = vpack.c.bf16 %v2596_v57, %v2592_v55  ;;  %v10880_v55 = vld [vmem:[#allocation7 + $0x140] ss:$8 sps:$4 sm:$0xff]   ;;  %9561 = vmatprep.subr.bf16.mxu1 %v10928_v40 }
 0x264   :  { %v2716_v3 = vpack.c.bf16 %v2595_v61, %v2591_v59  ;;  %v12315_v4 = vpack.c.bf16 %v2597_v62, %v2593_v60  ;;  %v2071_v5 = vpop.f32.mrb[8].mxu0  ;;  %v2523_v6 = vpop.f32.mrb[8].mxu1  ;;  %3190 = vmatpush1.bf16.msra.mxu0 %v10871_v46  ;;  %v10885_v60 = vld [vmem:[#allocation7 + $0x154] ss:$8 sps:$4 sm:$0xff]  }
 0x265   :  { %v9960_v8 = vadd.f32 %v2071_v5, %v12255_v49  ;;  %v9992_v9 = vadd.f32 %v2523_v6, %v12258_v50  ;;  %v2073_v10 = vpop.f32.mrb[9].mxu0  ;;  %v2525_v11 = vpop.f32.mrb[9].mxu1  ;;  %3191 = vmatprep.subr.bf16.mxu0 %v10876_v58 }
 0x266   :  { %v9961_v13 = vadd.f32 %v2073_v10, %v12261_v52  ;;  %v9993_v14 = vadd.f32 %v2525_v11, %v12264_v53  ;;  %v2075_v15 = vpop.f32.mrb[10].mxu0  ;;  %v2527_v16 = vpop.f32.mrb[10].mxu1  ;;  %3116 = vmatprep.mubr.bf16.mxu0 %v2716_v3  ;;  %v10883_v10 = vld [vmem:[#allocation7 + $0x150] ss:$8 sps:$4 sm:$0xff]   ;;  %9562 = vmatpush3.bf16.msra.mxu1 %v10929_v2 }
 0x267   :  { %v9962_v18 = vadd.f32 %v2075_v15, %v12255_v49  ;;  %v9994_v20 = vadd.f32 %v2527_v16, %v12258_v50  ;;  %v2077_v21 = vpop.f32.mrb[11].mxu0  ;;  %v2529_v23 = vpop.f32.mrb[11].mxu1  ;;  %3117 = vmatmul.mubr.bf16.gmra.mrb[36].mxu0 %v2715_v0  ;;  %v2598_v28 = vmax.f32 %v9960_v8, 0.0  ;;  %v2600_v29 = vmax.f32 %v9992_v9, 0.0  ;;  %v10888_v15 = vld [vmem:[#allocation7 + $0x164] ss:$8 sps:$4 sm:$0xff]  }
 0x268   :  { %v9963_v25 = vadd.f32 %v2077_v21, %v12261_v52  ;;  %v9995_v26 = vadd.f32 %v2529_v23, %v12264_v53  ;;  %3192 = vmatpush1.bf16.msra.mxu0 %v10874_v7  ;;  %v2599_v33 = vmax.f32 %v9961_v13, 0.0  ;;  %v2601_v34 = vmax.f32 %v9993_v14, 0.0 }
 0x269   :  { %v2602_v30 = vmax.f32 %v9962_v18, 0.0  ;;  %v2604_v31 = vmax.f32 %v9994_v20, 0.0  ;;  %3193 = vmatprep.subr.bf16.mxu0 %v10879_v12 }
 0x26a   :  { %v2603_v35 = vmax.f32 %v9963_v25, 0.0  ;;  %v2605_v36 = vmax.f32 %v9995_v26, 0.0 }
 0x26b   :  { %v2719_v38 = vpack.c.bf16 %v2602_v30, %v2598_v28  ;;  %v12334_v39 = vpack.c.bf16 %v2604_v31, %v2600_v29  ;;  %v10886_v28 = vld [vmem:[#allocation7 + $0x160] ss:$8 sps:$4 sm:$0xff]  }
 0x26c   :  { %v2720_v41 = vpack.c.bf16 %v2603_v35, %v2599_v33  ;;  %v12339_v42 = vpack.c.bf16 %v2605_v36, %v2601_v34  ;;  %v2081_v46 = vpop.f32.mrb[12].mxu0  ;;  %v2533_v54 = vpop.f32.mrb[12].mxu1  ;;  %3194 = vmatpush1.bf16.msra.mxu0 %v10877_v27  ;;  %v10891_v33 = vld [vmem:[#allocation7 + $0x174] ss:$8 sps:$4 sm:$0xff]  }
 0x26d   :  { %v9964_v56 = vadd.f32 %v2081_v46, %v12255_v49  ;;  %v9996_v57 = vadd.f32 %v2533_v54, %v12258_v50  ;;  %v2083_v58 = vpop.f32.mrb[13].mxu0  ;;  %v2535_v59 = vpop.f32.mrb[13].mxu1  ;;  %3195 = vmatprep.subr.bf16.mxu0 %v10882_v32 }
 0x26e   :  { %v9965_v61 = vadd.f32 %v2083_v58, %v12261_v52  ;;  %v9997_v62 = vadd.f32 %v2535_v59, %v12264_v53  ;;  %v2085_v63 = vpop.f32.mrb[14].mxu0  ;;  %v2537_v0 = vpop.f32.mrb[14].mxu1  ;;  %3126 = vmatprep.mubr.bf16.mxu0 %v2720_v41 }
 0x26f   :  { %v9966_v3 = vadd.f32 %v2085_v63, %v12255_v49  ;;  %v9998_v5 = vadd.f32 %v2537_v0, %v12258_v50  ;;  %v2087_v6 = vpop.f32.mrb[15].mxu0  ;;  %v2539_v7 = vpop.f32.mrb[15].mxu1  ;;  %3127 = vmatmul.mubr.bf16.gmra.mrb[40].mxu0 %v2719_v38  ;;  %v2606_v11 = vmax.f32 %v9964_v56, 0.0  ;;  %v2608_v12 = vmax.f32 %v9996_v57, 0.0  ;;  %v10889_v56 = vld [vmem:[#allocation7 + $0x170] ss:$8 sps:$4 sm:$0xff]  }
 0x270   :  { %v9967_v8 = vadd.f32 %v2087_v6, %v12261_v52  ;;  %v9999_v9 = vadd.f32 %v2539_v7, %v12264_v53  ;;  %3196 = vmatpush1.bf16.msra.mxu0 %v10880_v55  ;;  %v2607_v16 = vmax.f32 %v9965_v61, 0.0  ;;  %v2609_v17 = vmax.f32 %v9997_v62, 0.0  ;;  %v10894_v61 = vld [vmem:[#allocation7 + $0x184] ss:$8 sps:$4 sm:$0xff]  }
 0x271   :  { %v2610_v13 = vmax.f32 %v9966_v3, 0.0  ;;  %v2612_v14 = vmax.f32 %v9998_v5, 0.0  ;;  %3197 = vmatprep.subr.bf16.mxu0 %v10885_v60 }
 0x272   :  { %v2611_v18 = vmax.f32 %v9967_v8, 0.0  ;;  %v2613_v20 = vmax.f32 %v9999_v9, 0.0 }
 0x273   :  { %v2723_v21 = vpack.c.bf16 %v2610_v13, %v2606_v11  ;;  %v12352_v23 = vpack.c.bf16 %v2612_v14, %v2608_v12 }
 0x274   :  { %v2724_v24 = vpack.c.bf16 %v2611_v18, %v2607_v16  ;;  %v12354_v25 = vpack.c.bf16 %v2613_v20, %v2609_v17  ;;  %v2091_v26 = vpop.f32.mrb[16].mxu0  ;;  %v2543_v27 = vpop.f32.mrb[16].mxu1  ;;  %3198 = vmatpush1.bf16.msra.mxu0 %v10883_v10  ;;  %v10892_v10 = vld [vmem:[#allocation7 + $0x180] ss:$8 sps:$4 sm:$0xff]  }
 0x275   :  { %v9968_v29 = vadd.f32 %v2091_v26, %v12255_v49  ;;  %v10000_v30 = vadd.f32 %v2543_v27, %v12258_v50  ;;  %v2093_v31 = vpop.f32.mrb[17].mxu0  ;;  %v2545_v32 = vpop.f32.mrb[17].mxu1  ;;  %3199 = vmatprep.subr.bf16.mxu0 %v10888_v15  ;;  %v10897_v15 = vld [vmem:[#allocation7 + $0x194] ss:$8 sps:$4 sm:$0xff]  }
 0x276   :  { %v9969_v34 = vadd.f32 %v2093_v31, %v12261_v52  ;;  %v10001_v35 = vadd.f32 %v2545_v32, %v12264_v53  ;;  %v2095_v36 = vpop.f32.mrb[18].mxu0  ;;  %v2547_v37 = vpop.f32.mrb[18].mxu1  ;;  %3136 = vmatprep.mubr.bf16.mxu0 %v2724_v24 }
 0x277   :  { %v9970_v38 = vadd.f32 %v2095_v36, %v12255_v49  ;;  %v10002_v40 = vadd.f32 %v2547_v37, %v12258_v50  ;;  %v2097_v41 = vpop.f32.mrb[19].mxu0  ;;  %v2549_v46 = vpop.f32.mrb[19].mxu1  ;;  %3137 = vmatmul.mubr.bf16.gmra.mrb[44].mxu0 %v2723_v21  ;;  %v2614_v57 = vmax.f32 %v9968_v29, 0.0  ;;  %v2616_v58 = vmax.f32 %v10000_v30, 0.0  ;;  %v10895_v30 = vld [vmem:[#allocation7 + $0x190] ss:$8 sps:$4 sm:$0xff]  }
 0x278   :  { %v9971_v54 = vadd.f32 %v2097_v41, %v12261_v52  ;;  %v10003_v55 = vadd.f32 %v2549_v46, %v12264_v53  ;;  %3200 = vmatpush1.bf16.msra.mxu0 %v10886_v28  ;;  %v2615_v62 = vmax.f32 %v9969_v34, 0.0  ;;  %v2617_v63 = vmax.f32 %v10001_v35, 0.0  ;;  %v10900_v35 = vld [vmem:[#allocation7 + $0x1a4] ss:$8 sps:$4 sm:$0xff]  }
 0x279   :  { %v2618_v59 = vmax.f32 %v9970_v38, 0.0  ;;  %v2620_v60 = vmax.f32 %v10002_v40, 0.0  ;;  %3201 = vmatprep.subr.bf16.mxu0 %v10891_v33 }
 0x27a   :  { %v2619_v0 = vmax.f32 %v9971_v54, 0.0  ;;  %v2621_v2 = vmax.f32 %v10003_v55, 0.0 }
 0x27b   :  { %v2727_v3 = vpack.c.bf16 %v2618_v59, %v2614_v57  ;;  %v12364_v5 = vpack.c.bf16 %v2620_v60, %v2616_v58  ;;  %v10898_v58 = vld [vmem:[#allocation7 + $0x1a0] ss:$8 sps:$4 sm:$0xff]  }
 0x27c   :  { %v2728_v6 = vpack.c.bf16 %v2619_v0, %v2615_v62  ;;  %v12366_v7 = vpack.c.bf16 %v2621_v2, %v2617_v63  ;;  %v2101_v8 = vpop.f32.mrb[20].mxu0  ;;  %v2553_v9 = vpop.f32.mrb[20].mxu1  ;;  %3202 = vmatpush1.bf16.msra.mxu0 %v10889_v56  ;;  %v10903_v63 = vld [vmem:[#allocation7 + $0x1b4] ss:$8 sps:$4 sm:$0xff]  }
 0x27d   :  { %v9972_v11 = vadd.f32 %v2101_v8, %v12255_v49  ;;  %v10004_v12 = vadd.f32 %v2553_v9, %v12258_v50  ;;  %v2103_v13 = vpop.f32.mrb[21].mxu0  ;;  %v2555_v14 = vpop.f32.mrb[21].mxu1  ;;  %3203 = vmatprep.subr.bf16.mxu0 %v10894_v61 }
 0x27e   :  { %v9973_v16 = vadd.f32 %v2103_v13, %v12261_v52  ;;  %v10005_v17 = vadd.f32 %v2555_v14, %v12264_v53  ;;  %v2105_v18 = vpop.f32.mrb[22].mxu0  ;;  %v2557_v20 = vpop.f32.mrb[22].mxu1  ;;  %3146 = vmatprep.mubr.bf16.mxu0 %v2728_v6  ;;  %v10901_v14 = vld [vmem:[#allocation7 + $0x1b0] ss:$8 sps:$4 sm:$0xff]  }
 0x27f   :  { %v9974_v21 = vadd.f32 %v2105_v18, %v12255_v49  ;;  %v10006_v24 = vadd.f32 %v2557_v20, %v12258_v50  ;;  %v2107_v26 = vpop.f32.mrb[23].mxu0  ;;  %v2559_v27 = vpop.f32.mrb[23].mxu1  ;;  %3147 = vmatmul.mubr.bf16.gmra.mrb[48].mxu0 %v2727_v3  ;;  %v2622_v31 = vmax.f32 %v9972_v11, 0.0  ;;  %v2624_v32 = vmax.f32 %v10004_v12, 0.0  ;;  %v10906_v20 = vld [vmem:[#allocation7 + $0x1c4] ss:$8 sps:$4 sm:$0xff]  }
 0x280   :  { %v9975_v28 = vadd.f32 %v2107_v26, %v12261_v52  ;;  %v10007_v29 = vadd.f32 %v2559_v27, %v12264_v53  ;;  %3204 = vmatpush1.bf16.msra.mxu0 %v10892_v10  ;;  %v2623_v36 = vmax.f32 %v9973_v16, 0.0  ;;  %v2625_v37 = vmax.f32 %v10005_v17, 0.0 }
 0x281   :  { %v2626_v33 = vmax.f32 %v9974_v21, 0.0  ;;  %v2628_v34 = vmax.f32 %v10006_v24, 0.0  ;;  %3205 = vmatprep.subr.bf16.mxu0 %v10897_v15 }
 0x282   :  { %v2627_v38 = vmax.f32 %v9975_v28, 0.0  ;;  %v2629_v40 = vmax.f32 %v10007_v29, 0.0 }
 0x283   :  { %v2731_v41 = vpack.c.bf16 %v2626_v33, %v2622_v31  ;;  %v12376_v46 = vpack.c.bf16 %v2628_v34, %v2624_v32  ;;  %v10904_v34 = vld [vmem:[#allocation7 + $0x1c0] ss:$8 sps:$4 sm:$0xff]  }
 0x284   :  { %v2732_v54 = vpack.c.bf16 %v2627_v38, %v2623_v36  ;;  %v12378_v55 = vpack.c.bf16 %v2629_v40, %v2625_v37  ;;  %v2111_v56 = vpop.f32.mrb[24].mxu0  ;;  %v2563_v57 = vpop.f32.mrb[24].mxu1  ;;  %3206 = vmatpush1.bf16.msra.mxu0 %v10895_v30  ;;  %v10909_v40 = vld [vmem:[#allocation7 + $0x1d4] ss:$8 sps:$4 sm:$0xff]  }
 0x285   :  { %v9976_v59 = vadd.f32 %v2111_v56, %v12255_v49  ;;  %v10008_v60 = vadd.f32 %v2563_v57, %v12258_v50  ;;  %v2113_v61 = vpop.f32.mrb[25].mxu0  ;;  %v2565_v62 = vpop.f32.mrb[25].mxu1  ;;  %3207 = vmatprep.subr.bf16.mxu0 %v10900_v35 }
 0x286   :  { %v9977_v0 = vadd.f32 %v2113_v61, %v12261_v52  ;;  %v10009_v2 = vadd.f32 %v2565_v62, %v12264_v53  ;;  %v2115_v3 = vpop.f32.mrb[26].mxu0  ;;  %v2567_v6 = vpop.f32.mrb[26].mxu1  ;;  %3156 = vmatprep.mubr.bf16.mxu0 %v2732_v54 }
 0x287   :  { %v9978_v8 = vadd.f32 %v2115_v3, %v12255_v49  ;;  %v10010_v9 = vadd.f32 %v2567_v6, %v12258_v50  ;;  %v2117_v10 = vpop.f32.mrb[27].mxu0  ;;  %v2569_v11 = vpop.f32.mrb[27].mxu1  ;;  %3157 = vmatmul.mubr.bf16.gmra.mrb[52].mxu0 %v2731_v41  ;;  %v2630_v15 = vmax.f32 %v9976_v59, 0.0  ;;  %v2632_v16 = vmax.f32 %v10008_v60, 0.0 }
 0x288   :  { %v9979_v12 = vadd.f32 %v2117_v10, %v12261_v52  ;;  %v10011_v13 = vadd.f32 %v2569_v11, %v12264_v53  ;;  %3208 = vmatpush1.bf16.msra.mxu0 %v10898_v58  ;;  %v2631_v21 = vmax.f32 %v9977_v0, 0.0  ;;  %v2633_v24 = vmax.f32 %v10009_v2, 0.0  ;;  %v10907_v0 = vld [vmem:[#allocation7 + $0x1d0] ss:$8 sps:$4 sm:$0xff]  }
 0x289   :  { %v2634_v17 = vmax.f32 %v9978_v8, 0.0  ;;  %v2636_v18 = vmax.f32 %v10010_v9, 0.0  ;;  %3209 = vmatprep.subr.bf16.mxu0 %v10903_v63  ;;  %v10912_v9 = vld [vmem:[#allocation7 + $0x1e4] ss:$8 sps:$4 sm:$0xff]  }
 0x28a   :  { %v2635_v26 = vmax.f32 %v9979_v12, 0.0  ;;  %v2637_v27 = vmax.f32 %v10011_v13, 0.0 }
 0x28b   :  { %v2735_v28 = vpack.c.bf16 %v2634_v17, %v2630_v15  ;;  %v12388_v29 = vpack.c.bf16 %v2636_v18, %v2632_v16  ;;  %v10913_v16 = vld [vmem:[#allocation7 + $0x1f0] ss:$8 sps:$4 sm:$0xff]  }
 0x28c   :  { %v2736_v30 = vpack.c.bf16 %v2635_v26, %v2631_v21  ;;  %v2738_v31 = vpack.c.bf16 %v2637_v27, %v2633_v24  ;;  %v2121_v32 = vpop.f32.mrb[28].mxu0  ;;  %v2573_v33 = vpop.f32.mrb[28].mxu1  ;;  %3210 = vmatpush1.bf16.msra.mxu0 %v10901_v14 }
 0x28d   :  { %v9980_v35 = vadd.f32 %v2121_v32, %v12255_v49  ;;  %v10012_v36 = vadd.f32 %v2573_v33, %v12258_v50  ;;  %v2123_v37 = vpop.f32.mrb[29].mxu0  ;;  %v2575_v38 = vpop.f32.mrb[29].mxu1  ;;  %3211 = vmatprep.subr.bf16.mxu0 %v10906_v20  ;;  %v10933_v32 = vld [vmem:[%s13324_s4 + $0x8] sm:$0xff]  }
 0x28e   :  { %v9981_v41 = vadd.f32 %v2123_v37, %v12261_v52  ;;  %v10013_v54 = vadd.f32 %v2575_v38, %v12264_v53  ;;  %v2125_v56 = vpop.f32.mrb[30].mxu0  ;;  %v2577_v57 = vpop.f32.mrb[30].mxu1  ;;  %3166 = vmatprep.mubr.bf16.mxu0 %v2736_v30 }
 0x28f   :  { %v9982_v58 = vadd.f32 %v2125_v56, %v12255_v49  ;;  %v10014_v59 = vadd.f32 %v2577_v57, %v12258_v50  ;;  %v2127_v60 = vpop.f32.mrb[31].mxu0  ;;  %v2579_v61 = vpop.f32.mrb[31].mxu1  ;;  %3167 = vmatmul.mubr.bf16.gmra.mrb[56].mxu0 %v2735_v28  ;;  %v2638_v2 = vmax.f32 %v9980_v35, 0.0  ;;  %v2640_v3 = vmax.f32 %v10012_v36, 0.0 }
 0x290   :  { %v9983_v62 = vadd.f32 %v2127_v60, %v12261_v52  ;;  %v10015_v63 = vadd.f32 %v2579_v61, %v12264_v53  ;;  %3212 = vmatpush1.bf16.msra.mxu0 %v10904_v34  ;;  %v2639_v10 = vmax.f32 %v9981_v41, 0.0  ;;  %v2641_v11 = vmax.f32 %v10013_v54, 0.0  ;;  %v10910_v52 = vld [vmem:[#allocation7 + $0x1e0] ss:$8 sps:$4 sm:$0xff]   ;;  %v10915_v53 = vld [vmem:[#allocation7 + $0x1f4] ss:$8 sps:$4 sm:$0xff]  }
 0x291   :  { %v2642_v6 = vmax.f32 %v9982_v58, 0.0  ;;  %v2644_v8 = vmax.f32 %v10014_v59, 0.0  ;;  %3213 = vmatprep.subr.bf16.mxu0 %v10909_v40  ;;  %v10934_v41 = vld [vmem:[%s13324_s4 + $0x10] sm:$0xff]  }
 0x292   :  { %v2643_v49 = vmax.f32 %v9983_v62, 0.0  ;;  %v2645_v12 = vmax.f32 %v10015_v63, 0.0  ;;  %v10935_v62 = vld [vmem:[%s13324_s4 + $0x18] sm:$0xff]  }
 0x293   :  { %v2739_v50 = vpack.c.bf16 %v2642_v6, %v2638_v2  ;;  %v2741_v13 = vpack.c.bf16 %v2644_v8, %v2640_v3 }
 0x294   :  { %v2740_v14 = vpack.c.bf16 %v2643_v49, %v2639_v10  ;;  %v2742_v15 = vpack.c.bf16 %v2645_v12, %v2641_v11  ;;  %3214 = vmatpush1.bf16.msra.mxu0 %v10907_v0  ;;  %v10936_v10 = vld [vmem:[%s13324_s4 + $0x20] sm:$0xff]  }
 0x295   :  { %3215 = vmatprep.subr.bf16.mxu0 %v10912_v9 }
 0x296   :  { %3176 = vmatprep.mubr.bf16.mxu0 %v2740_v14 }
 0x297   :  { %3177 = vmatmul.mubr.bf16.gmra.mrb[60].mxu0 %v2739_v50 }
 0x298   :  { %3216 = vmatpush1.bf16.msra.mxu0 %v10910_v52  ;;  %3219 = vmatprep.mubr.bf16.mxu0 %v12291_v22  ;;  %v10931_v22 = vld [vmem:[%s13323_s3 + $0x38] sm:$0xff]   ;;  %v10937_v52 = vld [vmem:[%s13324_s4 + $0x28] sm:$0xff]  }
 0x299   :  { %3217 = vmatprep.subr.bf16.mxu0 %v10915_v53 }
 0x29c   :  { %3218 = vmatpush1.bf16.msra.mxu0 %v10913_v16 }
 0x29f   :  { %3220 = vmatmul.mubr.bf16.vlgmr.msra.gmra.mrb[32].mxu0 %v12286_v19  ;;  %v10930_v19 = vld [vmem:[%s13323_s3 + $0x78] sm:$0xff]  }
 0x2a0   :  { %3229 = vmatprep.mubr.bf16.mxu0 %v12315_v4  ;;  %9563 = vmatprep.subr.bf16.mxu1 %v10930_v19  ;;  %v2710_v4 = vld [vmem:[%s13333_s13 + $0x4] sm:$0x3] }
 0x2a1   :  { %9564 = vmatpush3.bf16.msra.mxu1 %v10931_v22 }
 0x2a7   :  { %3230 = vmatmul.mubr.bf16.gmra.mrb[36].mxu0 %v12310_v1  ;;  %v10932_v1 = vld [vmem:[%s13324_s4] sm:$0xff]  }
 0x2a8   :  { %3239 = vmatprep.mubr.bf16.mxu0 %v12339_v42  ;;  %9810 = vmatprep.subr.bf16.mxu1 %v10932_v1  ;;  %v12427_v42 = vrot.slane %v2710_v4, %v12249_v47 }
 0x2af   :  { %3240 = vmatmul.mubr.bf16.gmra.mrb[40].mxu0 %v12334_v39  ;;  %v12424_v39 = vrot.slane %v2710_v4, %v12240_v44 }
 0x2b0   :  { %3249 = vmatprep.mubr.bf16.mxu0 %v12354_v25 }
 0x2b7   :  { %3250 = vmatmul.mubr.bf16.gmra.mrb[44].mxu0 %v12352_v23 }
 0x2b8   :  { %3259 = vmatprep.mubr.bf16.mxu0 %v12366_v7 }
 0x2bf   :  { %3260 = vmatmul.mubr.bf16.gmra.mrb[48].mxu0 %v12364_v5 }
 0x2c0   :  { %3269 = vmatprep.mubr.bf16.mxu0 %v12378_v55 }
 0x2c7   :  { %3270 = vmatmul.mubr.bf16.gmra.mrb[52].mxu0 %v12376_v46 }
 0x2c8   :  { %3279 = vmatprep.mubr.bf16.mxu0 %v2738_v31 }
 0x2cf   :  { %3280 = vmatmul.mubr.bf16.gmra.mrb[56].mxu0 %v12388_v29 }
 0x2d0   :  { %3289 = vmatprep.mubr.bf16.mxu0 %v2742_v15 }
 0x2d7   :  { %3290 = vmatmul.mubr.bf16.gmra.mrb[60].mxu0 %v2741_v13 }
 0x372   :  { %v3221_v23 = vpop.f32.mrb[32].mxu0 }
 0x373   :  { %v10016_v25 = vadd.f32 %v3221_v23, %v12424_v39  ;;  %v3223_v5 = vpop.f32.mrb[33].mxu0 }
 0x374   :  { %v10017_v7 = vadd.f32 %v3223_v5, %v12427_v42  ;;  %v3225_v46 = vpop.f32.mrb[34].mxu0 }
 0x375   :  { %v10018_v55 = vadd.f32 %v3225_v46, %v12424_v39  ;;  %v3227_v17 = vpop.f32.mrb[35].mxu0  ;;  %v3300_v20 = vmax.f32 %v10016_v25, 0.0 }
 0x376   :  { %v10019_v18 = vadd.f32 %v3227_v17, %v12427_v42  ;;  %v3301_v24 = vmax.f32 %v10017_v7, 0.0 }
 0x377   :  { %v3302_v21 = vmax.f32 %v10018_v55, 0.0 }
 0x378   :  { %v3303_v26 = vmax.f32 %v10019_v18, 0.0 }
 0x379   :  { %v3365_v27 = vpack.c.bf16 %v3302_v21, %v3300_v20 }
 0x37a   :  { %v3366_v28 = vpack.c.bf16 %v3303_v26, %v3301_v24  ;;  %v3231_v29 = vpop.f32.mrb[36].mxu0 }
 0x37b   :  { %v10020_v30 = vadd.f32 %v3231_v29, %v12424_v39  ;;  %v3233_v31 = vpop.f32.mrb[37].mxu0 }
 0x37c   :  { %v10021_v33 = vadd.f32 %v3233_v31, %v12427_v42  ;;  %v3235_v34 = vpop.f32.mrb[38].mxu0  ;;  %3515 = vmatprep.mubr.bf16.mxu1 %v3366_v28 }
 0x37d   :  { %v10022_v35 = vadd.f32 %v3235_v34, %v12424_v39  ;;  %v3237_v36 = vpop.f32.mrb[39].mxu0  ;;  %3516 = vmatmul.mubr.bf16.vlgmr.msra.gmra.mrb[32].mxu1 %v3365_v27  ;;  %v3304_v38 = vmax.f32 %v10020_v30, 0.0 }
 0x37e   :  { %v10023_v37 = vadd.f32 %v3237_v36, %v12427_v42  ;;  %9811 = vmatpush3.bf16.msra.mxu1 %v10932_v1  ;;  %v3305_v54 = vmax.f32 %v10021_v33, 0.0 }
 0x37f   :  { %v3306_v40 = vmax.f32 %v10022_v35, 0.0  ;;  %9812 = vmatprep.subr.bf16.mxu1 %v10933_v32 }
 0x380   :  { %v3307_v56 = vmax.f32 %v10023_v37, 0.0 }
 0x381   :  { %v3367_v57 = vpack.c.bf16 %v3306_v40, %v3304_v38 }
 0x382   :  { %v3368_v58 = vpack.c.bf16 %v3307_v56, %v3305_v54  ;;  %v3241_v59 = vpop.f32.mrb[40].mxu0  ;;  %9813 = vmatpush3.bf16.msra.mxu1 %v10933_v32 }
 0x383   :  { %v10024_v60 = vadd.f32 %v3241_v59, %v12424_v39  ;;  %v3243_v61 = vpop.f32.mrb[41].mxu0  ;;  %9814 = vmatprep.subr.bf16.mxu1 %v10934_v41 }
 0x384   :  { %v10025_v63 = vadd.f32 %v3243_v61, %v12427_v42  ;;  %v3245_v0 = vpop.f32.mrb[42].mxu0  ;;  %3523 = vmatprep.mubr.bf16.mxu1 %v3368_v58 }
 0x385   :  { %v10026_v2 = vadd.f32 %v3245_v0, %v12424_v39  ;;  %v3247_v3 = vpop.f32.mrb[43].mxu0  ;;  %3524 = vmatmul.mubr.bf16.gmra.mrb[36].mxu1 %v3367_v57  ;;  %v3308_v8 = vmax.f32 %v10024_v60, 0.0 }
 0x386   :  { %v10027_v6 = vadd.f32 %v3247_v3, %v12427_v42  ;;  %9815 = vmatpush3.bf16.msra.mxu1 %v10934_v41  ;;  %v3309_v11 = vmax.f32 %v10025_v63, 0.0 }
 0x387   :  { %v3310_v9 = vmax.f32 %v10026_v2, 0.0  ;;  %9816 = vmatprep.subr.bf16.mxu1 %v10935_v62 }
 0x388   :  { %v3311_v49 = vmax.f32 %v10027_v6, 0.0 }
 0x389   :  { %v3369_v12 = vpack.c.bf16 %v3310_v9, %v3308_v8 }
 0x38a   :  { %v3370_v50 = vpack.c.bf16 %v3311_v49, %v3309_v11  ;;  %v3251_v13 = vpop.f32.mrb[44].mxu0  ;;  %9817 = vmatpush3.bf16.msra.mxu1 %v10935_v62 }
 0x38b   :  { %v10028_v14 = vadd.f32 %v3251_v13, %v12424_v39  ;;  %v3253_v15 = vpop.f32.mrb[45].mxu0  ;;  %9818 = vmatprep.subr.bf16.mxu1 %v10936_v10 }
 0x38c   :  { %v10029_v53 = vadd.f32 %v3253_v15, %v12427_v42  ;;  %v3255_v16 = vpop.f32.mrb[46].mxu0  ;;  %3531 = vmatprep.mubr.bf16.mxu1 %v3370_v50 }
 0x38d   :  { %v10030_v19 = vadd.f32 %v3255_v16, %v12424_v39  ;;  %v3257_v22 = vpop.f32.mrb[47].mxu0  ;;  %3532 = vmatmul.mubr.bf16.gmra.mrb[40].mxu1 %v3369_v12  ;;  %v3312_v4 = vmax.f32 %v10028_v14, 0.0 }
 0x38e   :  { %v10031_v1 = vadd.f32 %v3257_v22, %v12427_v42  ;;  %9819 = vmatpush3.bf16.msra.mxu1 %v10936_v10  ;;  %v3313_v25 = vmax.f32 %v10029_v53, 0.0 }
 0x38f   :  { %v3314_v23 = vmax.f32 %v10030_v19, 0.0  ;;  %9820 = vmatprep.subr.bf16.mxu1 %v10937_v52 }
 0x390   :  { %v3315_v5 = vmax.f32 %v10031_v1, 0.0 }
 0x391   :  { %v3371_v7 = vpack.c.bf16 %v3314_v23, %v3312_v4 }
 0x392   :  { %v3372_v46 = vpack.c.bf16 %v3315_v5, %v3313_v25  ;;  %v3261_v55 = vpop.f32.mrb[48].mxu0  ;;  %9821 = vmatpush3.bf16.msra.mxu1 %v10937_v52 }
 0x393   :  { %v10032_v17 = vadd.f32 %v3261_v55, %v12424_v39  ;;  %v3263_v18 = vpop.f32.mrb[49].mxu0  ;;  %v10938_v55 = vld [vmem:[%s13324_s4 + $0x30] sm:$0xff]  }
 0x394   :  { %v10033_v20 = vadd.f32 %v3263_v18, %v12427_v42  ;;  %v3265_v21 = vpop.f32.mrb[50].mxu0  ;;  %3539 = vmatprep.mubr.bf16.mxu1 %v3372_v46  ;;  %9822 = vmatprep.subr.bf16.mxu1 %v10938_v55  ;;  %v12488_v18 = vld [vmem:[%s13333_s13 + $0x6] ss:$0 sm:$0xff] }
 0x395   :  { %v10034_v24 = vadd.f32 %v3265_v21, %v12424_v39  ;;  %v3267_v26 = vpop.f32.mrb[51].mxu0  ;;  %3540 = vmatmul.mubr.bf16.gmra.mrb[44].mxu1 %v3371_v7  ;;  %v3316_v28 = vmax.f32 %v10032_v17, 0.0 }
 0x396   :  { %v10035_v27 = vadd.f32 %v3267_v26, %v12427_v42  ;;  %v3317_v30 = vmax.f32 %v10033_v20, 0.0  ;;  %9823 = vmatpush3.bf16.msra.mxu1 %v10938_v55 }
 0x397   :  { %v3318_v29 = vmax.f32 %v10034_v24, 0.0 }
 0x398   :  { %v3319_v31 = vmax.f32 %v10035_v27, 0.0 }
 0x399   :  { %v3373_v32 = vpack.c.bf16 %v3318_v29, %v3316_v28 }
 0x39a   :  { %v3374_v33 = vpack.c.bf16 %v3319_v31, %v3317_v30  ;;  %v3271_v34 = vpop.f32.mrb[52].mxu0 }
 0x39b   :  { %v10036_v35 = vadd.f32 %v3271_v34, %v12424_v39  ;;  %v3273_v36 = vpop.f32.mrb[53].mxu0 }
 0x39c   :  { %v10037_v37 = vadd.f32 %v3273_v36, %v12427_v42  ;;  %v3275_v38 = vpop.f32.mrb[54].mxu0  ;;  %3547 = vmatprep.mubr.bf16.mxu1 %v3374_v33 }
 0x39d   :  { %v10038_v40 = vadd.f32 %v3275_v38, %v12424_v39  ;;  %v3277_v41 = vpop.f32.mrb[55].mxu0  ;;  %3548 = vmatmul.mubr.bf16.gmra.mrb[48].mxu1 %v3373_v32  ;;  %v3320_v56 = vmax.f32 %v10036_v35, 0.0 }
 0x39e   :  { %v10039_v54 = vadd.f32 %v3277_v41, %v12427_v42  ;;  %v3321_v58 = vmax.f32 %v10037_v37, 0.0 }
 0x39f   :  { %v3322_v57 = vmax.f32 %v10038_v40, 0.0 }
 0x3a0   :  { %v3323_v59 = vmax.f32 %v10039_v54, 0.0 }
 0x3a1   :  { %v3375_v60 = vpack.c.bf16 %v3322_v57, %v3320_v56 }
 0x3a2   :  { %v3376_v61 = vpack.c.bf16 %v3323_v59, %v3321_v58  ;;  %v3281_v62 = vpop.f32.mrb[56].mxu0 }
 0x3a3   :  { %v10040_v63 = vadd.f32 %v3281_v62, %v12424_v39  ;;  %v3283_v0 = vpop.f32.mrb[57].mxu0  ;;  %v10941_v62 = vld [vmem:[%s13325_s5 + $0x8] sm:$0xff]  }
 0x3a4   :  { %v10041_v2 = vadd.f32 %v3283_v0, %v12427_v42  ;;  %v3285_v3 = vpop.f32.mrb[58].mxu0  ;;  %3555 = vmatprep.mubr.bf16.mxu1 %v3376_v61 }
 0x3a5   :  { %v10042_v6 = vadd.f32 %v3285_v3, %v12424_v39  ;;  %v3287_v8 = vpop.f32.mrb[59].mxu0  ;;  %3556 = vmatmul.mubr.bf16.gmra.mrb[52].mxu1 %v3375_v60  ;;  %v3324_v10 = vmax.f32 %v10040_v63, 0.0 }
 0x3a6   :  { %v10043_v9 = vadd.f32 %v3287_v8, %v12427_v42  ;;  %v3325_v49 = vmax.f32 %v10041_v2, 0.0 }
 0x3a7   :  { %v3326_v11 = vmax.f32 %v10042_v6, 0.0  ;;  %v10942_v6 = vld [vmem:[%s13325_s5 + $0x10] sm:$0xff]  }
 0x3a8   :  { %v3327_v12 = vmax.f32 %v10043_v9, 0.0 }
 0x3a9   :  { %v3377_v50 = vpack.c.bf16 %v3326_v11, %v3324_v10 }
 0x3aa   :  { %v3378_v13 = vpack.c.bf16 %v3327_v12, %v3325_v49  ;;  %v3291_v14 = vpop.f32.mrb[60].mxu0 }
 0x3ab   :  { %v10044_v15 = vadd.f32 %v3291_v14, %v12424_v39  ;;  %v3293_v52 = vpop.f32.mrb[61].mxu0 }
 0x3ac   :  { %v10045_v53 = vadd.f32 %v3293_v52, %v12427_v42  ;;  %v3295_v16 = vpop.f32.mrb[62].mxu0  ;;  %3563 = vmatprep.mubr.bf16.mxu1 %v3378_v13 }
 0x3ad   :  { %v10046_v19 = vadd.f32 %v3295_v16, %v12424_v39  ;;  %v3297_v22 = vpop.f32.mrb[63].mxu0  ;;  %3564 = vmatmul.mubr.bf16.gmra.mrb[56].mxu1 %v3377_v50  ;;  %v3328_v4 = vmax.f32 %v10044_v15, 0.0  ;;  %v10939_v39 = vld [vmem:[%s13324_s4 + $0x38] sm:$0xff]  }
 0x3ae   :  { %v10047_v1 = vadd.f32 %v3297_v22, %v12427_v42  ;;  %v3329_v25 = vmax.f32 %v10045_v53, 0.0  ;;  %9824 = vmatprep.subr.bf16.mxu1 %v10939_v39  ;;  %v10940_v42 = vld [vmem:[%s13325_s5] sm:$0xff]  }
 0x3af   :  { %v3330_v23 = vmax.f32 %v10046_v19, 0.0  ;;  %9825 = vmatpush3.bf16.msra.mxu1 %v10939_v39 }
 0x3b0   :  { %v3331_v5 = vmax.f32 %v10047_v1, 0.0  ;;  %9842 = vmatprep.subr.bf16.mxu1 %v10940_v42 }
 0x3b1   :  { %v3379_v7 = vpack.c.bf16 %v3330_v23, %v3328_v4 }
 0x3b2   :  { %v3380_v46 = vpack.c.bf16 %v3331_v5, %v3329_v25 }
 0x3b4   :  { %3571 = vmatprep.mubr.bf16.mxu1 %v3380_v46 }
 0x3b5   :  { %3572 = vmatmul.mubr.bf16.gmra.mrb[60].mxu1 %v3379_v7 }
 0x450   :  { %v9565_v17 = vpop.f32.mrb[32].mxu1 }
 0x451   :  { %v9566_v20 = vpop.f32.mrb[33].mxu1 }
 0x452   :  { %v9567_v21 = vadd.f32 %v9566_v20, %v9565_v17  ;;  %v9568_v24 = vpop.f32.mrb[34].mxu1 }
 0x453   :  { %v9569_v26 = vpop.f32.mrb[35].mxu1 }
 0x454   :  { %v3518_v27 = vadd.f32 %v9567_v21, %v12488_v18  ;;  %v9570_v28 = vadd.f32 %v9569_v26, %v9568_v24 }
 0x456   :  { %v3521_v29 = vadd.f32 %v9570_v28, %v12488_v18  ;;  %v3580_v30 = vmax.f32 %v3518_v27, 0.0 }
 0x458   :  { %v3581_v31 = vmax.f32 %v3521_v29, 0.0  ;;  %v9571_v32 = vpop.f32.mrb[36].mxu1 }
 0x459   :  { %v9572_v33 = vpop.f32.mrb[37].mxu1 }
 0x45a   :  { %v9573_v34 = vadd.f32 %v9572_v33, %v9571_v32  ;;  %v9574_v35 = vpop.f32.mrb[38].mxu1  ;;  %v3613_v36 = vpack.c.bf16 %v3581_v31, %v3580_v30 }
 0x45b   :  { %v9575_v37 = vpop.f32.mrb[39].mxu1 }
 0x45c   :  { %v3526_v38 = vadd.f32 %v9573_v34, %v12488_v18  ;;  %v9576_v40 = vadd.f32 %v9575_v37, %v9574_v35  ;;  %9826 = vmatprep.mubr.bf16.mxu1 %v3613_v36 }
 0x45e   :  { %v3529_v41 = vadd.f32 %v9576_v40, %v12488_v18  ;;  %v3582_v54 = vmax.f32 %v3526_v38, 0.0 }
 0x460   :  { %v3583_v56 = vmax.f32 %v3529_v41, 0.0  ;;  %v9577_v57 = vpop.f32.mrb[40].mxu1 }
 0x461   :  { %v9578_v58 = vpop.f32.mrb[41].mxu1 }
 0x462   :  { %v3614_v59 = vpack.c.bf16 %v3583_v56, %v3582_v54  ;;  %v9579_v60 = vadd.f32 %v9578_v58, %v9577_v57  ;;  %v9580_v61 = vpop.f32.mrb[42].mxu1 }
 0x463   :  { %v9581_v63 = vpop.f32.mrb[43].mxu1 }
 0x464   :  { %v3534_v0 = vadd.f32 %v9579_v60, %v12488_v18  ;;  %v9582_v2 = vadd.f32 %v9581_v63, %v9580_v61  ;;  %9827 = vmatmul.mubr.bf16.vlgmr.msra.gmra.mrb[64].mxu1 %v3614_v59 }
 0x465   :  { %9843 = vmatpush3.bf16.msra.mxu1 %v10940_v42 }
 0x466   :  { %v3537_v3 = vadd.f32 %v9582_v2, %v12488_v18  ;;  %9844 = vmatprep.subr.bf16.mxu1 %v10941_v62  ;;  %v3584_v8 = vmax.f32 %v3534_v0, 0.0 }
 0x468   :  { %v3585_v9 = vmax.f32 %v3537_v3, 0.0  ;;  %v9583_v10 = vpop.f32.mrb[44].mxu1 }
 0x469   :  { %v9584_v11 = vpop.f32.mrb[45].mxu1  ;;  %9845 = vmatpush3.bf16.msra.mxu1 %v10941_v62 }
 0x46a   :  { %v9585_v49 = vadd.f32 %v9584_v11, %v9583_v10  ;;  %v9586_v12 = vpop.f32.mrb[46].mxu1  ;;  %v3615_v50 = vpack.c.bf16 %v3585_v9, %v3584_v8  ;;  %9846 = vmatprep.subr.bf16.mxu1 %v10942_v6  ;;  %v10943_v9 = vld [vmem:[%s13325_s5 + $0x18] sm:$0xff]   ;;  %v10944_v10 = vld [vmem:[%s13326_s6] sm:$0xff]   ;;  %v10945_v11 = vld [vmem:[%s13326_s6 + $0x8] sm:$0xff]  }
 0x46b   :  { %v9587_v13 = vpop.f32.mrb[47].mxu1  ;;  %9866 = vmatprep.subr.bf16.mxu0 %v10944_v10 }
 0x46c   :  { %v3542_v14 = vadd.f32 %v9585_v49, %v12488_v18  ;;  %v9588_v15 = vadd.f32 %v9587_v13, %v9586_v12  ;;  %9830 = vmatprep.mubr.bf16.mxu1 %v3615_v50  ;;  %9867 = vmatpush3.bf16.msra.mxu0 %v10944_v10 }
 0x46d   :  { %9847 = vmatpush3.bf16.msra.mxu1 %v10942_v6  ;;  %9868 = vmatprep.subr.bf16.mxu0 %v10945_v11 }
 0x46e   :  { %v3545_v52 = vadd.f32 %v9588_v15, %v12488_v18  ;;  %v3586_v53 = vmax.f32 %v3542_v14, 0.0  ;;  %9848 = vmatprep.subr.bf16.mxu1 %v10943_v9 }
 0x470   :  { %v3587_v16 = vmax.f32 %v3545_v52, 0.0  ;;  %v9589_v19 = vpop.f32.mrb[48].mxu1  ;;  %9869 = vmatpush3.bf16.msra.mxu0 %v10945_v11 }
 0x471   :  { %v9590_v22 = vpop.f32.mrb[49].mxu1  ;;  %9849 = vmatpush3.bf16.msra.mxu1 %v10943_v9 }
 0x472   :  { %v9591_v1 = vadd.f32 %v9590_v22, %v9589_v19  ;;  %v9592_v4 = vpop.f32.mrb[50].mxu1  ;;  %v3616_v23 = vpack.c.bf16 %v3587_v16, %v3586_v53  ;;  %9948 = vmatprep.subr.bf16.mxu1 %v10944_v10 }
 0x473   :  { %v9593_v25 = vpop.f32.mrb[51].mxu1 }
 0x474   :  { %v3550_v5 = vadd.f32 %v9591_v1, %v12488_v18  ;;  %v9594_v7 = vadd.f32 %v9593_v25, %v9592_v4  ;;  %9831 = vmatmul.mubr.bf16.gmra.mrb[68].mxu1 %v3616_v23 }
 0x476   :  { %v3553_v46 = vadd.f32 %v9594_v7, %v12488_v18  ;;  %v3588_v55 = vmax.f32 %v3550_v5, 0.0 }
 0x478   :  { %v3589_v39 = vmax.f32 %v3553_v46, 0.0  ;;  %v9595_v42 = vpop.f32.mrb[52].mxu1 }
 0x479   :  { %v9596_v17 = vpop.f32.mrb[53].mxu1 }
 0x47a   :  { %v9597_v20 = vadd.f32 %v9596_v17, %v9595_v42  ;;  %v9598_v21 = vpop.f32.mrb[54].mxu1  ;;  %v3617_v24 = vpack.c.bf16 %v3589_v39, %v3588_v55 }
 0x47b   :  { %v9599_v26 = vpop.f32.mrb[55].mxu1 }
 0x47c   :  { %v3558_v27 = vadd.f32 %v9597_v20, %v12488_v18  ;;  %v9600_v28 = vadd.f32 %v9599_v26, %v9598_v21  ;;  %9834 = vmatprep.mubr.bf16.mxu1 %v3617_v24 }
 0x47e   :  { %v3561_v29 = vadd.f32 %v9600_v28, %v12488_v18  ;;  %v3590_v30 = vmax.f32 %v3558_v27, 0.0 }
 0x480   :  { %v3591_v31 = vmax.f32 %v3561_v29, 0.0  ;;  %v9601_v32 = vpop.f32.mrb[56].mxu1 }
 0x481   :  { %v9602_v33 = vpop.f32.mrb[57].mxu1 }
 0x482   :  { %v9603_v34 = vadd.f32 %v9602_v33, %v9601_v32  ;;  %v9604_v35 = vpop.f32.mrb[58].mxu1  ;;  %v3618_v36 = vpack.c.bf16 %v3591_v31, %v3590_v30 }
 0x483   :  { %v9605_v37 = vpop.f32.mrb[59].mxu1 }
 0x484   :  { %v3566_v38 = vadd.f32 %v9603_v34, %v12488_v18  ;;  %v9606_v40 = vadd.f32 %v9605_v37, %v9604_v35  ;;  %9835 = vmatmul.mubr.bf16.gmra.mrb[72].mxu1 %v3618_v36 }
 0x486   :  { %v3569_v41 = vadd.f32 %v9606_v40, %v12488_v18  ;;  %v3592_v54 = vmax.f32 %v3566_v38, 0.0 }
 0x488   :  { %v3593_v56 = vmax.f32 %v3569_v41, 0.0  ;;  %v9607_v57 = vpop.f32.mrb[60].mxu1 }
 0x489   :  { %v9608_v58 = vpop.f32.mrb[61].mxu1 }
 0x48a   :  { %v9609_v59 = vadd.f32 %v9608_v58, %v9607_v57  ;;  %v9610_v60 = vpop.f32.mrb[62].mxu1  ;;  %v3619_v61 = vpack.c.bf16 %v3593_v56, %v3592_v54 }
 0x48b   :  { %v9611_v62 = vpop.f32.mrb[63].mxu1 }
 0x48c   :  { %v3574_v63 = vadd.f32 %v9609_v59, %v12488_v18  ;;  %v9612_v0 = vadd.f32 %v9611_v62, %v9610_v60  ;;  %9838 = vmatprep.mubr.bf16.mxu1 %v3619_v61 }
 0x48e   :  { %v3577_v2 = vadd.f32 %v9612_v0, %v12488_v18  ;;  %v3594_v3 = vmax.f32 %v3574_v63, 0.0  ;;  %v9067_v18 = vld [vmem:[%s13333_s13 + $0x7] ss:$0 sm:$0xff] }
 0x490   :  { %v3595_v6 = vmax.f32 %v3577_v2, 0.0 }
 0x492   :  { %v3620_v8 = vpack.c.bf16 %v3595_v6, %v3594_v3 }
 0x494   :  { %9839 = vmatmul.mubr.bf16.gmra.mrb[76].mxu1 %v3620_v8 }
 0x537   :  { %v9828_v49 = vpop.f32.mrb[64].mxu1 }
 0x538   :  { %v3718_v12 = vadd.f32 %v9828_v49, %v9067_v18  ;;  %v3709_v50 = vpop.f32.mrb[65].mxu1 }
 0x539   :  { %v3710_v13 = vadd.f32 %v9067_v18, %v3709_v50  ;;  %v9829_v14 = vpop.f32.mrb[66].mxu1 }
 0x53a   :  { %v3721_v15 = vadd.f32 %v9829_v14, %v9067_v18  ;;  %v3712_v52 = vpop.f32.mrb[67].mxu1  ;;  %v3774_v16 = vmax.f32 %v3718_v12, 0.0 }
 0x53b   :  { %v3713_v53 = vadd.f32 %v9067_v18, %v3712_v52  ;;  %v3772_v22 = vmax.f32 %v3710_v13, 0.0 }
 0x53c   :  { %v3775_v19 = vmax.f32 %v3721_v15, 0.0 }
 0x53d   :  { %v3773_v1 = vmax.f32 %v3713_v53, 0.0 }
 0x53e   :  { %v3798_v4 = vpack.c.bf16 %v3775_v19, %v3774_v16 }
 0x53f   :  { %v3797_v23 = vpack.c.bf16 %v3773_v1, %v3772_v22 }
 0x541   :  { %9850 = vmatprep.mubr.msk.bf16.mxu1 %vm3835_vm0, %v3797_v23 }
 0x542   :  { %9851 = vmatmul.mubr.msk.bf16.vlgmr.msra.gmra.mrb[80].mxu1 %vm3835_vm0, %v3798_v4 }
 0x543   :  { %9950 = vmatpush3.bf16.msra.mxu1 %v10944_v10 }
 0x544   :  { %9949 = vmatprep.subr.bf16.mxu1 %v10945_v11 }
 0x547   :  { %v9832_v25 = vpop.f32.mrb[68].mxu1  ;;  %9951 = vmatpush3.bf16.msra.mxu1 %v10945_v11  ;;  %v4126_v11 = vld [vmem:[%s13327_s7] sm:$0x1] }
 0x548   :  { %v3734_v5 = vadd.f32 %v9832_v25, %v9067_v18  ;;  %v3725_v7 = vpop.f32.mrb[69].mxu1  ;;  %10464 = vmatprep.subr.msk.bf16.mxu1 %vm4167_vm1, %v4126_v11  ;;  %v4169_v49 = vsel %vm4167_vm1, %v4126_v11, 0 }
 0x549   :  { %v3726_v46 = vadd.f32 %v9067_v18, %v3725_v7  ;;  %v9833_v55 = vpop.f32.mrb[70].mxu1 }
 0x54a   :  { %v3737_v39 = vadd.f32 %v9833_v55, %v9067_v18  ;;  %v3728_v42 = vpop.f32.mrb[71].mxu1  ;;  %v3778_v20 = vmax.f32 %v3734_v5, 0.0 }
 0x54b   :  { %v3729_v17 = vadd.f32 %v9067_v18, %v3728_v42  ;;  %v3776_v24 = vmax.f32 %v3726_v46, 0.0 }
 0x54c   :  { %v3779_v21 = vmax.f32 %v3737_v39, 0.0 }
 0x54d   :  { %v3777_v26 = vmax.f32 %v3729_v17, 0.0 }
 0x54e   :  { %v3800_v27 = vpack.c.bf16 %v3779_v21, %v3778_v20 }
 0x54f   :  { %v3799_v28 = vpack.c.bf16 %v3777_v26, %v3776_v24 }
 0x551   :  { %9854 = vmatprep.mubr.msk.bf16.mxu1 %vm3835_vm0, %v3799_v28 }
 0x552   :  { %9855 = vmatmul.mubr.msk.bf16.gmra.mrb[84].mxu1 %vm3835_vm0, %v3800_v27 }
 0x557   :  { %v9836_v29 = vpop.f32.mrb[72].mxu1 }
 0x558   :  { %v3750_v30 = vadd.f32 %v9836_v29, %v9067_v18  ;;  %v3741_v31 = vpop.f32.mrb[73].mxu1 }
 0x559   :  { %v3742_v32 = vadd.f32 %v9067_v18, %v3741_v31  ;;  %v9837_v33 = vpop.f32.mrb[74].mxu1 }
 0x55a   :  { %v3753_v34 = vadd.f32 %v9837_v33, %v9067_v18  ;;  %v3744_v35 = vpop.f32.mrb[75].mxu1  ;;  %v3782_v37 = vmax.f32 %v3750_v30, 0.0 }
 0x55b   :  { %v3745_v36 = vadd.f32 %v9067_v18, %v3744_v35  ;;  %v3780_v40 = vmax.f32 %v3742_v32, 0.0 }
 0x55c   :  { %v3783_v38 = vmax.f32 %v3753_v34, 0.0 }
 0x55d   :  { %v3781_v41 = vmax.f32 %v3745_v36, 0.0 }
 0x55e   :  { %v3802_v54 = vpack.c.bf16 %v3783_v38, %v3782_v37 }
 0x55f   :  { %v3801_v56 = vpack.c.bf16 %v3781_v41, %v3780_v40 }
 0x561   :  { %9858 = vmatprep.mubr.msk.bf16.mxu1 %vm3835_vm0, %v3801_v56 }
 0x562   :  { %9859 = vmatmul.mubr.msk.bf16.gmra.mrb[88].mxu1 %vm3835_vm0, %v3802_v54 }
 0x567   :  { %v9840_v57 = vpop.f32.mrb[76].mxu1 }
 0x568   :  { %v3766_v58 = vadd.f32 %v9840_v57, %v9067_v18  ;;  %v3757_v59 = vpop.f32.mrb[77].mxu1 }
 0x569   :  { %v3758_v60 = vadd.f32 %v9067_v18, %v3757_v59  ;;  %v9841_v61 = vpop.f32.mrb[78].mxu1 }
 0x56a   :  { %v3769_v62 = vadd.f32 %v9841_v61, %v9067_v18  ;;  %v3760_v63 = vpop.f32.mrb[79].mxu1  ;;  %v3786_v2 = vmax.f32 %v3766_v58, 0.0 }
 0x56b   :  { %v3761_v0 = vadd.f32 %v9067_v18, %v3760_v63  ;;  %v3784_v6 = vmax.f32 %v3758_v60, 0.0  ;;  %v9076_v18 = vld [vmem:[%s13333_s13 + $0x8] ss:$0 sm:$0xff] }
 0x56c   :  { %v3787_v3 = vmax.f32 %v3769_v62, 0.0 }
 0x56d   :  { %v3785_v8 = vmax.f32 %v3761_v0, 0.0 }
 0x56e   :  { %v3804_v9 = vpack.c.bf16 %v3787_v3, %v3786_v2 }
 0x56f   :  { %v3803_v10 = vpack.c.bf16 %v3785_v8, %v3784_v6 }
 0x571   :  { %9862 = vmatprep.mubr.msk.bf16.mxu1 %vm3835_vm0, %v3803_v10 }
 0x572   :  { %9863 = vmatmul.mubr.msk.bf16.gmra.mrb[92].mxu1 %vm3835_vm0, %v3804_v9 }
 0x615   :  { %v9852_v12 = vpop.f32.mrb[80].mxu1 }
 0x616   :  { %v3903_v50 = vadd.f32 %v9852_v12, %v9076_v18  ;;  %v3894_v13 = vpop.f32.mrb[81].mxu1  ;;  %v10946_v12 = vld [vmem:[#allocation8] sm:$0xff]  }
 0x617   :  { %v3895_v14 = vadd.f32 %v9076_v18, %v3894_v13  ;;  %v9853_v15 = vpop.f32.mrb[82].mxu1  ;;  %9904 = vmatprep.subr.bf16.mxu0 %v10946_v12 }
 0x618   :  { %v3906_v52 = vadd.f32 %v9853_v15, %v9076_v18  ;;  %v3897_v53 = vpop.f32.mrb[83].mxu1  ;;  %v3959_v19 = vmax.f32 %v3903_v50, 0.0  ;;  %v9089_v50 = vld [vmem:[%s13333_s13 + $0x9] ss:$0 sm:$0xff] }
 0x619   :  { %v3898_v16 = vadd.f32 %v9076_v18, %v3897_v53  ;;  %v3957_v1 = vmax.f32 %v3895_v14, 0.0 }
 0x61a   :  { %v3960_v22 = vmax.f32 %v3906_v52, 0.0 }
 0x61b   :  { %v3958_v4 = vmax.f32 %v3898_v16, 0.0 }
 0x61c   :  { %v3979_v23 = vpack.c.bf16 %v3960_v22, %v3959_v19 }
 0x61d   :  { %v3978_v25 = vpack.c.bf16 %v3958_v4, %v3957_v1 }
 0x61f   :  { %9870 = vmatprep.mubr.msk.bf16.mxu0 %vm4004_vm2, %v3978_v25 }
 0x620   :  { %9871 = vmatmul.mubr.msk.bf16.vlgmr.msra.gmra.mrb[64].mxu0 %vm4004_vm2, %v3979_v23 }
 0x621   :  { %9905 = vmatpush3.bf16.msra.mxu0 %v10946_v12 }
 0x625   :  { %v9856_v5 = vpop.f32.mrb[84].mxu1 }
 0x626   :  { %v3919_v7 = vadd.f32 %v9856_v5, %v9076_v18  ;;  %v3910_v46 = vpop.f32.mrb[85].mxu1 }
 0x627   :  { %v3911_v55 = vadd.f32 %v9076_v18, %v3910_v46  ;;  %v9857_v39 = vpop.f32.mrb[86].mxu1 }
 0x628   :  { %v3922_v42 = vadd.f32 %v9857_v39, %v9076_v18  ;;  %v3913_v17 = vpop.f32.mrb[87].mxu1  ;;  %v3963_v21 = vmax.f32 %v3919_v7, 0.0 }
 0x629   :  { %v3914_v20 = vadd.f32 %v9076_v18, %v3913_v17  ;;  %v3961_v26 = vmax.f32 %v3911_v55, 0.0 }
 0x62a   :  { %v3964_v24 = vmax.f32 %v3922_v42, 0.0 }
 0x62b   :  { %v3962_v27 = vmax.f32 %v3914_v20, 0.0 }
 0x62c   :  { %v3981_v28 = vpack.c.bf16 %v3964_v24, %v3963_v21 }
 0x62d   :  { %v3980_v29 = vpack.c.bf16 %v3962_v27, %v3961_v26 }
 0x62f   :  { %9874 = vmatprep.mubr.msk.bf16.mxu0 %vm4004_vm2, %v3980_v29 }
 0x630   :  { %9875 = vmatmul.mubr.msk.bf16.gmra.mrb[68].mxu0 %vm4004_vm2, %v3981_v28 }
 0x635   :  { %v9860_v30 = vpop.f32.mrb[88].mxu1 }
 0x636   :  { %v3935_v31 = vadd.f32 %v9860_v30, %v9076_v18  ;;  %v3926_v32 = vpop.f32.mrb[89].mxu1 }
 0x637   :  { %v3927_v33 = vadd.f32 %v9076_v18, %v3926_v32  ;;  %v9861_v34 = vpop.f32.mrb[90].mxu1 }
 0x638   :  { %v3938_v35 = vadd.f32 %v9861_v34, %v9076_v18  ;;  %v3929_v36 = vpop.f32.mrb[91].mxu1  ;;  %v3967_v38 = vmax.f32 %v3935_v31, 0.0 }
 0x639   :  { %v3930_v37 = vadd.f32 %v9076_v18, %v3929_v36  ;;  %v3965_v41 = vmax.f32 %v3927_v33, 0.0 }
 0x63a   :  { %v3968_v40 = vmax.f32 %v3938_v35, 0.0 }
 0x63b   :  { %v3966_v54 = vmax.f32 %v3930_v37, 0.0 }
 0x63c   :  { %v3983_v56 = vpack.c.bf16 %v3968_v40, %v3967_v38 }
 0x63d   :  { %v3982_v57 = vpack.c.bf16 %v3966_v54, %v3965_v41 }
 0x63f   :  { %9878 = vmatprep.mubr.msk.bf16.mxu1 %vm4004_vm2, %v3982_v57  ;;  %v10948_v57 = vld [vmem:[%s13329_s9] sm:$0xff]  }
 0x640   :  { %9879 = vmatmul.mubr.msk.bf16.vlgmr.msra.gmra.mrb[96].mxu1 %vm4004_vm2, %v3983_v56  ;;  %v10947_v56 = vld [vmem:[#allocation8 + $0x8] sm:$0xff]  }
 0x641   :  { %9887 = vmatpush3.bf16.msra.mxu1 %v4169_v49  ;;  %9906 = vmatprep.subr.bf16.mxu0 %v10947_v56 }
 0x642   :  { %9907 = vmatpush3.bf16.msra.mxu0 %v10947_v56  ;;  %9924 = vmatprep.subr.bf16.mxu1 %v10948_v57 }
 0x645   :  { %v9864_v58 = vpop.f32.mrb[92].mxu1 }
 0x646   :  { %v3951_v59 = vadd.f32 %v9864_v58, %v9076_v18  ;;  %v3942_v60 = vpop.f32.mrb[93].mxu1  ;;  %v10949_v58 = vld [vmem:[%s13329_s9 + $0x8] sm:$0xff]  }
 0x647   :  { %v3943_v61 = vadd.f32 %v9076_v18, %v3942_v60  ;;  %v9865_v62 = vpop.f32.mrb[94].mxu1  ;;  %v9100_v60 = vld [vmem:[%s13333_s13 + $0xa] ss:$0 sm:$0xff] }
 0x648   :  { %v3954_v63 = vadd.f32 %v9865_v62, %v9076_v18  ;;  %v3945_v0 = vpop.f32.mrb[95].mxu1  ;;  %v3971_v3 = vmax.f32 %v3951_v59, 0.0  ;;  %v10950_v59 = vld [vmem:[%s13329_s9 + $0x10] sm:$0xff]  }
 0x649   :  { %v3946_v2 = vadd.f32 %v9076_v18, %v3945_v0  ;;  %v3969_v8 = vmax.f32 %v3943_v61, 0.0 }
 0x64a   :  { %v3972_v6 = vmax.f32 %v3954_v63, 0.0 }
 0x64b   :  { %v3970_v9 = vmax.f32 %v3946_v2, 0.0 }
 0x64c   :  { %v3985_v10 = vpack.c.bf16 %v3972_v6, %v3971_v3 }
 0x64d   :  { %v3984_v11 = vpack.c.bf16 %v3970_v9, %v3969_v8 }
 0x64f   :  { %9882 = vmatprep.mubr.msk.bf16.mxu1 %vm4004_vm2, %v3984_v11 }
 0x650   :  { %9883 = vmatmul.mubr.msk.bf16.gmra.mrb[100].mxu1 %vm4004_vm2, %v3985_v10 }
 0x6f3   :  { %v9872_v49 = vpop.f32.mrb[64].mxu0 }
 0x6f4   :  { %v4063_v13 = vpop.f32.mrb[65].mxu0  ;;  %v4072_v14 = vadd.f32 %v9872_v49, %v9089_v50 }
 0x6f5   :  { %v9873_v18 = vpop.f32.mrb[66].mxu0  ;;  %v4064_v53 = vadd.f32 %v9089_v50, %v4063_v13 }
 0x6f6   :  { %v4075_v15 = vadd.f32 %v9873_v18, %v9089_v50  ;;  %v4066_v52 = vpop.f32.mrb[67].mxu0 }
 0x6f7   :  { %v4067_v16 = vadd.f32 %v9089_v50, %v4066_v52 }
 0x6f8   :  { %v4129_v19 = vpack.c.bf16 %v4075_v15, %v4072_v14 }
 0x6f9   :  { %v4128_v22 = vpack.c.bf16 %v4067_v16, %v4064_v53 }
 0x6fb   :  { %9888 = vmatprep.mubr.msk.bf16.mxu1 %vm4142_vm3, %v4128_v22 }
 0x6fc   :  { %9889 = vmatmul.mubr.msk.bf16.vlgmr.msra.gmra.mrb[104].mxu1 %vm4142_vm3, %v4129_v19 }
 0x6fd   :  { %9925 = vmatpush3.bf16.msra.mxu1 %v10948_v57 }
 0x6fe   :  { %9926 = vmatprep.subr.bf16.mxu1 %v10949_v58 }
 0x701   :  { %9927 = vmatpush3.bf16.msra.mxu1 %v10949_v58 }
 0x702   :  { %9928 = vmatprep.subr.bf16.mxu1 %v10950_v59 }
 0x703   :  { %v9876_v1 = vpop.f32.mrb[68].mxu0 }
 0x704   :  { %v4079_v4 = vpop.f32.mrb[69].mxu0  ;;  %v4088_v25 = vadd.f32 %v9876_v1, %v9089_v50 }
 0x705   :  { %v9877_v23 = vpop.f32.mrb[70].mxu0  ;;  %v4080_v46 = vadd.f32 %v9089_v50, %v4079_v4  ;;  %9929 = vmatpush3.bf16.msra.mxu1 %v10950_v59  ;;  %v10951_v59 = vld [vmem:[%s13329_s9 + $0x18] sm:$0xff]  }
 0x706   :  { %v4091_v5 = vadd.f32 %v9877_v23, %v9089_v50  ;;  %v4082_v7 = vpop.f32.mrb[71].mxu0  ;;  %9930 = vmatprep.subr.bf16.mxu1 %v10951_v59 }
 0x707   :  { %v4083_v55 = vadd.f32 %v9089_v50, %v4082_v7 }
 0x708   :  { %v4131_v39 = vpack.c.bf16 %v4091_v5, %v4088_v25 }
 0x709   :  { %v4130_v42 = vpack.c.bf16 %v4083_v55, %v4080_v46  ;;  %9931 = vmatpush3.bf16.msra.mxu1 %v10951_v59 }
 0x70b   :  { %9892 = vmatprep.mubr.msk.bf16.mxu1 %vm4142_vm3, %v4130_v42 }
 0x70c   :  { %9893 = vmatmul.mubr.msk.bf16.gmra.mrb[108].mxu1 %vm4142_vm3, %v4131_v39 }
 0x713   :  { %v9880_v17 = vpop.f32.mrb[96].mxu1 }
 0x714   :  { %v4095_v20 = vpop.f32.mrb[97].mxu1  ;;  %v4104_v24 = vadd.f32 %v9880_v17, %v9089_v50 }
 0x715   :  { %v9881_v21 = vpop.f32.mrb[98].mxu1  ;;  %v4096_v28 = vadd.f32 %v9089_v50, %v4095_v20 }
 0x716   :  { %v4107_v26 = vadd.f32 %v9881_v21, %v9089_v50  ;;  %v4098_v27 = vpop.f32.mrb[99].mxu1 }
 0x717   :  { %v4099_v29 = vadd.f32 %v9089_v50, %v4098_v27 }
 0x718   :  { %v4133_v30 = vpack.c.bf16 %v4107_v26, %v4104_v24 }
 0x719   :  { %v4132_v31 = vpack.c.bf16 %v4099_v29, %v4096_v28 }
 0x71b   :  { %9896 = vmatprep.mubr.msk.bf16.mxu1 %vm4142_vm3, %v4132_v31 }
 0x71c   :  { %9897 = vmatmul.mubr.msk.bf16.gmra.mrb[112].mxu1 %vm4142_vm3, %v4133_v30 }
 0x723   :  { %v9884_v32 = vpop.f32.mrb[100].mxu1 }
 0x724   :  { %v4111_v33 = vpop.f32.mrb[101].mxu1  ;;  %v4120_v35 = vadd.f32 %v9884_v32, %v9089_v50 }
 0x725   :  { %v9885_v34 = vpop.f32.mrb[102].mxu1  ;;  %v4112_v38 = vadd.f32 %v9089_v50, %v4111_v33 }
 0x726   :  { %v4123_v36 = vadd.f32 %v9885_v34, %v9089_v50  ;;  %v4114_v37 = vpop.f32.mrb[103].mxu1 }
 0x727   :  { %v4115_v40 = vadd.f32 %v9089_v50, %v4114_v37 }
 0x728   :  { %v4135_v41 = vpack.c.bf16 %v4123_v36, %v4120_v35 }
 0x729   :  { %v4134_v54 = vpack.c.bf16 %v4115_v40, %v4112_v38 }
 0x72b   :  { %9900 = vmatprep.mubr.msk.bf16.mxu1 %vm4142_vm3, %v4134_v54 }
 0x72c   :  { %9901 = vmatmul.mubr.msk.bf16.gmra.mrb[116].mxu1 %vm4142_vm3, %v4135_v41 }
 0x7cf   :  { %v9890_v61 = vpop.f32.mrb[104].mxu1 }
 0x7d0   :  { %v4214_v62 = vadd.f32 %v9890_v61, %v9100_v60  ;;  %v4205_v63 = vpop.f32.mrb[105].mxu1  ;;  %v10952_v61 = vld [vmem:[#allocation10] ss:$8 sps:$4 sm:$0xff]  }
 0x7d1   :  { %v4206_v0 = vadd.f32 %v9100_v60, %v4205_v63  ;;  %v9891_v2 = vpop.f32.mrb[106].mxu1  ;;  %v10955_v63 = vld [vmem:[#allocation10 + $0x10] ss:$8 sps:$4 sm:$0xff]  }
 0x7d2   :  { %v4217_v3 = vadd.f32 %v9891_v2, %v9100_v60  ;;  %v4208_v6 = vpop.f32.mrb[107].mxu1  ;;  %v4270_v9 = vmax.f32 %v4214_v62, 0.0  ;;  %v10957_v62 = vld [vmem:[#allocation10 + $0x14] ss:$8 sps:$4 sm:$0xff]   ;;  %v10958_v2 = vld [vmem:[#allocation10 + $0x20] ss:$8 sps:$4 sm:$0xff]  }
 0x7d3   :  { %v4209_v8 = vadd.f32 %v9100_v60, %v4208_v6  ;;  %v4268_v11 = vmax.f32 %v4206_v0, 0.0  ;;  %v10960_v0 = vld [vmem:[#allocation10 + $0x24] ss:$8 sps:$4 sm:$0xff]   ;;  %v10961_v6 = vld [vmem:[#allocation10 + $0x30] ss:$8 sps:$4 sm:$0xff]  }
 0x7d4   :  { %v4271_v10 = vmax.f32 %v4217_v3, 0.0  ;;  %v10963_v3 = vld [vmem:[#allocation10 + $0x34] ss:$8 sps:$4 sm:$0xff]  }
 0x7d5   :  { %v4269_v12 = vmax.f32 %v4209_v8, 0.0  ;;  %v10966_v8 = vld [vmem:[#allocation10 + $0x44] ss:$8 sps:$4 sm:$0xff]  }
 0x7d6   :  { %v4290_v49 = vpack.c.bf16 %v4271_v10, %v4270_v9  ;;  %v10964_v9 = vld [vmem:[#allocation10 + $0x40] ss:$8 sps:$4 sm:$0xff]   ;;  %v10969_v10 = vld [vmem:[#allocation10 + $0x54] ss:$8 sps:$4 sm:$0xff]  }
 0x7d7   :  { %v4289_v50 = vpack.c.bf16 %v4269_v12, %v4268_v11  ;;  %v10967_v11 = vld [vmem:[#allocation10 + $0x50] ss:$8 sps:$4 sm:$0xff]  }
 0x7d8   :  { %v9109_v12 = vld [vmem:[%s13333_s13 + $0xb] ss:$0 sm:$0xff] }
 0x7d9   :  { %9908 = vmatprep.mubr.msk.bf16.mxu0 %vm4004_vm2, %v4289_v50 }
 0x7da   :  { %9909 = vmatmul.mubr.msk.bf16.vlgmr.msra.gmra.mrb[72].mxu0 %vm4004_vm2, %v4290_v49 }
 0x7df   :  { %v9894_v13 = vpop.f32.mrb[108].mxu1 }
 0x7e0   :  { %v4230_v18 = vadd.f32 %v9894_v13, %v9100_v60  ;;  %v4221_v14 = vpop.f32.mrb[109].mxu1 }
 0x7e1   :  { %v4222_v15 = vadd.f32 %v9100_v60, %v4221_v14  ;;  %v9895_v52 = vpop.f32.mrb[110].mxu1 }
 0x7e2   :  { %v4233_v53 = vadd.f32 %v9895_v52, %v9100_v60  ;;  %v4224_v16 = vpop.f32.mrb[111].mxu1  ;;  %v4274_v22 = vmax.f32 %v4230_v18, 0.0 }
 0x7e3   :  { %v4225_v19 = vadd.f32 %v9100_v60, %v4224_v16  ;;  %v4272_v4 = vmax.f32 %v4222_v15, 0.0 }
 0x7e4   :  { %v4275_v1 = vmax.f32 %v4233_v53, 0.0 }
 0x7e5   :  { %v4273_v23 = vmax.f32 %v4225_v19, 0.0 }
 0x7e6   :  { %v4292_v25 = vpack.c.bf16 %v4275_v1, %v4274_v22 }
 0x7e7   :  { %v4291_v5 = vpack.c.bf16 %v4273_v23, %v4272_v4 }
 0x7e9   :  { %9912 = vmatprep.mubr.msk.bf16.mxu0 %vm4004_vm2, %v4291_v5 }
 0x7ea   :  { %9913 = vmatmul.mubr.msk.bf16.gmra.mrb[76].mxu0 %vm4004_vm2, %v4292_v25 }
 0x7ef   :  { %v9898_v7 = vpop.f32.mrb[112].mxu1 }
 0x7f0   :  { %v4246_v46 = vadd.f32 %v9898_v7, %v9100_v60  ;;  %v4237_v55 = vpop.f32.mrb[113].mxu1 }
 0x7f1   :  { %v4238_v39 = vadd.f32 %v9100_v60, %v4237_v55  ;;  %v9899_v42 = vpop.f32.mrb[114].mxu1 }
 0x7f2   :  { %v4249_v17 = vadd.f32 %v9899_v42, %v9100_v60  ;;  %v4240_v20 = vpop.f32.mrb[115].mxu1  ;;  %v4278_v24 = vmax.f32 %v4246_v46, 0.0 }
 0x7f3   :  { %v4241_v21 = vadd.f32 %v9100_v60, %v4240_v20  ;;  %v4276_v27 = vmax.f32 %v4238_v39, 0.0 }
 0x7f4   :  { %v4279_v26 = vmax.f32 %v4249_v17, 0.0 }
 0x7f5   :  { %v4277_v28 = vmax.f32 %v4241_v21, 0.0 }
 0x7f6   :  { %v4294_v29 = vpack.c.bf16 %v4279_v26, %v4278_v24 }
 0x7f7   :  { %v4293_v30 = vpack.c.bf16 %v4277_v28, %v4276_v27 }
 0x7f9   :  { %9916 = vmatprep.mubr.msk.bf16.mxu0 %vm4004_vm2, %v4293_v30 }
 0x7fa   :  { %9917 = vmatmul.mubr.msk.bf16.gmra.mrb[80].mxu0 %vm4004_vm2, %v4294_v29 }
 0x7ff   :  { %v9902_v31 = vpop.f32.mrb[116].mxu1 }
 0x800   :  { %v4262_v32 = vadd.f32 %v9902_v31, %v9100_v60  ;;  %v4253_v33 = vpop.f32.mrb[117].mxu1 }
 0x801   :  { %v4254_v34 = vadd.f32 %v9100_v60, %v4253_v33  ;;  %v9903_v35 = vpop.f32.mrb[118].mxu1 }
 0x802   :  { %v4265_v36 = vadd.f32 %v9903_v35, %v9100_v60  ;;  %v4256_v37 = vpop.f32.mrb[119].mxu1  ;;  %v4282_v40 = vmax.f32 %v4262_v32, 0.0 }
 0x803   :  { %v4257_v38 = vadd.f32 %v9100_v60, %v4256_v37  ;;  %v4280_v54 = vmax.f32 %v4254_v34, 0.0  ;;  %v10954_v60 = vld [vmem:[#allocation10 + $0x4] ss:$8 sps:$4 sm:$0xff]  }
 0x804   :  { %v4283_v41 = vmax.f32 %v4265_v36, 0.0  ;;  %4752 = vmatprep.subr.bf16.mxu0 %v10954_v60 }
 0x805   :  { %v4281_v56 = vmax.f32 %v4257_v38, 0.0  ;;  %4753 = vmatpush1.bf16.msra.mxu0 %v10952_v61 }
 0x806   :  { %v4296_v57 = vpack.c.bf16 %v4283_v41, %v4282_v40  ;;  %4754 = vmatprep.subr.bf16.mxu0 %v10957_v62 }
 0x807   :  { %v4295_v58 = vpack.c.bf16 %v4281_v56, %v4280_v54 }
 0x809   :  { %9920 = vmatprep.mubr.msk.bf16.mxu0 %vm4004_vm2, %v4295_v58  ;;  %4755 = vmatpush1.bf16.msra.mxu0 %v10955_v63 }
 0x80a   :  { %9921 = vmatmul.mubr.msk.bf16.gmra.mrb[84].mxu0 %vm4004_vm2, %v4296_v57  ;;  %4756 = vmatprep.subr.bf16.mxu0 %v10960_v0 }
 0x80b   :  { %4784 = vmatprep.mubr.bf16.mxu0 %v12044_v51 }
 0x80d   :  { %4757 = vmatpush1.bf16.msra.mxu0 %v10958_v2 }
 0x80e   :  { %4758 = vmatprep.subr.bf16.mxu0 %v10963_v3 }
 0x811   :  { %4759 = vmatpush1.bf16.msra.mxu0 %v10961_v6 }
 0x812   :  { %4760 = vmatprep.subr.bf16.mxu0 %v10966_v8 }
 0x815   :  { %4761 = vmatpush1.bf16.msra.mxu0 %v10964_v9 }
 0x816   :  { %4762 = vmatprep.subr.bf16.mxu0 %v10969_v10 }
 0x819   :  { %4763 = vmatpush1.bf16.msra.mxu0 %v10967_v11  ;;  %v10972_v11 = vld [vmem:[#allocation10 + $0x64] ss:$8 sps:$4 sm:$0xff]  }
 0x81a   :  { %4764 = vmatprep.subr.bf16.mxu0 %v10972_v11 }
 0x8ad   :  { %v9910_v49 = vpop.f32.mrb[72].mxu0 }
 0x8ae   :  { %v4382_v50 = vadd.f32 %v9910_v49, %v9109_v12  ;;  %v4373_v13 = vpop.f32.mrb[73].mxu0  ;;  %v10970_v49 = vld [vmem:[#allocation10 + $0x60] ss:$8 sps:$4 sm:$0xff]  }
 0x8af   :  { %v4374_v18 = vadd.f32 %v9109_v12, %v4373_v13  ;;  %v9911_v14 = vpop.f32.mrb[74].mxu0  ;;  %4765 = vmatpush1.bf16.msra.mxu0 %v10970_v49  ;;  %v10973_v13 = vld [vmem:[#allocation10 + $0x70] ss:$8 sps:$4 sm:$0xff]  }
 0x8b0   :  { %v4385_v15 = vadd.f32 %v9911_v14, %v9109_v12  ;;  %v4376_v52 = vpop.f32.mrb[75].mxu0  ;;  %v4438_v16 = vmax.f32 %v4382_v50, 0.0  ;;  %v10975_v50 = vld [vmem:[#allocation10 + $0x74] ss:$8 sps:$4 sm:$0xff]  }
 0x8b1   :  { %v4377_v53 = vadd.f32 %v9109_v12, %v4376_v52  ;;  %v4436_v22 = vmax.f32 %v4374_v18, 0.0  ;;  %4766 = vmatprep.subr.bf16.mxu0 %v10975_v50  ;;  %v10976_v18 = vld [vmem:[#allocation11] ss:$16 sps:$4 sm:$0xff]   ;;  %v10981_v14 = vld [vmem:[#allocation11 + $0xc] ss:$16 sps:$4 sm:$0xff]  }
 0x8b2   :  { %v4439_v19 = vmax.f32 %v4385_v15, 0.0  ;;  %v10984_v15 = vld [vmem:[#allocation11 + $0x24] ss:$16 sps:$4 sm:$0xff]   ;;  %v10982_v52 = vld [vmem:[#allocation11 + $0x20] ss:$16 sps:$4 sm:$0xff]  }
 0x8b3   :  { %v4437_v1 = vmax.f32 %v4377_v53, 0.0  ;;  %4767 = vmatpush1.bf16.msra.mxu0 %v10973_v13  ;;  %v10990_v53 = vld [vmem:[#allocation11 + $0x44] ss:$16 sps:$4 sm:$0xff]   ;;  %v10997_v13 = vld [vmem:[#allocation11 + $0x68] ss:$16 sps:$4 sm:$0xff]  }
 0x8b4   :  { %v4462_v4 = vpack.c.bf16 %v4439_v19, %v4438_v16  ;;  %5432 = vmatprep.subr.bf16.mxu0 %v10981_v14  ;;  %v10988_v16 = vld [vmem:[#allocation11 + $0x40] ss:$16 sps:$4 sm:$0xff]   ;;  %v10996_v19 = vld [vmem:[#allocation11 + $0x64] ss:$16 sps:$4 sm:$0xff]  }
 0x8b5   :  { %v4461_v23 = vpack.c.bf16 %v4437_v1, %v4436_v22  ;;  %v10994_v22 = vld [vmem:[#allocation11 + $0x60] ss:$16 sps:$4 sm:$0xff]   ;;  %v11002_v1 = vld [vmem:[#allocation11 + $0x84] ss:$16 sps:$4 sm:$0xff]  }
 0x8b7   :  { %9932 = vmatprep.mubr.msk.bf16.mxu1 %vm3835_vm0, %v4461_v23  ;;  %v11008_v23 = vld [vmem:[#allocation11 + $0xa4] ss:$16 sps:$4 sm:$0xff]  }
 0x8b8   :  { %9933 = vmatmul.mubr.msk.bf16.vlgmr.msra.gmra.mrb[120].mxu1 %vm3835_vm0, %v4462_v4  ;;  %v11000_v4 = vld [vmem:[#allocation11 + $0x80] ss:$16 sps:$4 sm:$0xff]  }
 0x8bd   :  { %v9914_v25 = vpop.f32.mrb[76].mxu0 }
 0x8be   :  { %v4398_v5 = vadd.f32 %v9914_v25, %v9109_v12  ;;  %v4389_v7 = vpop.f32.mrb[77].mxu0  ;;  %v11006_v25 = vld [vmem:[#allocation11 + $0xa0] ss:$16 sps:$4 sm:$0xff]  }
 0x8bf   :  { %v4390_v46 = vadd.f32 %v9109_v12, %v4389_v7  ;;  %v9915_v55 = vpop.f32.mrb[78].mxu0  ;;  %v11012_v7 = vld [vmem:[#allocation11 + $0xc0] ss:$16 sps:$4 sm:$0xff]  }
 0x8c0   :  { %v4401_v39 = vadd.f32 %v9915_v55, %v9109_v12  ;;  %v4392_v42 = vpop.f32.mrb[79].mxu0  ;;  %v4442_v20 = vmax.f32 %v4398_v5, 0.0  ;;  %v11014_v5 = vld [vmem:[#allocation11 + $0xc4] ss:$16 sps:$4 sm:$0xff]   ;;  %v11018_v55 = vld [vmem:[#allocation11 + $0xe0] ss:$16 sps:$4 sm:$0xff]  }
 0x8c1   :  { %v4393_v17 = vadd.f32 %v9109_v12, %v4392_v42  ;;  %v4440_v24 = vmax.f32 %v4390_v46, 0.0  ;;  %v11020_v46 = vld [vmem:[#allocation11 + $0xe4] ss:$16 sps:$4 sm:$0xff]   ;;  %v11024_v42 = vld [vmem:[#allocation11 + $0x100] ss:$16 sps:$4 sm:$0xff]  }
 0x8c2   :  { %v4443_v21 = vmax.f32 %v4401_v39, 0.0  ;;  %v11026_v39 = vld [vmem:[#allocation11 + $0x104] ss:$16 sps:$4 sm:$0xff]  }
 0x8c3   :  { %v4441_v26 = vmax.f32 %v4393_v17, 0.0  ;;  %v11032_v17 = vld [vmem:[#allocation11 + $0x124] ss:$16 sps:$4 sm:$0xff]  }
 0x8c4   :  { %v4464_v27 = vpack.c.bf16 %v4443_v21, %v4442_v20  ;;  %v11030_v20 = vld [vmem:[#allocation11 + $0x120] ss:$16 sps:$4 sm:$0xff]   ;;  %v11038_v21 = vld [vmem:[#allocation11 + $0x144] ss:$16 sps:$4 sm:$0xff]  }
 0x8c5   :  { %v4463_v28 = vpack.c.bf16 %v4441_v26, %v4440_v24  ;;  %v11036_v24 = vld [vmem:[#allocation11 + $0x140] ss:$16 sps:$4 sm:$0xff]   ;;  %v11044_v26 = vld [vmem:[#allocation11 + $0x164] ss:$16 sps:$4 sm:$0xff]  }
 0x8c7   :  { %9936 = vmatprep.mubr.msk.bf16.mxu1 %vm3835_vm0, %v4463_v28  ;;  %v11050_v28 = vld [vmem:[#allocation11 + $0x184] ss:$16 sps:$4 sm:$0xff]  }
 0x8c8   :  { %9937 = vmatmul.mubr.msk.bf16.gmra.mrb[124].mxu1 %vm3835_vm0, %v4464_v27  ;;  %v11042_v27 = vld [vmem:[#allocation11 + $0x160] ss:$16 sps:$4 sm:$0xff]  }
 0x8cd   :  { %v9918_v29 = vpop.f32.mrb[80].mxu0 }
 0x8ce   :  { %v4414_v30 = vadd.f32 %v9918_v29, %v9109_v12  ;;  %v4405_v31 = vpop.f32.mrb[81].mxu0  ;;  %v11048_v29 = vld [vmem:[#allocation11 + $0x180] ss:$16 sps:$4 sm:$0xff]  }
 0x8cf   :  { %v4406_v32 = vadd.f32 %v9109_v12, %v4405_v31  ;;  %v9919_v33 = vpop.f32.mrb[82].mxu0  ;;  %v11054_v31 = vld [vmem:[#allocation11 + $0x1a0] ss:$16 sps:$4 sm:$0xff]  }
 0x8d0   :  { %v4417_v34 = vadd.f32 %v9919_v33, %v9109_v12  ;;  %v4408_v35 = vpop.f32.mrb[83].mxu0  ;;  %v4446_v37 = vmax.f32 %v4414_v30, 0.0  ;;  %v11056_v30 = vld [vmem:[#allocation11 + $0x1a4] ss:$16 sps:$4 sm:$0xff]  }
 0x8d1   :  { %v4409_v36 = vadd.f32 %v9109_v12, %v4408_v35  ;;  %v4444_v40 = vmax.f32 %v4406_v32, 0.0  ;;  %v12595_v32 = vld [vmem:[%s13333_s13 + $0xc] ss:$0 sm:$0xff] }
 0x8d2   :  { %v4447_v38 = vmax.f32 %v4417_v34, 0.0 }
 0x8d3   :  { %v4445_v41 = vmax.f32 %v4409_v36, 0.0 }
 0x8d4   :  { %v4466_v54 = vpack.c.bf16 %v4447_v38, %v4446_v37 }
 0x8d5   :  { %v4465_v56 = vpack.c.bf16 %v4445_v41, %v4444_v40 }
 0x8d7   :  { %9940 = vmatprep.mubr.msk.bf16.mxu1 %vm3835_vm0, %v4465_v56 }
 0x8d8   :  { %9941 = vmatmul.mubr.msk.bf16.gmra.mrb[128].mxu1 %vm3835_vm0, %v4466_v54 }
 0x8dd   :  { %v9922_v57 = vpop.f32.mrb[84].mxu0 }
 0x8de   :  { %v4430_v58 = vadd.f32 %v9922_v57, %v9109_v12  ;;  %v4421_v59 = vpop.f32.mrb[85].mxu0 }
 0x8df   :  { %v4422_v61 = vadd.f32 %v9109_v12, %v4421_v59  ;;  %v9923_v60 = vpop.f32.mrb[86].mxu0 }
 0x8e0   :  { %v4433_v62 = vadd.f32 %v9923_v60, %v9109_v12  ;;  %v4424_v63 = vpop.f32.mrb[87].mxu0  ;;  %v4450_v2 = vmax.f32 %v4430_v58, 0.0 }
 0x8e1   :  { %v4425_v0 = vadd.f32 %v9109_v12, %v4424_v63  ;;  %v4448_v6 = vmax.f32 %v4422_v61, 0.0  ;;  %v10978_v12 = vld [vmem:[#allocation11 + $0x4] ss:$16 sps:$4 sm:$0xff]   ;;  %v10979_v61 = vld [vmem:[#allocation11 + $0x8] ss:$16 sps:$4 sm:$0xff]  }
 0x8e2   :  { %v4451_v3 = vmax.f32 %v4433_v62, 0.0  ;;  %5319 = vmatprep.subr.bf16.mxu1 %v10978_v12  ;;  %v10987_v62 = vld [vmem:[#allocation11 + $0x2c] ss:$16 sps:$4 sm:$0xff]   ;;  %v10985_v63 = vld [vmem:[#allocation11 + $0x28] ss:$16 sps:$4 sm:$0xff]  }
 0x8e3   :  { %v4449_v8 = vmax.f32 %v4425_v0, 0.0  ;;  %5320 = vmatpush1.bf16.msra.mxu1 %v10976_v18  ;;  %v10993_v0 = vld [vmem:[#allocation11 + $0x4c] ss:$16 sps:$4 sm:$0xff]  }
 0x8e4   :  { %v4468_v9 = vpack.c.bf16 %v4451_v3, %v4450_v2  ;;  %5321 = vmatprep.subr.bf16.mxu1 %v10984_v15  ;;  %v10991_v2 = vld [vmem:[#allocation11 + $0x48] ss:$16 sps:$4 sm:$0xff]   ;;  %v11005_v12 = vld [vmem:[#allocation11 + $0x8c] ss:$16 sps:$4 sm:$0xff]  }
 0x8e5   :  { %v4467_v10 = vpack.c.bf16 %v4449_v8, %v4448_v6  ;;  %v10999_v6 = vld [vmem:[#allocation11 + $0x6c] ss:$16 sps:$4 sm:$0xff]  }
 0x8e7   :  { %9944 = vmatprep.mubr.msk.bf16.mxu1 %vm3835_vm0, %v4467_v10  ;;  %5322 = vmatpush1.bf16.msra.mxu1 %v10982_v52 }
 0x8e8   :  { %9945 = vmatmul.mubr.msk.bf16.gmra.mrb[132].mxu1 %vm3835_vm0, %v4468_v9  ;;  %5323 = vmatprep.subr.bf16.mxu1 %v10990_v53 }
 0x8eb   :  { %5324 = vmatpush1.bf16.msra.mxu1 %v10988_v16 }
 0x8ec   :  { %5325 = vmatprep.subr.bf16.mxu1 %v10996_v19  ;;  %v11003_v19 = vld [vmem:[#allocation11 + $0x88] ss:$16 sps:$4 sm:$0xff]  }
 0x8ef   :  { %5326 = vmatpush1.bf16.msra.mxu1 %v10994_v22 }
 0x8f0   :  { %5327 = vmatprep.subr.bf16.mxu1 %v11002_v1  ;;  %v11011_v1 = vld [vmem:[#allocation11 + $0xac] ss:$16 sps:$4 sm:$0xff]  }
 0x8f3   :  { %5328 = vmatpush1.bf16.msra.mxu1 %v11000_v4  ;;  %v11009_v4 = vld [vmem:[#allocation11 + $0xa8] ss:$16 sps:$4 sm:$0xff]  }
 0x8f4   :  { %5329 = vmatprep.subr.bf16.mxu1 %v11008_v23  ;;  %v11017_v23 = vld [vmem:[#allocation11 + $0xcc] ss:$16 sps:$4 sm:$0xff]  }
 0x8f7   :  { %5330 = vmatpush1.bf16.msra.mxu1 %v11006_v25  ;;  %v11015_v25 = vld [vmem:[#allocation11 + $0xc8] ss:$16 sps:$4 sm:$0xff]  }
 0x8f8   :  { %5331 = vmatprep.subr.bf16.mxu1 %v11014_v5 }
 0x8fb   :  { %5332 = vmatpush1.bf16.msra.mxu1 %v11012_v7  ;;  %v11023_v7 = vld [vmem:[#allocation11 + $0xec] ss:$16 sps:$4 sm:$0xff]  }
 0x8fc   :  { %5333 = vmatprep.subr.bf16.mxu1 %v11020_v46 }
 0x8ff   :  { %5334 = vmatpush1.bf16.msra.mxu1 %v11018_v55 }
 0x900   :  { %5335 = vmatprep.subr.bf16.mxu1 %v11026_v39 }
 0x903   :  { %5336 = vmatpush1.bf16.msra.mxu1 %v11024_v42 }
 0x904   :  { %5337 = vmatprep.subr.bf16.mxu1 %v11032_v17 }
 0x907   :  { %5338 = vmatpush1.bf16.msra.mxu1 %v11030_v20 }
 0x908   :  { %5339 = vmatprep.subr.bf16.mxu1 %v11038_v21  ;;  %v11021_v21 = vld [vmem:[#allocation11 + $0xe8] ss:$16 sps:$4 sm:$0xff]  }
 0x90b   :  { %5340 = vmatpush1.bf16.msra.mxu1 %v11036_v24 }
 0x90c   :  { %5341 = vmatprep.subr.bf16.mxu1 %v11044_v26  ;;  %v11029_v26 = vld [vmem:[#allocation11 + $0x10c] ss:$16 sps:$4 sm:$0xff]  }
 0x90f   :  { %5342 = vmatpush1.bf16.msra.mxu1 %v11042_v27 }
 0x910   :  { %5343 = vmatprep.subr.bf16.mxu1 %v11050_v28 }
 0x913   :  { %5344 = vmatpush1.bf16.msra.mxu1 %v11048_v29 }
 0x914   :  { %5345 = vmatprep.subr.bf16.mxu1 %v11056_v30 }
 0x917   :  { %5346 = vmatpush1.bf16.msra.mxu1 %v11054_v31 }
 0x98b   :  { %v9934_v33 = vpop.f32.mrb[120].mxu1 }
 0x98c   :  { %v4566_v34 = vadd.f32 %v9934_v33, %v12595_v32  ;;  %v4557_v35 = vpop.f32.mrb[121].mxu1  ;;  %v11027_v33 = vld [vmem:[#allocation11 + $0x108] ss:$16 sps:$4 sm:$0xff]  }
 0x98d   :  { %v4558_v36 = vadd.f32 %v12595_v32, %v4557_v35  ;;  %v9935_v37 = vpop.f32.mrb[122].mxu1  ;;  %v11035_v35 = vld [vmem:[#allocation11 + $0x12c] ss:$16 sps:$4 sm:$0xff]  }
 0x98e   :  { %v4569_v38 = vadd.f32 %v9935_v37, %v12595_v32  ;;  %v4560_v40 = vpop.f32.mrb[123].mxu1  ;;  %v4622_v54 = vmax.f32 %v4566_v34, 0.0  ;;  %v11041_v37 = vld [vmem:[#allocation11 + $0x14c] ss:$16 sps:$4 sm:$0xff]  }
 0x98f   :  { %v4561_v41 = vadd.f32 %v12595_v32, %v4560_v40  ;;  %v4620_v57 = vmax.f32 %v4558_v36, 0.0  ;;  %v11033_v36 = vld [vmem:[#allocation11 + $0x128] ss:$16 sps:$4 sm:$0xff]  }
 0x990   :  { %v4623_v56 = vmax.f32 %v4569_v38, 0.0  ;;  %v11039_v38 = vld [vmem:[#allocation11 + $0x148] ss:$16 sps:$4 sm:$0xff]  }
 0x991   :  { %v4621_v58 = vmax.f32 %v4561_v41, 0.0  ;;  %v11047_v41 = vld [vmem:[#allocation11 + $0x16c] ss:$16 sps:$4 sm:$0xff]  }
 0x992   :  { %v4654_v59 = vpack.c.bf16 %v4623_v56, %v4622_v54 }
 0x993   :  { %v4653_v60 = vpack.c.bf16 %v4621_v58, %v4620_v57 }
 0x995   :  { %4785 = vmatmul.mubr.bf16.vlgmr.msra.gmra.mrb[88].mxu0 %v4653_v60  ;;  %v11045_v60 = vld [vmem:[#allocation11 + $0x168] ss:$16 sps:$4 sm:$0xff]  }
 0x996   :  { %4794 = vmatprep.mubr.bf16.mxu0 %v12044_v51  ;;  %5433 = vmatpush1.bf16.msra.mxu0 %v10979_v61 }
 0x997   :  { %5434 = vmatprep.subr.bf16.mxu0 %v10987_v62 }
 0x99a   :  { %5435 = vmatpush1.bf16.msra.mxu0 %v10985_v63  ;;  %v11053_v63 = vld [vmem:[#allocation11 + $0x18c] ss:$16 sps:$4 sm:$0xff]  }
 0x99b   :  { %v9938_v3 = vpop.f32.mrb[124].mxu1  ;;  %5436 = vmatprep.subr.bf16.mxu0 %v10993_v0 }
 0x99c   :  { %v4582_v8 = vadd.f32 %v9938_v3, %v12595_v32  ;;  %v4573_v9 = vpop.f32.mrb[125].mxu1 }
 0x99d   :  { %v4574_v10 = vadd.f32 %v12595_v32, %v4573_v9  ;;  %v9939_v11 = vpop.f32.mrb[126].mxu1  ;;  %4795 = vmatmul.mubr.bf16.gmra.mrb[92].mxu0 %v4654_v59  ;;  %v11051_v9 = vld [vmem:[#allocation11 + $0x188] ss:$16 sps:$4 sm:$0xff]  }
 0x99e   :  { %v4585_v49 = vadd.f32 %v9939_v11, %v12595_v32  ;;  %v4576_v50 = vpop.f32.mrb[127].mxu1  ;;  %4804 = vmatprep.mubr.bf16.mxu0 %v12044_v51  ;;  %5437 = vmatpush1.bf16.msra.mxu0 %v10991_v2  ;;  %v4626_v14 = vmax.f32 %v4582_v8, 0.0  ;;  %v11059_v11 = vld [vmem:[#allocation11 + $0x1ac] ss:$16 sps:$4 sm:$0xff]  }
 0x99f   :  { %v4577_v18 = vadd.f32 %v12595_v32, %v4576_v50  ;;  %5438 = vmatprep.subr.bf16.mxu0 %v10999_v6  ;;  %v4624_v52 = vmax.f32 %v4574_v10, 0.0  ;;  %v11065_v50 = vld [vmem:[#allocation11 + $0x1cc] ss:$16 sps:$4 sm:$0xff]  }
 0x9a0   :  { %v4627_v15 = vmax.f32 %v4585_v49, 0.0  ;;  %v11057_v49 = vld [vmem:[#allocation11 + $0x1a8] ss:$16 sps:$4 sm:$0xff]  }
 0x9a1   :  { %v4625_v53 = vmax.f32 %v4577_v18, 0.0  ;;  %v11063_v18 = vld [vmem:[#allocation11 + $0x1c8] ss:$16 sps:$4 sm:$0xff]  }
 0x9a2   :  { %v4656_v16 = vpack.c.bf16 %v4627_v15, %v4626_v14  ;;  %5439 = vmatpush1.bf16.msra.mxu0 %v10997_v13  ;;  %v11060_v13 = vld [vmem:[#allocation11 + $0x1c0] ss:$16 sps:$4 sm:$0xff]   ;;  %v11071_v14 = vld [vmem:[#allocation11 + $0x1ec] ss:$16 sps:$4 sm:$0xff]  }
 0x9a3   :  { %v4655_v22 = vpack.c.bf16 %v4625_v53, %v4624_v52  ;;  %5440 = vmatprep.subr.bf16.mxu0 %v11005_v12  ;;  %v11068_v12 = vld [vmem:[#allocation11 + $0x1e4] ss:$16 sps:$4 sm:$0xff]   ;;  %v11066_v15 = vld [vmem:[#allocation11 + $0x1e0] ss:$16 sps:$4 sm:$0xff]   ;;  %v11069_v52 = vld [vmem:[#allocation11 + $0x1e8] ss:$16 sps:$4 sm:$0xff]  }
 0x9a4   :  { %v11077_v53 = vld [vmem:[#allocation13 + $0xc] ss:$28 sps:$4 sm:$0xff]  }
 0x9a5   :  { %4805 = vmatmul.mubr.bf16.gmra.mrb[96].mxu0 %v4655_v22 }
 0x9a6   :  { %4814 = vmatprep.mubr.bf16.mxu0 %v12044_v51  ;;  %5441 = vmatpush1.bf16.msra.mxu0 %v11003_v19 }
 0x9a7   :  { %5442 = vmatprep.subr.bf16.mxu0 %v11011_v1 }
 0x9aa   :  { %5443 = vmatpush1.bf16.msra.mxu0 %v11009_v4 }
 0x9ab   :  { %v9942_v5 = vpop.f32.mrb[128].mxu1  ;;  %5444 = vmatprep.subr.bf16.mxu0 %v11017_v23 }
 0x9ac   :  { %v4598_v46 = vadd.f32 %v9942_v5, %v12595_v32  ;;  %v4589_v55 = vpop.f32.mrb[129].mxu1 }
 0x9ad   :  { %v4590_v39 = vadd.f32 %v12595_v32, %v4589_v55  ;;  %v9943_v42 = vpop.f32.mrb[130].mxu1  ;;  %4815 = vmatmul.mubr.bf16.gmra.mrb[100].mxu0 %v4656_v16  ;;  %v4652_v16 = vld [vmem:[%s13333_s13 + $0xd] sm:$0x3] }
 0x9ae   :  { %v4601_v17 = vadd.f32 %v9943_v42, %v12595_v32  ;;  %v4592_v20 = vpop.f32.mrb[131].mxu1  ;;  %4824 = vmatprep.mubr.bf16.mxu0 %v12044_v51  ;;  %5445 = vmatpush1.bf16.msra.mxu0 %v11015_v25  ;;  %v4630_v27 = vmax.f32 %v4598_v46, 0.0  ;;  %v12624_v19 = vrot.slane %v4652_v16, %v12240_v44  ;;  %v12627_v22 = vrot.slane %v4652_v16, %v12249_v47 }
 0x9af   :  { %v4593_v24 = vadd.f32 %v12595_v32, %v4592_v20  ;;  %5446 = vmatprep.subr.bf16.mxu0 %v11023_v7  ;;  %v4628_v29 = vmax.f32 %v4590_v39, 0.0 }
 0x9b0   :  { %v4631_v28 = vmax.f32 %v4601_v17, 0.0 }
 0x9b1   :  { %v4629_v30 = vmax.f32 %v4593_v24, 0.0 }
 0x9b2   :  { %v4658_v31 = vpack.c.bf16 %v4631_v28, %v4630_v27  ;;  %5447 = vmatpush1.bf16.msra.mxu0 %v11021_v21  ;;  %v11072_v27 = vld [vmem:[#allocation13] ss:$28 sps:$4 sm:$0xff]   ;;  %v11075_v28 = vld [vmem:[#allocation13 + $0x8] ss:$28 sps:$4 sm:$0xff]  }
 0x9b3   :  { %v4657_v34 = vpack.c.bf16 %v4629_v30, %v4628_v29  ;;  %5448 = vmatprep.subr.bf16.mxu0 %v11029_v26 }
 0x9b5   :  { %4825 = vmatmul.mubr.bf16.gmra.mrb[104].mxu0 %v4657_v34 }
 0x9b6   :  { %4834 = vmatprep.mubr.bf16.mxu0 %v12044_v51  ;;  %5449 = vmatpush1.bf16.msra.mxu0 %v11027_v33  ;;  %v11083_v33 = vld [vmem:[#allocation13 + $0x44] ss:$28 sps:$4 sm:$0xff]  }
 0x9b7   :  { %5450 = vmatprep.subr.bf16.mxu0 %v11035_v35 }
 0x9ba   :  { %5451 = vmatpush1.bf16.msra.mxu0 %v11033_v36 }
 0x9bb   :  { %v9946_v40 = vpop.f32.mrb[132].mxu1  ;;  %5452 = vmatprep.subr.bf16.mxu0 %v11041_v37 }
 0x9bc   :  { %v4614_v54 = vadd.f32 %v9946_v40, %v12595_v32  ;;  %v4605_v56 = vpop.f32.mrb[133].mxu1  ;;  %v11078_v40 = vld [vmem:[#allocation13 + $0x38] ss:$28 sps:$4 sm:$0xff]  }
 0x9bd   :  { %v4606_v57 = vadd.f32 %v12595_v32, %v4605_v56  ;;  %v9947_v58 = vpop.f32.mrb[134].mxu1  ;;  %4835 = vmatmul.mubr.bf16.gmra.mrb[108].mxu0 %v4658_v31  ;;  %v11080_v31 = vld [vmem:[#allocation13 + $0x3c] ss:$28 sps:$4 sm:$0xff]  }
 0x9be   :  { %v4617_v59 = vadd.f32 %v9947_v58, %v12595_v32  ;;  %v4608_v61 = vpop.f32.mrb[135].mxu1  ;;  %4844 = vmatprep.mubr.bf16.mxu0 %v12044_v51  ;;  %5453 = vmatpush1.bf16.msra.mxu0 %v11039_v38  ;;  %v4634_v0 = vmax.f32 %v4614_v54, 0.0  ;;  %v11089_v58 = vld [vmem:[#allocation13 + $0x7c] ss:$28 sps:$4 sm:$0xff]  }
 0x9bf   :  { %v4609_v62 = vadd.f32 %v12595_v32, %v4608_v61  ;;  %5454 = vmatprep.subr.bf16.mxu0 %v11047_v41  ;;  %v4632_v3 = vmax.f32 %v4606_v57, 0.0  ;;  %v11062_v32 = vld [vmem:[#allocation11 + $0x1c4] ss:$16 sps:$4 sm:$0xff]   ;;  %v11081_v41 = vld [vmem:[#allocation13 + $0x40] ss:$28 sps:$4 sm:$0xff]  }
 0x9c0   :  { %v4635_v2 = vmax.f32 %v4617_v59, 0.0  ;;  %5347 = vmatprep.subr.bf16.mxu1 %v11062_v32  ;;  %v11086_v57 = vld [vmem:[#allocation13 + $0x74] ss:$28 sps:$4 sm:$0xff]  }
 0x9c1   :  { %v4633_v6 = vmax.f32 %v4609_v62, 0.0  ;;  %5348 = vmatpush1.bf16.msra.mxu1 %v11060_v13  ;;  %v11090_v13 = vld [vmem:[#allocation13 + $0xa8] ss:$28 sps:$4 sm:$0xff]  }
 0x9c2   :  { %v4660_v8 = vpack.c.bf16 %v4635_v2, %v4634_v0  ;;  %5455 = vmatpush1.bf16.msra.mxu0 %v11045_v60  ;;  %5349 = vmatprep.subr.bf16.mxu1 %v11068_v12  ;;  %v11084_v0 = vld [vmem:[#allocation13 + $0x70] ss:$28 sps:$4 sm:$0xff]   ;;  %v11087_v2 = vld [vmem:[#allocation13 + $0x78] ss:$28 sps:$4 sm:$0xff]  }
 0x9c3   :  { %v4659_v10 = vpack.c.bf16 %v4633_v6, %v4632_v3  ;;  %5456 = vmatprep.subr.bf16.mxu0 %v11053_v63 }
 0x9c5   :  { %4845 = vmatmul.mubr.bf16.gmra.mrb[112].mxu0 %v4659_v10  ;;  %5350 = vmatpush1.bf16.msra.mxu1 %v11066_v15  ;;  %v11098_v15 = vld [vmem:[#allocation13 + $0xe4] ss:$28 sps:$4 sm:$0xff]  }
 0x9c6   :  { %4854 = vmatprep.mubr.bf16.mxu0 %v12044_v51  ;;  %5457 = vmatpush1.bf16.msra.mxu0 %v11051_v9  ;;  %v11074_v51 = vld [vmem:[#allocation13 + $0x4] ss:$28 sps:$4 sm:$0xff]   ;;  %v11095_v9 = vld [vmem:[#allocation13 + $0xb4] ss:$28 sps:$4 sm:$0xff]  }
 0x9c7   :  { %5458 = vmatprep.subr.bf16.mxu0 %v11059_v11  ;;  %7086 = vmatprep.subr.bf16.mxu1 %v11074_v51 }
 0x9ca   :  { %5459 = vmatpush1.bf16.msra.mxu0 %v11057_v49 }
 0x9cb   :  { %5460 = vmatprep.subr.bf16.mxu0 %v11065_v50 }
 0x9cd   :  { %4855 = vmatmul.mubr.bf16.gmra.mrb[116].mxu0 %v4660_v8  ;;  %v11092_v8 = vld [vmem:[#allocation13 + $0xac] ss:$28 sps:$4 sm:$0xff]  }
 0x9ce   :  { %5461 = vmatpush1.bf16.msra.mxu0 %v11063_v18  ;;  %v11093_v18 = vld [vmem:[#allocation13 + $0xb0] ss:$28 sps:$4 sm:$0xff]  }
 0x9cf   :  { %5462 = vmatprep.subr.bf16.mxu0 %v11071_v14 }
 0x9d2   :  { %5463 = vmatpush1.bf16.msra.mxu0 %v11069_v52  ;;  %v11101_v52 = vld [vmem:[#allocation13 + $0xec] ss:$28 sps:$4 sm:$0xff]  }
 0x9d3   :  { %7312 = vmatprep.subr.bf16.mxu0 %v11077_v53 }
 0xa68   :  { %v4786_v1 = vpop.f32.mrb[88].mxu0 }
 0xa69   :  { %v4787_v4 = vadd.f32 %v4786_v1, %v12624_v19  ;;  %v4788_v23 = vpop.f32.mrb[89].mxu0 }
 0xa6a   :  { %v4789_v25 = vadd.f32 %v4788_v23, %v12627_v22  ;;  %v4790_v5 = vpop.f32.mrb[90].mxu0  ;;  %v11096_v23 = vld [vmem:[#allocation13 + $0xe0] ss:$28 sps:$4 sm:$0xff]  }
 0xa6b   :  { %v4791_v7 = vadd.f32 %v4790_v5, %v12624_v19  ;;  %v4792_v46 = vpop.f32.mrb[91].mxu0  ;;  %v4865_v39 = vmax.f32 %v4787_v4, 0.0 }
 0xa6c   :  { %v4793_v55 = vadd.f32 %v4792_v46, %v12627_v22  ;;  %v4866_v17 = vmax.f32 %v4789_v25, 0.0  ;;  %v11099_v25 = vld [vmem:[#allocation13 + $0xe8] ss:$28 sps:$4 sm:$0xff]   ;;  %v11104_v46 = vld [vmem:[#allocation13 + $0x11c] ss:$28 sps:$4 sm:$0xff]  }
 0xa6d   :  { %v4867_v42 = vmax.f32 %v4791_v7, 0.0 }
 0xa6e   :  { %v4868_v20 = vmax.f32 %v4793_v55, 0.0  ;;  %v11107_v55 = vld [vmem:[#allocation13 + $0x124] ss:$28 sps:$4 sm:$0xff]  }
 0xa6f   :  { %v4962_v21 = vpack.c.bf16 %v4867_v42, %v4865_v39 }
 0xa70   :  { %v4963_v24 = vpack.c.bf16 %v4868_v20, %v4866_v17  ;;  %v4796_v26 = vpop.f32.mrb[92].mxu0 }
 0xa71   :  { %v4797_v29 = vadd.f32 %v4796_v26, %v12624_v19  ;;  %v4798_v30 = vpop.f32.mrb[93].mxu0  ;;  %v11105_v26 = vld [vmem:[#allocation13 + $0x120] ss:$28 sps:$4 sm:$0xff]  }
 0xa72   :  { %v4799_v34 = vadd.f32 %v4798_v30, %v12627_v22  ;;  %v4800_v35 = vpop.f32.mrb[94].mxu0  ;;  %5351 = vmatprep.mubr.bf16.mxu1 %v4963_v24  ;;  %5464 = vmatprep.mubr.bf16.mxu0 %v4963_v24  ;;  %v11102_v24 = vld [vmem:[#allocation13 + $0x118] ss:$28 sps:$4 sm:$0xff]  }
 0xa73   :  { %v4801_v36 = vadd.f32 %v4800_v35, %v12624_v19  ;;  %v4802_v37 = vpop.f32.mrb[95].mxu0  ;;  %5352 = vmatmul.mubr.bf16.vlgmr.msra.gmra.mrb[136].mxu1 %v4962_v21  ;;  %5465 = vmatmul.mubr.bf16.vlgmr.msra.gmra.mrb[120].mxu0 %v4962_v21  ;;  %v4869_v54 = vmax.f32 %v4797_v29, 0.0  ;;  %v11110_v29 = vld [vmem:[#allocation13 + $0x154] ss:$28 sps:$4 sm:$0xff]   ;;  %v11113_v30 = vld [vmem:[#allocation13 + $0x15c] ss:$28 sps:$4 sm:$0xff]  }
 0xa74   :  { %v4803_v38 = vadd.f32 %v4802_v37, %v12627_v22  ;;  %7087 = vmatpush1.bf16.msra.mxu1 %v11072_v27  ;;  %7313 = vmatpush1.bf16.msra.mxu0 %v11075_v28  ;;  %v4870_v59 = vmax.f32 %v4799_v34, 0.0  ;;  %v11108_v37 = vld [vmem:[#allocation13 + $0x150] ss:$28 sps:$4 sm:$0xff]  }
 0xa75   :  { %v4871_v56 = vmax.f32 %v4801_v36, 0.0  ;;  %7088 = vmatprep.subr.bf16.mxu1 %v11080_v31  ;;  %7314 = vmatprep.subr.bf16.mxu0 %v11083_v33 }
 0xa76   :  { %v4872_v61 = vmax.f32 %v4803_v38, 0.0  ;;  %v11111_v38 = vld [vmem:[#allocation13 + $0x158] ss:$28 sps:$4 sm:$0xff]  }
 0xa77   :  { %v4964_v60 = vpack.c.bf16 %v4871_v56, %v4869_v54  ;;  %v11116_v54 = vld [vmem:[#allocation13 + $0x18c] ss:$28 sps:$4 sm:$0xff]   ;;  %v11119_v56 = vld [vmem:[#allocation13 + $0x194] ss:$28 sps:$4 sm:$0xff]  }
 0xa78   :  { %v4965_v62 = vpack.c.bf16 %v4872_v61, %v4870_v59  ;;  %v4806_v63 = vpop.f32.mrb[96].mxu0  ;;  %7089 = vmatpush1.bf16.msra.mxu1 %v11078_v40  ;;  %7315 = vmatpush1.bf16.msra.mxu0 %v11081_v41 }
 0xa79   :  { %v4807_v3 = vadd.f32 %v4806_v63, %v12624_v19  ;;  %v4808_v6 = vpop.f32.mrb[97].mxu0  ;;  %7090 = vmatprep.subr.bf16.mxu1 %v11086_v57  ;;  %7316 = vmatprep.subr.bf16.mxu0 %v11089_v58  ;;  %v11117_v63 = vld [vmem:[#allocation13 + $0x190] ss:$28 sps:$4 sm:$0xff]  }
 0xa7a   :  { %v4809_v10 = vadd.f32 %v4808_v6, %v12627_v22  ;;  %v4810_v11 = vpop.f32.mrb[98].mxu0  ;;  %5361 = vmatprep.mubr.bf16.mxu1 %v4965_v62  ;;  %5474 = vmatprep.mubr.bf16.mxu0 %v4965_v62  ;;  %v11114_v62 = vld [vmem:[#allocation13 + $0x188] ss:$28 sps:$4 sm:$0xff]  }
 0xa7b   :  { %v4811_v49 = vadd.f32 %v4810_v11, %v12624_v19  ;;  %v4812_v32 = vpop.f32.mrb[99].mxu0  ;;  %5362 = vmatmul.mubr.bf16.gmra.mrb[140].mxu1 %v4964_v60  ;;  %5475 = vmatmul.mubr.bf16.gmra.mrb[124].mxu0 %v4964_v60  ;;  %v4873_v12 = vmax.f32 %v4807_v3, 0.0  ;;  %v11122_v3 = vld [vmem:[#allocation13 + $0x1c4] ss:$28 sps:$4 sm:$0xff]   ;;  %v11125_v6 = vld [vmem:[#allocation13 + $0x1cc] ss:$28 sps:$4 sm:$0xff]  }
 0xa7c   :  { %v4813_v50 = vadd.f32 %v4812_v32, %v12627_v22  ;;  %7091 = vmatpush1.bf16.msra.mxu1 %v11084_v0  ;;  %7317 = vmatpush1.bf16.msra.mxu0 %v11087_v2  ;;  %v4874_v51 = vmax.f32 %v4809_v10, 0.0  ;;  %v11120_v32 = vld [vmem:[#allocation13 + $0x1c0] ss:$28 sps:$4 sm:$0xff]  }
 0xa7d   :  { %v4875_v14 = vmax.f32 %v4811_v49, 0.0  ;;  %7092 = vmatprep.subr.bf16.mxu1 %v11092_v8  ;;  %7318 = vmatprep.subr.bf16.mxu0 %v11095_v9 }
 0xa7e   :  { %v4876_v53 = vmax.f32 %v4813_v50, 0.0  ;;  %v11123_v50 = vld [vmem:[#allocation13 + $0x1c8] ss:$28 sps:$4 sm:$0xff]  }
 0xa7f   :  { %v4966_v16 = vpack.c.bf16 %v4875_v14, %v4873_v12  ;;  %v11128_v12 = vld [vmem:[#allocation13 + $0x1fc] ss:$28 sps:$4 sm:$0xff]   ;;  %v11131_v14 = vld [vmem:[#allocation13 + $0x204] ss:$28 sps:$4 sm:$0xff]  }
 0xa80   :  { %v4967_v1 = vpack.c.bf16 %v4876_v53, %v4874_v51  ;;  %v4816_v4 = vpop.f32.mrb[100].mxu0  ;;  %7093 = vmatpush1.bf16.msra.mxu1 %v11090_v13  ;;  %7319 = vmatpush1.bf16.msra.mxu0 %v11093_v18 }
 0xa81   :  { %v4817_v5 = vadd.f32 %v4816_v4, %v12624_v19  ;;  %v4818_v7 = vpop.f32.mrb[101].mxu0  ;;  %7094 = vmatprep.subr.bf16.mxu1 %v11098_v15  ;;  %7320 = vmatprep.subr.bf16.mxu0 %v11101_v52  ;;  %v11129_v4 = vld [vmem:[#allocation13 + $0x200] ss:$28 sps:$4 sm:$0xff]  }
 0xa82   :  { %v4819_v39 = vadd.f32 %v4818_v7, %v12627_v22  ;;  %v4820_v42 = vpop.f32.mrb[102].mxu0  ;;  %5371 = vmatprep.mubr.bf16.mxu1 %v4967_v1  ;;  %5484 = vmatprep.mubr.bf16.mxu0 %v4967_v1  ;;  %v11126_v1 = vld [vmem:[#allocation13 + $0x1f8] ss:$28 sps:$4 sm:$0xff]  }
 0xa83   :  { %v4821_v17 = vadd.f32 %v4820_v42, %v12624_v19  ;;  %v4822_v20 = vpop.f32.mrb[103].mxu0  ;;  %5372 = vmatmul.mubr.bf16.gmra.mrb[144].mxu1 %v4966_v16  ;;  %5485 = vmatmul.mubr.bf16.gmra.mrb[128].mxu0 %v4966_v16  ;;  %v4877_v27 = vmax.f32 %v4817_v5, 0.0  ;;  %v11134_v5 = vld [vmem:[#allocation13 + $0x234] ss:$28 sps:$4 sm:$0xff]   ;;  %v11137_v7 = vld [vmem:[#allocation13 + $0x23c] ss:$28 sps:$4 sm:$0xff]  }
 0xa84   :  { %v4823_v21 = vadd.f32 %v4822_v20, %v12627_v22  ;;  %7095 = vmatpush1.bf16.msra.mxu1 %v11096_v23  ;;  %7321 = vmatpush1.bf16.msra.mxu0 %v11099_v25  ;;  %v4878_v31 = vmax.f32 %v4819_v39, 0.0  ;;  %v11132_v20 = vld [vmem:[#allocation13 + $0x230] ss:$28 sps:$4 sm:$0xff]  }
 0xa85   :  { %v4879_v28 = vmax.f32 %v4821_v17, 0.0  ;;  %7096 = vmatprep.subr.bf16.mxu1 %v11104_v46  ;;  %7322 = vmatprep.subr.bf16.mxu0 %v11107_v55 }
 0xa86   :  { %v4880_v33 = vmax.f32 %v4823_v21, 0.0  ;;  %v11135_v21 = vld [vmem:[#allocation13 + $0x238] ss:$28 sps:$4 sm:$0xff]  }
 0xa87   :  { %v4968_v34 = vpack.c.bf16 %v4879_v28, %v4877_v27  ;;  %v11140_v27 = vld [vmem:[#allocation13 + $0x26c] ss:$28 sps:$4 sm:$0xff]   ;;  %v11143_v28 = vld [vmem:[#allocation13 + $0x274] ss:$28 sps:$4 sm:$0xff]  }
 0xa88   :  { %v4969_v35 = vpack.c.bf16 %v4880_v33, %v4878_v31  ;;  %v4826_v36 = vpop.f32.mrb[104].mxu0  ;;  %7097 = vmatpush1.bf16.msra.mxu1 %v11102_v24  ;;  %7323 = vmatpush1.bf16.msra.mxu0 %v11105_v26 }
 0xa89   :  { %v4827_v40 = vadd.f32 %v4826_v36, %v12624_v19  ;;  %v4828_v41 = vpop.f32.mrb[105].mxu0  ;;  %7098 = vmatprep.subr.bf16.mxu1 %v11110_v29  ;;  %7324 = vmatprep.subr.bf16.mxu0 %v11113_v30  ;;  %v11141_v36 = vld [vmem:[#allocation13 + $0x270] ss:$28 sps:$4 sm:$0xff]  }
 0xa8a   :  { %v4829_v57 = vadd.f32 %v4828_v41, %v12627_v22  ;;  %v4830_v58 = vpop.f32.mrb[106].mxu0  ;;  %5381 = vmatprep.mubr.bf16.mxu1 %v4969_v35  ;;  %5494 = vmatprep.mubr.bf16.mxu0 %v4969_v35  ;;  %v11138_v35 = vld [vmem:[#allocation13 + $0x268] ss:$28 sps:$4 sm:$0xff]  }
 0xa8b   :  { %v4831_v59 = vadd.f32 %v4830_v58, %v12624_v19  ;;  %v4832_v61 = vpop.f32.mrb[107].mxu0  ;;  %5382 = vmatmul.mubr.bf16.gmra.mrb[148].mxu1 %v4968_v34  ;;  %5495 = vmatmul.mubr.bf16.gmra.mrb[132].mxu0 %v4968_v34  ;;  %v4881_v0 = vmax.f32 %v4827_v40, 0.0  ;;  %v11146_v40 = vld [vmem:[#allocation13 + $0x2a4] ss:$28 sps:$4 sm:$0xff]   ;;  %v11149_v41 = vld [vmem:[#allocation13 + $0x2ac] ss:$28 sps:$4 sm:$0xff]  }
 0xa8c   :  { %v4833_v60 = vadd.f32 %v4832_v61, %v12627_v22  ;;  %7099 = vmatpush1.bf16.msra.mxu1 %v11108_v37  ;;  %7325 = vmatpush1.bf16.msra.mxu0 %v11111_v38  ;;  %v4882_v8 = vmax.f32 %v4829_v57, 0.0  ;;  %v11144_v61 = vld [vmem:[#allocation13 + $0x2a0] ss:$28 sps:$4 sm:$0xff]  }
 0xa8d   :  { %v4883_v2 = vmax.f32 %v4831_v59, 0.0  ;;  %7100 = vmatprep.subr.bf16.mxu1 %v11116_v54  ;;  %7326 = vmatprep.subr.bf16.mxu0 %v11119_v56 }
 0xa8e   :  { %v4884_v9 = vmax.f32 %v4833_v60, 0.0  ;;  %v11147_v60 = vld [vmem:[#allocation13 + $0x2a8] ss:$28 sps:$4 sm:$0xff]  }
 0xa8f   :  { %v4970_v10 = vpack.c.bf16 %v4883_v2, %v4881_v0  ;;  %v11152_v0 = vld [vmem:[#allocation13 + $0x2dc] ss:$28 sps:$4 sm:$0xff]   ;;  %v11155_v2 = vld [vmem:[#allocation13 + $0x2e4] ss:$28 sps:$4 sm:$0xff]  }
 0xa90   :  { %v4971_v11 = vpack.c.bf16 %v4884_v9, %v4882_v8  ;;  %v4836_v49 = vpop.f32.mrb[108].mxu0  ;;  %7101 = vmatpush1.bf16.msra.mxu1 %v11114_v62  ;;  %7327 = vmatpush1.bf16.msra.mxu0 %v11117_v63 }
 0xa91   :  { %v4837_v13 = vadd.f32 %v4836_v49, %v12624_v19  ;;  %v4838_v18 = vpop.f32.mrb[109].mxu0  ;;  %7102 = vmatprep.subr.bf16.mxu1 %v11122_v3  ;;  %7328 = vmatprep.subr.bf16.mxu0 %v11125_v6  ;;  %v11153_v49 = vld [vmem:[#allocation13 + $0x2e0] ss:$28 sps:$4 sm:$0xff]  }
 0xa92   :  { %v4839_v15 = vadd.f32 %v4838_v18, %v12627_v22  ;;  %v4840_v52 = vpop.f32.mrb[110].mxu0  ;;  %5391 = vmatprep.mubr.bf16.mxu1 %v4971_v11  ;;  %5504 = vmatprep.mubr.bf16.mxu0 %v4971_v11  ;;  %v11150_v11 = vld [vmem:[#allocation13 + $0x2d8] ss:$28 sps:$4 sm:$0xff]  }
 0xa93   :  { %v4841_v51 = vadd.f32 %v4840_v52, %v12624_v19  ;;  %v4842_v53 = vpop.f32.mrb[111].mxu0  ;;  %5392 = vmatmul.mubr.bf16.gmra.mrb[152].mxu1 %v4970_v10  ;;  %5505 = vmatmul.mubr.bf16.gmra.mrb[136].mxu0 %v4970_v10  ;;  %v4885_v23 = vmax.f32 %v4837_v13, 0.0  ;;  %v11159_v52 = vld [vmem:[#allocation13 + $0x318] ss:$28 sps:$4 sm:$0xff]  }
 0xa94   :  { %v4843_v16 = vadd.f32 %v4842_v53, %v12627_v22  ;;  %7103 = vmatpush1.bf16.msra.mxu1 %v11120_v32  ;;  %7329 = vmatpush1.bf16.msra.mxu0 %v11123_v50  ;;  %v4886_v46 = vmax.f32 %v4839_v15, 0.0  ;;  %v11156_v15 = vld [vmem:[#allocation13 + $0x310] ss:$28 sps:$4 sm:$0xff]  }
 0xa95   :  { %v4887_v25 = vmax.f32 %v4841_v51, 0.0  ;;  %7104 = vmatprep.subr.bf16.mxu1 %v11128_v12  ;;  %7330 = vmatprep.subr.bf16.mxu0 %v11131_v14  ;;  %v11164_v51 = vld [vmem:[#allocation13 + $0x34c] ss:$28 sps:$4 sm:$0xff]   ;;  %v11167_v53 = vld [vmem:[#allocation13 + $0x354] ss:$28 sps:$4 sm:$0xff]  }
 0xa96   :  { %v4888_v55 = vmax.f32 %v4843_v16, 0.0  ;;  %v11162_v16 = vld [vmem:[#allocation13 + $0x348] ss:$28 sps:$4 sm:$0xff]  }
 0xa97   :  { %v4972_v39 = vpack.c.bf16 %v4887_v25, %v4885_v23  ;;  %v11173_v23 = vld [vmem:[#allocation13 + $0x38c] ss:$28 sps:$4 sm:$0xff]   ;;  %v4961_v25 = vld [vmem:[%s13333_s13 + $0xf] sm:$0xf] }
 0xa98   :  { %v4973_v42 = vpack.c.bf16 %v4888_v55, %v4886_v46  ;;  %v4846_v17 = vpop.f32.mrb[112].mxu0  ;;  %7105 = vmatpush1.bf16.msra.mxu1 %v11126_v1  ;;  %7331 = vmatpush1.bf16.msra.mxu0 %v11129_v4  ;;  %v11165_v1 = vld [vmem:[#allocation13 + $0x350] ss:$28 sps:$4 sm:$0xff]   ;;  %v11170_v4 = vld [vmem:[#allocation13 + $0x384] ss:$28 sps:$4 sm:$0xff]   ;;  %v12671_v46 = vrot.slane %v4961_v25, %v12249_v47  ;;  %v12674_v55 = vrot.slane %v4961_v25, %v12252_v48 }
 0xa99   :  { %v4847_v24 = vadd.f32 %v4846_v17, %v12624_v19  ;;  %v4848_v26 = vpop.f32.mrb[113].mxu0  ;;  %7106 = vmatprep.subr.bf16.mxu1 %v11134_v5  ;;  %7332 = vmatprep.subr.bf16.mxu0 %v11137_v7  ;;  %v12665_v5 = vrot.slane %v4961_v25, %v12240_v44  ;;  %v12668_v7 = vrot.slane %v4961_v25, %v12243_v45 }
 0xa9a   :  { %v4849_v29 = vadd.f32 %v4848_v26, %v12627_v22  ;;  %v4850_v30 = vpop.f32.mrb[114].mxu0  ;;  %5401 = vmatprep.mubr.bf16.mxu1 %v4973_v42  ;;  %5514 = vmatprep.mubr.bf16.mxu0 %v4973_v42 }
 0xa9b   :  { %v4851_v31 = vadd.f32 %v4850_v30, %v12624_v19  ;;  %v4852_v33 = vpop.f32.mrb[115].mxu0  ;;  %5402 = vmatmul.mubr.bf16.gmra.mrb[156].mxu1 %v4972_v39  ;;  %5515 = vmatmul.mubr.bf16.gmra.mrb[140].mxu0 %v4972_v39  ;;  %v4889_v37 = vmax.f32 %v4847_v24, 0.0 }
 0xa9c   :  { %v4853_v34 = vadd.f32 %v4852_v33, %v12627_v22  ;;  %7107 = vmatpush1.bf16.msra.mxu1 %v11132_v20  ;;  %7333 = vmatpush1.bf16.msra.mxu0 %v11135_v21  ;;  %v4890_v54 = vmax.f32 %v4849_v29, 0.0 }
 0xa9d   :  { %v4891_v38 = vmax.f32 %v4851_v31, 0.0  ;;  %7108 = vmatprep.subr.bf16.mxu1 %v11140_v27  ;;  %7334 = vmatprep.subr.bf16.mxu0 %v11143_v28 }
 0xa9e   :  { %v4892_v56 = vmax.f32 %v4853_v34, 0.0 }
 0xa9f   :  { %v4974_v57 = vpack.c.bf16 %v4891_v38, %v4889_v37 }
 0xaa0   :  { %v4975_v58 = vpack.c.bf16 %v4892_v56, %v4890_v54  ;;  %v4856_v59 = vpop.f32.mrb[116].mxu0  ;;  %7109 = vmatpush1.bf16.msra.mxu1 %v11138_v35  ;;  %7335 = vmatpush1.bf16.msra.mxu0 %v11141_v36 }
 0xaa1   :  { %v4857_v62 = vadd.f32 %v4856_v59, %v12624_v19  ;;  %v4858_v63 = vpop.f32.mrb[117].mxu0  ;;  %7110 = vmatprep.subr.bf16.mxu1 %v11146_v40  ;;  %7336 = vmatprep.subr.bf16.mxu0 %v11149_v41 }
 0xaa2   :  { %v4859_v3 = vadd.f32 %v4858_v63, %v12627_v22  ;;  %v4860_v6 = vpop.f32.mrb[118].mxu0  ;;  %5411 = vmatprep.mubr.bf16.mxu1 %v4975_v58  ;;  %5524 = vmatprep.mubr.bf16.mxu0 %v4975_v58 }
 0xaa3   :  { %v4861_v8 = vadd.f32 %v4860_v6, %v12624_v19  ;;  %v4862_v9 = vpop.f32.mrb[119].mxu0  ;;  %5412 = vmatmul.mubr.bf16.gmra.mrb[160].mxu1 %v4974_v57  ;;  %5525 = vmatmul.mubr.bf16.gmra.mrb[144].mxu0 %v4974_v57  ;;  %v4893_v32 = vmax.f32 %v4857_v62, 0.0  ;;  %v11158_v19 = vld [vmem:[#allocation13 + $0x314] ss:$28 sps:$4 sm:$0xff]  }
 0xaa4   :  { %v4863_v10 = vadd.f32 %v4862_v9, %v12627_v22  ;;  %7111 = vmatpush1.bf16.msra.mxu1 %v11144_v61  ;;  %7337 = vmatpush1.bf16.msra.mxu0 %v11147_v60  ;;  %v4894_v13 = vmax.f32 %v4859_v3, 0.0  ;;  %v11161_v22 = vld [vmem:[#allocation13 + $0x31c] ss:$28 sps:$4 sm:$0xff]   ;;  %v11171_v3 = vld [vmem:[#allocation13 + $0x388] ss:$28 sps:$4 sm:$0xff]  }
 0xaa5   :  { %v4895_v50 = vmax.f32 %v4861_v8, 0.0  ;;  %7112 = vmatprep.subr.bf16.mxu1 %v11152_v0  ;;  %7338 = vmatprep.subr.bf16.mxu0 %v11155_v2  ;;  %v11168_v2 = vld [vmem:[#allocation13 + $0x380] ss:$28 sps:$4 sm:$0xff]  }
 0xaa6   :  { %v4896_v18 = vmax.f32 %v4863_v10, 0.0 }
 0xaa7   :  { %v4976_v12 = vpack.c.bf16 %v4895_v50, %v4893_v32 }
 0xaa8   :  { %v4977_v14 = vpack.c.bf16 %v4896_v18, %v4894_v13  ;;  %7113 = vmatpush1.bf16.msra.mxu1 %v11150_v11  ;;  %7339 = vmatpush1.bf16.msra.mxu0 %v11153_v49  ;;  %v11176_v11 = vld [vmem:[#allocation13 + $0x3bc] ss:$28 sps:$4 sm:$0xff]   ;;  %v11179_v49 = vld [vmem:[#allocation13 + $0x3c4] ss:$28 sps:$4 sm:$0xff]  }
 0xaa9   :  { %7114 = vmatprep.subr.bf16.mxu1 %v11158_v19  ;;  %7340 = vmatprep.subr.bf16.mxu0 %v11161_v22 }
 0xaaa   :  { %5421 = vmatprep.mubr.bf16.mxu1 %v4977_v14  ;;  %5534 = vmatprep.mubr.bf16.mxu0 %v4977_v14 }
 0xaab   :  { %5422 = vmatmul.mubr.bf16.gmra.mrb[164].mxu1 %v4976_v12  ;;  %5535 = vmatmul.mubr.bf16.gmra.mrb[148].mxu0 %v4976_v12 }
 0xaac   :  { %7115 = vmatpush1.bf16.msra.mxu1 %v11156_v15  ;;  %7341 = vmatpush1.bf16.msra.mxu0 %v11159_v52 }
 0xaad   :  { %7116 = vmatprep.subr.bf16.mxu1 %v11164_v51  ;;  %7342 = vmatprep.subr.bf16.mxu0 %v11167_v53  ;;  %v11174_v51 = vld [vmem:[#allocation13 + $0x3b8] ss:$28 sps:$4 sm:$0xff]   ;;  %v11177_v53 = vld [vmem:[#allocation13 + $0x3c0] ss:$28 sps:$4 sm:$0xff]  }
 0xab0   :  { %7117 = vmatpush1.bf16.msra.mxu1 %v11162_v16  ;;  %7343 = vmatpush1.bf16.msra.mxu0 %v11165_v1  ;;  %v11182_v16 = vld [vmem:[#allocation13 + $0x3f4] ss:$28 sps:$4 sm:$0xff]  }
 0xab1   :  { %7199 = vmatprep.subr.bf16.mxu1 %v11170_v4  ;;  %7425 = vmatprep.subr.bf16.mxu0 %v11173_v23 }
 0xb46   :  { %v5353_v39 = vpop.f32.mrb[136].mxu1  ;;  %v5466_v42 = vpop.f32.mrb[120].mxu0 }
 0xb47   :  { %v5354_v17 = vadd.f32 %v5353_v39, %v12665_v5  ;;  %v5467_v20 = vadd.f32 %v5466_v42, %v12668_v7  ;;  %v5355_v21 = vpop.f32.mrb[137].mxu1  ;;  %v5468_v24 = vpop.f32.mrb[121].mxu0  ;;  %v11185_v39 = vld [vmem:[#allocation13 + $0x3fc] ss:$28 sps:$4 sm:$0xff]  }
 0xb48   :  { %v5356_v26 = vadd.f32 %v5355_v21, %v12671_v46  ;;  %v5469_v27 = vadd.f32 %v5468_v24, %v12674_v55  ;;  %v5357_v28 = vpop.f32.mrb[138].mxu1  ;;  %v5470_v29 = vpop.f32.mrb[122].mxu0 }
 0xb49   :  { %v5358_v30 = vadd.f32 %v5357_v28, %v12665_v5  ;;  %v5471_v31 = vadd.f32 %v5470_v29, %v12668_v7  ;;  %v5359_v33 = vpop.f32.mrb[139].mxu1  ;;  %v5472_v34 = vpop.f32.mrb[123].mxu0  ;;  %v5545_v37 = vmax.f32 %v5354_v17, 0.0  ;;  %v5547_v38 = vmax.f32 %v5467_v20, 0.0 }
 0xb4a   :  { %v5360_v35 = vadd.f32 %v5359_v33, %v12671_v46  ;;  %v5473_v36 = vadd.f32 %v5472_v34, %v12674_v55  ;;  %v5546_v54 = vmax.f32 %v5356_v26, 0.0  ;;  %v5548_v56 = vmax.f32 %v5469_v27, 0.0  ;;  %v11183_v33 = vld [vmem:[#allocation13 + $0x3f8] ss:$28 sps:$4 sm:$0xff]  }
 0xb4b   :  { %v5549_v40 = vmax.f32 %v5358_v30, 0.0  ;;  %v5551_v41 = vmax.f32 %v5471_v31, 0.0  ;;  %v11180_v31 = vld [vmem:[#allocation13 + $0x3f0] ss:$28 sps:$4 sm:$0xff]  }
 0xb4c   :  { %v5550_v57 = vmax.f32 %v5360_v35, 0.0  ;;  %v5552_v58 = vmax.f32 %v5473_v36, 0.0 }
 0xb4d   :  { %v12684_v59 = vpack.c.bf16 %v5549_v40, %v5545_v37  ;;  %v12686_v61 = vpack.c.bf16 %v5551_v41, %v5547_v38  ;;  %v11188_v38 = vld [vmem:[#allocation13 + $0x42c] ss:$28 sps:$4 sm:$0xff]   ;;  %v11191_v40 = vld [vmem:[#allocation13 + $0x434] ss:$28 sps:$4 sm:$0xff]  }
 0xb4e   :  { %v12688_v60 = vpack.c.bf16 %v5550_v57, %v5546_v54  ;;  %v12690_v62 = vpack.c.bf16 %v5552_v58, %v5548_v56  ;;  %v5363_v63 = vpop.f32.mrb[140].mxu1  ;;  %v5476_v0 = vpop.f32.mrb[124].mxu0 }
 0xb4f   :  { %v5364_v6 = vadd.f32 %v5363_v63, %v12665_v5  ;;  %v5477_v8 = vadd.f32 %v5476_v0, %v12668_v7  ;;  %v5365_v9 = vpop.f32.mrb[141].mxu1  ;;  %v5478_v10 = vpop.f32.mrb[125].mxu0 }
 0xb50   :  { %v5366_v32 = vadd.f32 %v5365_v9, %v12671_v46  ;;  %v5479_v50 = vadd.f32 %v5478_v10, %v12674_v55  ;;  %v5367_v13 = vpop.f32.mrb[142].mxu1  ;;  %v5480_v18 = vpop.f32.mrb[126].mxu0  ;;  %7118 = vmatprep.mubr.bf16.mxu1 %v12688_v60  ;;  %7344 = vmatprep.mubr.bf16.mxu0 %v12688_v60  ;;  %v11189_v9 = vld [vmem:[#allocation13 + $0x430] ss:$28 sps:$4 sm:$0xff]   ;;  %v11194_v10 = vld [vmem:[#allocation13 + $0x464] ss:$28 sps:$4 sm:$0xff]  }
 0xb51   :  { %v5368_v12 = vadd.f32 %v5367_v13, %v12665_v5  ;;  %v5481_v14 = vadd.f32 %v5480_v18, %v12668_v7  ;;  %v5369_v19 = vpop.f32.mrb[143].mxu1  ;;  %v5482_v22 = vpop.f32.mrb[127].mxu0  ;;  %7119 = vmatmul.mubr.bf16.vlgmr.msra.gmra.mrb[168].mxu1 %v12684_v59  ;;  %7345 = vmatmul.mubr.bf16.vlgmr.msra.gmra.mrb[152].mxu0 %v12684_v59  ;;  %v5553_v1 = vmax.f32 %v5364_v6, 0.0  ;;  %v5555_v4 = vmax.f32 %v5477_v8, 0.0  ;;  %v11186_v8 = vld [vmem:[#allocation13 + $0x428] ss:$28 sps:$4 sm:$0xff]  }
 0xb52   :  { %v5370_v15 = vadd.f32 %v5369_v19, %v12671_v46  ;;  %v5483_v52 = vadd.f32 %v5482_v22, %v12674_v55  ;;  %7200 = vmatpush1.bf16.msra.mxu1 %v11168_v2  ;;  %7426 = vmatpush1.bf16.msra.mxu0 %v11171_v3  ;;  %v5554_v42 = vmax.f32 %v5366_v32, 0.0  ;;  %v5556_v17 = vmax.f32 %v5479_v50, 0.0  ;;  %v11197_v13 = vld [vmem:[#allocation13 + $0x46c] ss:$28 sps:$4 sm:$0xff]  }
 0xb53   :  { %v5557_v23 = vmax.f32 %v5368_v12, 0.0  ;;  %v5559_v25 = vmax.f32 %v5481_v14, 0.0  ;;  %7201 = vmatprep.subr.bf16.mxu1 %v11176_v11  ;;  %7427 = vmatprep.subr.bf16.mxu0 %v11179_v49 }
 0xb54   :  { %v5558_v20 = vmax.f32 %v5370_v15, 0.0  ;;  %v5560_v21 = vmax.f32 %v5483_v52, 0.0 }
 0xb55   :  { %v12704_v24 = vpack.c.bf16 %v5557_v23, %v5553_v1  ;;  %v12706_v26 = vpack.c.bf16 %v5559_v25, %v5555_v4  ;;  %v11192_v1 = vld [vmem:[#allocation13 + $0x460] ss:$28 sps:$4 sm:$0xff]   ;;  %v11195_v4 = vld [vmem:[#allocation13 + $0x468] ss:$28 sps:$4 sm:$0xff]  }
 0xb56   :  { %v12708_v27 = vpack.c.bf16 %v5558_v20, %v5554_v42  ;;  %v12710_v28 = vpack.c.bf16 %v5560_v21, %v5556_v17  ;;  %v5373_v29 = vpop.f32.mrb[144].mxu1  ;;  %v5486_v30 = vpop.f32.mrb[128].mxu0  ;;  %7202 = vmatpush1.bf16.msra.mxu1 %v11174_v51  ;;  %7428 = vmatpush1.bf16.msra.mxu0 %v11177_v53  ;;  %v11200_v17 = vld [vmem:[#allocation13 + $0x49c] ss:$28 sps:$4 sm:$0xff]   ;;  %v11203_v20 = vld [vmem:[#allocation13 + $0x4a4] ss:$28 sps:$4 sm:$0xff]  }
 0xb57   :  { %v5374_v34 = vadd.f32 %v5373_v29, %v12665_v5  ;;  %v5487_v35 = vadd.f32 %v5486_v30, %v12668_v7  ;;  %v5375_v36 = vpop.f32.mrb[145].mxu1  ;;  %v5488_v37 = vpop.f32.mrb[129].mxu0  ;;  %7203 = vmatprep.subr.bf16.mxu1 %v11182_v16  ;;  %7429 = vmatprep.subr.bf16.mxu0 %v11185_v39 }
 0xb58   :  { %v5376_v41 = vadd.f32 %v5375_v36, %v12671_v46  ;;  %v5489_v54 = vadd.f32 %v5488_v37, %v12674_v55  ;;  %v5377_v56 = vpop.f32.mrb[146].mxu1  ;;  %v5490_v57 = vpop.f32.mrb[130].mxu0  ;;  %7128 = vmatprep.mubr.bf16.mxu1 %v12708_v27  ;;  %7354 = vmatprep.mubr.bf16.mxu0 %v12708_v27 }
 0xb59   :  { %v5378_v58 = vadd.f32 %v5377_v56, %v12665_v5  ;;  %v5491_v63 = vadd.f32 %v5490_v57, %v12668_v7  ;;  %v5379_v0 = vpop.f32.mrb[147].mxu1  ;;  %v5492_v2 = vpop.f32.mrb[131].mxu0  ;;  %7129 = vmatmul.mubr.bf16.gmra.mrb[172].mxu1 %v12704_v24  ;;  %7355 = vmatmul.mubr.bf16.gmra.mrb[156].mxu0 %v12704_v24  ;;  %v5561_v11 = vmax.f32 %v5374_v34, 0.0  ;;  %v5563_v49 = vmax.f32 %v5487_v35, 0.0 }
 0xb5a   :  { %v5380_v3 = vadd.f32 %v5379_v0, %v12671_v46  ;;  %v5493_v6 = vadd.f32 %v5492_v2, %v12674_v55  ;;  %7204 = vmatpush1.bf16.msra.mxu1 %v11180_v31  ;;  %7430 = vmatpush1.bf16.msra.mxu0 %v11183_v33  ;;  %v5562_v18 = vmax.f32 %v5376_v41, 0.0  ;;  %v5564_v12 = vmax.f32 %v5489_v54, 0.0  ;;  %v11201_v41 = vld [vmem:[#allocation13 + $0x4a0] ss:$28 sps:$4 sm:$0xff]   ;;  %v11206_v54 = vld [vmem:[#allocation13 + $0x4d4] ss:$28 sps:$4 sm:$0xff]  }
 0xb5b   :  { %v5565_v32 = vmax.f32 %v5378_v58, 0.0  ;;  %v5567_v50 = vmax.f32 %v5491_v63, 0.0  ;;  %7205 = vmatprep.subr.bf16.mxu1 %v11188_v38  ;;  %7431 = vmatprep.subr.bf16.mxu0 %v11191_v40  ;;  %v11198_v40 = vld [vmem:[#allocation13 + $0x498] ss:$28 sps:$4 sm:$0xff]  }
 0xb5c   :  { %v5566_v14 = vmax.f32 %v5380_v3, 0.0  ;;  %v5568_v19 = vmax.f32 %v5493_v6, 0.0  ;;  %v11209_v0 = vld [vmem:[#allocation13 + $0x4dc] ss:$28 sps:$4 sm:$0xff]  }
 0xb5d   :  { %v12724_v22 = vpack.c.bf16 %v5565_v32, %v5561_v11  ;;  %v12726_v15 = vpack.c.bf16 %v5567_v50, %v5563_v49 }
 0xb5e   :  { %v12728_v52 = vpack.c.bf16 %v5566_v14, %v5562_v18  ;;  %v12730_v51 = vpack.c.bf16 %v5568_v19, %v5564_v12  ;;  %v5383_v53 = vpop.f32.mrb[148].mxu1  ;;  %v5496_v16 = vpop.f32.mrb[132].mxu0  ;;  %7206 = vmatpush1.bf16.msra.mxu1 %v11186_v8  ;;  %7432 = vmatpush1.bf16.msra.mxu0 %v11189_v9  ;;  %v11207_v18 = vld [vmem:[#allocation13 + $0x4d8] ss:$28 sps:$4 sm:$0xff]  }
 0xb5f   :  { %v5384_v23 = vadd.f32 %v5383_v53, %v12665_v5  ;;  %v5497_v25 = vadd.f32 %v5496_v16, %v12668_v7  ;;  %v5385_v39 = vpop.f32.mrb[149].mxu1  ;;  %v5498_v42 = vpop.f32.mrb[133].mxu0  ;;  %7207 = vmatprep.subr.bf16.mxu1 %v11194_v10  ;;  %7433 = vmatprep.subr.bf16.mxu0 %v11197_v13  ;;  %v11204_v13 = vld [vmem:[#allocation13 + $0x4d0] ss:$28 sps:$4 sm:$0xff]  }
 0xb60   :  { %v5386_v21 = vadd.f32 %v5385_v39, %v12671_v46  ;;  %v5499_v29 = vadd.f32 %v5498_v42, %v12674_v55  ;;  %v5387_v30 = vpop.f32.mrb[150].mxu1  ;;  %v5500_v31 = vpop.f32.mrb[134].mxu0  ;;  %7138 = vmatprep.mubr.bf16.mxu1 %v12728_v52  ;;  %7364 = vmatprep.mubr.bf16.mxu0 %v12728_v52  ;;  %v11212_v16 = vld [vmem:[#allocation13 + $0x50c] ss:$28 sps:$4 sm:$0xff]  }
 0xb61   :  { %v5388_v33 = vadd.f32 %v5387_v30, %v12665_v5  ;;  %v5501_v34 = vadd.f32 %v5500_v31, %v12668_v7  ;;  %v5389_v35 = vpop.f32.mrb[151].mxu1  ;;  %v5502_v36 = vpop.f32.mrb[135].mxu0  ;;  %7139 = vmatmul.mubr.bf16.gmra.mrb[176].mxu1 %v12724_v22  ;;  %7365 = vmatmul.mubr.bf16.gmra.mrb[160].mxu0 %v12724_v22  ;;  %v5569_v56 = vmax.f32 %v5384_v23, 0.0  ;;  %v5571_v57 = vmax.f32 %v5497_v25, 0.0  ;;  %v11210_v31 = vld [vmem:[#allocation13 + $0x508] ss:$28 sps:$4 sm:$0xff]  }
 0xb62   :  { %v5390_v37 = vadd.f32 %v5389_v35, %v12671_v46  ;;  %v5503_v38 = vadd.f32 %v5502_v36, %v12674_v55  ;;  %7208 = vmatpush1.bf16.msra.mxu1 %v11192_v1  ;;  %7434 = vmatpush1.bf16.msra.mxu0 %v11195_v4  ;;  %v5570_v2 = vmax.f32 %v5386_v21, 0.0  ;;  %v5572_v3 = vmax.f32 %v5499_v29, 0.0  ;;  %v11215_v1 = vld [vmem:[#allocation13 + $0x514] ss:$28 sps:$4 sm:$0xff]  }
 0xb63   :  { %v5573_v58 = vmax.f32 %v5388_v33, 0.0  ;;  %v5575_v63 = vmax.f32 %v5501_v34, 0.0  ;;  %7209 = vmatprep.subr.bf16.mxu1 %v11200_v17  ;;  %7435 = vmatprep.subr.bf16.mxu0 %v11203_v20  ;;  %v11213_v33 = vld [vmem:[#allocation13 + $0x510] ss:$28 sps:$4 sm:$0xff]   ;;  %v11218_v34 = vld [vmem:[#allocation13 + $0x544] ss:$28 sps:$4 sm:$0xff]  }
 0xb64   :  { %v5574_v6 = vmax.f32 %v5390_v37, 0.0  ;;  %v5576_v8 = vmax.f32 %v5503_v38, 0.0 }
 0xb65   :  { %v12744_v9 = vpack.c.bf16 %v5573_v58, %v5569_v56  ;;  %v12746_v10 = vpack.c.bf16 %v5575_v63, %v5571_v57 }
 0xb66   :  { %v12748_v11 = vpack.c.bf16 %v5574_v6, %v5570_v2  ;;  %v12750_v49 = vpack.c.bf16 %v5576_v8, %v5572_v3  ;;  %v5393_v32 = vpop.f32.mrb[152].mxu1  ;;  %v5506_v50 = vpop.f32.mrb[136].mxu0  ;;  %7210 = vmatpush1.bf16.msra.mxu1 %v11198_v40  ;;  %7436 = vmatpush1.bf16.msra.mxu0 %v11201_v41  ;;  %v11221_v40 = vld [vmem:[#allocation13 + $0x54c] ss:$28 sps:$4 sm:$0xff]   ;;  %v11216_v8 = vld [vmem:[#allocation13 + $0x540] ss:$28 sps:$4 sm:$0xff]  }
 0xb67   :  { %v5394_v12 = vadd.f32 %v5393_v32, %v12665_v5  ;;  %v5507_v14 = vadd.f32 %v5506_v50, %v12668_v7  ;;  %v5395_v19 = vpop.f32.mrb[153].mxu1  ;;  %v5508_v53 = vpop.f32.mrb[137].mxu0  ;;  %7211 = vmatprep.subr.bf16.mxu1 %v11206_v54  ;;  %7437 = vmatprep.subr.bf16.mxu0 %v11209_v0  ;;  %v11219_v32 = vld [vmem:[#allocation13 + $0x548] ss:$28 sps:$4 sm:$0xff]  }
 0xb68   :  { %v5396_v4 = vadd.f32 %v5395_v19, %v12671_v46  ;;  %v5509_v23 = vadd.f32 %v5508_v53, %v12674_v55  ;;  %v5397_v25 = vpop.f32.mrb[154].mxu1  ;;  %v5510_v39 = vpop.f32.mrb[138].mxu0  ;;  %7148 = vmatprep.mubr.bf16.mxu1 %v12748_v11  ;;  %7374 = vmatprep.mubr.bf16.mxu0 %v12748_v11  ;;  %v11227_v19 = vld [vmem:[#allocation13 + $0x584] ss:$28 sps:$4 sm:$0xff]  }
 0xb69   :  { %v5398_v42 = vadd.f32 %v5397_v25, %v12665_v5  ;;  %v5511_v17 = vadd.f32 %v5510_v39, %v12668_v7  ;;  %v5399_v20 = vpop.f32.mrb[155].mxu1  ;;  %v5512_v21 = vpop.f32.mrb[139].mxu0  ;;  %7149 = vmatmul.mubr.bf16.gmra.mrb[180].mxu1 %v12744_v9  ;;  %7375 = vmatmul.mubr.bf16.gmra.mrb[164].mxu0 %v12744_v9  ;;  %v5577_v35 = vmax.f32 %v5394_v12, 0.0  ;;  %v5579_v36 = vmax.f32 %v5507_v14, 0.0  ;;  %v11224_v14 = vld [vmem:[#allocation13 + $0x57c] ss:$28 sps:$4 sm:$0xff]  }
 0xb6a   :  { %v5400_v29 = vadd.f32 %v5399_v20, %v12671_v46  ;;  %v5513_v30 = vadd.f32 %v5512_v21, %v12674_v55  ;;  %7212 = vmatpush1.bf16.msra.mxu1 %v11204_v13  ;;  %7438 = vmatpush1.bf16.msra.mxu0 %v11207_v18  ;;  %v5578_v41 = vmax.f32 %v5396_v4, 0.0  ;;  %v5580_v54 = vmax.f32 %v5509_v23, 0.0  ;;  %v11222_v21 = vld [vmem:[#allocation13 + $0x578] ss:$28 sps:$4 sm:$0xff]  }
 0xb6b   :  { %v5581_v37 = vmax.f32 %v5398_v42, 0.0  ;;  %v5583_v38 = vmax.f32 %v5511_v17, 0.0  ;;  %7213 = vmatprep.subr.bf16.mxu1 %v11212_v16  ;;  %7439 = vmatprep.subr.bf16.mxu0 %v11215_v1 }
 0xb6c   :  { %v5582_v56 = vmax.f32 %v5400_v29, 0.0  ;;  %v5584_v57 = vmax.f32 %v5513_v30, 0.0  ;;  %v11225_v29 = vld [vmem:[#allocation13 + $0x580] ss:$28 sps:$4 sm:$0xff]   ;;  %v11230_v30 = vld [vmem:[#allocation13 + $0x5b4] ss:$28 sps:$4 sm:$0xff]  }
 0xb6d   :  { %v12764_v58 = vpack.c.bf16 %v5581_v37, %v5577_v35  ;;  %v12766_v63 = vpack.c.bf16 %v5583_v38, %v5579_v36  ;;  %v11233_v36 = vld [vmem:[#allocation13 + $0x5bc] ss:$28 sps:$4 sm:$0xff]  }
 0xb6e   :  { %v12768_v0 = vpack.c.bf16 %v5582_v56, %v5578_v41  ;;  %v12770_v2 = vpack.c.bf16 %v5584_v57, %v5580_v54  ;;  %v5403_v3 = vpop.f32.mrb[156].mxu1  ;;  %v5516_v6 = vpop.f32.mrb[140].mxu0  ;;  %7214 = vmatpush1.bf16.msra.mxu1 %v11210_v31  ;;  %7440 = vmatpush1.bf16.msra.mxu0 %v11213_v33 }
 0xb6f   :  { %v5404_v50 = vadd.f32 %v5403_v3, %v12665_v5  ;;  %v5517_v13 = vadd.f32 %v5516_v6, %v12668_v7  ;;  %v5405_v18 = vpop.f32.mrb[157].mxu1  ;;  %v5518_v12 = vpop.f32.mrb[141].mxu0  ;;  %7215 = vmatprep.subr.bf16.mxu1 %v11218_v34  ;;  %7441 = vmatprep.subr.bf16.mxu0 %v11221_v40 }
 0xb70   :  { %v5406_v53 = vadd.f32 %v5405_v18, %v12671_v46  ;;  %v5519_v16 = vadd.f32 %v5518_v12, %v12674_v55  ;;  %v5407_v1 = vpop.f32.mrb[158].mxu1  ;;  %v5520_v4 = vpop.f32.mrb[142].mxu0  ;;  %7158 = vmatprep.mubr.bf16.mxu1 %v12768_v0  ;;  %7384 = vmatprep.mubr.bf16.mxu0 %v12768_v0 }
 0xb71   :  { %v5408_v23 = vadd.f32 %v5407_v1, %v12665_v5  ;;  %v5521_v25 = vadd.f32 %v5520_v4, %v12668_v7  ;;  %v5409_v39 = vpop.f32.mrb[159].mxu1  ;;  %v5522_v42 = vpop.f32.mrb[143].mxu0  ;;  %7159 = vmatmul.mubr.bf16.gmra.mrb[184].mxu1 %v12764_v58  ;;  %7385 = vmatmul.mubr.bf16.gmra.mrb[168].mxu0 %v12764_v58  ;;  %v5585_v31 = vmax.f32 %v5404_v50, 0.0  ;;  %v5587_v33 = vmax.f32 %v5517_v13, 0.0  ;;  %v11231_v50 = vld [vmem:[#allocation13 + $0x5b8] ss:$28 sps:$4 sm:$0xff]  }
 0xb72   :  { %v5410_v17 = vadd.f32 %v5409_v39, %v12671_v46  ;;  %v5523_v20 = vadd.f32 %v5522_v42, %v12674_v55  ;;  %7216 = vmatpush1.bf16.msra.mxu1 %v11216_v8  ;;  %7442 = vmatpush1.bf16.msra.mxu0 %v11219_v32  ;;  %v5586_v37 = vmax.f32 %v5406_v53, 0.0  ;;  %v5588_v38 = vmax.f32 %v5519_v16, 0.0  ;;  %v11228_v32 = vld [vmem:[#allocation13 + $0x5b0] ss:$28 sps:$4 sm:$0xff]  }
 0xb73   :  { %v5589_v34 = vmax.f32 %v5408_v23, 0.0  ;;  %v5591_v35 = vmax.f32 %v5521_v25, 0.0  ;;  %7217 = vmatprep.subr.bf16.mxu1 %v11224_v14  ;;  %7443 = vmatprep.subr.bf16.mxu0 %v11227_v19  ;;  %v11236_v19 = vld [vmem:[#allocation13 + $0x5ec] ss:$28 sps:$4 sm:$0xff]   ;;  %v11239_v53 = vld [vmem:[#allocation13 + $0x5f4] ss:$28 sps:$4 sm:$0xff]  }
 0xb74   :  { %v5590_v40 = vmax.f32 %v5410_v17, 0.0  ;;  %v5592_v41 = vmax.f32 %v5523_v20, 0.0 }
 0xb75   :  { %v12784_v54 = vpack.c.bf16 %v5589_v34, %v5585_v31  ;;  %v12786_v56 = vpack.c.bf16 %v5591_v35, %v5587_v33  ;;  %v11242_v31 = vld [vmem:[#allocation13 + $0x624] ss:$28 sps:$4 sm:$0xff]  }
 0xb76   :  { %v12788_v57 = vpack.c.bf16 %v5590_v40, %v5586_v37  ;;  %v12790_v3 = vpack.c.bf16 %v5592_v41, %v5588_v38  ;;  %v5413_v6 = vpop.f32.mrb[160].mxu1  ;;  %v5526_v8 = vpop.f32.mrb[144].mxu0  ;;  %7218 = vmatpush1.bf16.msra.mxu1 %v11222_v21  ;;  %7444 = vmatpush1.bf16.msra.mxu0 %v11225_v29  ;;  %v11234_v29 = vld [vmem:[#allocation13 + $0x5e8] ss:$28 sps:$4 sm:$0xff]  }
 0xb77   :  { %v5414_v13 = vadd.f32 %v5413_v6, %v12665_v5  ;;  %v5527_v18 = vadd.f32 %v5526_v8, %v12668_v7  ;;  %v5415_v12 = vpop.f32.mrb[161].mxu1  ;;  %v5528_v14 = vpop.f32.mrb[145].mxu0  ;;  %7219 = vmatprep.subr.bf16.mxu1 %v11230_v30  ;;  %7445 = vmatprep.subr.bf16.mxu0 %v11233_v36  ;;  %v11237_v30 = vld [vmem:[#allocation13 + $0x5f0] ss:$28 sps:$4 sm:$0xff]  }
 0xb78   :  { %v5416_v16 = vadd.f32 %v5415_v12, %v12671_v46  ;;  %v5529_v1 = vadd.f32 %v5528_v14, %v12674_v55  ;;  %v5417_v4 = vpop.f32.mrb[162].mxu1  ;;  %v5530_v23 = vpop.f32.mrb[146].mxu0  ;;  %7168 = vmatprep.mubr.bf16.mxu1 %v12788_v57  ;;  %7394 = vmatprep.mubr.bf16.mxu0 %v12788_v57  ;;  %v11245_v37 = vld [vmem:[#allocation13 + $0x62c] ss:$28 sps:$4 sm:$0xff]  }
 0xb79   :  { %v5418_v25 = vadd.f32 %v5417_v4, %v12665_v5  ;;  %v5531_v39 = vadd.f32 %v5530_v23, %v12668_v7  ;;  %v5419_v42 = vpop.f32.mrb[163].mxu1  ;;  %v5532_v17 = vpop.f32.mrb[147].mxu0  ;;  %7169 = vmatmul.mubr.bf16.gmra.mrb[188].mxu1 %v12784_v54  ;;  %7395 = vmatmul.mubr.bf16.gmra.mrb[172].mxu0 %v12784_v54  ;;  %v5593_v33 = vmax.f32 %v5414_v13, 0.0  ;;  %v5595_v34 = vmax.f32 %v5527_v18, 0.0  ;;  %v11240_v18 = vld [vmem:[#allocation13 + $0x620] ss:$28 sps:$4 sm:$0xff]  }
 0xb7a   :  { %v5420_v20 = vadd.f32 %v5419_v42, %v12671_v46  ;;  %v5533_v21 = vadd.f32 %v5532_v17, %v12674_v55  ;;  %7220 = vmatpush1.bf16.msra.mxu1 %v11228_v32  ;;  %7446 = vmatpush1.bf16.msra.mxu0 %v11231_v50  ;;  %v5594_v38 = vmax.f32 %v5416_v16, 0.0  ;;  %v5596_v40 = vmax.f32 %v5529_v1, 0.0  ;;  %v11248_v23 = vld [vmem:[#allocation13 + $0x65c] ss:$28 sps:$4 sm:$0xff]  }
 0xb7b   :  { %v5597_v35 = vmax.f32 %v5418_v25, 0.0  ;;  %v5599_v36 = vmax.f32 %v5531_v39, 0.0  ;;  %7221 = vmatprep.subr.bf16.mxu1 %v11236_v19  ;;  %7447 = vmatprep.subr.bf16.mxu0 %v11239_v53  ;;  %v11243_v19 = vld [vmem:[#allocation13 + $0x628] ss:$28 sps:$4 sm:$0xff]  }
 0xb7c   :  { %v5598_v41 = vmax.f32 %v5420_v20, 0.0  ;;  %v5600_v6 = vmax.f32 %v5533_v21, 0.0  ;;  %v11251_v25 = vld [vmem:[#allocation13 + $0x664] ss:$28 sps:$4 sm:$0xff]  }
 0xb7d   :  { %v12804_v8 = vpack.c.bf16 %v5597_v35, %v5593_v33  ;;  %v12806_v12 = vpack.c.bf16 %v5599_v36, %v5595_v34  ;;  %v11246_v35 = vld [vmem:[#allocation13 + $0x658] ss:$28 sps:$4 sm:$0xff]   ;;  %v11249_v36 = vld [vmem:[#allocation13 + $0x660] ss:$28 sps:$4 sm:$0xff]  }
 0xb7e   :  { %v12808_v32 = vpack.c.bf16 %v5598_v41, %v5594_v38  ;;  %v12810_v50 = vpack.c.bf16 %v5600_v6, %v5596_v40  ;;  %v5423_v14 = vpop.f32.mrb[164].mxu1  ;;  %v5536_v13 = vpop.f32.mrb[148].mxu0  ;;  %7222 = vmatpush1.bf16.msra.mxu1 %v11234_v29  ;;  %7448 = vmatpush1.bf16.msra.mxu0 %v11237_v30 }
 0xb7f   :  { %v5424_v53 = vadd.f32 %v5423_v14, %v12665_v5  ;;  %v5537_v16 = vadd.f32 %v5536_v13, %v12668_v7  ;;  %v5425_v1 = vpop.f32.mrb[165].mxu1  ;;  %v5538_v4 = vpop.f32.mrb[149].mxu0  ;;  %7223 = vmatprep.subr.bf16.mxu1 %v11242_v31  ;;  %7449 = vmatprep.subr.bf16.mxu0 %v11245_v37  ;;  %v11254_v37 = vld [vmem:[#allocation13 + $0x694] ss:$28 sps:$4 sm:$0xff]  }
 0xb80   :  { %v5426_v39 = vadd.f32 %v5425_v1, %v12671_v46  ;;  %v5539_v42 = vadd.f32 %v5538_v4, %v12674_v55  ;;  %v5427_v17 = vpop.f32.mrb[166].mxu1  ;;  %v5540_v20 = vpop.f32.mrb[150].mxu0  ;;  %7178 = vmatprep.mubr.bf16.mxu1 %v12808_v32  ;;  %7404 = vmatprep.mubr.bf16.mxu0 %v12808_v32 }
 0xb81   :  { %v5428_v21 = vadd.f32 %v5427_v17, %v12665_v5  ;;  %v5541_v29 = vadd.f32 %v5540_v20, %v12668_v7  ;;  %v5429_v30 = vpop.f32.mrb[167].mxu1  ;;  %v5542_v33 = vpop.f32.mrb[151].mxu0  ;;  %7179 = vmatmul.mubr.bf16.gmra.mrb[192].mxu1 %v12804_v8  ;;  %7405 = vmatmul.mubr.bf16.gmra.mrb[176].mxu0 %v12804_v8  ;;  %v5601_v38 = vmax.f32 %v5424_v53, 0.0  ;;  %v5603_v40 = vmax.f32 %v5537_v16, 0.0  ;;  %v11257_v7 = vld [vmem:[#allocation13 + $0x69c] ss:$28 sps:$4 sm:$0xff]  }
 0xb82   :  { %v5430_v31 = vadd.f32 %v5429_v30, %v12671_v46  ;;  %v5543_v34 = vadd.f32 %v5542_v33, %v12674_v55  ;;  %7224 = vmatpush1.bf16.msra.mxu1 %v11240_v18  ;;  %7450 = vmatpush1.bf16.msra.mxu0 %v11243_v19  ;;  %v5602_v6 = vmax.f32 %v5426_v39, 0.0  ;;  %v5604_v14 = vmax.f32 %v5539_v42, 0.0  ;;  %v11252_v19 = vld [vmem:[#allocation13 + $0x690] ss:$28 sps:$4 sm:$0xff]   ;;  %v11255_v53 = vld [vmem:[#allocation13 + $0x698] ss:$28 sps:$4 sm:$0xff]  }
 0xb83   :  { %v5605_v5 = vmax.f32 %v5428_v21, 0.0  ;;  %v5607_v41 = vmax.f32 %v5541_v29, 0.0  ;;  %7225 = vmatprep.subr.bf16.mxu1 %v11248_v23  ;;  %7451 = vmatprep.subr.bf16.mxu0 %v11251_v25  ;;  %v11260_v16 = vld [vmem:[#allocation13 + $0x6cc] ss:$28 sps:$4 sm:$0xff]   ;;  %v11263_v23 = vld [vmem:[#allocation13 + $0x6d4] ss:$28 sps:$4 sm:$0xff]  }
 0xb84   :  { %v5606_v13 = vmax.f32 %v5430_v31, 0.0  ;;  %v5608_v1 = vmax.f32 %v5543_v34, 0.0  ;;  %v11258_v25 = vld [vmem:[#allocation13 + $0x6c8] ss:$28 sps:$4 sm:$0xff]   ;;  %v11261_v39 = vld [vmem:[#allocation13 + $0x6d0] ss:$28 sps:$4 sm:$0xff]  }
 0xb85   :  { %v12824_v4 = vpack.c.bf16 %v5605_v5, %v5601_v38  ;;  %v12826_v46 = vpack.c.bf16 %v5607_v41, %v5603_v40  ;;  %v11266_v42 = vld [vmem:[#allocation13 + $0x14] ss:$28 sps:$4 sm:$0xff]   ;;  %v11271_v29 = vld [vmem:[#allocation13 + $0x4c] ss:$28 sps:$4 sm:$0xff]   ;;  %v11274_v31 = vld [vmem:[#allocation13 + $0x84] ss:$28 sps:$4 sm:$0xff]  }
 0xb86   :  { %v12828_v55 = vpack.c.bf16 %v5606_v13, %v5602_v6  ;;  %v12830_v18 = vpack.c.bf16 %v5608_v1, %v5604_v14  ;;  %7226 = vmatpush1.bf16.msra.mxu1 %v11246_v35  ;;  %7452 = vmatpush1.bf16.msra.mxu0 %v11249_v36  ;;  %v11267_v17 = vld [vmem:[#allocation13 + $0x1d8] ss:$28 sps:$4 sm:$0xff]   ;;  %v11264_v20 = vld [vmem:[#allocation13 + $0x10] ss:$28 sps:$4 sm:$0xff]   ;;  %v11269_v33 = vld [vmem:[#allocation13 + $0x48] ss:$28 sps:$4 sm:$0xff]  }
 0xb87   :  { %7227 = vmatprep.subr.bf16.mxu1 %v11254_v37  ;;  %7453 = vmatprep.subr.bf16.mxu0 %v11257_v7  ;;  %v11268_v21 = vld [vmem:[#allocation13 + $0x18] ss:$28 sps:$4 sm:$0xff]   ;;  %v11275_v30 = vld [vmem:[#allocation13 + $0x210] ss:$28 sps:$4 sm:$0xff]   ;;  %v11283_v35 = vld [vmem:[#allocation13 + $0x248] ss:$28 sps:$4 sm:$0xff]  }
 0xb88   :  { %7188 = vmatprep.mubr.bf16.mxu1 %v12828_v55  ;;  %7414 = vmatprep.mubr.bf16.mxu0 %v12828_v55  ;;  %v11276_v34 = vld [vmem:[#allocation13 + $0x50] ss:$28 sps:$4 sm:$0xff]   ;;  %v11272_v36 = vld [vmem:[#allocation13 + $0x80] ss:$28 sps:$4 sm:$0xff]   ;;  %v11284_v38 = vld [vmem:[#allocation13 + $0x88] ss:$28 sps:$4 sm:$0xff]  }
 0xb89   :  { %7189 = vmatmul.mubr.bf16.gmra.mrb[196].mxu1 %v12824_v4  ;;  %7415 = vmatmul.mubr.bf16.gmra.mrb[180].mxu0 %v12824_v4  ;;  %v11279_v37 = vld [vmem:[#allocation13 + $0xbc] ss:$28 sps:$4 sm:$0xff]   ;;  %v11282_v41 = vld [vmem:[#allocation13 + $0xf4] ss:$28 sps:$4 sm:$0xff]   ;;  %v11287_v13 = vld [vmem:[#allocation13 + $0x12c] ss:$28 sps:$4 sm:$0xff]  }
 0xb8a   :  { %7228 = vmatpush1.bf16.msra.mxu1 %v11252_v19  ;;  %7231 = vmatprep.mubr.bf16.mxu1 %v12690_v62  ;;  %v11291_v40 = vld [vmem:[#allocation13 + $0x280] ss:$28 sps:$4 sm:$0xff]   ;;  %v11277_v5 = vld [vmem:[#allocation13 + $0xb8] ss:$28 sps:$4 sm:$0xff]   ;;  %v11280_v14 = vld [vmem:[#allocation13 + $0xf0] ss:$28 sps:$4 sm:$0xff]  }
 0xb8b   :  { %7454 = vmatpush1.bf16.msra.mxu0 %v11255_v53  ;;  %7457 = vmatprep.mubr.bf16.mxu0 %v12690_v62  ;;  %v11292_v7 = vld [vmem:[#allocation13 + $0xc0] ss:$28 sps:$4 sm:$0xff]   ;;  %v11299_v6 = vld [vmem:[#allocation13 + $0x2b8] ss:$28 sps:$4 sm:$0xff]   ;;  %v11307_v19 = vld [vmem:[#allocation13 + $0x2f0] ss:$28 sps:$4 sm:$0xff]  }
 0xb8c   :  { %7229 = vmatprep.subr.bf16.mxu1 %v11260_v16  ;;  %7455 = vmatprep.subr.bf16.mxu0 %v11263_v23  ;;  %v11300_v1 = vld [vmem:[#allocation13 + $0xf8] ss:$28 sps:$4 sm:$0xff]   ;;  %v11285_v53 = vld [vmem:[#allocation13 + $0x128] ss:$28 sps:$4 sm:$0xff]   ;;  %v11308_v23 = vld [vmem:[#allocation13 + $0x130] ss:$28 sps:$4 sm:$0xff]  }
 0xb8d   :  { %v11290_v16 = vld [vmem:[#allocation13 + $0x164] ss:$28 sps:$4 sm:$0xff]  }
 0xb8e   :  { %7230 = vmatpush1.bf16.msra.mxu1 %v11258_v25  ;;  %v11315_v25 = vld [vmem:[#allocation13 + $0x328] ss:$28 sps:$4 sm:$0xff]  }
 0xb8f   :  { %7456 = vmatpush1.bf16.msra.mxu0 %v11261_v39  ;;  %7538 = vmatprep.subr.bf16.mxu1 %v11266_v42  ;;  %v11288_v39 = vld [vmem:[#allocation13 + $0x160] ss:$28 sps:$4 sm:$0xff]  }
 0xb90   :  { %9682 = vmatprep.subr.bf16.mxu0 %v11267_v17  ;;  %v11295_v42 = vld [vmem:[#allocation13 + $0x19c] ss:$28 sps:$4 sm:$0xff]   ;;  %v11316_v17 = vld [vmem:[#allocation13 + $0x168] ss:$28 sps:$4 sm:$0xff]  }
 0xb91   :  { %7232 = vmatmul.mubr.bf16.vlgmr.msra.gmra.mrb[168].mxu1 %v12686_v61 }
 0xb92   :  { %7458 = vmatmul.mubr.bf16.vlgmr.msra.gmra.mrb[152].mxu0 %v12686_v61  ;;  %7241 = vmatprep.mubr.bf16.mxu1 %v12710_v28 }
 0xb93   :  { %7467 = vmatprep.mubr.bf16.mxu0 %v12710_v28  ;;  %7539 = vmatpush1.bf16.msra.mxu1 %v11264_v20  ;;  %v11323_v20 = vld [vmem:[#allocation13 + $0x360] ss:$28 sps:$4 sm:$0xff]  }
 0xb94   :  { %9683 = vmatpush3.bf16.msra.mxu0 %v11268_v21  ;;  %7540 = vmatprep.subr.bf16.mxu1 %v11271_v29  ;;  %v11293_v21 = vld [vmem:[#allocation13 + $0x198] ss:$28 sps:$4 sm:$0xff]  }
 0xb95   :  { %9684 = vmatprep.subr.bf16.mxu0 %v11275_v30  ;;  %v11298_v29 = vld [vmem:[#allocation13 + $0x1d4] ss:$28 sps:$4 sm:$0xff]   ;;  %v11324_v30 = vld [vmem:[#allocation13 + $0x1a0] ss:$28 sps:$4 sm:$0xff]  }
 0xb97   :  { %7541 = vmatpush1.bf16.msra.mxu1 %v11269_v33  ;;  %v11331_v33 = vld [vmem:[#allocation13 + $0x558] ss:$28 sps:$4 sm:$0xff]  }
 0xb98   :  { %7542 = vmatprep.subr.bf16.mxu1 %v11274_v31  ;;  %9685 = vmatpush3.bf16.msra.mxu0 %v11276_v34  ;;  %v11296_v31 = vld [vmem:[#allocation13 + $0x1d0] ss:$28 sps:$4 sm:$0xff]  }
 0xb99   :  { %7242 = vmatmul.mubr.bf16.gmra.mrb[172].mxu1 %v12706_v26  ;;  %9686 = vmatprep.subr.bf16.mxu0 %v11283_v35  ;;  %v11303_v34 = vld [vmem:[#allocation13 + $0x20c] ss:$28 sps:$4 sm:$0xff]  }
 0xb9a   :  { %7468 = vmatmul.mubr.bf16.gmra.mrb[156].mxu0 %v12706_v26  ;;  %7251 = vmatprep.mubr.bf16.mxu1 %v12730_v51  ;;  %v11301_v35 = vld [vmem:[#allocation13 + $0x208] ss:$28 sps:$4 sm:$0xff]  }
 0xb9b   :  { %7477 = vmatprep.mubr.bf16.mxu0 %v12730_v51  ;;  %7543 = vmatpush1.bf16.msra.mxu1 %v11272_v36  ;;  %v11306_v36 = vld [vmem:[#allocation13 + $0x244] ss:$28 sps:$4 sm:$0xff]  }
 0xb9c   :  { %7544 = vmatprep.subr.bf16.mxu1 %v11279_v37  ;;  %9687 = vmatpush3.bf16.msra.mxu0 %v11284_v38  ;;  %v11304_v37 = vld [vmem:[#allocation13 + $0x240] ss:$28 sps:$4 sm:$0xff]  }
 0xb9d   :  { %9688 = vmatprep.subr.bf16.mxu0 %v11291_v40  ;;  %v11311_v38 = vld [vmem:[#allocation13 + $0x27c] ss:$28 sps:$4 sm:$0xff]  }
 0xb9e   :  { %v11309_v40 = vld [vmem:[#allocation13 + $0x278] ss:$28 sps:$4 sm:$0xff]  }
 0xb9f   :  { %7545 = vmatpush1.bf16.msra.mxu1 %v11277_v5  ;;  %v11314_v5 = vld [vmem:[#allocation13 + $0x2b4] ss:$28 sps:$4 sm:$0xff]  }
 0xba0   :  { %7546 = vmatprep.subr.bf16.mxu1 %v11282_v41  ;;  %9689 = vmatpush3.bf16.msra.mxu0 %v11292_v7  ;;  %v11312_v41 = vld [vmem:[#allocation13 + $0x2b0] ss:$28 sps:$4 sm:$0xff]  }
 0xba1   :  { %7252 = vmatmul.mubr.bf16.gmra.mrb[176].mxu1 %v12726_v15  ;;  %9690 = vmatprep.subr.bf16.mxu0 %v11299_v6  ;;  %v11319_v7 = vld [vmem:[#allocation13 + $0x2ec] ss:$28 sps:$4 sm:$0xff]  }
 0xba2   :  { %7478 = vmatmul.mubr.bf16.gmra.mrb[160].mxu0 %v12726_v15  ;;  %7261 = vmatprep.mubr.bf16.mxu1 %v12750_v49  ;;  %v11317_v6 = vld [vmem:[#allocation13 + $0x2e8] ss:$28 sps:$4 sm:$0xff]  }
 0xba3   :  { %7487 = vmatprep.mubr.bf16.mxu0 %v12750_v49  ;;  %7547 = vmatpush1.bf16.msra.mxu1 %v11280_v14  ;;  %v11322_v14 = vld [vmem:[#allocation13 + $0x324] ss:$28 sps:$4 sm:$0xff]  }
 0xba4   :  { %7548 = vmatprep.subr.bf16.mxu1 %v11287_v13  ;;  %9691 = vmatpush3.bf16.msra.mxu0 %v11300_v1  ;;  %v11320_v13 = vld [vmem:[#allocation13 + $0x320] ss:$28 sps:$4 sm:$0xff]  }
 0xba5   :  { %9692 = vmatprep.subr.bf16.mxu0 %v11307_v19  ;;  %v11327_v1 = vld [vmem:[#allocation13 + $0x35c] ss:$28 sps:$4 sm:$0xff]  }
 0xba6   :  { %v11325_v19 = vld [vmem:[#allocation13 + $0x358] ss:$28 sps:$4 sm:$0xff]  }
 0xba7   :  { %7549 = vmatpush1.bf16.msra.mxu1 %v11285_v53  ;;  %v11330_v53 = vld [vmem:[#allocation13 + $0x394] ss:$28 sps:$4 sm:$0xff]  }
 0xba8   :  { %7550 = vmatprep.subr.bf16.mxu1 %v11290_v16  ;;  %9693 = vmatpush3.bf16.msra.mxu0 %v11308_v23  ;;  %v11328_v16 = vld [vmem:[#allocation13 + $0x390] ss:$28 sps:$4 sm:$0xff]   ;;  %v11332_v23 = vld [vmem:[#allocation13 + $0x398] ss:$28 sps:$4 sm:$0xff]  }
 0xba9   :  { %7262 = vmatmul.mubr.bf16.gmra.mrb[180].mxu1 %v12746_v10  ;;  %9694 = vmatprep.subr.bf16.mxu0 %v11315_v25  ;;  %v11335_v25 = vld [vmem:[#allocation13 + $0x3cc] ss:$28 sps:$4 sm:$0xff]  }
 0xbaa   :  { %7488 = vmatmul.mubr.bf16.gmra.mrb[164].mxu0 %v12746_v10  ;;  %7271 = vmatprep.mubr.bf16.mxu1 %v12770_v2 }
 0xbab   :  { %7497 = vmatprep.mubr.bf16.mxu0 %v12770_v2  ;;  %7551 = vmatpush1.bf16.msra.mxu1 %v11288_v39  ;;  %v11339_v39 = vld [vmem:[#allocation13 + $0x590] ss:$28 sps:$4 sm:$0xff]  }
 0xbac   :  { %7552 = vmatprep.subr.bf16.mxu1 %v11295_v42  ;;  %9695 = vmatpush3.bf16.msra.mxu0 %v11316_v17  ;;  %v11333_v42 = vld [vmem:[#allocation13 + $0x3c8] ss:$28 sps:$4 sm:$0xff]   ;;  %v11340_v17 = vld [vmem:[#allocation13 + $0x3d0] ss:$28 sps:$4 sm:$0xff]  }
 0xbad   :  { %9696 = vmatprep.subr.bf16.mxu0 %v11323_v20  ;;  %v11347_v20 = vld [vmem:[#allocation13 + $0x5c8] ss:$28 sps:$4 sm:$0xff]  }
 0xbaf   :  { %7553 = vmatpush1.bf16.msra.mxu1 %v11293_v21  ;;  %v11336_v21 = vld [vmem:[#allocation13 + $0x400] ss:$28 sps:$4 sm:$0xff]  }
 0xbb0   :  { %7554 = vmatprep.subr.bf16.mxu1 %v11298_v29  ;;  %9697 = vmatpush3.bf16.msra.mxu0 %v11324_v30  ;;  %v11343_v29 = vld [vmem:[#allocation13 + $0x43c] ss:$28 sps:$4 sm:$0xff]   ;;  %v11348_v30 = vld [vmem:[#allocation13 + $0x408] ss:$28 sps:$4 sm:$0xff]  }
 0xbb1   :  { %7272 = vmatmul.mubr.bf16.gmra.mrb[184].mxu1 %v12766_v63  ;;  %9746 = vmatprep.subr.bf16.mxu0 %v11331_v33  ;;  %v11346_v33 = vld [vmem:[#allocation13 + $0x474] ss:$28 sps:$4 sm:$0xff]  }
 0xbb2   :  { %7498 = vmatmul.mubr.bf16.gmra.mrb[168].mxu0 %v12766_v63  ;;  %7281 = vmatprep.mubr.bf16.mxu1 %v12790_v3 }
 0xbb3   :  { %7507 = vmatprep.mubr.bf16.mxu0 %v12790_v3  ;;  %7555 = vmatpush1.bf16.msra.mxu1 %v11296_v31  ;;  %v11356_v31 = vld [vmem:[#allocation13 + $0x440] ss:$28 sps:$4 sm:$0xff]  }
 0xbb4   :  { %7556 = vmatprep.subr.bf16.mxu1 %v11303_v34  ;;  %v11344_v34 = vld [vmem:[#allocation13 + $0x470] ss:$28 sps:$4 sm:$0xff]  }
 0xbb7   :  { %7557 = vmatpush1.bf16.msra.mxu1 %v11301_v35  ;;  %v11351_v35 = vld [vmem:[#allocation13 + $0x4ac] ss:$28 sps:$4 sm:$0xff]  }
 0xbb8   :  { %7558 = vmatprep.subr.bf16.mxu1 %v11306_v36  ;;  %v11363_v36 = vld [vmem:[#allocation13 + $0x638] ss:$28 sps:$4 sm:$0xff]  }
 0xbb9   :  { %7282 = vmatmul.mubr.bf16.gmra.mrb[188].mxu1 %v12786_v56 }
 0xbba   :  { %7508 = vmatmul.mubr.bf16.gmra.mrb[172].mxu0 %v12786_v56  ;;  %7291 = vmatprep.mubr.bf16.mxu1 %v12810_v50 }
 0xbbb   :  { %7517 = vmatprep.mubr.bf16.mxu0 %v12810_v50  ;;  %7559 = vmatpush1.bf16.msra.mxu1 %v11304_v37  ;;  %v11371_v37 = vld [vmem:[#allocation13 + $0x670] ss:$28 sps:$4 sm:$0xff]  }
 0xbbc   :  { %7560 = vmatprep.subr.bf16.mxu1 %v11311_v38  ;;  %v11354_v38 = vld [vmem:[#allocation13 + $0x4e4] ss:$28 sps:$4 sm:$0xff]  }
 0xbbf   :  { %7561 = vmatpush1.bf16.msra.mxu1 %v11309_v40  ;;  %v11352_v40 = vld [vmem:[#allocation13 + $0x4e0] ss:$28 sps:$4 sm:$0xff]  }
 0xbc0   :  { %7562 = vmatprep.subr.bf16.mxu1 %v11314_v5  ;;  %v11359_v5 = vld [vmem:[#allocation13 + $0x51c] ss:$28 sps:$4 sm:$0xff]  }
 0xbc1   :  { %7292 = vmatmul.mubr.bf16.gmra.mrb[192].mxu1 %v12806_v12 }
 0xbc2   :  { %7518 = vmatmul.mubr.bf16.gmra.mrb[176].mxu0 %v12806_v12  ;;  %7301 = vmatprep.mubr.bf16.mxu1 %v12830_v18 }
 0xbc3   :  { %7527 = vmatprep.mubr.bf16.mxu0 %v12830_v18  ;;  %7563 = vmatpush1.bf16.msra.mxu1 %v11312_v41  ;;  %v11372_v41 = vld [vmem:[#allocation13 + $0x4b0] ss:$28 sps:$4 sm:$0xff]  }
 0xbc4   :  { %7564 = vmatprep.subr.bf16.mxu1 %v11319_v7  ;;  %v11357_v7 = vld [vmem:[#allocation13 + $0x518] ss:$28 sps:$4 sm:$0xff]  }
 0xbc7   :  { %7565 = vmatpush1.bf16.msra.mxu1 %v11317_v6  ;;  %v11380_v6 = vld [vmem:[#allocation13 + $0x4e8] ss:$28 sps:$4 sm:$0xff]  }
 0xbc8   :  { %7566 = vmatprep.subr.bf16.mxu1 %v11322_v14  ;;  %v11360_v14 = vld [vmem:[#allocation13 + $0x550] ss:$28 sps:$4 sm:$0xff]  }
 0xbc9   :  { %7302 = vmatmul.mubr.bf16.gmra.mrb[196].mxu1 %v12826_v46 }
 0xbca   :  { %7528 = vmatmul.mubr.bf16.gmra.mrb[180].mxu0 %v12826_v46  ;;  %7570 = vmatprep.mubr.bf16.mxu1 %v12688_v60 }
 0xbcb   :  { %7567 = vmatpush1.bf16.msra.mxu1 %v11320_v13  ;;  %7796 = vmatprep.mubr.bf16.mxu0 %v12688_v60  ;;  %v11338_v60 = vld [vmem:[#allocation13 + $0x404] ss:$28 sps:$4 sm:$0xff]   ;;  %v11367_v13 = vld [vmem:[#allocation13 + $0x58c] ss:$28 sps:$4 sm:$0xff]  }
 0xbcc   :  { %7568 = vmatprep.subr.bf16.mxu1 %v11327_v1  ;;  %v11387_v1 = vld [vmem:[#allocation13 + $0x6e0] ss:$28 sps:$4 sm:$0xff]  }
 0xbcf   :  { %7569 = vmatpush1.bf16.msra.mxu1 %v11325_v19  ;;  %v11370_v19 = vld [vmem:[#allocation13 + $0x5c4] ss:$28 sps:$4 sm:$0xff]  }
 0xbd0   :  { %7651 = vmatprep.subr.bf16.mxu1 %v11330_v53  ;;  %v11368_v53 = vld [vmem:[#allocation13 + $0x5c0] ss:$28 sps:$4 sm:$0xff]  }
 0xbd2   :  { %7571 = vmatmul.mubr.bf16.vlgmr.msra.gmra.mrb[200].mxu1 %v12684_v59  ;;  %7797 = vmatmul.mubr.bf16.vlgmr.msra.gmra.mrb[184].mxu0 %v12684_v59  ;;  %v11355_v59 = vld [vmem:[#allocation13 + $0x600] ss:$28 sps:$4 sm:$0xff]  }
 0xbd3   :  { %7580 = vmatprep.mubr.bf16.mxu1 %v12708_v27  ;;  %7652 = vmatpush1.bf16.msra.mxu1 %v11328_v16  ;;  %v11375_v16 = vld [vmem:[#allocation13 + $0x5fc] ss:$28 sps:$4 sm:$0xff]  }
 0xbd4   :  { %7804 = vmatprep.mubr.bf16.mxu0 %v12708_v27  ;;  %9747 = vmatpush3.bf16.msra.mxu0 %v11332_v23  ;;  %v11341_v27 = vld [vmem:[#allocation13 + $0x438] ss:$28 sps:$4 sm:$0xff]   ;;  %v11376_v23 = vld [vmem:[#allocation13 + $0x630] ss:$28 sps:$4 sm:$0xff]  }
 0xbd5   :  { %7653 = vmatprep.subr.bf16.mxu1 %v11335_v25  ;;  %9748 = vmatprep.subr.bf16.mxu0 %v11339_v39  ;;  %v11383_v25 = vld [vmem:[#allocation13 + $0x66c] ss:$28 sps:$4 sm:$0xff]   ;;  %v11386_v39 = vld [vmem:[#allocation13 + $0x6a4] ss:$28 sps:$4 sm:$0xff]  }
 0xbd7   :  { %7654 = vmatpush1.bf16.msra.mxu1 %v11333_v42  ;;  %v11391_v42 = vld [vmem:[#allocation13 + $0x6dc] ss:$28 sps:$4 sm:$0xff]  }
 0xbd8   :  { %7655 = vmatprep.subr.bf16.mxu1 %v11338_v60  ;;  %9749 = vmatpush3.bf16.msra.mxu0 %v11340_v17 }
 0xbd9   :  { %9750 = vmatprep.subr.bf16.mxu0 %v11347_v20 }
 0xbda   :  { %7581 = vmatmul.mubr.bf16.gmra.mrb[204].mxu1 %v12704_v24  ;;  %7805 = vmatmul.mubr.bf16.gmra.mrb[188].mxu0 %v12704_v24  ;;  %v11364_v24 = vld [vmem:[#allocation13 + $0x478] ss:$28 sps:$4 sm:$0xff]  }
 0xbdb   :  { %7590 = vmatprep.mubr.bf16.mxu1 %v12728_v52  ;;  %7656 = vmatpush1.bf16.msra.mxu1 %v11336_v21 }
 0xbdc   :  { %7812 = vmatprep.mubr.bf16.mxu0 %v12728_v52  ;;  %7657 = vmatprep.subr.bf16.mxu1 %v11343_v29  ;;  %v11349_v52 = vld [vmem:[#allocation13 + $0x4a8] ss:$28 sps:$4 sm:$0xff]  }
 0xbdd   :  { %9751 = vmatpush3.bf16.msra.mxu0 %v11348_v30 }
 0xbde   :  { %9752 = vmatprep.subr.bf16.mxu0 %v11355_v59 }
 0xbdf   :  { %7658 = vmatpush1.bf16.msra.mxu1 %v11341_v27 }
 0xbe0   :  { %7659 = vmatprep.subr.bf16.mxu1 %v11346_v33 }
 0xbe1   :  { %9753 = vmatpush3.bf16.msra.mxu0 %v11356_v31 }
 0xbe2   :  { %7591 = vmatmul.mubr.bf16.gmra.mrb[208].mxu1 %v12724_v22  ;;  %7813 = vmatmul.mubr.bf16.gmra.mrb[192].mxu0 %v12724_v22  ;;  %v11379_v22 = vld [vmem:[#allocation13 + $0x6a8] ss:$28 sps:$4 sm:$0xff]  }
 0xbe3   :  { %7600 = vmatprep.mubr.bf16.mxu1 %v12748_v11  ;;  %7660 = vmatpush1.bf16.msra.mxu1 %v11344_v34 }
 0xbe4   :  { %7820 = vmatprep.mubr.bf16.mxu0 %v12748_v11  ;;  %7661 = vmatprep.subr.bf16.mxu1 %v11351_v35  ;;  %v11362_v11 = vld [vmem:[#allocation13 + $0x554] ss:$28 sps:$4 sm:$0xff]  }
 0xbe5   :  { %9754 = vmatprep.subr.bf16.mxu0 %v11363_v36 }
 0xbe6   :  { %9755 = vmatpush3.bf16.msra.mxu0 %v11364_v24 }
 0xbe7   :  { %7662 = vmatpush1.bf16.msra.mxu1 %v11349_v52  ;;  %9756 = vmatprep.subr.bf16.mxu0 %v11371_v37 }
 0xbe8   :  { %7663 = vmatprep.subr.bf16.mxu1 %v11354_v38 }
 0xbea   :  { %7601 = vmatmul.mubr.bf16.gmra.mrb[212].mxu1 %v12744_v9  ;;  %7821 = vmatmul.mubr.bf16.gmra.mrb[196].mxu0 %v12744_v9  ;;  %v11388_v9 = vld [vmem:[#allocation13 + $0x520] ss:$28 sps:$4 sm:$0xff]  }
 0xbeb   :  { %7610 = vmatprep.mubr.bf16.mxu1 %v12768_v0  ;;  %7664 = vmatpush1.bf16.msra.mxu1 %v11352_v40 }
 0xbec   :  { %7828 = vmatprep.mubr.bf16.mxu0 %v12768_v0  ;;  %7665 = vmatprep.subr.bf16.mxu1 %v11359_v5  ;;  %v11365_v0 = vld [vmem:[#allocation13 + $0x588] ss:$28 sps:$4 sm:$0xff]  }
 0xbed   :  { %9757 = vmatpush3.bf16.msra.mxu0 %v11372_v41 }
 0xbee   :  { %9758 = vmatprep.subr.bf16.mxu0 %v11379_v22 }
 0xbef   :  { %7666 = vmatpush1.bf16.msra.mxu1 %v11357_v7 }
 0xbf0   :  { %7667 = vmatprep.subr.bf16.mxu1 %v11362_v11 }
 0xbf1   :  { %9759 = vmatpush3.bf16.msra.mxu0 %v11380_v6 }
 0xbf2   :  { %7611 = vmatmul.mubr.bf16.gmra.mrb[216].mxu1 %v12764_v58  ;;  %7829 = vmatmul.mubr.bf16.gmra.mrb[200].mxu0 %v12764_v58  ;;  %v11373_v58 = vld [vmem:[#allocation13 + $0x5f8] ss:$28 sps:$4 sm:$0xff]  }
 0xbf3   :  { %7620 = vmatprep.mubr.bf16.mxu1 %v12788_v57  ;;  %7668 = vmatpush1.bf16.msra.mxu1 %v11360_v14 }
 0xbf4   :  { %7836 = vmatprep.mubr.bf16.mxu0 %v12788_v57  ;;  %7669 = vmatprep.subr.bf16.mxu1 %v11367_v13  ;;  %v11378_v57 = vld [vmem:[#allocation13 + $0x634] ss:$28 sps:$4 sm:$0xff]  }
 0xbf5   :  { %9760 = vmatprep.subr.bf16.mxu0 %v11387_v1 }
 0xbf6   :  { %9761 = vmatpush3.bf16.msra.mxu0 %v11388_v9 }
 0xbf7   :  { %7670 = vmatpush1.bf16.msra.mxu1 %v11365_v0 }
 0xbf8   :  { %7671 = vmatprep.subr.bf16.mxu1 %v11370_v19 }
 0xbfa   :  { %7621 = vmatmul.mubr.bf16.gmra.mrb[220].mxu1 %v12784_v54  ;;  %7837 = vmatmul.mubr.bf16.gmra.mrb[204].mxu0 %v12784_v54  ;;  %v11381_v54 = vld [vmem:[#allocation13 + $0x668] ss:$28 sps:$4 sm:$0xff]  }
 0xbfb   :  { %7630 = vmatprep.mubr.bf16.mxu1 %v12808_v32  ;;  %7672 = vmatpush1.bf16.msra.mxu1 %v11368_v53 }
 0xbfc   :  { %7844 = vmatprep.mubr.bf16.mxu0 %v12808_v32  ;;  %7673 = vmatprep.subr.bf16.mxu1 %v11375_v16  ;;  %v11384_v32 = vld [vmem:[#allocation13 + $0x6a0] ss:$28 sps:$4 sm:$0xff]  }
 0xbff   :  { %7674 = vmatpush1.bf16.msra.mxu1 %v11373_v58 }
 0xc00   :  { %7675 = vmatprep.subr.bf16.mxu1 %v11378_v57 }
 0xc02   :  { %7631 = vmatmul.mubr.bf16.gmra.mrb[224].mxu1 %v12804_v8  ;;  %7845 = vmatmul.mubr.bf16.gmra.mrb[208].mxu0 %v12804_v8  ;;  %v11389_v8 = vld [vmem:[#allocation13 + $0x6d8] ss:$28 sps:$4 sm:$0xff]  }
 0xc03   :  { %7640 = vmatprep.mubr.bf16.mxu1 %v12828_v55  ;;  %7676 = vmatpush1.bf16.msra.mxu1 %v11376_v23 }
 0xc04   :  { %7852 = vmatprep.mubr.bf16.mxu0 %v12828_v55  ;;  %7677 = vmatprep.subr.bf16.mxu1 %v11383_v25 }
 0xc07   :  { %7678 = vmatpush1.bf16.msra.mxu1 %v11381_v54 }
 0xc08   :  { %7679 = vmatprep.subr.bf16.mxu1 %v11386_v39 }
 0xc0a   :  { %7641 = vmatmul.mubr.bf16.gmra.mrb[228].mxu1 %v12824_v4  ;;  %7853 = vmatmul.mubr.bf16.gmra.mrb[212].mxu0 %v12824_v4 }
 0xc0b   :  { %7680 = vmatpush1.bf16.msra.mxu1 %v11384_v32  ;;  %7683 = vmatprep.mubr.bf16.mxu1 %v12690_v62 }
 0xc0c   :  { %7893 = vmatprep.mubr.bf16.mxu0 %v12690_v62  ;;  %7681 = vmatprep.subr.bf16.mxu1 %v11391_v42 }
 0xc0f   :  { %7682 = vmatpush1.bf16.msra.mxu1 %v11389_v8 }
 0xc12   :  { %7684 = vmatmul.mubr.bf16.vlgmr.msra.gmra.mrb[200].mxu1 %v12686_v61  ;;  %7894 = vmatmul.mubr.bf16.vlgmr.msra.gmra.mrb[216].mxu0 %v12686_v61  ;;  %v5865_v61 = vld [vmem:[%s13333_s13 + $0x13] sm:$0xff] }
 0xc13   :  { %7693 = vmatprep.mubr.bf16.mxu1 %v12710_v28  ;;  %7901 = vmatprep.mubr.bf16.mxu0 %v12710_v28  ;;  %v12936_v62 = vrot.slane %v5865_v61, %v12240_v44  ;;  %v12942_v28 = vrot.slane %v5865_v61, %v12249_v47 }
 0xc1a   :  { %7694 = vmatmul.mubr.bf16.gmra.mrb[204].mxu1 %v12706_v26  ;;  %7902 = vmatmul.mubr.bf16.gmra.mrb[220].mxu0 %v12706_v26  ;;  %v12939_v26 = vrot.slane %v5865_v61, %v12243_v45 }
 0xc1b   :  { %7703 = vmatprep.mubr.bf16.mxu1 %v12730_v51  ;;  %7909 = vmatprep.mubr.bf16.mxu0 %v12730_v51 }
 0xc22   :  { %7704 = vmatmul.mubr.bf16.gmra.mrb[208].mxu1 %v12726_v15  ;;  %7910 = vmatmul.mubr.bf16.gmra.mrb[224].mxu0 %v12726_v15  ;;  %v12945_v15 = vrot.slane %v5865_v61, %v12252_v48 }
 0xc23   :  { %7713 = vmatprep.mubr.bf16.mxu1 %v12750_v49  ;;  %7917 = vmatprep.mubr.bf16.mxu0 %v12750_v49 }
 0xc2a   :  { %7714 = vmatmul.mubr.bf16.gmra.mrb[212].mxu1 %v12746_v10  ;;  %7918 = vmatmul.mubr.bf16.gmra.mrb[228].mxu0 %v12746_v10 }
 0xc2b   :  { %7723 = vmatprep.mubr.bf16.mxu1 %v12770_v2  ;;  %7925 = vmatprep.mubr.bf16.mxu0 %v12770_v2 }
 0xc32   :  { %7724 = vmatmul.mubr.bf16.gmra.mrb[216].mxu1 %v12766_v63  ;;  %7926 = vmatmul.mubr.bf16.gmra.mrb[232].mxu0 %v12766_v63 }
 0xc33   :  { %7733 = vmatprep.mubr.bf16.mxu1 %v12790_v3  ;;  %7933 = vmatprep.mubr.bf16.mxu0 %v12790_v3 }
 0xc3a   :  { %7734 = vmatmul.mubr.bf16.gmra.mrb[220].mxu1 %v12786_v56  ;;  %7934 = vmatmul.mubr.bf16.gmra.mrb[236].mxu0 %v12786_v56 }
 0xc3b   :  { %7743 = vmatprep.mubr.bf16.mxu1 %v12810_v50  ;;  %7941 = vmatprep.mubr.bf16.mxu0 %v12810_v50 }
 0xc42   :  { %7744 = vmatmul.mubr.bf16.gmra.mrb[224].mxu1 %v12806_v12  ;;  %7942 = vmatmul.mubr.bf16.gmra.mrb[240].mxu0 %v12806_v12 }
 0xc43   :  { %7753 = vmatprep.mubr.bf16.mxu1 %v12830_v18  ;;  %7949 = vmatprep.mubr.bf16.mxu0 %v12830_v18 }
 0xc4a   :  { %7754 = vmatmul.mubr.bf16.gmra.mrb[228].mxu1 %v12826_v46  ;;  %7950 = vmatmul.mubr.bf16.gmra.mrb[244].mxu0 %v12826_v46 }
 0xc64   :  { %v7233_v51 = vpop.f32.mrb[168].mxu1 }
 0xc65   :  { %v10048_v10 = vadd.f32 %v7233_v51, %v12936_v62  ;;  %v7459_v49 = vpop.f32.mrb[152].mxu0  ;;  %v7235_v63 = vpop.f32.mrb[169].mxu1 }
 0xc66   :  { %v10080_v2 = vadd.f32 %v7459_v49, %v12939_v26  ;;  %v10049_v56 = vadd.f32 %v7235_v63, %v12942_v28  ;;  %v7461_v44 = vpop.f32.mrb[153].mxu0  ;;  %v7237_v3 = vpop.f32.mrb[170].mxu1 }
 0xc67   :  { %v9437_v12 = vmul.f32 -1.442695, %v10048_v10  ;;  %v10081_v45 = vadd.f32 %v7461_v44, %v12945_v15  ;;  %v10050_v47 = vadd.f32 %v7237_v3, %v12936_v62  ;;  %v7463_v50 = vpop.f32.mrb[154].mxu0  ;;  %v7239_v4 = vpop.f32.mrb[171].mxu1 }
 0xc68   :  { %v9439_v48 = vmul.f32 -1.442695, %v10080_v2  ;;  %v9438_v46 = vmul.f32 -1.442695, %v10049_v56  ;;  %v10082_v55 = vadd.f32 %v7463_v50, %v12939_v26  ;;  %v10051_v18 = vadd.f32 %v7239_v4, %v12942_v28  ;;  %v7465_v60 = vpop.f32.mrb[155].mxu0 }
 0xc69   :  { %11392 = vpow2.f32 %v9437_v12  ;;  %v9440_v17 = vmul.f32 -1.442695, %v10081_v45  ;;  %v9444_v20 = vmul.f32 -1.442695, %v10050_v47  ;;  %v10083_v21 = vadd.f32 %v7465_v60, %v12945_v15 }
 0xc6a   :  { %11394 = vpow2.f32 %v9439_v48  ;;  %v9446_v29 = vmul.f32 -1.442695, %v10082_v55  ;;  %v9445_v30 = vmul.f32 -1.442695, %v10051_v18 }
 0xc6b   :  { %11396 = vpow2.f32 %v9438_v46  ;;  %v9447_v59 = vmul.f32 -1.442695, %v10083_v21 }
 0xc6c   :  { %11398 = vpow2.f32 %v9440_v17  ;;  %v7243_v27 = vpop.f32.mrb[172].mxu1 }
 0xc6d   :  { %11400 = vpow2.f32 %v9444_v20  ;;  %v10052_v33 = vadd.f32 %v7243_v27, %v12936_v62  ;;  %v7469_v31 = vpop.f32.mrb[156].mxu0  ;;  %v7245_v34 = vpop.f32.mrb[173].mxu1 }
 0xc6e   :  { %11402 = vpow2.f32 %v9446_v29  ;;  %v10084_v35 = vadd.f32 %v7469_v31, %v12939_v26  ;;  %v10053_v36 = vadd.f32 %v7245_v34, %v12942_v28  ;;  %v7471_v24 = vpop.f32.mrb[157].mxu0  ;;  %v7247_v52 = vpop.f32.mrb[174].mxu1 }
 0xc6f   :  { %11404 = vpow2.f32 %v9445_v30  ;;  %v9451_v37 = vmul.f32 -1.442695, %v10052_v33  ;;  %v10085_v38 = vadd.f32 %v7471_v24, %v12945_v15  ;;  %v10054_v40 = vadd.f32 %v7247_v52, %v12936_v62  ;;  %v7473_v5 = vpop.f32.mrb[158].mxu0  ;;  %v7249_v41 = vpop.f32.mrb[175].mxu1 }
 0xc70   :  { %11406 = vpow2.f32 %v9447_v59  ;;  %v9453_v22 = vmul.f32 -1.442695, %v10084_v35  ;;  %v9452_v7 = vmul.f32 -1.442695, %v10053_v36  ;;  %v7475_v11 = vpop.f32.mrb[159].mxu0  ;;  %v10086_v12 = vadd.f32 %v7473_v5, %v12939_v26 }
 0xc71   :  { %11408 = vpow2.f32 %v9451_v37  ;;  %v9454_v6 = vmul.f32 -1.442695, %v10085_v38  ;;  %v9458_v14 = vmul.f32 -1.442695, %v10054_v40  ;;  %v10055_v50 = vadd.f32 %v7249_v41, %v12942_v28 }
 0xc72   :  { %11410 = vpow2.f32 %v9453_v22  ;;  %v10087_v55 = vadd.f32 %v7475_v11, %v12945_v15  ;;  %v9460_v33 = vmul.f32 -1.442695, %v10086_v12 }
 0xc73   :  { %v11393_v13 = vpop.eup %11392  ;;  %11412 = vpow2.f32 %v9452_v7  ;;  %v9459_v52 = vmul.f32 -1.442695, %v10055_v50 }
 0xc74   :  { %v11395_v1 = vpop.eup %11394  ;;  %v8294_v9 = vadd.f32 1.0, %v11393_v13  ;;  %11414 = vpow2.f32 %v9454_v6  ;;  %v7253_v0 = vpop.f32.mrb[176].mxu1  ;;  %v9461_v5 = vmul.f32 -1.442695, %v10087_v55 }
 0xc75   :  { %v11397_v19 = vpop.eup %11396  ;;  %v8296_v53 = vadd.f32 1.0, %v11395_v1  ;;  %11416 = vpow2.f32 %v9458_v14  ;;  %v7479_v16 = vpop.f32.mrb[160].mxu0  ;;  %v10056_v21 = vadd.f32 %v7253_v0, %v12936_v62 }
 0xc76   :  { %v7255_v58 = vpop.f32.mrb[177].mxu1  ;;  %v11399_v57 = vpop.eup %11398  ;;  %11418 = vrcp.f32 %v8294_v9  ;;  %v8295_v23 = vadd.f32 1.0, %v11397_v19  ;;  %v10088_v31 = vadd.f32 %v7479_v16, %v12939_v26 }
 0xc77   :  { %v7481_v25 = vpop.f32.mrb[161].mxu0  ;;  %v7257_v54 = vpop.f32.mrb[178].mxu1  ;;  %11420 = vrcp.f32 %v8296_v53  ;;  %v8297_v32 = vadd.f32 1.0, %v11399_v57  ;;  %v10057_v37 = vadd.f32 %v7255_v58, %v12942_v28  ;;  %v9465_v7 = vmul.f32 -1.442695, %v10056_v21 }
 0xc78   :  { %v11401_v39 = vpop.eup %11400  ;;  %v7483_v42 = vpop.f32.mrb[162].mxu0  ;;  %11422 = vrcp.f32 %v8295_v23  ;;  %v10089_v41 = vadd.f32 %v7481_v25, %v12945_v15  ;;  %v10058_v11 = vadd.f32 %v7257_v54, %v12936_v62  ;;  %v9467_v14 = vmul.f32 -1.442695, %v10088_v31 }
 0xc79   :  { %v12960_v8 = vpop.f32.mrb[179].mxu1  ;;  %v11403_v61 = vpop.eup %11402  ;;  %v8301_v51 = vadd.f32 1.0, %v11401_v39  ;;  %11424 = vrcp.f32 %v8297_v32  ;;  %v10090_v13 = vadd.f32 %v7483_v42, %v12939_v26  ;;  %v9466_v9 = vmul.f32 -1.442695, %v10057_v37 }
 0xc7a   :  { %v12962_v10 = vpop.f32.mrb[163].mxu0  ;;  %v11405_v49 = vpop.eup %11404  ;;  %v8303_v63 = vadd.f32 1.0, %v11403_v61  ;;  %v10059_v0 = vadd.f32 %v12960_v8, %v12942_v28  ;;  %v9468_v16 = vmul.f32 -1.442695, %v10089_v41  ;;  %v9472_v54 = vmul.f32 -1.442695, %v10058_v11 }
 0xc7b   :  { %v11407_v2 = vpop.eup %11406  ;;  %11426 = vrcp.f32 %v8301_v51  ;;  %v8302_v56 = vadd.f32 1.0, %v11405_v49  ;;  %v10091_v58 = vadd.f32 %v12962_v10, %v12945_v15  ;;  %v9474_v61 = vmul.f32 -1.442695, %v10090_v13 }
 0xc7c   :  { %v11409_v44 = vpop.eup %11408  ;;  %11428 = vrcp.f32 %v8303_v63  ;;  %v8304_v3 = vadd.f32 1.0, %v11407_v2  ;;  %v7263_v4 = vpop.f32.mrb[180].mxu1  ;;  %v9473_v2 = vmul.f32 -1.442695, %v10059_v0 }
 0xc7d   :  { %v11411_v45 = vpop.eup %11410  ;;  %11430 = vrcp.f32 %v8302_v56  ;;  %v8308_v47 = vadd.f32 1.0, %v11409_v44  ;;  %v7489_v18 = vpop.f32.mrb[164].mxu0  ;;  %v10060_v39 = vadd.f32 %v7263_v4, %v12936_v62 }
 0xc7e   :  { %v11413_v48 = vpop.eup %11412  ;;  %11432 = vrcp.f32 %v8304_v3  ;;  %v8310_v46 = vadd.f32 1.0, %v11411_v45  ;;  %v12967_v60 = vpop.f32.mrb[181].mxu1  ;;  %v10092_v51 = vadd.f32 %v7489_v18, %v12939_v26  ;;  %v9475_v3 = vmul.f32 -1.442695, %v10091_v58 }
 0xc7f   :  { %v11415_v17 = vpop.eup %11414  ;;  %11434 = vrcp.f32 %v8308_v47  ;;  %v8309_v20 = vadd.f32 1.0, %v11413_v48  ;;  %v12970_v29 = vpop.f32.mrb[165].mxu0  ;;  %v9479_v45 = vmul.f32 -1.442695, %v10060_v39 }
 0xc80   :  { %v12972_v30 = vpop.f32.mrb[182].mxu1  ;;  %v11417_v59 = vpop.eup %11416  ;;  %11436 = vrcp.f32 %v8310_v46  ;;  %v8311_v27 = vadd.f32 1.0, %v11415_v17  ;;  %v9481_v4 = vmul.f32 -1.442695, %v10092_v51  ;;  %v10093_v11 = vadd.f32 %v12970_v29, %v12945_v15 }
 0xc81   :  { %v12975_v34 = vpop.f32.mrb[166].mxu0  ;;  %v12977_v35 = vpop.f32.mrb[183].mxu1  ;;  %11438 = vrcp.f32 %v8309_v20  ;;  %v8315_v24 = vadd.f32 1.0, %v11417_v59 }
 0xc82   :  { %v11419_v36 = vpop.eup %11418  ;;  %v12980_v38 = vpop.f32.mrb[167].mxu0  ;;  %11440 = vrcp.f32 %v8311_v27 }
 0xc83   :  { %v11421_v40 = vpop.eup %11420  ;;  %8630 = vst [vmem:[#allocation14] sm:$0xff] %v11419_v36  ;;  %11442 = vrcp.f32 %v8315_v24 }
 0xc84   :  { %v11423_v22 = vpop.eup %11422  ;;  %8632 = vst [vmem:[#allocation14 + $0x10] sm:$0xff] %v11421_v40  ;;  %11444 = vpow2.f32 %v9460_v33  ;;  %v12987_v19 = vpop.f32.mrb[184].mxu1 }
 0xc85   :  { %v11425_v6 = vpop.eup %11424  ;;  %8631 = vst [vmem:[#allocation14 + $0x8] sm:$0xff] %v11423_v22  ;;  %11446 = vpow2.f32 %v9459_v52  ;;  %v12991_v57 = vpop.f32.mrb[168].mxu0 }
 0xc86   :  { %v11427_v1 = vpop.eup %11426  ;;  %8633 = vst [vmem:[#allocation14 + $0x18] sm:$0xff] %v11425_v6  ;;  %11448 = vpow2.f32 %v9461_v5  ;;  %v12993_v23 = vpop.f32.mrb[185].mxu1 }
 0xc87   :  { %v11429_v53 = vpop.eup %11428  ;;  %8637 = vst [vmem:[#allocation14 + $0x38] sm:$0xff] %v11427_v1  ;;  %11450 = vpow2.f32 %v9465_v7  ;;  %v12996_v32 = vpop.f32.mrb[169].mxu0  ;;  %v10061_v7 = vadd.f32 %v12967_v60, %v12942_v28 }
 0xc88   :  { %v11431_v25 = vpop.eup %11430  ;;  %8639 = vst [vmem:[#allocation14 + $0x48] sm:$0xff] %v11429_v53  ;;  %v12998_v42 = vpop.f32.mrb[186].mxu1  ;;  %11452 = vpow2.f32 %v9467_v14 }
 0xc89   :  { %v11433_v8 = vpop.eup %11432  ;;  %8638 = vst [vmem:[#allocation14 + $0x40] sm:$0xff] %v11431_v25  ;;  %v13001_v10 = vpop.f32.mrb[170].mxu0  ;;  %11454 = vpow2.f32 %v9466_v9  ;;  %v9480_v39 = vmul.f32 -1.442695, %v10061_v7 }
 0xc8a   :  { %v13003_v49 = vpop.f32.mrb[187].mxu1  ;;  %v11435_v63 = vpop.eup %11434  ;;  %8640 = vst [vmem:[#allocation14 + $0x50] sm:$0xff] %v11433_v8  ;;  %11456 = vpow2.f32 %v9468_v16  ;;  %v9482_v8 = vmul.f32 -1.442695, %v10093_v11 }
 0xc8b   :  { %v7505_v56 = vpop.f32.mrb[171].mxu0  ;;  %v11437_v44 = vpop.eup %11436  ;;  %8644 = vst [vmem:[#allocation14 + $0x70] sm:$0xff] %v11435_v63  ;;  %11458 = vpow2.f32 %v9472_v54 }
 0xc8c   :  { %v11439_v12 = vpop.eup %11438  ;;  %8646 = vst [vmem:[#allocation14 + $0x80] sm:$0xff] %v11437_v44  ;;  %v13006_v47 = vadd.f32 %v7505_v56, %v12945_v15  ;;  %11460 = vpow2.f32 %v9474_v61  ;;  %v7283_v46 = vpop.f32.mrb[188].mxu1 }
 0xc8d   :  { %v11441_v50 = vpop.eup %11440  ;;  %8645 = vst [vmem:[#allocation14 + $0x78] sm:$0xff] %v11439_v12  ;;  %11462 = vpow2.f32 %v9473_v2  ;;  %v13009_v18 = vadd.f32 %v7283_v46, %v12936_v62  ;;  %v7509_v17 = vpop.f32.mrb[172].mxu0  ;;  %v10062_v2 = vadd.f32 %v12972_v30, %v12936_v62  ;;  %v10094_v30 = vadd.f32 %v12975_v34, %v12939_v26 }
 0xc8e   :  { %v11443_v48 = vpop.eup %11442  ;;  %8647 = vst [vmem:[#allocation14 + $0x88] sm:$0xff] %v11441_v50  ;;  %11464 = vpow2.f32 %v9475_v3  ;;  %v7285_v20 = vpop.f32.mrb[189].mxu1  ;;  %v13012_v27 = vadd.f32 %v7509_v17, %v12939_v26  ;;  %v10064_v34 = vadd.f32 %v12987_v19, %v12936_v62 }
 0xc8f   :  { %v11445_v55 = vpop.eup %11444  ;;  %8651 = vst [vmem:[#allocation14 + $0xa8] sm:$0xff] %v11443_v48  ;;  %11466 = vpow2.f32 %v9479_v45  ;;  %v13015_v33 = vadd.f32 %v7285_v20, %v12942_v28  ;;  %v7511_v31 = vpop.f32.mrb[173].mxu0 }
 0xc90   :  { %v11447_v21 = vpop.eup %11446  ;;  %v8317_v59 = vadd.f32 1.0, %v11445_v55  ;;  %v7287_v36 = vpop.f32.mrb[190].mxu1  ;;  %11468 = vpow2.f32 %v9481_v4  ;;  %v13018_v37 = vadd.f32 %v7511_v31, %v12945_v15 }
 0xc91   :  { %v11449_v24 = vpop.eup %11448  ;;  %v8316_v52 = vadd.f32 1.0, %v11447_v21  ;;  %v7513_v40 = vpop.f32.mrb[174].mxu0  ;;  %v13025_v1 = vadd.f32 %v7287_v36, %v12936_v62 }
 0xc92   :  { %v7289_v5 = vpop.f32.mrb[191].mxu1  ;;  %v11451_v41 = vpop.eup %11450  ;;  %11470 = vrcp.f32 %v8317_v59  ;;  %v8318_v22 = vadd.f32 1.0, %v11449_v24  ;;  %v13028_v53 = vadd.f32 %v7513_v40, %v12939_v26  ;;  %v10063_v24 = vadd.f32 %v12977_v35, %v12942_v28 }
 0xc93   :  { %v7515_v6 = vpop.f32.mrb[175].mxu0  ;;  %v11453_v14 = vpop.eup %11452  ;;  %11472 = vrcp.f32 %v8316_v52  ;;  %v8322_v13 = vadd.f32 1.0, %v11451_v41  ;;  %v13031_v16 = vadd.f32 %v7289_v5, %v12942_v28  ;;  %v10095_v52 = vadd.f32 %v12980_v38, %v12945_v15 }
 0xc94   :  { %v11455_v9 = vpop.eup %11454  ;;  %11474 = vrcp.f32 %v8318_v22  ;;  %v8324_v0 = vadd.f32 1.0, %v11453_v14  ;;  %v13034_v29 = vadd.f32 %v7515_v6, %v12945_v15  ;;  %v7293_v61 = vpop.f32.mrb[192].mxu1  ;;  %v9486_v14 = vmul.f32 -1.442695, %v10062_v2 }
 0xc95   :  { %v11457_v60 = vpop.eup %11456  ;;  %11476 = vrcp.f32 %v8322_v13  ;;  %v8323_v58 = vadd.f32 1.0, %v11455_v9  ;;  %v13039_v56 = vadd.f32 %v7293_v61, %v12936_v62  ;;  %v7519_v44 = vpop.f32.mrb[176].mxu0  ;;  %v9488_v13 = vmul.f32 -1.442695, %v10094_v30 }
 0xc96   :  { %v11459_v25 = vpop.eup %11458  ;;  %11478 = vrcp.f32 %v8324_v0  ;;  %v8325_v54 = vadd.f32 1.0, %v11457_v60  ;;  %v7295_v3 = vpop.f32.mrb[193].mxu1  ;;  %v13042_v50 = vadd.f32 %v7519_v44, %v12939_v26  ;;  %v9487_v0 = vmul.f32 -1.442695, %v10063_v24 }
 0xc97   :  { %v11461_v51 = vpop.eup %11460  ;;  %11480 = vrcp.f32 %v8323_v58  ;;  %v8329_v63 = vadd.f32 1.0, %v11459_v25  ;;  %v13045_v4 = vadd.f32 %v7295_v3, %v12942_v28  ;;  %v7521_v48 = vpop.f32.mrb[177].mxu0  ;;  %v9489_v60 = vmul.f32 -1.442695, %v10095_v52 }
 0xc98   :  { %v11463_v12 = vpop.eup %11462  ;;  %11482 = vrcp.f32 %v8325_v54  ;;  %v8331_v45 = vadd.f32 1.0, %v11461_v51  ;;  %v7297_v46 = vpop.f32.mrb[194].mxu1  ;;  %v13050_v20 = vadd.f32 %v7521_v48, %v12945_v15  ;;  %v10096_v58 = vadd.f32 %v12991_v57, %v12939_v26 }
 0xc99   :  { %v11465_v55 = vpop.eup %11464  ;;  %11484 = vrcp.f32 %v8329_v63  ;;  %v8330_v17 = vadd.f32 1.0, %v11463_v12  ;;  %v7523_v21 = vpop.f32.mrb[178].mxu0  ;;  %v13059_v22 = vadd.f32 %v7297_v46, %v12936_v62  ;;  %v9493_v61 = vmul.f32 -1.442695, %v10064_v34 }
 0xc9a   :  { %v7299_v59 = vpop.f32.mrb[195].mxu1  ;;  %v11467_v31 = vpop.eup %11466  ;;  %11486 = vrcp.f32 %v8331_v45  ;;  %v8332_v36 = vadd.f32 1.0, %v11465_v55  ;;  %v13062_v6 = vadd.f32 %v7523_v21, %v12939_v26  ;;  %v10065_v51 = vadd.f32 %v12993_v23, %v12942_v28 }
 0xc9b   :  { %v7525_v40 = vpop.f32.mrb[179].mxu0  ;;  %v11469_v5 = vpop.eup %11468  ;;  %11488 = vrcp.f32 %v8330_v17  ;;  %v8336_v41 = vadd.f32 1.0, %v11467_v31  ;;  %v13065_v35 = vadd.f32 %v7299_v59, %v12942_v28  ;;  %v10097_v12 = vadd.f32 %v12996_v32, %v12945_v15 }
 0xc9c   :  { %v11471_v7 = vpop.eup %11470  ;;  %11490 = vrcp.f32 %v8332_v36  ;;  %v8338_v11 = vadd.f32 1.0, %v11469_v5  ;;  %v13068_v9 = vadd.f32 %v7525_v40, %v12945_v15  ;;  %v7303_v25 = vpop.f32.mrb[196].mxu1  ;;  %v10066_v46 = vadd.f32 %v12998_v42, %v12936_v62 }
 0xc9d   :  { %v11473_v38 = vpop.eup %11472  ;;  %8653 = vst [vmem:[#allocation14 + $0xb8] sm:$0xff] %v11471_v7  ;;  %11492 = vrcp.f32 %v8336_v41  ;;  %v13075_v63 = vadd.f32 %v7303_v25, %v12936_v62  ;;  %v7529_v2 = vpop.f32.mrb[180].mxu0  ;;  %v9495_v21 = vmul.f32 -1.442695, %v10096_v58  ;;  %v10098_v59 = vadd.f32 %v13001_v10, %v12939_v26 }
 0xc9e   :  { %v11475_v19 = vpop.eup %11474  ;;  %8652 = vst [vmem:[#allocation14 + $0xb0] sm:$0xff] %v11473_v38  ;;  %11494 = vrcp.f32 %v8338_v11  ;;  %v7305_v44 = vpop.f32.mrb[197].mxu1  ;;  %v13080_v57 = vadd.f32 %v7529_v2, %v12939_v26  ;;  %v9494_v24 = vmul.f32 -1.442695, %v10065_v51  ;;  %v9496_v5 = vmul.f32 -1.442695, %v10097_v12 }
 0xc9f   :  { %v11477_v54 = vpop.eup %11476  ;;  %8654 = vst [vmem:[#allocation14 + $0xc0] sm:$0xff] %v11475_v19  ;;  %11496 = vpow2.f32 %v9480_v39  ;;  %v13083_v39 = vadd.f32 %v7305_v44, %v12942_v28  ;;  %v7531_v45 = vpop.f32.mrb[181].mxu0  ;;  %v9500_v41 = vmul.f32 -1.442695, %v10066_v46  ;;  %v9502_v7 = vmul.f32 -1.442695, %v10098_v59 }
 0xca0   :  { %v11479_v3 = vpop.eup %11478  ;;  %8658 = vst [vmem:[#allocation14 + $0xe0] sm:$0xff] %v11477_v54  ;;  %11498 = vpow2.f32 %v9482_v8  ;;  %v7307_v48 = vpop.f32.mrb[198].mxu1  ;;  %v13088_v55 = vadd.f32 %v7531_v45, %v12945_v15 }
 0xca1   :  { %v11481_v23 = vpop.eup %11480  ;;  %8660 = vst [vmem:[#allocation14 + $0xf0] sm:$0xff] %v11479_v3  ;;  %11500 = vpow2.f32 %v9486_v14  ;;  %v13091_v8 = vadd.f32 %v7307_v48, %v12936_v62  ;;  %v7533_v32 = vpop.f32.mrb[182].mxu0  ;;  %v10067_v62 = vadd.f32 %v13003_v49, %v12942_v28 }
 0xca2   :  { %v7309_v17 = vpop.f32.mrb[199].mxu1  ;;  %v11483_v30 = vpop.eup %11482  ;;  %8659 = vst [vmem:[#allocation14 + $0xe8] sm:$0xff] %v11481_v23  ;;  %11502 = vpow2.f32 %v9488_v13  ;;  %v13096_v31 = vadd.f32 %v7533_v32, %v12939_v26 }
 0xca3   :  { %v7535_v36 = vpop.f32.mrb[183].mxu0  ;;  %v11485_v42 = vpop.eup %11484  ;;  %8661 = vst [vmem:[#allocation14 + $0xf8] sm:$0xff] %v11483_v30  ;;  %11504 = vpow2.f32 %v9487_v0  ;;  %v13101_v52 = vadd.f32 %v7309_v17, %v12942_v28  ;;  %v9501_v28 = vmul.f32 -1.442695, %v10067_v62 }
 0xca4   :  { %v11487_v40 = vpop.eup %11486  ;;  %8665 = vst [vmem:[#allocation14 + $0x118] sm:$0xff] %v11485_v42  ;;  %11506 = vpow2.f32 %v9489_v60  ;;  %v13104_v10 = vadd.f32 %v7535_v36, %v12945_v15 }
 0xca5   :  { %v11489_v26 = vpop.eup %11488  ;;  %8667 = vst [vmem:[#allocation14 + $0x128] sm:$0xff] %v11487_v40  ;;  %11508 = vpow2.f32 %v9493_v61  ;;  %v9698_v49 = vpop.f32.mrb[184].mxu0 }
 0xca6   :  { %v11491_v34 = vpop.eup %11490  ;;  %8666 = vst [vmem:[#allocation14 + $0x120] sm:$0xff] %v11489_v26  ;;  %11510 = vpow2.f32 %v9495_v21  ;;  %v9699_v14 = vpop.f32.mrb[185].mxu0 }
 0xca7   :  { %v11493_v11 = vpop.eup %11492  ;;  %8668 = vst [vmem:[#allocation14 + $0x130] sm:$0xff] %v11491_v34  ;;  %11512 = vpow2.f32 %v9494_v24  ;;  %v13106_v15 = vadd.f32 %v9699_v14, %v9698_v49  ;;  %v9701_v19 = vpop.f32.mrb[186].mxu0  ;;  %v9503_v49 = vmul.f32 -1.442695, %v13006_v47  ;;  %v9510_v47 = vmul.f32 -1.442695, %v13018_v37 }
 0xca8   :  { %v11495_v38 = vpop.eup %11494  ;;  %8672 = vst [vmem:[#allocation14 + $0x150] sm:$0xff] %v11493_v11  ;;  %11514 = vpow2.f32 %v9496_v5  ;;  %v9702_v58 = vpop.f32.mrb[187].mxu0  ;;  %v9515_v37 = vmul.f32 -1.442695, %v13031_v16  ;;  %v9522_v16 = vmul.f32 -1.442695, %v13045_v4 }
 0xca9   :  { %v11497_v13 = vpop.eup %11496  ;;  %8674 = vst [vmem:[#allocation14 + $0x160] sm:$0xff] %v11495_v38  ;;  %11516 = vpow2.f32 %v9500_v41  ;;  %v13108_v61 = vadd.f32 %v9702_v58, %v9701_v19 }
 0xcaa   :  { %v11499_v0 = vpop.eup %11498  ;;  %v8337_v60 = vadd.f32 1.0, %v11497_v13  ;;  %11518 = vpow2.f32 %v9502_v7  ;;  %v9507_v13 = vmul.f32 -1.442695, %v13009_v18 }
 0xcab   :  { %v11501_v25 = vpop.eup %11500  ;;  %v8339_v54 = vadd.f32 1.0, %v11499_v0  ;;  %11520 = vpow2.f32 %v9501_v28  ;;  %v9509_v0 = vmul.f32 -1.442695, %v13012_v27  ;;  %v9514_v27 = vmul.f32 -1.442695, %v13025_v1 }
 0xcac   :  { %v11503_v51 = vpop.eup %11502  ;;  %11522 = vrcp.f32 %v8337_v60  ;;  %v8343_v2 = vadd.f32 1.0, %v11501_v25  ;;  %v9508_v25 = vmul.f32 -1.442695, %v13015_v33  ;;  %v9516_v33 = vmul.f32 -1.442695, %v13028_v53 }
 0xcad   :  { %v11505_v44 = vpop.eup %11504  ;;  %11524 = vrcp.f32 %v8339_v54  ;;  %v8345_v3 = vadd.f32 1.0, %v11503_v51  ;;  %v9704_v46 = vpop.f32.mrb[188].mxu0  ;;  %v9521_v1 = vmul.f32 -1.442695, %v13039_v56  ;;  %v9523_v53 = vmul.f32 -1.442695, %v13042_v50 }
 0xcae   :  { %v11507_v12 = vpop.eup %11506  ;;  %11526 = vrcp.f32 %v8343_v2  ;;  %v8344_v45 = vadd.f32 1.0, %v11505_v44  ;;  %v9705_v30 = vpop.f32.mrb[189].mxu0 }
 0xcaf   :  { %v11509_v48 = vpop.eup %11508  ;;  %11528 = vrcp.f32 %v8345_v3  ;;  %v8346_v23 = vadd.f32 1.0, %v11507_v12  ;;  %v13110_v36 = vadd.f32 %v9705_v30, %v9704_v46  ;;  %v9707_v42 = vpop.f32.mrb[190].mxu0  ;;  %v9517_v46 = vmul.f32 -1.442695, %v13034_v29 }
 0xcb0   :  { %v11511_v32 = vpop.eup %11510  ;;  %11530 = vrcp.f32 %v8344_v45  ;;  %v8350_v17 = vadd.f32 1.0, %v11509_v48  ;;  %v9708_v40 = vpop.f32.mrb[191].mxu0  ;;  %v9524_v29 = vmul.f32 -1.442695, %v13050_v20 }
 0xcb1   :  { %v11513_v21 = vpop.eup %11512  ;;  %11532 = vrcp.f32 %v8346_v23  ;;  %v8352_v59 = vadd.f32 1.0, %v11511_v32  ;;  %v13112_v41 = vadd.f32 %v9708_v40, %v9707_v42 }
 0xcb2   :  { %v11515_v24 = vpop.eup %11514  ;;  %11534 = vrcp.f32 %v8350_v17  ;;  %v8351_v62 = vadd.f32 1.0, %v11513_v21 }
 0xcb3   :  { %v11517_v5 = vpop.eup %11516  ;;  %11536 = vrcp.f32 %v8352_v59  ;;  %v8353_v26 = vadd.f32 1.0, %v11515_v24 }
 0xcb4   :  { %v11519_v34 = vpop.eup %11518  ;;  %11538 = vrcp.f32 %v8351_v62  ;;  %v8357_v7 = vadd.f32 1.0, %v11517_v5 }
 0xcb5   :  { %v11521_v11 = vpop.eup %11520  ;;  %11540 = vrcp.f32 %v8353_v26  ;;  %v8359_v28 = vadd.f32 1.0, %v11519_v34  ;;  %v9710_v60 = vpop.f32.mrb[192].mxu0 }
 0xcb6   :  { %v11523_v38 = vpop.eup %11522  ;;  %11542 = vrcp.f32 %v8357_v7  ;;  %v8358_v14 = vadd.f32 1.0, %v11521_v11  ;;  %v9711_v54 = vpop.f32.mrb[193].mxu0 }
 0xcb7   :  { %v11525_v19 = vpop.eup %11524  ;;  %8673 = vst [vmem:[#allocation14 + $0x158] sm:$0xff] %v11523_v38  ;;  %11544 = vrcp.f32 %v8359_v28  ;;  %v13119_v2 = vadd.f32 %v9711_v54, %v9710_v60  ;;  %v9713_v18 = vpop.f32.mrb[194].mxu0 }
 0xcb8   :  { %v11527_v58 = vpop.eup %11526  ;;  %8675 = vst [vmem:[#allocation14 + $0x168] sm:$0xff] %v11525_v19  ;;  %11546 = vrcp.f32 %v8358_v14  ;;  %v9714_v3 = vpop.f32.mrb[195].mxu0 }
 0xcb9   :  { %v11529_v51 = vpop.eup %11528  ;;  %8679 = vst [vmem:[#allocation14 + $0x188] sm:$0xff] %v11527_v58  ;;  %11548 = vpow2.f32 %v9503_v49  ;;  %v13123_v45 = vadd.f32 %v9714_v3, %v9713_v18 }
 0xcba   :  { %v11531_v44 = vpop.eup %11530  ;;  %8681 = vst [vmem:[#allocation14 + $0x198] sm:$0xff] %v11529_v51  ;;  %11550 = vpow2.f32 %v9507_v13 }
 0xcbb   :  { %v11533_v12 = vpop.eup %11532  ;;  %8680 = vst [vmem:[#allocation14 + $0x190] sm:$0xff] %v11531_v44  ;;  %11552 = vpow2.f32 %v9509_v0 }
 0xcbc   :  { %v11535_v48 = vpop.eup %11534  ;;  %8682 = vst [vmem:[#allocation14 + $0x1a0] sm:$0xff] %v11533_v12  ;;  %11554 = vpow2.f32 %v9508_v25 }
 0xcbd   :  { %v11537_v23 = vpop.eup %11536  ;;  %8686 = vst [vmem:[#allocation14 + $0x1c0] sm:$0xff] %v11535_v48  ;;  %11556 = vpow2.f32 %v9510_v47  ;;  %v9716_v30 = vpop.f32.mrb[196].mxu0 }
 0xcbe   :  { %v11539_v32 = vpop.eup %11538  ;;  %8688 = vst [vmem:[#allocation14 + $0x1d0] sm:$0xff] %v11537_v23  ;;  %11558 = vpow2.f32 %v9514_v27  ;;  %v9717_v59 = vpop.f32.mrb[197].mxu0 }
 0xcbf   :  { %v11541_v17 = vpop.eup %11540  ;;  %8687 = vst [vmem:[#allocation14 + $0x1c8] sm:$0xff] %v11539_v32  ;;  %11560 = vpow2.f32 %v9516_v33  ;;  %v13131_v24 = vadd.f32 %v9717_v59, %v9716_v30  ;;  %v9719_v56 = vpop.f32.mrb[198].mxu0 }
 0xcc0   :  { %v11543_v21 = vpop.eup %11542  ;;  %8689 = vst [vmem:[#allocation14 + $0x1d8] sm:$0xff] %v11541_v17  ;;  %11562 = vpow2.f32 %v9515_v37  ;;  %v9720_v40 = vpop.f32.mrb[199].mxu0 }
 0xcc1   :  { %v11545_v42 = vpop.eup %11544  ;;  %8693 = vst [vmem:[#allocation14 + $0x1f8] sm:$0xff] %v11543_v21  ;;  %11564 = vpow2.f32 %v9517_v46  ;;  %v13133_v5 = vadd.f32 %v9720_v40, %v9719_v56  ;;  %v9530_v21 = vmul.f32 -1.442695, %v13062_v6  ;;  %v9535_v6 = vmul.f32 -1.442695, %v13075_v63 }
 0xcc2   :  { %v11547_v62 = vpop.eup %11546  ;;  %8695 = vst [vmem:[#allocation14 + $0x208] sm:$0xff] %v11545_v42  ;;  %11566 = vpow2.f32 %v9521_v1  ;;  %v9528_v1 = vmul.f32 -1.442695, %v13059_v22  ;;  %v9529_v42 = vmul.f32 -1.442695, %v13065_v35 }
 0xcc3   :  { %v11549_v50 = vpop.eup %11548  ;;  %8694 = vst [vmem:[#allocation14 + $0x200] sm:$0xff] %v11547_v62  ;;  %11568 = vpow2.f32 %v9523_v53  ;;  %v9531_v22 = vmul.f32 -1.442695, %v13068_v9  ;;  %v9537_v35 = vmul.f32 -1.442695, %v13080_v57  ;;  %v5925_v9 = vsub.s32 6, %v12237_v43 }
 0xcc4   :  { %v11551_v26 = vpop.eup %11550  ;;  %v8360_v4 = vadd.f32 1.0, %v11549_v50  ;;  %11570 = vpow2.f32 %v9522_v16  ;;  %v9544_v57 = vmul.f32 -1.442695, %v13096_v31 }
 0xcc5   :  { %v11553_v34 = vpop.eup %11552  ;;  %v8364_v7 = vadd.f32 1.0, %v11551_v26  ;;  %11572 = vpow2.f32 %v9524_v29  ;;  %v9722_v38 = vpop.f32.mrb[200].mxu0 }
 0xcc6   :  { %v11555_v11 = vpop.eup %11554  ;;  %11574 = vrcp.f32 %v8360_v4  ;;  %v8366_v20 = vadd.f32 1.0, %v11553_v34  ;;  %v9723_v19 = vpop.f32.mrb[201].mxu0 }
 0xcc7   :  { %v11557_v28 = vpop.eup %11556  ;;  %11576 = vrcp.f32 %v8364_v7  ;;  %v8365_v49 = vadd.f32 1.0, %v11555_v11  ;;  %v13135_v58 = vadd.f32 %v9723_v19, %v9722_v38  ;;  %v9725_v25 = vpop.f32.mrb[202].mxu0  ;;  %v9536_v7 = vmul.f32 -1.442695, %v13083_v39 }
 0xcc8   :  { %v11559_v14 = vpop.eup %11558  ;;  %11578 = vrcp.f32 %v8366_v20  ;;  %v8367_v13 = vadd.f32 1.0, %v11557_v28  ;;  %v9726_v47 = vpop.f32.mrb[203].mxu0  ;;  %v9538_v20 = vmul.f32 -1.442695, %v13088_v55  ;;  %v9542_v28 = vmul.f32 -1.442695, %v13091_v8 }
 0xcc9   :  { %v11561_v0 = vpop.eup %11560  ;;  %11580 = vrcp.f32 %v8365_v49  ;;  %v8371_v60 = vadd.f32 1.0, %v11559_v14  ;;  %v13137_v27 = vadd.f32 %v9726_v47, %v9725_v25  ;;  %v11840_v55 = vld [vmem:[%s13333_s13 + $0x13] sm:$0xff]  ;;  %v9545_v25 = vmul.f32 -1.442695, %v13104_v10  ;;  %s12045_s13 = smov [#allocation14]  }
 0xcca   :  { %v11563_v54 = vpop.eup %11562  ;;  %11582 = vrcp.f32 %v8367_v13  ;;  %v8373_v51 = vadd.f32 1.0, %v11561_v0  ;;  %v9543_v13 = vmul.f32 -1.442695, %v13101_v52  ;;  %v13158_v19 = vrot.slane %v11840_v55, %v5925_v9  ;;  %s8747_s6 = sshll.u32 %s12045_s13, 4  ;;  %s8748_s6 = int_to_ptr.vmem [resolvable:$true] %s8747_s6 }
 0xccb   :  { %v11565_v18 = vpop.eup %11564  ;;  %11584 = vrcp.f32 %v8371_v60  ;;  %v8372_v44 = vadd.f32 1.0, %v11563_v54  ;;  %s11995_s1 = scalar_lea.vmem %s8748_s6, 14336  ;;  %p12000_p1 = scmp.lt.s32.totalorder %s8748_s6, %s8748_s6 }
 0xccc   :  { %v11567_v3 = vpop.eup %11566  ;;  %11586 = vrcp.f32 %v8373_v51  ;;  %v8374_v12 = vadd.f32 1.0, %v11565_v18  ;;  %p11996_p0 = scmp.ne.s32.totalorder %s8748_s6, %s11995_s1  ;;  %p12001_p2 = scmp.lt.s32.totalorder %s11995_s1, %s11995_s1 }
 0xccd   :  { %v11569_v33 = vpop.eup %11568  ;;  %11588 = vrcp.f32 %v8372_v44  ;;  %v8378_v48 = vadd.f32 1.0, %v11567_v3  ;;  %v9728_v17 = vpop.f32.mrb[204].mxu0 }
 0xcce   :  { %v11571_v37 = vpop.eup %11570  ;;  %11590 = vrcp.f32 %v8374_v12  ;;  %v8380_v23 = vadd.f32 1.0, %v11569_v33  ;;  %v9729_v16 = vpop.f32.mrb[205].mxu0  ;;  %p12002_p3 = por %p12001_p2, %p12000_p1 }
 0xccf   :  { %v11573_v46 = vpop.eup %11572  ;;  %11592 = vrcp.f32 %v8378_v48  ;;  %v8379_v32 = vadd.f32 1.0, %v11571_v37  ;;  %v13142_v29 = vadd.f32 %v9729_v16, %v9728_v17  ;;  %v9731_v56 = vpop.f32.mrb[206].mxu0 }
 0xcd0   :  { %v11575_v53 = vpop.eup %11574  ;;  %11594 = vrcp.f32 %v8380_v23  ;;  %v8381_v30 = vadd.f32 1.0, %v11573_v46  ;;  %v9732_v40 = vpop.f32.mrb[207].mxu0  ;;  %p12003_p4 = pnand %p12002_p3, %p11996_p0 }
 0xcd1   :  { %v11577_v59 = vpop.eup %11576  ;;  %8696 = vst [vmem:[#allocation14 + $0x210] sm:$0xff] %v11575_v53  ;;  %11596 = vrcp.f32 %v8379_v32  ;;  %v13146_v26 = vadd.f32 %v9732_v40, %v9731_v56  ;;  %v5917_v32 = vsub.s32 4, %v12237_v43 }
 0xcd2   :  { %v11579_v62 = vpop.eup %11578  ;;  %8700 = vst [vmem:[#allocation14 + $0x230] sm:$0xff] %v11577_v59  ;;  %11598 = vrcp.f32 %v8381_v30 }
 0xcd3   :  { %v11581_v50 = vpop.eup %11580  ;;  %8702 = vst [vmem:[#allocation14 + $0x240] sm:$0xff] %v11579_v62  ;;  %11600 = vpow2.f32 %v9528_v1 }
 0xcd4   :  { %v11583_v4 = vpop.eup %11582  ;;  %8701 = vst [vmem:[#allocation14 + $0x238] sm:$0xff] %v11581_v50  ;;  %11602 = vpow2.f32 %v9530_v21  ;;  %v5921_v21 = vsub.s32 5, %v12237_v43 }
 0xcd5   :  { %v11585_v34 = vpop.eup %11584  ;;  %8703 = vst [vmem:[#allocation14 + $0x248] sm:$0xff] %v11583_v4  ;;  %11604 = vpow2.f32 %v9529_v42  ;;  %v9734_v49 = vpop.f32.mrb[208].mxu0  ;;  %v13172_v4 = vrot.slane %v11840_v55, %v5917_v32 }
 0xcd6   :  { %v11587_v11 = vpop.eup %11586  ;;  %8707 = vst [vmem:[#allocation14 + $0x268] sm:$0xff] %v11585_v34  ;;  %11606 = vpow2.f32 %v9531_v22  ;;  %v9735_v14 = vpop.f32.mrb[209].mxu0 }
 0xcd7   :  { %v11589_v63 = vpop.eup %11588  ;;  %8709 = vst [vmem:[#allocation14 + $0x278] sm:$0xff] %v11587_v11  ;;  %11608 = vpow2.f32 %v9535_v6  ;;  %v9736_v0 = vadd.f32 %v9735_v14, %v9734_v49  ;;  %v9737_v8 = vpop.f32.mrb[210].mxu0  ;;  %v7799_v14 = vadd.f32 %v13106_v15, %v13158_v19 }
 0xcd8   :  { %v11591_v38 = vpop.eup %11590  ;;  %8708 = vst [vmem:[#allocation14 + $0x270] sm:$0xff] %v11589_v63  ;;  %11610 = vpow2.f32 %v9537_v35  ;;  %v9738_v31 = vpop.f32.mrb[211].mxu0 }
 0xcd9   :  { %v11593_v39 = vpop.eup %11592  ;;  %8710 = vst [vmem:[#allocation14 + $0x280] sm:$0xff] %v11591_v38  ;;  %11612 = vpow2.f32 %v9536_v7  ;;  %v13162_v51 = vadd.f32 %v9736_v0, %v13158_v19  ;;  %v9739_v52 = vadd.f32 %v9738_v31, %v9737_v8  ;;  %v13177_v7 = vrot.slane %v11840_v55, %v5921_v21 }
 0xcda   :  { %v11595_v60 = vpop.eup %11594  ;;  %8714 = vst [vmem:[#allocation14 + $0x2a0] sm:$0xff] %v11593_v39  ;;  %11614 = vpow2.f32 %v9538_v20 }
 0xcdb   :  { %v11597_v54 = vpop.eup %11596  ;;  %8716 = vst [vmem:[#allocation14 + $0x2b0] sm:$0xff] %v11595_v60  ;;  %11616 = vpow2.f32 %v9542_v28  ;;  %v13165_v44 = vadd.f32 %v9739_v52, %v13158_v19 }
 0xcdc   :  { %v11599_v47 = vpop.eup %11598  ;;  %8715 = vst [vmem:[#allocation14 + $0x2a8] sm:$0xff] %v11597_v54  ;;  %11618 = vpow2.f32 %v9544_v57 }
 0xcdd   :  { %v11601_v18 = vpop.eup %11600  ;;  %8717 = vst [vmem:[#allocation14 + $0x2b8] sm:$0xff] %v11599_v47  ;;  %11620 = vpow2.f32 %v9543_v13  ;;  %v9740_v48 = vpop.f32.mrb[212].mxu0 }
 0xcde   :  { %v11603_v3 = vpop.eup %11602  ;;  %v8385_v12 = vadd.f32 1.0, %v11601_v18  ;;  %11622 = vpow2.f32 %v9545_v25  ;;  %v9741_v46 = vpop.f32.mrb[213].mxu0 }
 0xcdf   :  { %v11605_v10 = vpop.eup %11604  ;;  %v8387_v33 = vadd.f32 1.0, %v11603_v3  ;;  %v9742_v53 = vadd.f32 %v9741_v46, %v9740_v48  ;;  %v9743_v30 = vpop.f32.mrb[214].mxu0 }
 0xce0   :  { %v11607_v37 = vpop.eup %11606  ;;  %11624 = vrcp.f32 %v8385_v12  ;;  %v8386_v23 = vadd.f32 1.0, %v11605_v10  ;;  %v9744_v42 = vpop.f32.mrb[215].mxu0 }
 0xce1   :  { %v11609_v1 = vpop.eup %11608  ;;  %11626 = vrcp.f32 %v8387_v33  ;;  %v8388_v17 = vadd.f32 1.0, %v11607_v37  ;;  %v13170_v22 = vadd.f32 %v9742_v53, %v13158_v19  ;;  %v9745_v40 = vadd.f32 %v9744_v42, %v9743_v30 }
 0xce2   :  { %v11611_v16 = vpop.eup %11610  ;;  %11628 = vrcp.f32 %v8386_v23  ;;  %v8392_v59 = vadd.f32 1.0, %v11609_v1  ;;  %v7802_v37 = vadd.f32 %v13108_v61, %v13158_v19 }
 0xce3   :  { %v11613_v56 = vpop.eup %11612  ;;  %11630 = vrcp.f32 %v8388_v17  ;;  %v8394_v62 = vadd.f32 1.0, %v11611_v16  ;;  %v13175_v43 = vadd.f32 %v9745_v40, %v13158_v19 }
 0xce4   :  { %v11615_v50 = vpop.eup %11614  ;;  %11632 = vrcp.f32 %v8392_v59  ;;  %v8393_v6 = vadd.f32 1.0, %v11613_v56 }
 0xce5   :  { %v11617_v35 = vpop.eup %11616  ;;  %11634 = vrcp.f32 %v8394_v62  ;;  %v8395_v34 = vadd.f32 1.0, %v11615_v50  ;;  %v7685_v28 = vpop.f32.mrb[200].mxu1 }
 0xce6   :  { %v11619_v9 = vpop.eup %11618  ;;  %11636 = vrcp.f32 %v8393_v6  ;;  %v8399_v11 = vadd.f32 1.0, %v11617_v35  ;;  %v9762_v49 = vpop.f32.mrb[216].mxu0  ;;  %v10112_v39 = vadd.f32 %v7685_v28, %v13172_v4  ;;  %v7807_v6 = vadd.f32 %v13110_v36, %v13158_v19 }
 0xce7   :  { %v11621_v20 = vpop.eup %11620  ;;  %11638 = vrcp.f32 %v8395_v34  ;;  %v8401_v63 = vadd.f32 1.0, %v11619_v9  ;;  %v7687_v13 = vpop.f32.mrb[201].mxu1 }
 0xce8   :  { %v11623_v38 = vpop.eup %11622  ;;  %11640 = vrcp.f32 %v8399_v11  ;;  %v8400_v57 = vadd.f32 1.0, %v11621_v20  ;;  %v9763_v0 = vpop.f32.mrb[217].mxu0  ;;  %v10113_v8 = vadd.f32 %v7687_v13, %v13177_v7  ;;  %v9441_v52 = vmul.f32 -1.442695, %v10112_v39 }
 0xce9   :  { %11642 = vrcp.f32 %v8401_v63  ;;  %v8402_v55 = vadd.f32 1.0, %v11623_v38  ;;  %v9764_v60 = vadd.f32 %v9763_v0, %v9762_v49  ;;  %v7689_v25 = vpop.f32.mrb[202].mxu1  ;;  %v9765_v31 = vpop.f32.mrb[218].mxu0  ;;  %v7810_v63 = vadd.f32 %v13112_v41, %v13158_v19 }
 0xcea   :  { %v11625_v54 = vpop.eup %11624  ;;  %11644 = vrcp.f32 %v8400_v57  ;;  %v10114_v47 = vadd.f32 %v7689_v25, %v13172_v4  ;;  %v7691_v18 = vpop.f32.mrb[203].mxu1  ;;  %v9442_v15 = vmul.f32 -1.442695, %v10113_v8 }
 0xceb   :  { %v9766_v3 = vpop.f32.mrb[219].mxu0  ;;  %v11627_v12 = vpop.eup %11626  ;;  %8721 = vst [vmem:[#allocation14 + $0x2d8] sm:$0xff] %v11625_v54  ;;  %11646 = vrcp.f32 %v8402_v55  ;;  %v7896_v10 = vadd.f32 %v9764_v60, %v7799_v14  ;;  %v10115_v33 = vadd.f32 %v7691_v18, %v13177_v7 }
 0xcec   :  { %v11629_v48 = vpop.eup %11628  ;;  %8723 = vst [vmem:[#allocation14 + $0x2e8] sm:$0xff] %v11627_v12  ;;  %11648 = vpow2.f32 %v9441_v52  ;;  %v9448_v23 = vmul.f32 -1.442695, %v10114_v47  ;;  %v9767_v46 = vadd.f32 %v9766_v3, %v9765_v31 }
 0xced   :  { %v11631_v32 = vpop.eup %11630  ;;  %8722 = vst [vmem:[#allocation14 + $0x2e0] sm:$0xff] %v11629_v48  ;;  %11650 = vpow2.f32 %v9442_v15  ;;  %v9443_v1 = vmul.f32 -1.442695, %v7896_v10  ;;  %v9449_v17 = vmul.f32 -1.442695, %v10115_v33  ;;  %v7695_v16 = vpop.f32.mrb[204].mxu1 }
 0xcee   :  { %v11633_v53 = vpop.eup %11632  ;;  %8724 = vst [vmem:[#allocation14 + $0x2f0] sm:$0xff] %v11631_v32  ;;  %11652 = vpow2.f32 %v9448_v23  ;;  %v7899_v30 = vadd.f32 %v9767_v46, %v7802_v37  ;;  %v9768_v59 = vpop.f32.mrb[220].mxu0  ;;  %v10116_v56 = vadd.f32 %v7695_v16, %v13172_v4  ;;  %v7815_v23 = vadd.f32 %v13119_v2, %v13158_v19 }
 0xcef   :  { %v11635_v21 = vpop.eup %11634  ;;  %8728 = vst [vmem:[#allocation14 + $0x310] sm:$0xff] %v11633_v53  ;;  %11654 = vpow2.f32 %v9443_v1  ;;  %v7697_v62 = vpop.f32.mrb[205].mxu1 }
 0xcf0   :  { %v11637_v42 = vpop.eup %11636  ;;  %8730 = vst [vmem:[#allocation14 + $0x320] sm:$0xff] %v11635_v21  ;;  %11656 = vpow2.f32 %v9449_v17  ;;  %v9450_v61 = vmul.f32 -1.442695, %v7899_v30  ;;  %v9769_v40 = vpop.f32.mrb[221].mxu0  ;;  %v10117_v35 = vadd.f32 %v7697_v62, %v13177_v7  ;;  %v9455_v28 = vmul.f32 -1.442695, %v10116_v56 }
 0xcf1   :  { %v11639_v50 = vpop.eup %11638  ;;  %8729 = vst [vmem:[#allocation14 + $0x318] sm:$0xff] %v11637_v42  ;;  %v9770_v34 = vadd.f32 %v9769_v40, %v9768_v59  ;;  %v7699_v9 = vpop.f32.mrb[206].mxu1  ;;  %v7818_v62 = vadd.f32 %v13123_v45, %v13158_v19 }
 0xcf2   :  { %v9771_v11 = vpop.f32.mrb[222].mxu0  ;;  %v11641_v20 = vpop.eup %11640  ;;  %8731 = vst [vmem:[#allocation14 + $0x328] sm:$0xff] %v11639_v50  ;;  %11658 = vpow2.f32 %v9450_v61  ;;  %v10118_v49 = vadd.f32 %v7699_v9, %v13172_v4  ;;  %v9456_v39 = vmul.f32 -1.442695, %v10117_v35 }
 0xcf3   :  { %v7701_v38 = vpop.f32.mrb[207].mxu1  ;;  %v9772_v57 = vpop.f32.mrb[223].mxu0  ;;  %8735 = vst [vmem:[#allocation14 + $0x348] sm:$0xff] %v11641_v20  ;;  %v7904_v36 = vadd.f32 %v9770_v34, %v7807_v6  ;;  %11660 = vpow2.f32 %v9455_v28 }
 0xcf4   :  { %v11643_v14 = vpop.eup %11642  ;;  %v10119_v13 = vadd.f32 %v7701_v38, %v13177_v7  ;;  %v9773_v0 = vadd.f32 %v9772_v57, %v9771_v11  ;;  %v9462_v8 = vmul.f32 -1.442695, %v10118_v49  ;;  %11662 = vpow2.f32 %v9456_v39 }
 0xcf5   :  { %v11645_v55 = vpop.eup %11644  ;;  %8737 = vst [vmem:[#allocation14 + $0x358] sm:$0xff] %v11643_v14  ;;  %v9457_v41 = vmul.f32 -1.442695, %v7904_v36  ;;  %v7705_v18 = vpop.f32.mrb[208].mxu1  ;;  %v7823_v49 = vadd.f32 %v13131_v24, %v13158_v19 }
 0xcf6   :  { %v11647_v60 = vpop.eup %11646  ;;  %8736 = vst [vmem:[#allocation14 + $0x350] sm:$0xff] %v11645_v55  ;;  %v9463_v25 = vmul.f32 -1.442695, %v10119_v13  ;;  %v7907_v31 = vadd.f32 %v9773_v0, %v7810_v63  ;;  %11664 = vpow2.f32 %v9462_v8  ;;  %v9774_v3 = vpop.f32.mrb[224].mxu0  ;;  %v10120_v10 = vadd.f32 %v7705_v18, %v13172_v4 }
 0xcf7   :  { %v11649_v54 = vpop.eup %11648  ;;  %8738 = vst [vmem:[#allocation14 + $0x360] sm:$0xff] %v11647_v60  ;;  %11666 = vpow2.f32 %v9457_v41  ;;  %v7707_v33 = vpop.f32.mrb[209].mxu1  ;;  %v7826_v41 = vadd.f32 %v13133_v5, %v13158_v19 }
 0xcf8   :  { %v11651_v52 = vpop.eup %11650  ;;  %v8298_v47 = vadd.f32 1.0, %v11649_v54  ;;  %11668 = vpow2.f32 %v9463_v25  ;;  %v9775_v48 = vpop.f32.mrb[225].mxu0  ;;  %v9464_v21 = vmul.f32 -1.442695, %v7907_v31  ;;  %v9469_v2 = vmul.f32 -1.442695, %v10120_v10 }
 0xcf9   :  { %v11653_v12 = vpop.eup %11652  ;;  %v8299_v15 = vadd.f32 1.0, %v11651_v52  ;;  %v9776_v32 = vadd.f32 %v9775_v48, %v9774_v3  ;;  %v7709_v1 = vpop.f32.mrb[210].mxu1  ;;  %v10121_v35 = vadd.f32 %v7707_v33, %v13177_v7 }
 0xcfa   :  { %v11655_v37 = vpop.eup %11654  ;;  %11670 = vrcp.f32 %v8298_v47  ;;  %v8305_v46 = vadd.f32 1.0, %v11653_v12  ;;  %v9777_v17 = vpop.f32.mrb[226].mxu0  ;;  %v10122_v38 = vadd.f32 %v7709_v1, %v13172_v4 }
 0xcfb   :  { %v11657_v53 = vpop.eup %11656  ;;  %11672 = vrcp.f32 %v8299_v15  ;;  %v8300_v30 = vadd.f32 1.0, %v11655_v37  ;;  %v7711_v16 = vpop.f32.mrb[211].mxu1  ;;  %v7912_v61 = vadd.f32 %v9776_v32, %v7815_v23  ;;  %v9470_v25 = vmul.f32 -1.442695, %v10121_v35 }
 0xcfc   :  { %v9778_v59 = vpop.f32.mrb[227].mxu0  ;;  %11674 = vrcp.f32 %v8305_v46  ;;  %v8306_v42 = vadd.f32 1.0, %v11657_v53  ;;  %v11659_v56 = vpop.eup %11658  ;;  %v10123_v13 = vadd.f32 %v7711_v16, %v13177_v7  ;;  %v9476_v15 = vmul.f32 -1.442695, %v10122_v38 }
 0xcfd   :  { %11676 = vrcp.f32 %v8300_v30  ;;  %v9779_v40 = vadd.f32 %v9778_v59, %v9777_v17  ;;  %v8307_v50 = vadd.f32 1.0, %v11659_v56  ;;  %v11661_v6 = vpop.eup %11660  ;;  %v7715_v20 = vpop.f32.mrb[212].mxu1  ;;  %v9471_v18 = vmul.f32 -1.442695, %v7912_v61 }
 0xcfe   :  { %11678 = vrcp.f32 %v8306_v42  ;;  %v11663_v9 = vpop.eup %11662  ;;  %v8312_v11 = vadd.f32 1.0, %v11661_v6  ;;  %v9780_v63 = vpop.f32.mrb[228].mxu0  ;;  %v10124_v10 = vadd.f32 %v7715_v20, %v13172_v4  ;;  %v9477_v5 = vmul.f32 -1.442695, %v10123_v13 }
 0xcff   :  { %11680 = vpow2.f32 %v9464_v21  ;;  %v7915_v34 = vadd.f32 %v9779_v40, %v7818_v62  ;;  %v8313_v45 = vadd.f32 1.0, %v11663_v9  ;;  %v7717_v57 = vpop.f32.mrb[213].mxu1  ;;  %v9781_v14 = vpop.f32.mrb[229].mxu0  ;;  %v7831_v21 = vadd.f32 %v13135_v58, %v13158_v19 }
 0xd00   :  { %11682 = vrcp.f32 %v8307_v50  ;;  %v11665_v28 = vpop.eup %11664  ;;  %v9782_v0 = vadd.f32 %v9781_v14, %v9780_v63  ;;  %v7719_v55 = vpop.f32.mrb[214].mxu1  ;;  %v10125_v46 = vadd.f32 %v7717_v57, %v13177_v7  ;;  %v9483_v16 = vmul.f32 -1.442695, %v10124_v10 }
 0xd01   :  { %11684 = vpow2.f32 %v9469_v2  ;;  %v11667_v39 = vpop.eup %11666  ;;  %v8319_v36 = vadd.f32 1.0, %v11665_v28  ;;  %v9783_v8 = vpop.f32.mrb[230].mxu0  ;;  %v9478_v23 = vmul.f32 -1.442695, %v7915_v34  ;;  %v10126_v59 = vadd.f32 %v7719_v55, %v13172_v4 }
 0xd02   :  { %11686 = vrcp.f32 %v8312_v11  ;;  %v11669_v60 = vpop.eup %11668  ;;  %v8314_v24 = vadd.f32 1.0, %v11667_v39  ;;  %v7721_v31 = vpop.f32.mrb[215].mxu1  ;;  %v7920_v3 = vadd.f32 %v9782_v0, %v7823_v49  ;;  %v9484_v58 = vmul.f32 -1.442695, %v10125_v46 }
 0xd03   :  { %11688 = vrcp.f32 %v8313_v45  ;;  %v9784_v54 = vpop.f32.mrb[231].mxu0  ;;  %v8320_v47 = vadd.f32 1.0, %v11669_v60  ;;  %v10127_v2 = vadd.f32 %v7721_v31, %v13177_v7  ;;  %v7834_v45 = vadd.f32 %v13137_v27, %v13158_v19 }
 0xd04   :  { %v11671_v52 = vpop.eup %11670  ;;  %11690 = vrcp.f32 %v8319_v36  ;;  %v9785_v33 = vadd.f32 %v9784_v54, %v9783_v8  ;;  %v9485_v63 = vmul.f32 -1.442695, %v7920_v3  ;;  %v9490_v38 = vmul.f32 -1.442695, %v10126_v59 }
 0xd05   :  { %v11673_v12 = vpop.eup %11672  ;;  %8634 = vst [vmem:[#allocation14 + $0x20] sm:$0xff] %v11671_v52  ;;  %11692 = vrcp.f32 %v8314_v24  ;;  %v7725_v17 = vpop.f32.mrb[216].mxu1  ;;  %v9491_v39 = vmul.f32 -1.442695, %v10127_v2  ;;  %v7839_v54 = vadd.f32 %v13142_v29, %v13158_v19 }
 0xd06   :  { %v11675_v48 = vpop.eup %11674  ;;  %8635 = vst [vmem:[#allocation14 + $0x28] sm:$0xff] %v11673_v12  ;;  %11694 = vrcp.f32 %v8320_v47  ;;  %v7923_v32 = vadd.f32 %v9785_v33, %v7826_v41  ;;  %v9786_v53 = vpop.f32.mrb[232].mxu0  ;;  %v10128_v41 = vadd.f32 %v7725_v17, %v13172_v4  ;;  %v7842_v17 = vadd.f32 %v13146_v26, %v13158_v19 }
 0xd07   :  { %v11677_v37 = vpop.eup %11676  ;;  %8641 = vst [vmem:[#allocation14 + $0x58] sm:$0xff] %v11675_v48  ;;  %11696 = vpow2.f32 %v9470_v25  ;;  %v7727_v42 = vpop.f32.mrb[217].mxu1 }
 0xd08   :  { %v11679_v1 = vpop.eup %11678  ;;  %8636 = vst [vmem:[#allocation14 + $0x30] sm:$0xff] %v11677_v37  ;;  %11698 = vpow2.f32 %v9471_v18  ;;  %v9787_v61 = vpop.f32.mrb[233].mxu0  ;;  %v9492_v13 = vmul.f32 -1.442695, %v7923_v32  ;;  %v10129_v10 = vadd.f32 %v7727_v42, %v13177_v7  ;;  %v9497_v32 = vmul.f32 -1.442695, %v10128_v41 }
 0xd09   :  { %v11681_v30 = vpop.eup %11680  ;;  %8642 = vst [vmem:[#allocation14 + $0x60] sm:$0xff] %v11679_v1  ;;  %11700 = vpow2.f32 %v9476_v15  ;;  %v9788_v40 = vadd.f32 %v9787_v61, %v9786_v53  ;;  %v13213_v50 = vpop.f32.mrb[218].mxu1 }
 0xd0a   :  { %v11683_v56 = vpop.eup %11682  ;;  %v8321_v62 = vadd.f32 1.0, %v11681_v30  ;;  %11702 = vpow2.f32 %v9477_v5  ;;  %v9789_v6 = vpop.f32.mrb[234].mxu0  ;;  %v10130_v26 = vadd.f32 %v13213_v50, %v13172_v4 }
 0xd0b   :  { %v11685_v35 = vpop.eup %11684  ;;  %8643 = vst [vmem:[#allocation14 + $0x68] sm:$0xff] %v11683_v56  ;;  %11704 = vpow2.f32 %v9478_v23  ;;  %v13215_v34 = vpop.f32.mrb[219].mxu1  ;;  %v13217_v28 = vadd.f32 %v9788_v40, %v7831_v21 }
 0xd0c   :  { %v9790_v9 = vpop.f32.mrb[235].mxu0  ;;  %v11687_v11 = vpop.eup %11686  ;;  %11706 = vrcp.f32 %v8321_v62  ;;  %v8326_v20 = vadd.f32 1.0, %v11685_v35 }
 0xd0d   :  { %v11689_v49 = vpop.eup %11688  ;;  %8648 = vst [vmem:[#allocation14 + $0x90] sm:$0xff] %v11687_v11  ;;  %11708 = vpow2.f32 %v9483_v16  ;;  %v9791_v57 = vadd.f32 %v9790_v9, %v9789_v6  ;;  %v13223_v8 = vpop.f32.mrb[220].mxu1  ;;  %v9498_v16 = vmul.f32 -1.442695, %v10129_v10  ;;  %v10131_v9 = vadd.f32 %v13215_v34, %v13177_v7 }
 0xd0e   :  { %v11691_v14 = vpop.eup %11690  ;;  %8649 = vst [vmem:[#allocation14 + $0x98] sm:$0xff] %v11689_v49  ;;  %11710 = vrcp.f32 %v8326_v20  ;;  %v9792_v27 = vpop.f32.mrb[236].mxu0  ;;  %v9499_v50 = vmul.f32 -1.442695, %v13217_v28 }
 0xd0f   :  { %v11693_v36 = vpop.eup %11692  ;;  %8655 = vst [vmem:[#allocation14 + $0xc8] sm:$0xff] %v11691_v14  ;;  %11712 = vpow2.f32 %v9484_v58  ;;  %v13221_v0 = vadd.f32 %v9791_v57, %v7834_v45  ;;  %v13226_v24 = vpop.f32.mrb[221].mxu1 }
 0xd10   :  { %v11695_v55 = vpop.eup %11694  ;;  %8650 = vst [vmem:[#allocation14 + $0xa0] sm:$0xff] %v11693_v36  ;;  %11714 = vpow2.f32 %v9485_v63  ;;  %v9793_v25 = vpop.f32.mrb[237].mxu0 }
 0xd11   :  { %v11697_v60 = vpop.eup %11696  ;;  %8656 = vst [vmem:[#allocation14 + $0xd0] sm:$0xff] %v11695_v55  ;;  %11716 = vpow2.f32 %v9490_v38  ;;  %v9794_v47 = vadd.f32 %v9793_v25, %v9792_v27  ;;  %v13230_v18 = vpop.f32.mrb[222].mxu1 }
 0xd12   :  { %v11699_v31 = vpop.eup %11698  ;;  %v8327_v52 = vadd.f32 1.0, %v11697_v60  ;;  %11718 = vpow2.f32 %v9491_v39  ;;  %v9795_v3 = vpop.f32.mrb[238].mxu0 }
 0xd13   :  { %v11701_v12 = vpop.eup %11700  ;;  %v8328_v15 = vadd.f32 1.0, %v11699_v31  ;;  %11720 = vpow2.f32 %v9492_v13  ;;  %v13233_v33 = vpop.f32.mrb[223].mxu1  ;;  %v13235_v23 = vadd.f32 %v9794_v47, %v7839_v54  ;;  %v10132_v13 = vadd.f32 %v13223_v8, %v13172_v4 }
 0xd14   :  { %v9796_v48 = vpop.f32.mrb[239].mxu0  ;;  %v11703_v5 = vpop.eup %11702  ;;  %11722 = vrcp.f32 %v8327_v52  ;;  %v8333_v37 = vadd.f32 1.0, %v11701_v12  ;;  %v9504_v31 = vmul.f32 -1.442695, %v10130_v26  ;;  %v9505_v8 = vmul.f32 -1.442695, %v10131_v9 }
 0xd15   :  { %v11705_v29 = vpop.eup %11704  ;;  %11724 = vrcp.f32 %v8328_v15  ;;  %v8334_v46 = vadd.f32 1.0, %v11703_v5  ;;  %v9797_v30 = vadd.f32 %v9796_v48, %v9795_v3  ;;  %v7745_v56 = vpop.f32.mrb[224].mxu1  ;;  %v10133_v47 = vadd.f32 %v13226_v24, %v13177_v7 }
 0xd16   :  { %v11707_v1 = vpop.eup %11706  ;;  %11726 = vrcp.f32 %v8333_v37  ;;  %v8335_v53 = vadd.f32 1.0, %v11705_v29  ;;  %v9798_v62 = vpop.f32.mrb[240].mxu0  ;;  %v13244_v19 = vadd.f32 %v7745_v56, %v13172_v4  ;;  %v9511_v5 = vmul.f32 -1.442695, %v10132_v13 }
 0xd17   :  { %v11709_v21 = vpop.eup %11708  ;;  %8657 = vst [vmem:[#allocation14 + $0xd8] sm:$0xff] %v11707_v1  ;;  %11728 = vrcp.f32 %v8334_v46  ;;  %v13239_v61 = vadd.f32 %v9797_v30, %v7842_v17  ;;  %v7747_v40 = vpop.f32.mrb[225].mxu1  ;;  %v9512_v30 = vmul.f32 -1.442695, %v10133_v47  ;;  %v9513_v26 = vmul.f32 -1.442695, %v13235_v23 }
 0xd18   :  { %v11711_v59 = vpop.eup %11710  ;;  %11730 = vrcp.f32 %v8335_v53  ;;  %v8340_v42 = vadd.f32 1.0, %v11709_v21  ;;  %v9799_v6 = vpop.f32.mrb[241].mxu0  ;;  %v13249_v11 = vadd.f32 %v7747_v40, %v13177_v7  ;;  %v10135_v21 = vadd.f32 %v13233_v33, %v13177_v7 }
 0xd19   :  { %v11713_v2 = vpop.eup %11712  ;;  %8662 = vst [vmem:[#allocation14 + $0x100] sm:$0xff] %v11711_v59  ;;  %11732 = vpow2.f32 %v9497_v32  ;;  %v7749_v20 = vpop.f32.mrb[226].mxu1  ;;  %v9800_v38 = vadd.f32 %v9799_v6, %v9798_v62  ;;  %v9520_v23 = vmul.f32 -1.442695, %v13239_v61 }
 0xd1a   :  { %v11715_v35 = vpop.eup %11714  ;;  %11734 = vrcp.f32 %v8340_v42  ;;  %v8341_v58 = vadd.f32 1.0, %v11713_v2  ;;  %v9801_v63 = vpop.f32.mrb[242].mxu0  ;;  %v13255_v34 = vadd.f32 %v7749_v20, %v13172_v4  ;;  %v9519_v9 = vmul.f32 -1.442695, %v10135_v21 }
 0xd1b   :  { %v11717_v49 = vpop.eup %11716  ;;  %v8342_v45 = vadd.f32 1.0, %v11715_v35  ;;  %11736 = vpow2.f32 %v9498_v16  ;;  %v7751_v57 = vpop.f32.mrb[227].mxu1  ;;  %v13258_v60 = vadd.f32 %v9800_v38, %v13162_v51  ;;  %v9506_v51 = vmul.f32 -1.442695, %v13221_v0 }
 0xd1c   :  { %v9802_v14 = vpop.f32.mrb[243].mxu0  ;;  %v11719_v39 = vpop.eup %11718  ;;  %11738 = vrcp.f32 %v8341_v58  ;;  %v8347_v36 = vadd.f32 1.0, %v11717_v49  ;;  %v13261_v28 = vadd.f32 %v7751_v57, %v13177_v7  ;;  %v10134_v0 = vadd.f32 %v13230_v18, %v13172_v4 }
 0xd1d   :  { %v11721_v55 = vpop.eup %11720  ;;  %11740 = vrcp.f32 %v8342_v45  ;;  %v8348_v27 = vadd.f32 1.0, %v11719_v39  ;;  %v9803_v54 = vadd.f32 %v9802_v14, %v9801_v63  ;;  %v7755_v15 = vpop.f32.mrb[228].mxu1 }
 0xd1e   :  { %v11723_v41 = vpop.eup %11722  ;;  %11742 = vrcp.f32 %v8347_v36  ;;  %v8349_v25 = vadd.f32 1.0, %v11721_v55  ;;  %v9804_v10 = vpop.f32.mrb[244].mxu0  ;;  %v13270_v37 = vadd.f32 %v7755_v15, %v13172_v4  ;;  %v9518_v35 = vmul.f32 -1.442695, %v10134_v0 }
 0xd1f   :  { %v11725_v52 = vpop.eup %11724  ;;  %8663 = vst [vmem:[#allocation14 + $0x108] sm:$0xff] %v11723_v41  ;;  %11744 = vrcp.f32 %v8348_v27  ;;  %v13267_v12 = vadd.f32 %v9803_v54, %v13165_v44  ;;  %v7757_v29 = vpop.f32.mrb[229].mxu1  ;;  %v9527_v41 = vmul.f32 -1.442695, %v13258_v60  ;;  %v9532_v60 = vmul.f32 -1.442695, %v13255_v34 }
 0xd20   :  { %v11727_v3 = vpop.eup %11726  ;;  %8664 = vst [vmem:[#allocation14 + $0x110] sm:$0xff] %v11725_v52  ;;  %11746 = vrcp.f32 %v8349_v25  ;;  %v9805_v46 = vpop.f32.mrb[245].mxu0  ;;  %v13275_v44 = vadd.f32 %v7757_v29, %v13177_v7  ;;  %v9533_v29 = vmul.f32 -1.442695, %v13261_v28 }
 0xd21   :  { %v11729_v48 = vpop.eup %11728  ;;  %8669 = vst [vmem:[#allocation14 + $0x138] sm:$0xff] %v11727_v3  ;;  %11748 = vpow2.f32 %v9499_v50  ;;  %v9806_v32 = vadd.f32 %v9805_v46, %v9804_v10  ;;  %v7759_v1 = vpop.f32.mrb[230].mxu1 }
 0xd22   :  { %v11731_v24 = vpop.eup %11730  ;;  %8670 = vst [vmem:[#allocation14 + $0x140] sm:$0xff] %v11729_v48  ;;  %11750 = vpow2.f32 %v9504_v31  ;;  %v9807_v17 = vpop.f32.mrb[246].mxu0  ;;  %v13280_v16 = vadd.f32 %v7759_v1, %v13172_v4  ;;  %v9540_v34 = vmul.f32 -1.442695, %v13275_v44 }
 0xd23   :  { %v11733_v53 = vpop.eup %11732  ;;  %8671 = vst [vmem:[#allocation14 + $0x148] sm:$0xff] %v11731_v24  ;;  %11752 = vpow2.f32 %v9505_v8  ;;  %v7761_v59 = vpop.f32.mrb[231].mxu1  ;;  %v13283_v62 = vadd.f32 %v9806_v32, %v13170_v22  ;;  %v9534_v24 = vmul.f32 -1.442695, %v13267_v12  ;;  %v9539_v32 = vmul.f32 -1.442695, %v13270_v37 }
 0xd24   :  { %v9808_v42 = vpop.f32.mrb[247].mxu0  ;;  %v11735_v56 = vpop.eup %11734  ;;  %v8354_v18 = vadd.f32 1.0, %v11733_v53  ;;  %11754 = vpow2.f32 %v9506_v51  ;;  %v13287_v40 = vadd.f32 %v7761_v59, %v13177_v7  ;;  %v9525_v7 = vmul.f32 -1.442695, %v13244_v19 }
 0xd25   :  { %v11737_v2 = vpop.eup %11736  ;;  %8676 = vst [vmem:[#allocation14 + $0x170] sm:$0xff] %v11735_v56  ;;  %11756 = vpow2.f32 %v9511_v5  ;;  %v9809_v33 = vadd.f32 %v9808_v42, %v9807_v17  ;;  %v9526_v19 = vmul.f32 -1.442695, %v13249_v11  ;;  %v9541_v28 = vmul.f32 -1.442695, %v13283_v62 }
 0xd26   :  { %v11739_v6 = vpop.eup %11738  ;;  %11758 = vrcp.f32 %v8354_v18  ;;  %v8355_v4 = vadd.f32 1.0, %v11737_v2  ;;  %v9546_v37 = vmul.f32 -1.442695, %v13280_v16  ;;  %v9547_v44 = vmul.f32 -1.442695, %v13287_v40 }
 0xd27   :  { %v11741_v58 = vpop.eup %11740  ;;  %8677 = vst [vmem:[#allocation14 + $0x178] sm:$0xff] %v11739_v6  ;;  %11760 = vpow2.f32 %v9512_v30  ;;  %v13290_v22 = vadd.f32 %v9809_v33, %v13175_v43 }
 0xd28   :  { %v11743_v20 = vpop.eup %11742  ;;  %8678 = vst [vmem:[#allocation14 + $0x180] sm:$0xff] %v11741_v58  ;;  %11762 = vrcp.f32 %v8355_v4 }
 0xd29   :  { %v11745_v63 = vpop.eup %11744  ;;  %8683 = vst [vmem:[#allocation14 + $0x1a8] sm:$0xff] %v11743_v20  ;;  %11764 = vpow2.f32 %v9513_v26  ;;  %v9548_v18 = vmul.f32 -1.442695, %v13290_v22 }
 0xd2a   :  { %v11747_v49 = vpop.eup %11746  ;;  %8684 = vst [vmem:[#allocation14 + $0x1b0] sm:$0xff] %v11745_v63  ;;  %11766 = vpow2.f32 %v9518_v35 }
 0xd2b   :  { %v11749_v45 = vpop.eup %11748  ;;  %8685 = vst [vmem:[#allocation14 + $0x1b8] sm:$0xff] %v11747_v49  ;;  %11768 = vpow2.f32 %v9519_v9 }
 0xd2c   :  { %v11751_v50 = vpop.eup %11750  ;;  %v8356_v38 = vadd.f32 1.0, %v11749_v45  ;;  %11770 = vpow2.f32 %v9520_v23 }
 0xd2d   :  { %v11753_v43 = vpop.eup %11752  ;;  %v8361_v57 = vadd.f32 1.0, %v11751_v50  ;;  %11772 = vpow2.f32 %v9525_v7 }
 0xd2e   :  { %v11755_v14 = vpop.eup %11754  ;;  %11774 = vrcp.f32 %v8356_v38  ;;  %v8362_v61 = vadd.f32 1.0, %v11753_v43 }
 0xd2f   :  { %v11757_v39 = vpop.eup %11756  ;;  %11776 = vrcp.f32 %v8361_v57  ;;  %v8363_v36 = vadd.f32 1.0, %v11755_v14 }
 0xd30   :  { %v11759_v13 = vpop.eup %11758  ;;  %11778 = vrcp.f32 %v8362_v61  ;;  %v8368_v55 = vadd.f32 1.0, %v11757_v39 }
 0xd31   :  { %v11761_v27 = vpop.eup %11760  ;;  %8690 = vst [vmem:[#allocation14 + $0x1e0] sm:$0xff] %v11759_v13  ;;  %11780 = vrcp.f32 %v8363_v36 }
 0xd32   :  { %v11763_v25 = vpop.eup %11762  ;;  %11782 = vrcp.f32 %v8368_v55  ;;  %v8369_v31 = vadd.f32 1.0, %v11761_v27 }
 0xd33   :  { %v11765_v54 = vpop.eup %11764  ;;  %8691 = vst [vmem:[#allocation14 + $0x1e8] sm:$0xff] %v11763_v25  ;;  %11784 = vpow2.f32 %v9526_v19 }
 0xd34   :  { %v11767_v52 = vpop.eup %11766  ;;  %11786 = vrcp.f32 %v8369_v31  ;;  %v8370_v8 = vadd.f32 1.0, %v11765_v54 }
 0xd35   :  { %v11769_v47 = vpop.eup %11768  ;;  %v8375_v3 = vadd.f32 1.0, %v11767_v52  ;;  %11788 = vpow2.f32 %v9527_v41 }
 0xd36   :  { %v11771_v11 = vpop.eup %11770  ;;  %11790 = vrcp.f32 %v8370_v8  ;;  %v8376_v51 = vadd.f32 1.0, %v11769_v47 }
 0xd37   :  { %v11773_v15 = vpop.eup %11772  ;;  %11792 = vrcp.f32 %v8375_v3  ;;  %v8377_v10 = vadd.f32 1.0, %v11771_v11 }
 0xd38   :  { %v11775_v48 = vpop.eup %11774  ;;  %11794 = vrcp.f32 %v8376_v51  ;;  %v8382_v5 = vadd.f32 1.0, %v11773_v15 }
 0xd39   :  { %v11777_v46 = vpop.eup %11776  ;;  %8692 = vst [vmem:[#allocation14 + $0x1f0] sm:$0xff] %v11775_v48  ;;  %11796 = vrcp.f32 %v8377_v10 }
 0xd3a   :  { %v11779_v0 = vpop.eup %11778  ;;  %8697 = vst [vmem:[#allocation14 + $0x218] sm:$0xff] %v11777_v46  ;;  %11798 = vrcp.f32 %v8382_v5 }
 0xd3b   :  { %v11781_v1 = vpop.eup %11780  ;;  %8698 = vst [vmem:[#allocation14 + $0x220] sm:$0xff] %v11779_v0  ;;  %11800 = vpow2.f32 %v9532_v60 }
 0xd3c   :  { %v11783_v17 = vpop.eup %11782  ;;  %8699 = vst [vmem:[#allocation14 + $0x228] sm:$0xff] %v11781_v1  ;;  %11802 = vpow2.f32 %v9533_v29 }
 0xd3d   :  { %v11785_v53 = vpop.eup %11784  ;;  %8704 = vst [vmem:[#allocation14 + $0x250] sm:$0xff] %v11783_v17  ;;  %11804 = vpow2.f32 %v9534_v24 }
 0xd3e   :  { %v11787_v30 = vpop.eup %11786  ;;  %v8383_v12 = vadd.f32 1.0, %v11785_v53  ;;  %11806 = vpow2.f32 %v9539_v32 }
 0xd3f   :  { %v11789_v21 = vpop.eup %11788  ;;  %8705 = vst [vmem:[#allocation14 + $0x258] sm:$0xff] %v11787_v30  ;;  %11808 = vpow2.f32 %v9540_v34 }
 0xd40   :  { %v11791_v59 = vpop.eup %11790  ;;  %11810 = vrcp.f32 %v8383_v12  ;;  %v8384_v42 = vadd.f32 1.0, %v11789_v21 }
 0xd41   :  { %v11793_v56 = vpop.eup %11792  ;;  %8706 = vst [vmem:[#allocation14 + $0x260] sm:$0xff] %v11791_v59  ;;  %11812 = vpow2.f32 %v9541_v28 }
 0xd42   :  { %v11795_v2 = vpop.eup %11794  ;;  %8711 = vst [vmem:[#allocation14 + $0x288] sm:$0xff] %v11793_v56  ;;  %11814 = vrcp.f32 %v8384_v42 }
 0xd43   :  { %v11797_v62 = vpop.eup %11796  ;;  %8712 = vst [vmem:[#allocation14 + $0x290] sm:$0xff] %v11795_v2  ;;  %11816 = vpow2.f32 %v9546_v37 }
 0xd44   :  { %v11799_v26 = vpop.eup %11798  ;;  %8713 = vst [vmem:[#allocation14 + $0x298] sm:$0xff] %v11797_v62  ;;  %11818 = vpow2.f32 %v9547_v44 }
 0xd45   :  { %v11801_v16 = vpop.eup %11800  ;;  %8718 = vst [vmem:[#allocation14 + $0x2c0] sm:$0xff] %v11799_v26  ;;  %11820 = vpow2.f32 %v9548_v18 }
 0xd46   :  { %v11803_v33 = vpop.eup %11802  ;;  %v8389_v6 = vadd.f32 1.0, %v11801_v16 }
 0xd47   :  { %v11805_v40 = vpop.eup %11804  ;;  %v8390_v4 = vadd.f32 1.0, %v11803_v33 }
 0xd48   :  { %v11807_v35 = vpop.eup %11806  ;;  %11822 = vrcp.f32 %v8389_v6  ;;  %v8391_v58 = vadd.f32 1.0, %v11805_v40 }
 0xd49   :  { %v11809_v9 = vpop.eup %11808  ;;  %11824 = vrcp.f32 %v8390_v4  ;;  %v8396_v22 = vadd.f32 1.0, %v11807_v35 }
 0xd4a   :  { %v11811_v20 = vpop.eup %11810  ;;  %11826 = vrcp.f32 %v8391_v58  ;;  %v8397_v23 = vadd.f32 1.0, %v11809_v9 }
 0xd4b   :  { %v11813_v63 = vpop.eup %11812  ;;  %8719 = vst [vmem:[#allocation14 + $0x2c8] sm:$0xff] %v11811_v20  ;;  %11828 = vrcp.f32 %v8396_v22 }
 0xd4c   :  { %v11815_v7 = vpop.eup %11814  ;;  %11830 = vrcp.f32 %v8397_v23  ;;  %v8398_v49 = vadd.f32 1.0, %v11813_v63 }
 0xd4d   :  { %v11817_v45 = vpop.eup %11816  ;;  %8720 = vst [vmem:[#allocation14 + $0x2d0] sm:$0xff] %v11815_v7 }
 0xd4e   :  { %v11819_v50 = vpop.eup %11818  ;;  %11832 = vrcp.f32 %v8398_v49  ;;  %v8403_v38 = vadd.f32 1.0, %v11817_v45 }
 0xd4f   :  { %v11821_v43 = vpop.eup %11820  ;;  %v8404_v57 = vadd.f32 1.0, %v11819_v50 }
 0xd50   :  { %11834 = vrcp.f32 %v8403_v38  ;;  %v8405_v14 = vadd.f32 1.0, %v11821_v43 }
 0xd51   :  { %11836 = vrcp.f32 %v8404_v57 }
 0xd52   :  { %v11823_v61 = vpop.eup %11822  ;;  %11838 = vrcp.f32 %v8405_v14 }
 0xd53   :  { %v11825_v39 = vpop.eup %11824  ;;  %8725 = vst [vmem:[#allocation14 + $0x2f8] sm:$0xff] %v11823_v61 }
 0xd54   :  { %v11827_v36 = vpop.eup %11826  ;;  %8726 = vst [vmem:[#allocation14 + $0x300] sm:$0xff] %v11825_v39 }
 0xd55   :  { %v11829_v19 = vpop.eup %11828  ;;  %8727 = vst [vmem:[#allocation14 + $0x308] sm:$0xff] %v11827_v36 }
 0xd56   :  { %v11831_v13 = vpop.eup %11830  ;;  %8732 = vst [vmem:[#allocation14 + $0x330] sm:$0xff] %v11829_v19 }
 0xd57   :  { %8733 = vst [vmem:[#allocation14 + $0x338] sm:$0xff] %v11831_v13 }
 0xd58   :  { %v11833_v55 = vpop.eup %11832 }
 0xd59   :  { %8734 = vst [vmem:[#allocation14 + $0x340] sm:$0xff] %v11833_v55 }
 0xd5a   :  { %v11835_v27 = vpop.eup %11834 }
 0xd5b   :  { %v11837_v41 = vpop.eup %11836  ;;  %8739 = vst [vmem:[#allocation14 + $0x368] sm:$0xff] %v11835_v27 }
 0xd5c   :  { %v11839_v25 = vpop.eup %11838  ;;  %8740 = vst [vmem:[#allocation14 + $0x370] sm:$0xff] %v11837_v41 }
 0xd5d   :  { %8741 = vst [vmem:[#allocation14 + $0x378] sm:$0xff] %v11839_v25 }
 0xd5e   :  { %12006 = shalt.err (!%p12003_p4)
}
 0xd5f   :  { %s12007_s22 = scalar_lea.hbm %s13334_s14, 14336 }
 0xd60   :  { %p12008_p5 = scmp.ne.s32.totalorder %s13334_s14, %s12007_s22  ;;  %p12011_p6 = scmp.lt.u32.totalorder %s12007_s22, %s13334_s14 }
 0xd62   :  { %p12013_p7 = pnand %p12011_p6, %p12008_p5 }
 0xd64   :  { %12016 = shalt.err (!%p12013_p7)
}
 0xd65   :  { %8753 = dma.vmem_to_hbm [thread:$0]  %s8748_s6, 14336, %s13334_s14, [#allocation4], %s12035_s11, %s12035_s11, %s12036_s24  }
 0xd66   :  { %12025 = dma.done.wait [#allocation4], 14336  }
 0xd67   :  { %12026 = vsyncadd [#allocation4], 4294952960 }
 0xd68   :  { %8757 = vsyncpa [#allocation3], 1 }
 0xd69   :  { %8758 = vsyncpa [#allocation6], 1 }
 0xd6a   :  { %8759 = vsyncpa [#allocation9], 1 }
 0xd6b   :  { %8760 = vsyncpa [#allocation12], 1 }
 0xd6c   :  { %8761 = vsyncpa [#allocation4], 1 }

</bundles_post_ra>
